<compile_context>
chip_gen: v7x
topology: tpu7x:2x2x1
jax: 0.10.0
libtpu: 0.0.40
codegen_flags: <defaults>
</compile_context>

<pallas_src>
import functools

import jax
import jax.numpy as jnp
from jax.experimental import pallas as pl
from jax.experimental.pallas import tpu as pltpu


LN_EPS = 1e-5  # torch.nn.LayerNorm default


def _decoder_layer_kernel(
    x_ref, enc_ref, mask_ref,
    wq1_ref, wk1_ref, wv1_ref, wo1_ref,
    wq2_ref, wk2_ref, wv2_ref, wo2_ref,
    ln_g_ref, ln_b_ref, w1_ref, b1_ref, w2_ref, b2_ref,
    o_ref,
    *, num_heads, head_dim, q_block, approx_recip):
  """One grid step = (batch element b, query tile q).

  Blocks:
    x_ref:    [1, S,  D]   decoder hidden states (whole sequence: self-attn keys/values)
    enc_ref:  [1, Se, D]   encoder output (whole sequence: cross-attn keys/values)
    mask_ref: [1, TQ, 1]   enc_attention_mask rows of this query tile (nonzero => mask row)
    wq/wk/wv: [D, H*Dh], wo: [H*Dh, D]   combined (un-split) projection weights
    ln_g/ln_b:[1, D],  w1: [D, F], b1: [1, F], w2: [F, D], b2: [1, D]
    o_ref:    [1, TQ, D]
  """
  f32 = jnp.float32
  cdt = wq1_ref.dtype                       # MXU-operand dtype (bf16 by default)
  H, Dh, TQ = num_heads, head_dim, q_block
  S = x_ref.shape[1]
  Se = enc_ref.shape[1]

  qi = pl.program_id(1)
  row0 = pl.multiple_of(qi * TQ, TQ)        # first query row of this tile

  x_kv = x_ref[0].astype(f32)                       # [S, D]   self-attn keys/values
  x_q = x_ref[0, pl.ds(row0, TQ), :].astype(f32)    # [TQ, D]  query tile (sliced in VMEM)
  enc = enc_ref[0].astype(f32)                      # [Se, D]
  gamma = ln_g_ref[...].astype(f32)                 # [1, D]
  beta = ln_b_ref[...].astype(f32)                  # [1, D]

  def layer_norm(y):                        # y: [TQ, D] f32
    mu = jnp.mean(y, axis=-1, keepdims=True)
    c = y - mu
    var = jnp.mean(c * c, axis=-1, keepdims=True)
    return c * jax.lax.rsqrt(var + LN_EPS) * gamma + beta

  def split_heads(t):                       # [rows, H*Dh] -> [H, rows, Dh]
    return jnp.swapaxes(t.reshape(t.shape[0], H, Dh), 0, 1)

  def mha(q_in, kv_in, wq_r, wk_r, wv_r, wo_r, bias):
    """q_in: [TQ, D] f32, kv_in: [Skv, D] f32, bias: f32 additive, broadcastable to [TQ, Skv]."""
    # Full-width projections: one MXU call per projection (K = D, N = H*Dh).
    q = jnp.dot(q_in.astype(cdt), wq_r[...], preferred_element_type=cdt)    # [TQ, H*Dh]
    k = jnp.dot(kv_in.astype(cdt), wk_r[...], preferred_element_type=cdt)   # [Skv, H*Dh]
    v = jnp.dot(kv_in.astype(cdt), wv_r[...], preferred_element_type=cdt)   # [Skv, H*Dh]
    qh, kh, vh = split_heads(q), split_heads(k), split_heads(v)             # [H, *, Dh]
    # Scores (no 1/sqrt(d) scaling, exactly as in the reference); f32 accumulation.
    s = jnp.einsum('hqe,hke->hqk', qh, kh, preferred_element_type=f32)      # [H, TQ, Skv]
    s = s + bias[None]                          # additive mask bias (broadcast over heads)
    # Softmax over keys: max-subtract, exp (EUP), reciprocal (EUP).
    m = jnp.max(s, axis=-1, keepdims=True)
    e = jnp.exp(s - m)
    p = (e * pl.reciprocal(jnp.sum(e, axis=-1, keepdims=True),
                           approx=approx_recip)).astype(cdt)
    o_h = jnp.einsum('hqk,hke->hqe', p, vh, preferred_element_type=cdt)     # [H, TQ, Dh]
    # combine_heads + output projection as ONE full-width matmul (K = H*Dh).
    o_flat = jnp.swapaxes(o_h, 0, 1).reshape(TQ, H * Dh)                    # [TQ, H*Dh]
    return jnp.dot(o_flat, wo_r[...], preferred_element_type=f32)           # [TQ, D]

  # ---- additive mask biases, built once per grid step ----
  rows = row0 + jax.lax.broadcasted_iota(jnp.int32, (TQ, S), 0)
  cols = jax.lax.broadcasted_iota(jnp.int32, (TQ, S), 1)
  causal_bias = jnp.where(cols > rows, f32(-1e9), f32(0.0))                 # [TQ, S] triu(1)
  # torch semantics: mask[b, i, j] = enc_attention_mask[b, i]  (masks whole query rows)
  cross_bias = jnp.where(mask_ref[0] != 0, f32(-1e9), f32(0.0))             # [TQ, 1]

  # ---- 1) masked (causal) self-attention + residual + LayerNorm ----
  h1 = layer_norm(x_q + mha(x_q, x_kv, wq1_ref, wk1_ref, wv1_ref, wo1_ref, causal_bias))

  # ---- 2) encoder-decoder cross attention + residual + LayerNorm ----
  h2 = layer_norm(h1 + mha(h1, enc, wq2_ref, wk2_ref, wv2_ref, wo2_ref, cross_bias))

  # ---- 3) position-wise feed-forward + residual + LayerNorm ----
  t = jnp.dot(h2.astype(cdt), w1_ref[...], preferred_element_type=f32)
  t = jnp.maximum(t + b1_ref[...].astype(f32), 0.0)
  ffn = jnp.dot(t.astype(cdt), w2_ref[...], preferred_element_type=f32)
  ffn = ffn + b2_ref[...].astype(f32)
  o_ref[0] = layer_norm(h2 + ffn).astype(o_ref.dtype)


_WEIGHT_ORDER = ('wq1', 'wk1', 'wv1', 'wo1', 'wq2', 'wk2', 'wv2', 'wo2',
                 'ln_g', 'ln_b', 'w1', 'b1', 'w2', 'b2')


def prepare_decoder_params(params, compute_dtype=jnp.bfloat16):
  """One-time (init-time) preprocessing: dtype casts + bias/LN reshapes.  No per-head splits."""
  cdt = jnp.dtype(compute_dtype)
  D = params['wq1'].shape[0]
  F = params['w1'].shape[1]
  prep = {k: params[k].astype(cdt)
          for k in ('wq1', 'wk1', 'wv1', 'wo1', 'wq2', 'wk2', 'wv2', 'wo2', 'w1', 'w2')}
  prep['ln_g'] = params['ln_g'].reshape(1, D).astype(jnp.float32)
  prep['ln_b'] = params['ln_b'].reshape(1, D).astype(jnp.float32)
  prep['b1'] = params['b1'].reshape(1, F).astype(jnp.float32)
  prep['b2'] = params['b2'].reshape(1, D).astype(jnp.float32)
  return prep


def transformer_decoder_layer(x, enc_output, enc_attention_mask, prepared, *,
                              num_heads, head_dim, q_block_size=None,
                              vmem_limit_bytes=48 * 1024 * 1024):
  """Pallas wrapper mirroring TransformerDecoderLayer.forward(input, enc_output, enc_attention_mask).

  `prepared` is the output of prepare_decoder_params (dtype-cast weights, hoisted out of the
  forward path).  vmem_limit_bytes=48 MiB fits v7x's 64 MiB physical VMEM; can be raised
  toward ~100 MiB on v5e/v6e for full-size whole-sequence blocks.
  """
  B, S, D = x.shape
  Be, Se, De = enc_output.shape
  assert (Be, De) == (B, D)
  assert S == Se, "reference module's mask broadcast requires dec_len == enc_len"
  assert D == num_heads * head_dim
  F = prepared['w1'].shape[1]
  cdt = prepared['wq1'].dtype

  TQ = min(q_block_size or 128, S)
  assert S % TQ == 0 and (TQ % 8 == 0 or TQ == S)
  n_q = S // TQ

  # Only the [B, S] mask vector travels to the kernel (no [B, S, S] mask materialized).
  mask = enc_attention_mask.astype(jnp.int32).reshape(B, S, 1)

  kernel = functools.partial(_decoder_layer_kernel,
                             num_heads=num_heads, head_dim=head_dim, q_block=TQ,
                             approx_recip=(cdt != jnp.dtype(jnp.float32)))

  weights = [prepared[k] for k in _WEIGHT_ORDER]

  # Advisory cost estimate (lets XLA schedule the custom call vs. surrounding ops).
  flops = B * (2 * (8 * S * D * D + 4 * S * S * D) + 4 * S * D * F)
  transcendentals = 2 * B * num_heads * S * S
  bytes_accessed = (x.size * x.dtype.itemsize
                    + enc_output.size * enc_output.dtype.itemsize
                    + mask.size * 4
                    + sum(int(w.size) * w.dtype.itemsize for w in weights)
                    + B * S * D * x.dtype.itemsize)
  cost = pl.CostEstimate(flops=int(flops), transcendentals=int(transcendentals),
                         bytes_accessed=int(bytes_accessed))

  def build(single_buffer_weights):
    def wspec(arr):
      assert arr.ndim == 2
      if single_buffer_weights:
        # Constant block index -> never re-fetched; one VMEM buffer is enough.
        return pl.BlockSpec(arr.shape, lambda b, q: (0, 0),
                            pipeline_mode=pl.Buffered(1))
      return pl.BlockSpec(arr.shape, lambda b, q: (0, 0))

    in_specs = [
        pl.BlockSpec((1, S, D), lambda b, q: (b, 0, 0)),     # x (whole seq: K/V + query tile)
        pl.BlockSpec((1, Se, D), lambda b, q: (b, 0, 0)),    # enc_output (whole seq)
        pl.BlockSpec((1, TQ, 1), lambda b, q: (b, q, 0)),    # enc_attention_mask rows
    ] + [wspec(w) for w in weights]

    return pl.pallas_call(
        kernel,
        out_shape=jax.ShapeDtypeStruct((B, S, D), x.dtype),
        grid=(B, n_q),
        in_specs=in_specs,
        out_specs=pl.BlockSpec((1, TQ, D), lambda b, q: (b, q, 0)),
        compiler_params=pltpu.CompilerParams(
            dimension_semantics=("parallel", "parallel"),
            vmem_limit_bytes=vmem_limit_bytes),
        cost_estimate=cost,
    )

  operands = (x, enc_output, mask, *weights)
  try:
    return build(True)(*operands)
  except Exception:
    # pipeline_mode=pl.Buffered(1) not supported by this jax/libtpu: fall back to defaults.
    return build(False)(*operands)


# ------------------------- pure-JAX reference (mirrors the PyTorch module) -------------------------
def decoder_layer_reference(x, enc_output, enc_attention_mask, params, *,
                            num_heads, head_dim, compute_dtype=jnp.float32):
  """compute_dtype applies the same MXU-operand casts as the kernel (f32 => exact module math)."""
  cdt = jnp.dtype(compute_dtype)
  f32 = jnp.float32

  def cast(a):
    return a.astype(cdt)

  def linear(a, w):      # a: [..., in], w: [in, out]
    return jnp.dot(cast(a), cast(w), preferred_element_type=f32)

  def layer_norm(y):
    mu = jnp.mean(y, axis=-1, keepdims=True)
    c = y - mu
    var = jnp.mean(c * c, axis=-1, keepdims=True)
    return c * jax.lax.rsqrt(var + LN_EPS) * params['ln_g'] + params['ln_b']

  def mha(q_in, kv_in, wq, wk, wv, wo, mask):   # mask: bool, broadcastable to [B,H,Sq,Skv]
    B, Sq, _ = q_in.shape
    def split(t):  # [B, S, H*Dh] -> [B, H, S, Dh]
      return t.reshape(B, -1, num_heads, head_dim).transpose(0, 2, 1, 3)
    q = split(linear(q_in, wq))
    k = split(linear(kv_in, wk))
    v = split(linear(kv_in, wv))
    s = jnp.einsum('bhqe,bhke->bhqk', cast(q), cast(k), preferred_element_type=f32)
    s = jnp.where(mask, jnp.float32(-1e9), s)
    m = jnp.max(s, axis=-1, keepdims=True)
    e = jnp.exp(s - m)
    p = e / jnp.sum(e, axis=-1, keepdims=True)
    o = jnp.einsum('bhqk,bhke->bhqe', cast(p), cast(v), preferred_element_type=f32)
    o = o.transpose(0, 2, 1, 3).reshape(B, Sq, num_heads * head_dim)
    return linear(o, wo)

  B, S, _ = x.shape
  x = x.astype(f32)
  enc_output = enc_output.astype(f32)
  causal = jnp.triu(jnp.ones((S, S), dtype=bool), k=1)[None, None]     # [1,1,S,S]
  h1 = layer_norm(x + mha(x, x, params['wq1'], params['wk1'],
                          params['wv1'], params['wo1'], causal))
  cross = (enc_attention_mask != 0)[:, None, :, None]                  # [B,1,S,1] row mask
  h2 = layer_norm(h1 + mha(h1, enc_output, params['wq2'], params['wk2'],
                           params['wv2'], params['wo2'], cross))
  t = jnp.maximum(linear(h2, params['w1']) + params['b1'], 0.0)
  ffn = linear(t, params['w2']) + params['b2']
  return layer_norm(h2 + ffn)


if __name__ == "__main__":
  # Small config consistent with the module: hidden = multi_head_num * qkv_hidden_size,
  # head_dim = 64 as in TransformerConfig (better MXU fill than 32), FFN = 4 * hidden.
  B, S = 2, 8
  H, Dh = 4, 64
  D = H * Dh          # 256 -> lane-dense output stores
  F = 4 * D           # 1024

  key = jax.random.PRNGKey(0)
  ks = jax.random.split(key, 17)

  def xavier(k, shape):
    fi, fo = shape
    bound = (6.0 / (fi + fo)) ** 0.5
    return jax.random.uniform(k, shape, jnp.float32, -bound, bound)

  x = jax.random.normal(ks[0], (B, S, D), jnp.float32)            # decoder hidden states
  enc_out = jax.random.normal(ks[1], (B, S, D), jnp.float32)      # encoder output
  enc_mask = jax.random.randint(ks[2], (B, S), 0, 2, jnp.int32)   # 0/1 like torch.randint

  params = dict(
      wq1=xavier(ks[3], (D, H * Dh)), wk1=xavier(ks[4], (D, H * Dh)),
      wv1=xavier(ks[5], (D, H * Dh)), wo1=xavier(ks[6], (H * Dh, D)),
      wq2=xavier(ks[7], (D, H * Dh)), wk2=xavier(ks[8], (D, H * Dh)),
      wv2=xavier(ks[9], (D, H * Dh)), wo2=xavier(ks[10], (H * Dh, D)),
      ln_g=1.0 + 0.1 * jax.random.normal(ks[11], (D,), jnp.float32),
      ln_b=0.1 * jax.random.normal(ks[12], (D,), jnp.float32),
      w1=xavier(ks[13], (D, F)),
      b1=0.1 * jax.random.normal(ks[14], (F,), jnp.float32),
      w2=xavier(ks[15], (F, D)),
      b2=0.1 * jax.random.normal(ks[16], (D,), jnp.float32),
  )

  # --- exactness check: f32 MXU operands vs. the pure module reference ---
  prep_f32 = prepare_decoder_params(params, compute_dtype=jnp.float32)
  out_f32 = transformer_decoder_layer(x, enc_out, enc_mask, prep_f32,
                                      num_heads=H, head_dim=Dh)
  out_f32 = jax.block_until_ready(out_f32)
  ref_f32 = decoder_layer_reference(x, enc_out, enc_mask, params,
                                    num_heads=H, head_dim=Dh,
                                    compute_dtype=jnp.float32)
  assert jnp.allclose(out_f32, ref_f32, atol=1e-3, rtol=1e-3), \
      ("f32 mismatch", float(jnp.max(jnp.abs(out_f32 - ref_f32))))

  # --- default perf path: bf16 MXU operands, f32 accumulation / softmax / LayerNorm ---
  prep_bf16 = prepare_decoder_params(params, compute_dtype=jnp.bfloat16)
  out_bf16 = transformer_decoder_layer(x, enc_out, enc_mask, prep_bf16,
                                       num_heads=H, head_dim=Dh)
  out_bf16 = jax.block_until_ready(out_bf16)
  ref_bf16 = decoder_layer_reference(x, enc_out, enc_mask, params,
                                     num_heads=H, head_dim=Dh,
                                     compute_dtype=jnp.bfloat16)
  assert jnp.allclose(out_bf16, ref_bf16, atol=3e-2, rtol=3e-2), \
      ("bf16 mismatch", float(jnp.max(jnp.abs(out_bf16 - ref_bf16))))

  print("KERNEL_OK")
</pallas_src>

<mosaic_0001>
module attributes {stable_mosaic.version = 11 : i64} {
  func.func @_decoder_layer_kernel(%arg0: i32, %arg1: i32, %arg2: memref<1x8x256xf32, #tpu.memory_space<vmem>>, %arg3: memref<1x8x256xf32, #tpu.memory_space<vmem>>, %arg4: memref<1x8x1xi32, #tpu.memory_space<vmem>>, %arg5: memref<256x256xf32, #tpu.memory_space<vmem>>, %arg6: memref<256x256xf32, #tpu.memory_space<vmem>>, %arg7: memref<256x256xf32, #tpu.memory_space<vmem>>, %arg8: memref<256x256xf32, #tpu.memory_space<vmem>>, %arg9: memref<256x256xf32, #tpu.memory_space<vmem>>, %arg10: memref<256x256xf32, #tpu.memory_space<vmem>>, %arg11: memref<256x256xf32, #tpu.memory_space<vmem>>, %arg12: memref<256x256xf32, #tpu.memory_space<vmem>>, %arg13: memref<1x256xf32, #tpu.memory_space<vmem>>, %arg14: memref<1x256xf32, #tpu.memory_space<vmem>>, %arg15: memref<256x1024xf32, #tpu.memory_space<vmem>>, %arg16: memref<1x1024xf32, #tpu.memory_space<vmem>>, %arg17: memref<1024x256xf32, #tpu.memory_space<vmem>>, %arg18: memref<1x256xf32, #tpu.memory_space<vmem>>, %arg19: memref<1x8x256xf32, #tpu.memory_space<vmem>>) attributes {dimension_semantics = [#tpu.dimension_semantics<parallel>, #tpu.dimension_semantics<parallel>], iteration_bounds = array<i64: 2, 1>, scalar_prefetch = 0 : i64, scratch_operands = 0 : i64, tpu.core_type = #tpu.core_type<tc>, window_params = [{transform_indices = @transform_0, window_bounds = array<i64: 1, 8, 256>}, {transform_indices = @transform_1, window_bounds = array<i64: 1, 8, 256>}, {transform_indices = @transform_2, window_bounds = array<i64: 1, 8, 1>}, {pipeline_mode = #tpu.pipeline_mode<synchronous>, transform_indices = @transform_3, window_bounds = array<i64: 256, 256>}, {pipeline_mode = #tpu.pipeline_mode<synchronous>, transform_indices = @transform_4, window_bounds = array<i64: 256, 256>}, {pipeline_mode = #tpu.pipeline_mode<synchronous>, transform_indices = @transform_5, window_bounds = array<i64: 256, 256>}, {pipeline_mode = #tpu.pipeline_mode<synchronous>, transform_indices = @transform_6, window_bounds = array<i64: 256, 256>}, {pipeline_mode = #tpu.pipeline_mode<synchronous>, transform_indices = @transform_7, window_bounds = array<i64: 256, 256>}, {pipeline_mode = #tpu.pipeline_mode<synchronous>, transform_indices = @transform_8, window_bounds = array<i64: 256, 256>}, {pipeline_mode = #tpu.pipeline_mode<synchronous>, transform_indices = @transform_9, window_bounds = array<i64: 256, 256>}, {pipeline_mode = #tpu.pipeline_mode<synchronous>, transform_indices = @transform_10, window_bounds = array<i64: 256, 256>}, {pipeline_mode = #tpu.pipeline_mode<synchronous>, transform_indices = @transform_11, window_bounds = array<i64: 1, 256>}, {pipeline_mode = #tpu.pipeline_mode<synchronous>, transform_indices = @transform_12, window_bounds = array<i64: 1, 256>}, {pipeline_mode = #tpu.pipeline_mode<synchronous>, transform_indices = @transform_13, window_bounds = array<i64: 256, 1024>}, {pipeline_mode = #tpu.pipeline_mode<synchronous>, transform_indices = @transform_14, window_bounds = array<i64: 1, 1024>}, {pipeline_mode = #tpu.pipeline_mode<synchronous>, transform_indices = @transform_15, window_bounds = array<i64: 1024, 256>}, {pipeline_mode = #tpu.pipeline_mode<synchronous>, transform_indices = @transform_16, window_bounds = array<i64: 1, 256>}, {transform_indices = @transform_17, window_bounds = array<i64: 1, 8, 256>}]} {
    %c8_i32 = arith.constant 8 : i32
    %0 = arith.muli %arg1, %c8_i32 : i32
    %1 = tpu.assume_multiple %0, 8 : i32
    %c0 = arith.constant 0 : index
    %c0_0 = arith.constant 0 : index
    %c0_1 = arith.constant 0 : index
    %2 = vector.load %arg2[%c0, %c0_0, %c0_1] : memref<1x8x256xf32, #tpu.memory_space<vmem>>, vector<1x8x256xf32>
    %3 = vector.shape_cast %2 : vector<1x8x256xf32> to vector<8x256xf32>
    %c0_2 = arith.constant 0 : index
    %4 = arith.index_cast %1 : i32 to index
    %c0_3 = arith.constant 0 : index
    %5 = vector.load %arg2[%c0_2, %4, %c0_3] : memref<1x8x256xf32, #tpu.memory_space<vmem>>, vector<1x8x256xf32>
    %6 = vector.shape_cast %5 : vector<1x8x256xf32> to vector<8x256xf32>
    %c0_4 = arith.constant 0 : index
    %c0_5 = arith.constant 0 : index
    %c0_6 = arith.constant 0 : index
    %7 = vector.load %arg3[%c0_4, %c0_5, %c0_6] : memref<1x8x256xf32, #tpu.memory_space<vmem>>, vector<1x8x256xf32>
    %8 = vector.shape_cast %7 : vector<1x8x256xf32> to vector<8x256xf32>
    %c0_7 = arith.constant 0 : index
    %c0_8 = arith.constant 0 : index
    %9 = vector.load %arg13[%c0_7, %c0_8] : memref<1x256xf32, #tpu.memory_space<vmem>>, vector<1x256xf32>
    %c0_9 = arith.constant 0 : index
    %c0_10 = arith.constant 0 : index
    %10 = vector.load %arg14[%c0_9, %c0_10] : memref<1x256xf32, #tpu.memory_space<vmem>>, vector<1x256xf32>
    %11 = tpu.iota {dimensions = array<i32: 0>} : vector<8x8xi32>
    %12 = vector.broadcast %1 : i32 to vector<8x8xi32>
    %13 = arith.addi %12, %11 : vector<8x8xi32>
    %14 = tpu.iota {dimensions = array<i32: 1>} : vector<8x8xi32>
    %15 = arith.cmpi sgt, %14, %13 : vector<8x8xi32>
    %cst = arith.constant -1.000000e+09 : f32
    %cst_11 = arith.constant 0.000000e+00 : f32
    %16 = vector.broadcast %cst : f32 to vector<8x8xf32>
    %17 = vector.broadcast %cst_11 : f32 to vector<8x8xf32>
    %18 = arith.select %15, %16, %17 : vector<8x8xi1>, vector<8x8xf32>
    %c0_12 = arith.constant 0 : index
    %c0_13 = arith.constant 0 : index
    %c0_14 = arith.constant 0 : index
    %19 = vector.load %arg4[%c0_12, %c0_13, %c0_14] : memref<1x8x1xi32, #tpu.memory_space<vmem>>, vector<1x8x1xi32>
    %20 = vector.shape_cast %19 : vector<1x8x1xi32> to vector<8x1xi32>
    %c0_i32 = arith.constant 0 : i32
    %21 = vector.broadcast %c0_i32 : i32 to vector<8x1xi32>
    %22 = arith.cmpi ne, %20, %21 : vector<8x1xi32>
    %cst_15 = arith.constant -1.000000e+09 : f32
    %cst_16 = arith.constant 0.000000e+00 : f32
    %23 = vector.broadcast %cst_15 : f32 to vector<8x1xf32>
    %24 = vector.broadcast %cst_16 : f32 to vector<8x1xf32>
    %25 = arith.select %22, %23, %24 : vector<8x1xi1>, vector<8x1xf32>
    %c0_17 = arith.constant 0 : index
    %c0_18 = arith.constant 0 : index
    %26 = vector.load %arg5[%c0_17, %c0_18] : memref<256x256xf32, #tpu.memory_space<vmem>>, vector<256x256xf32>
    %cst_19 = arith.constant dense<0.000000e+00> : vector<8x256xf32>
    %27 = tpu.matmul %6, %26, %cst_19 {dimension_numbers = #tpu.dot_dimension_numbers<[1], [0], [0], [1], [0, 0, 1, 1], [], []>} : vector<8x256xf32>, vector<256x256xf32>, vector<8x256xf32> -> vector<8x256xf32>
    %c0_20 = arith.constant 0 : index
    %c0_21 = arith.constant 0 : index
    %28 = vector.load %arg6[%c0_20, %c0_21] : memref<256x256xf32, #tpu.memory_space<vmem>>, vector<256x256xf32>
    %cst_22 = arith.constant dense<0.000000e+00> : vector<8x256xf32>
    %29 = tpu.matmul %3, %28, %cst_22 {dimension_numbers = #tpu.dot_dimension_numbers<[1], [0], [0], [1], [0, 0, 1, 1], [], []>} : vector<8x256xf32>, vector<256x256xf32>, vector<8x256xf32> -> vector<8x256xf32>
    %c0_23 = arith.constant 0 : index
    %c0_24 = arith.constant 0 : index
    %30 = vector.load %arg7[%c0_23, %c0_24] : memref<256x256xf32, #tpu.memory_space<vmem>>, vector<256x256xf32>
    %cst_25 = arith.constant dense<0.000000e+00> : vector<8x256xf32>
    %31 = tpu.matmul %3, %30, %cst_25 {dimension_numbers = #tpu.dot_dimension_numbers<[1], [0], [0], [1], [0, 0, 1, 1], [], []>} : vector<8x256xf32>, vector<256x256xf32>, vector<8x256xf32> -> vector<8x256xf32>
    %32 = vector.shape_cast %27 : vector<8x256xf32> to vector<8x4x64xf32>
    %33 = tpu.transpose %32, [1, 0, 2] : vector<8x4x64xf32> -> vector<4x8x64xf32>
    %34 = vector.shape_cast %29 : vector<8x256xf32> to vector<8x4x64xf32>
    %35 = tpu.transpose %34, [1, 0, 2] : vector<8x4x64xf32> -> vector<4x8x64xf32>
    %36 = vector.shape_cast %31 : vector<8x256xf32> to vector<8x4x64xf32>
    %37 = tpu.transpose %36, [1, 0, 2] : vector<8x4x64xf32> -> vector<4x8x64xf32>
    "tpu.trace_start"() <{level = 10 : i32, message = "hqe,hke->hqk"}> : () -> ()
    %cst_26 = arith.constant dense<0.000000e+00> : vector<4x8x8xf32>
    %38 = tpu.matmul %33, %35, %cst_26 {dimension_numbers = #tpu.dot_dimension_numbers<[2], [2], [1], [1], [0, 0, 0, 1, 1, 1], [0], [0]>} : vector<4x8x64xf32>, vector<4x8x64xf32>, vector<4x8x8xf32> -> vector<4x8x8xf32>
    "tpu.trace_stop"() : () -> ()
    %39 = vector.shape_cast %18 : vector<8x8xf32> to vector<1x8x8xf32>
    %40 = vector.broadcast %39 : vector<1x8x8xf32> to vector<4x8x8xf32>
    %41 = arith.addf %38, %40 : vector<4x8x8xf32>
    %cst_27 = arith.constant dense<0xFF800000> : vector<4x8xf32>
    %42 = vector.multi_reduction <maximumf>, %41, %cst_27 [2] : vector<4x8x8xf32> to vector<4x8xf32>
    %43 = vector.shape_cast %42 : vector<4x8xf32> to vector<4x8x1xf32>
    %44 = vector.broadcast %43 : vector<4x8x1xf32> to vector<4x8x8xf32>
    %45 = arith.subf %41, %44 : vector<4x8x8xf32>
    %46 = math.exp %45 : vector<4x8x8xf32>
    %cst_28 = arith.constant dense<0.000000e+00> : vector<4x8xf32>
    %47 = vector.multi_reduction <add>, %46, %cst_28 [2] : vector<4x8x8xf32> to vector<4x8xf32>
    %48 = vector.shape_cast %47 : vector<4x8xf32> to vector<4x8x1xf32>
    %49 = tpu.reciprocal %48 : vector<4x8x1xf32> -> vector<4x8x1xf32>
    %50 = vector.broadcast %49 : vector<4x8x1xf32> to vector<4x8x8xf32>
    %51 = arith.mulf %46, %50 : vector<4x8x8xf32>
    "tpu.trace_start"() <{level = 10 : i32, message = "hqk,hke->hqe"}> : () -> ()
    %cst_29 = arith.constant dense<0.000000e+00> : vector<4x8x64xf32>
    %52 = tpu.matmul %51, %37, %cst_29 {dimension_numbers = #tpu.dot_dimension_numbers<[2], [1], [1], [2], [0, 0, 0, 1, 1, 2], [0], [0]>} : vector<4x8x8xf32>, vector<4x8x64xf32>, vector<4x8x64xf32> -> vector<4x8x64xf32>
    "tpu.trace_stop"() : () -> ()
    %53 = tpu.transpose %52, [1, 0, 2] : vector<4x8x64xf32> -> vector<8x4x64xf32>
    %54 = vector.shape_cast %53 : vector<8x4x64xf32> to vector<8x256xf32>
    %c0_30 = arith.constant 0 : index
    %c0_31 = arith.constant 0 : index
    %55 = vector.load %arg8[%c0_30, %c0_31] : memref<256x256xf32, #tpu.memory_space<vmem>>, vector<256x256xf32>
    %cst_32 = arith.constant dense<0.000000e+00> : vector<8x256xf32>
    %56 = tpu.matmul %54, %55, %cst_32 {dimension_numbers = #tpu.dot_dimension_numbers<[1], [0], [0], [1], [0, 0, 1, 1], [], []>} : vector<8x256xf32>, vector<256x256xf32>, vector<8x256xf32> -> vector<8x256xf32>
    %57 = arith.addf %6, %56 : vector<8x256xf32>
    %cst_33 = arith.constant dense<0.000000e+00> : vector<8xf32>
    %58 = vector.multi_reduction <add>, %57, %cst_33 [1] : vector<8x256xf32> to vector<8xf32>
    %59 = vector.shape_cast %58 : vector<8xf32> to vector<8x1xf32>
    %cst_34 = arith.constant 2.560000e+02 : f32
    %60 = vector.broadcast %cst_34 : f32 to vector<8x1xf32>
    %61 = arith.divf %59, %60 : vector<8x1xf32>
    %62 = vector.broadcast %61 : vector<8x1xf32> to vector<8x256xf32>
    %63 = arith.subf %57, %62 : vector<8x256xf32>
    %64 = arith.mulf %63, %63 : vector<8x256xf32>
    %cst_35 = arith.constant dense<0.000000e+00> : vector<8xf32>
    %65 = vector.multi_reduction <add>, %64, %cst_35 [1] : vector<8x256xf32> to vector<8xf32>
    %66 = vector.shape_cast %65 : vector<8xf32> to vector<8x1xf32>
    %cst_36 = arith.constant 2.560000e+02 : f32
    %67 = vector.broadcast %cst_36 : f32 to vector<8x1xf32>
    %68 = arith.divf %66, %67 : vector<8x1xf32>
    %cst_37 = arith.constant 9.99999974E-6 : f32
    %69 = vector.broadcast %cst_37 : f32 to vector<8x1xf32>
    %70 = arith.addf %68, %69 : vector<8x1xf32>
    %71 = math.rsqrt %70 : vector<8x1xf32>
    %72 = vector.broadcast %71 : vector<8x1xf32> to vector<8x256xf32>
    %73 = arith.mulf %63, %72 : vector<8x256xf32>
    %74 = vector.broadcast %9 : vector<1x256xf32> to vector<8x256xf32>
    %75 = arith.mulf %73, %74 : vector<8x256xf32>
    %76 = vector.broadcast %10 : vector<1x256xf32> to vector<8x256xf32>
    %77 = arith.addf %75, %76 : vector<8x256xf32>
    %c0_38 = arith.constant 0 : index
    %c0_39 = arith.constant 0 : index
    %78 = vector.load %arg9[%c0_38, %c0_39] : memref<256x256xf32, #tpu.memory_space<vmem>>, vector<256x256xf32>
    %cst_40 = arith.constant dense<0.000000e+00> : vector<8x256xf32>
    %79 = tpu.matmul %77, %78, %cst_40 {dimension_numbers = #tpu.dot_dimension_numbers<[1], [0], [0], [1], [0, 0, 1, 1], [], []>} : vector<8x256xf32>, vector<256x256xf32>, vector<8x256xf32> -> vector<8x256xf32>
    %c0_41 = arith.constant 0 : index
    %c0_42 = arith.constant 0 : index
    %80 = vector.load %arg10[%c0_41, %c0_42] : memref<256x256xf32, #tpu.memory_space<vmem>>, vector<256x256xf32>
    %cst_43 = arith.constant dense<0.000000e+00> : vector<8x256xf32>
    %81 = tpu.matmul %8, %80, %cst_43 {dimension_numbers = #tpu.dot_dimension_numbers<[1], [0], [0], [1], [0, 0, 1, 1], [], []>} : vector<8x256xf32>, vector<256x256xf32>, vector<8x256xf32> -> vector<8x256xf32>
    %c0_44 = arith.constant 0 : index
    %c0_45 = arith.constant 0 : index
    %82 = vector.load %arg11[%c0_44, %c0_45] : memref<256x256xf32, #tpu.memory_space<vmem>>, vector<256x256xf32>
    %cst_46 = arith.constant dense<0.000000e+00> : vector<8x256xf32>
    %83 = tpu.matmul %8, %82, %cst_46 {dimension_numbers = #tpu.dot_dimension_numbers<[1], [0], [0], [1], [0, 0, 1, 1], [], []>} : vector<8x256xf32>, vector<256x256xf32>, vector<8x256xf32> -> vector<8x256xf32>
    %84 = vector.shape_cast %79 : vector<8x256xf32> to vector<8x4x64xf32>
    %85 = tpu.transpose %84, [1, 0, 2] : vector<8x4x64xf32> -> vector<4x8x64xf32>
    %86 = vector.shape_cast %81 : vector<8x256xf32> to vector<8x4x64xf32>
    %87 = tpu.transpose %86, [1, 0, 2] : vector<8x4x64xf32> -> vector<4x8x64xf32>
    %88 = vector.shape_cast %83 : vector<8x256xf32> to vector<8x4x64xf32>
    %89 = tpu.transpose %88, [1, 0, 2] : vector<8x4x64xf32> -> vector<4x8x64xf32>
    "tpu.trace_start"() <{level = 10 : i32, message = "hqe,hke->hqk"}> : () -> ()
    %cst_47 = arith.constant dense<0.000000e+00> : vector<4x8x8xf32>
    %90 = tpu.matmul %85, %87, %cst_47 {dimension_numbers = #tpu.dot_dimension_numbers<[2], [2], [1], [1], [0, 0, 0, 1, 1, 1], [0], [0]>} : vector<4x8x64xf32>, vector<4x8x64xf32>, vector<4x8x8xf32> -> vector<4x8x8xf32>
    "tpu.trace_stop"() : () -> ()
    %91 = vector.shape_cast %25 : vector<8x1xf32> to vector<1x8x1xf32>
    %92 = vector.broadcast %91 : vector<1x8x1xf32> to vector<4x8x8xf32>
    %93 = arith.addf %90, %92 : vector<4x8x8xf32>
    %cst_48 = arith.constant dense<0xFF800000> : vector<4x8xf32>
    %94 = vector.multi_reduction <maximumf>, %93, %cst_48 [2] : vector<4x8x8xf32> to vector<4x8xf32>
    %95 = vector.shape_cast %94 : vector<4x8xf32> to vector<4x8x1xf32>
    %96 = vector.broadcast %95 : vector<4x8x1xf32> to vector<4x8x8xf32>
    %97 = arith.subf %93, %96 : vector<4x8x8xf32>
    %98 = math.exp %97 : vector<4x8x8xf32>
    %cst_49 = arith.constant dense<0.000000e+00> : vector<4x8xf32>
    %99 = vector.multi_reduction <add>, %98, %cst_49 [2] : vector<4x8x8xf32> to vector<4x8xf32>
    %100 = vector.shape_cast %99 : vector<4x8xf32> to vector<4x8x1xf32>
    %101 = tpu.reciprocal %100 : vector<4x8x1xf32> -> vector<4x8x1xf32>
    %102 = vector.broadcast %101 : vector<4x8x1xf32> to vector<4x8x8xf32>
    %103 = arith.mulf %98, %102 : vector<4x8x8xf32>
    "tpu.trace_start"() <{level = 10 : i32, message = "hqk,hke->hqe"}> : () -> ()
    %cst_50 = arith.constant dense<0.000000e+00> : vector<4x8x64xf32>
    %104 = tpu.matmul %103, %89, %cst_50 {dimension_numbers = #tpu.dot_dimension_numbers<[2], [1], [1], [2], [0, 0, 0, 1, 1, 2], [0], [0]>} : vector<4x8x8xf32>, vector<4x8x64xf32>, vector<4x8x64xf32> -> vector<4x8x64xf32>
    "tpu.trace_stop"() : () -> ()
    %105 = tpu.transpose %104, [1, 0, 2] : vector<4x8x64xf32> -> vector<8x4x64xf32>
    %106 = vector.shape_cast %105 : vector<8x4x64xf32> to vector<8x256xf32>
    %c0_51 = arith.constant 0 : index
    %c0_52 = arith.constant 0 : index
    %107 = vector.load %arg12[%c0_51, %c0_52] : memref<256x256xf32, #tpu.memory_space<vmem>>, vector<256x256xf32>
    %cst_53 = arith.constant dense<0.000000e+00> : vector<8x256xf32>
    %108 = tpu.matmul %106, %107, %cst_53 {dimension_numbers = #tpu.dot_dimension_numbers<[1], [0], [0], [1], [0, 0, 1, 1], [], []>} : vector<8x256xf32>, vector<256x256xf32>, vector<8x256xf32> -> vector<8x256xf32>
    %109 = arith.addf %77, %108 : vector<8x256xf32>
    %cst_54 = arith.constant dense<0.000000e+00> : vector<8xf32>
    %110 = vector.multi_reduction <add>, %109, %cst_54 [1] : vector<8x256xf32> to vector<8xf32>
    %111 = vector.shape_cast %110 : vector<8xf32> to vector<8x1xf32>
    %cst_55 = arith.constant 2.560000e+02 : f32
    %112 = vector.broadcast %cst_55 : f32 to vector<8x1xf32>
    %113 = arith.divf %111, %112 : vector<8x1xf32>
    %114 = vector.broadcast %113 : vector<8x1xf32> to vector<8x256xf32>
    %115 = arith.subf %109, %114 : vector<8x256xf32>
    %116 = arith.mulf %115, %115 : vector<8x256xf32>
    %cst_56 = arith.constant dense<0.000000e+00> : vector<8xf32>
    %117 = vector.multi_reduction <add>, %116, %cst_56 [1] : vector<8x256xf32> to vector<8xf32>
    %118 = vector.shape_cast %117 : vector<8xf32> to vector<8x1xf32>
    %cst_57 = arith.constant 2.560000e+02 : f32
    %119 = vector.broadcast %cst_57 : f32 to vector<8x1xf32>
    %120 = arith.divf %118, %119 : vector<8x1xf32>
    %cst_58 = arith.constant 9.99999974E-6 : f32
    %121 = vector.broadcast %cst_58 : f32 to vector<8x1xf32>
    %122 = arith.addf %120, %121 : vector<8x1xf32>
    %123 = math.rsqrt %122 : vector<8x1xf32>
    %124 = vector.broadcast %123 : vector<8x1xf32> to vector<8x256xf32>
    %125 = arith.mulf %115, %124 : vector<8x256xf32>
    %126 = vector.broadcast %9 : vector<1x256xf32> to vector<8x256xf32>
    %127 = arith.mulf %125, %126 : vector<8x256xf32>
    %128 = vector.broadcast %10 : vector<1x256xf32> to vector<8x256xf32>
    %129 = arith.addf %127, %128 : vector<8x256xf32>
    %c0_59 = arith.constant 0 : index
    %c0_60 = arith.constant 0 : index
    %130 = vector.load %arg15[%c0_59, %c0_60] : memref<256x1024xf32, #tpu.memory_space<vmem>>, vector<256x1024xf32>
    %cst_61 = arith.constant dense<0.000000e+00> : vector<8x1024xf32>
    %131 = tpu.matmul %129, %130, %cst_61 {dimension_numbers = #tpu.dot_dimension_numbers<[1], [0], [0], [1], [0, 0, 1, 1], [], []>} : vector<8x256xf32>, vector<256x1024xf32>, vector<8x1024xf32> -> vector<8x1024xf32>
    %c0_62 = arith.constant 0 : index
    %c0_63 = arith.constant 0 : index
    %132 = vector.load %arg16[%c0_62, %c0_63] : memref<1x1024xf32, #tpu.memory_space<vmem>>, vector<1x1024xf32>
    %133 = vector.broadcast %132 : vector<1x1024xf32> to vector<8x1024xf32>
    %134 = arith.addf %131, %133 : vector<8x1024xf32>
    %cst_64 = arith.constant 0.000000e+00 : f32
    %135 = vector.broadcast %cst_64 : f32 to vector<8x1024xf32>
    %136 = arith.maximumf %134, %135 : vector<8x1024xf32>
    %c0_65 = arith.constant 0 : index
    %c0_66 = arith.constant 0 : index
    %137 = vector.load %arg17[%c0_65, %c0_66] : memref<1024x256xf32, #tpu.memory_space<vmem>>, vector<1024x256xf32>
    %cst_67 = arith.constant dense<0.000000e+00> : vector<8x256xf32>
    %138 = tpu.matmul %136, %137, %cst_67 {dimension_numbers = #tpu.dot_dimension_numbers<[1], [0], [0], [1], [0, 0, 1, 1], [], []>} : vector<8x1024xf32>, vector<1024x256xf32>, vector<8x256xf32> -> vector<8x256xf32>
    %c0_68 = arith.constant 0 : index
    %c0_69 = arith.constant 0 : index
    %139 = vector.load %arg18[%c0_68, %c0_69] : memref<1x256xf32, #tpu.memory_space<vmem>>, vector<1x256xf32>
    %140 = vector.broadcast %139 : vector<1x256xf32> to vector<8x256xf32>
    %141 = arith.addf %138, %140 : vector<8x256xf32>
    %142 = arith.addf %129, %141 : vector<8x256xf32>
    %cst_70 = arith.constant dense<0.000000e+00> : vector<8xf32>
    %143 = vector.multi_reduction <add>, %142, %cst_70 [1] : vector<8x256xf32> to vector<8xf32>
    %144 = vector.shape_cast %143 : vector<8xf32> to vector<8x1xf32>
    %cst_71 = arith.constant 2.560000e+02 : f32
    %145 = vector.broadcast %cst_71 : f32 to vector<8x1xf32>
    %146 = arith.divf %144, %145 : vector<8x1xf32>
    %147 = vector.broadcast %146 : vector<8x1xf32> to vector<8x256xf32>
    %148 = arith.subf %142, %147 : vector<8x256xf32>
    %149 = arith.mulf %148, %148 : vector<8x256xf32>
    %cst_72 = arith.constant dense<0.000000e+00> : vector<8xf32>
    %150 = vector.multi_reduction <add>, %149, %cst_72 [1] : vector<8x256xf32> to vector<8xf32>
    %151 = vector.shape_cast %150 : vector<8xf32> to vector<8x1xf32>
    %cst_73 = arith.constant 2.560000e+02 : f32
    %152 = vector.broadcast %cst_73 : f32 to vector<8x1xf32>
    %153 = arith.divf %151, %152 : vector<8x1xf32>
    %cst_74 = arith.constant 9.99999974E-6 : f32
    %154 = vector.broadcast %cst_74 : f32 to vector<8x1xf32>
    %155 = arith.addf %153, %154 : vector<8x1xf32>
    %156 = math.rsqrt %155 : vector<8x1xf32>
    %157 = vector.broadcast %156 : vector<8x1xf32> to vector<8x256xf32>
    %158 = arith.mulf %148, %157 : vector<8x256xf32>
    %159 = vector.broadcast %9 : vector<1x256xf32> to vector<8x256xf32>
    %160 = arith.mulf %158, %159 : vector<8x256xf32>
    %161 = vector.broadcast %10 : vector<1x256xf32> to vector<8x256xf32>
    %162 = arith.addf %160, %161 : vector<8x256xf32>
    %c0_75 = arith.constant 0 : index
    %c0_76 = arith.constant 0 : index
    %c0_77 = arith.constant 0 : index
    %163 = vector.load %arg19[%c0_75, %c0_76, %c0_77] : memref<1x8x256xf32, #tpu.memory_space<vmem>>, vector<1x8x256xf32>
    %164 = vector.shape_cast %163 : vector<1x8x256xf32> to vector<8x256xf32>
    %165 = vector.shape_cast %162 : vector<8x256xf32> to vector<1x8x256xf32>
    tpu.vector_store %arg19[%c0_75, %c0_76, %c0_77], %165 {strides = array<i32>} : memref<1x8x256xf32, #tpu.memory_space<vmem>>, vector<1x8x256xf32>,
    return
  }
  func.func @transform_0(%arg0: i32, %arg1: i32) -> (i32, i32, i32) {
    %c0_i32 = arith.constant 0 : i32
    %c0_i32_0 = arith.constant 0 : i32
    %c0_i32_1 = arith.constant 0 : i32
    return %arg0, %c0_i32, %c0_i32_0 : i32, i32, i32
  }
  func.func @transform_1(%arg0: i32, %arg1: i32) -> (i32, i32, i32) {
    %c0_i32 = arith.constant 0 : i32
    %c0_i32_0 = arith.constant 0 : i32
    %c0_i32_1 = arith.constant 0 : i32
    return %arg0, %c0_i32, %c0_i32_0 : i32, i32, i32
  }
  func.func @transform_2(%arg0: i32, %arg1: i32) -> (i32, i32, i32) {
    %c0_i32 = arith.constant 0 : i32
    %c0_i32_0 = arith.constant 0 : i32
    return %arg0, %arg1, %c0_i32 : i32, i32, i32
  }
  func.func @transform_3(%arg0: i32, %arg1: i32) -> (i32, i32) {
    %c0_i32 = arith.constant 0 : i32
    %c0_i32_0 = arith.constant 0 : i32
    %c0_i32_1 = arith.constant 0 : i32
    return %c0_i32, %c0_i32_0 : i32, i32
  }
  func.func @transform_4(%arg0: i32, %arg1: i32) -> (i32, i32) {
    %c0_i32 = arith.constant 0 : i32
    %c0_i32_0 = arith.constant 0 : i32
    %c0_i32_1 = arith.constant 0 : i32
    return %c0_i32, %c0_i32_0 : i32, i32
  }
  func.func @transform_5(%arg0: i32, %arg1: i32) -> (i32, i32) {
    %c0_i32 = arith.constant 0 : i32
    %c0_i32_0 = arith.constant 0 : i32
    %c0_i32_1 = arith.constant 0 : i32
    return %c0_i32, %c0_i32_0 : i32, i32
  }
  func.func @transform_6(%arg0: i32, %arg1: i32) -> (i32, i32) {
    %c0_i32 = arith.constant 0 : i32
    %c0_i32_0 = arith.constant 0 : i32
    %c0_i32_1 = arith.constant 0 : i32
    return %c0_i32, %c0_i32_0 : i32, i32
  }
  func.func @transform_7(%arg0: i32, %arg1: i32) -> (i32, i32) {
    %c0_i32 = arith.constant 0 : i32
    %c0_i32_0 = arith.constant 0 : i32
    %c0_i32_1 = arith.constant 0 : i32
    return %c0_i32, %c0_i32_0 : i32, i32
  }
  func.func @transform_8(%arg0: i32, %arg1: i32) -> (i32, i32) {
    %c0_i32 = arith.constant 0 : i32
    %c0_i32_0 = arith.constant 0 : i32
    %c0_i32_1 = arith.constant 0 : i32
    return %c0_i32, %c0_i32_0 : i32, i32
  }
  func.func @transform_9(%arg0: i32, %arg1: i32) -> (i32, i32) {
    %c0_i32 = arith.constant 0 : i32
    %c0_i32_0 = arith.constant 0 : i32
    %c0_i32_1 = arith.constant 0 : i32
    return %c0_i32, %c0_i32_0 : i32, i32
  }
  func.func @transform_10(%arg0: i32, %arg1: i32) -> (i32, i32) {
    %c0_i32 = arith.constant 0 : i32
    %c0_i32_0 = arith.constant 0 : i32
    %c0_i32_1 = arith.constant 0 : i32
    return %c0_i32, %c0_i32_0 : i32, i32
  }
  func.func @transform_11(%arg0: i32, %arg1: i32) -> (i32, i32) {
    %c0_i32 = arith.constant 0 : i32
    %c0_i32_0 = arith.constant 0 : i32
    %c0_i32_1 = arith.constant 0 : i32
    return %c0_i32, %c0_i32_0 : i32, i32
  }
  func.func @transform_12(%arg0: i32, %arg1: i32) -> (i32, i32) {
    %c0_i32 = arith.constant 0 : i32
    %c0_i32_0 = arith.constant 0 : i32
    %c0_i32_1 = arith.constant 0 : i32
    return %c0_i32, %c0_i32_0 : i32, i32
  }
  func.func @transform_13(%arg0: i32, %arg1: i32) -> (i32, i32) {
    %c0_i32 = arith.constant 0 : i32
    %c0_i32_0 = arith.constant 0 : i32
    %c0_i32_1 = arith.constant 0 : i32
    return %c0_i32, %c0_i32_0 : i32, i32
  }
  func.func @transform_14(%arg0: i32, %arg1: i32) -> (i32, i32) {
    %c0_i32 = arith.constant 0 : i32
    %c0_i32_0 = arith.constant 0 : i32
    %c0_i32_1 = arith.constant 0 : i32
    return %c0_i32, %c0_i32_0 : i32, i32
  }
  func.func @transform_15(%arg0: i32, %arg1: i32) -> (i32, i32) {
    %c0_i32 = arith.constant 0 : i32
    %c0_i32_0 = arith.constant 0 : i32
    %c0_i32_1 = arith.constant 0 : i32
    return %c0_i32, %c0_i32_0 : i32, i32
  }
  func.func @transform_16(%arg0: i32, %arg1: i32) -> (i32, i32) {
    %c0_i32 = arith.constant 0 : i32
    %c0_i32_0 = arith.constant 0 : i32
    %c0_i32_1 = arith.constant 0 : i32
    return %c0_i32, %c0_i32_0 : i32, i32
  }
  func.func @transform_17(%arg0: i32, %arg1: i32) -> (i32, i32, i32) {
    %c0_i32 = arith.constant 0 : i32
    %c0_i32_0 = arith.constant 0 : i32
    return %arg0, %arg1, %c0_i32 : i32, i32, i32
  }
}

module attributes {stable_mosaic.version = 11 : i64} {
  func.func @_decoder_layer_kernel(%arg0: i32, %arg1: i32, %arg2: memref<1x8x256xf32, #tpu.memory_space<vmem>>, %arg3: memref<1x8x256xf32, #tpu.memory_space<vmem>>, %arg4: memref<1x8x1xi32, #tpu.memory_space<vmem>>, %arg5: memref<256x256xf32, #tpu.memory_space<vmem>>, %arg6: memref<256x256xf32, #tpu.memory_space<vmem>>, %arg7: memref<256x256xf32, #tpu.memory_space<vmem>>, %arg8: memref<256x256xf32, #tpu.memory_space<vmem>>, %arg9: memref<256x256xf32, #tpu.memory_space<vmem>>, %arg10: memref<256x256xf32, #tpu.memory_space<vmem>>, %arg11: memref<256x256xf32, #tpu.memory_space<vmem>>, %arg12: memref<256x256xf32, #tpu.memory_space<vmem>>, %arg13: memref<1x256xf32, #tpu.memory_space<vmem>>, %arg14: memref<1x256xf32, #tpu.memory_space<vmem>>, %arg15: memref<256x1024xf32, #tpu.memory_space<vmem>>, %arg16: memref<1x1024xf32, #tpu.memory_space<vmem>>, %arg17: memref<1024x256xf32, #tpu.memory_space<vmem>>, %arg18: memref<1x256xf32, #tpu.memory_space<vmem>>, %arg19: memref<1x8x256xf32, #tpu.memory_space<vmem>>) attributes {dimension_semantics = [#tpu.dimension_semantics<parallel>, #tpu.dimension_semantics<parallel>], iteration_bounds = array<i64: 2, 1>, scalar_prefetch = 0 : i64, scratch_operands = 0 : i64, tpu.core_type = #tpu.core_type<tc>, window_params = [{transform_indices = @transform_0, window_bounds = array<i64: 1, 8, 256>}, {transform_indices = @transform_1, window_bounds = array<i64: 1, 8, 256>}, {transform_indices = @transform_2, window_bounds = array<i64: 1, 8, 1>}, {pipeline_mode = #tpu.pipeline_mode<synchronous>, transform_indices = @transform_3, window_bounds = array<i64: 256, 256>}, {pipeline_mode = #tpu.pipeline_mode<synchronous>, transform_indices = @transform_4, window_bounds = array<i64: 256, 256>}, {pipeline_mode = #tpu.pipeline_mode<synchronous>, transform_indices = @transform_5, window_bounds = array<i64: 256, 256>}, {pipeline_mode = #tpu.pipeline_mode<synchronous>, transform_indices = @transform_6, window_bounds = array<i64: 256, 256>}, {pipeline_mode = #tpu.pipeline_mode<synchronous>, transform_indices = @transform_7, window_bounds = array<i64: 256, 256>}, {pipeline_mode = #tpu.pipeline_mode<synchronous>, transform_indices = @transform_8, window_bounds = array<i64: 256, 256>}, {pipeline_mode = #tpu.pipeline_mode<synchronous>, transform_indices = @transform_9, window_bounds = array<i64: 256, 256>}, {pipeline_mode = #tpu.pipeline_mode<synchronous>, transform_indices = @transform_10, window_bounds = array<i64: 256, 256>}, {pipeline_mode = #tpu.pipeline_mode<synchronous>, transform_indices = @transform_11, window_bounds = array<i64: 1, 256>}, {pipeline_mode = #tpu.pipeline_mode<synchronous>, transform_indices = @transform_12, window_bounds = array<i64: 1, 256>}, {pipeline_mode = #tpu.pipeline_mode<synchronous>, transform_indices = @transform_13, window_bounds = array<i64: 256, 1024>}, {pipeline_mode = #tpu.pipeline_mode<synchronous>, transform_indices = @transform_14, window_bounds = array<i64: 1, 1024>}, {pipeline_mode = #tpu.pipeline_mode<synchronous>, transform_indices = @transform_15, window_bounds = array<i64: 1024, 256>}, {pipeline_mode = #tpu.pipeline_mode<synchronous>, transform_indices = @transform_16, window_bounds = array<i64: 1, 256>}, {transform_indices = @transform_17, window_bounds = array<i64: 1, 8, 256>}]} {
    %c8_i32 = arith.constant 8 : i32
    %0 = arith.muli %arg1, %c8_i32 : i32
    %1 = tpu.assume_multiple %0, 8 : i32
    %c0 = arith.constant 0 : index
    %c0_0 = arith.constant 0 : index
    %c0_1 = arith.constant 0 : index
    %2 = vector.load %arg2[%c0, %c0_0, %c0_1] : memref<1x8x256xf32, #tpu.memory_space<vmem>>, vector<1x8x256xf32>
    %3 = vector.shape_cast %2 : vector<1x8x256xf32> to vector<8x256xf32>
    %c0_2 = arith.constant 0 : index
    %4 = arith.index_cast %1 : i32 to index
    %c0_3 = arith.constant 0 : index
    %5 = vector.load %arg2[%c0_2, %4, %c0_3] : memref<1x8x256xf32, #tpu.memory_space<vmem>>, vector<1x8x256xf32>
    %6 = vector.shape_cast %5 : vector<1x8x256xf32> to vector<8x256xf32>
    %c0_4 = arith.constant 0 : index
    %c0_5 = arith.constant 0 : index
    %c0_6 = arith.constant 0 : index
    %7 = vector.load %arg3[%c0_4, %c0_5, %c0_6] : memref<1x8x256xf32, #tpu.memory_space<vmem>>, vector<1x8x256xf32>
    %8 = vector.shape_cast %7 : vector<1x8x256xf32> to vector<8x256xf32>
    %c0_7 = arith.constant 0 : index
    %c0_8 = arith.constant 0 : index
    %9 = vector.load %arg13[%c0_7, %c0_8] : memref<1x256xf32, #tpu.memory_space<vmem>>, vector<1x256xf32>
    %c0_9 = arith.constant 0 : index
    %c0_10 = arith.constant 0 : index
    %10 = vector.load %arg14[%c0_9, %c0_10] : memref<1x256xf32, #tpu.memory_space<vmem>>, vector<1x256xf32>
    %11 = tpu.iota {dimensions = array<i32: 0>} : vector<8x8xi32>
    %12 = vector.broadcast %1 : i32 to vector<8x8xi32>
    %13 = arith.addi %12, %11 : vector<8x8xi32>
    %14 = tpu.iota {dimensions = array<i32: 1>} : vector<8x8xi32>
    %15 = arith.cmpi sgt, %14, %13 : vector<8x8xi32>
    %cst = arith.constant -1.000000e+09 : f32
    %cst_11 = arith.constant 0.000000e+00 : f32
    %16 = vector.broadcast %cst : f32 to vector<8x8xf32>
    %17 = vector.broadcast %cst_11 : f32 to vector<8x8xf32>
    %18 = arith.select %15, %16, %17 : vector<8x8xi1>, vector<8x8xf32>
    %c0_12 = arith.constant 0 : index
    %c0_13 = arith.constant 0 : index
    %c0_14 = arith.constant 0 : index
    %19 = vector.load %arg4[%c0_12, %c0_13, %c0_14] : memref<1x8x1xi32, #tpu.memory_space<vmem>>, vector<1x8x1xi32>
    %20 = vector.shape_cast %19 : vector<1x8x1xi32> to vector<8x1xi32>
    %c0_i32 = arith.constant 0 : i32
    %21 = vector.broadcast %c0_i32 : i32 to vector<8x1xi32>
    %22 = arith.cmpi ne, %20, %21 : vector<8x1xi32>
    %cst_15 = arith.constant -1.000000e+09 : f32
    %cst_16 = arith.constant 0.000000e+00 : f32
    %23 = vector.broadcast %cst_15 : f32 to vector<8x1xf32>
    %24 = vector.broadcast %cst_16 : f32 to vector<8x1xf32>
    %25 = arith.select %22, %23, %24 : vector<8x1xi1>, vector<8x1xf32>
    %c0_17 = arith.constant 0 : index
    %c0_18 = arith.constant 0 : index
    %26 = vector.load %arg5[%c0_17, %c0_18] : memref<256x256xf32, #tpu.memory_space<vmem>>, vector<256x256xf32>
    %cst_19 = arith.constant dense<0.000000e+00> : vector<8x256xf32>
    %27 = tpu.matmul %6, %26, %cst_19 {dimension_numbers = #tpu.dot_dimension_numbers<[1], [0], [0], [1], [0, 0, 1, 1], [], []>} : vector<8x256xf32>, vector<256x256xf32>, vector<8x256xf32> -> vector<8x256xf32>
    %c0_20 = arith.constant 0 : index
    %c0_21 = arith.constant 0 : index
    %28 = vector.load %arg6[%c0_20, %c0_21] : memref<256x256xf32, #tpu.memory_space<vmem>>, vector<256x256xf32>
    %cst_22 = arith.constant dense<0.000000e+00> : vector<8x256xf32>
    %29 = tpu.matmul %3, %28, %cst_22 {dimension_numbers = #tpu.dot_dimension_numbers<[1], [0], [0], [1], [0, 0, 1, 1], [], []>} : vector<8x256xf32>, vector<256x256xf32>, vector<8x256xf32> -> vector<8x256xf32>
    %c0_23 = arith.constant 0 : index
    %c0_24 = arith.constant 0 : index
    %30 = vector.load %arg7[%c0_23, %c0_24] : memref<256x256xf32, #tpu.memory_space<vmem>>, vector<256x256xf32>
    %cst_25 = arith.constant dense<0.000000e+00> : vector<8x256xf32>
    %31 = tpu.matmul %3, %30, %cst_25 {dimension_numbers = #tpu.dot_dimension_numbers<[1], [0], [0], [1], [0, 0, 1, 1], [], []>} : vector<8x256xf32>, vector<256x256xf32>, vector<8x256xf32> -> vector<8x256xf32>
    %32 = vector.shape_cast %27 : vector<8x256xf32> to vector<8x4x64xf32>
    %33 = tpu.transpose %32, [1, 0, 2] : vector<8x4x64xf32> -> vector<4x8x64xf32>
    %34 = vector.shape_cast %29 : vector<8x256xf32> to vector<8x4x64xf32>
    %35 = tpu.transpose %34, [1, 0, 2] : vector<8x4x64xf32> -> vector<4x8x64xf32>
    %36 = vector.shape_cast %31 : vector<8x256xf32> to vector<8x4x64xf32>
    %37 = tpu.transpose %36, [1, 0, 2] : vector<8x4x64xf32> -> vector<4x8x64xf32>
    "tpu.trace_start"() <{level = 10 : i32, message = "hqe,hke->hqk"}> : () -> ()
    %cst_26 = arith.constant dense<0.000000e+00> : vector<4x8x8xf32>
    %38 = tpu.matmul %33, %35, %cst_26 {dimension_numbers = #tpu.dot_dimension_numbers<[2], [2], [1], [1], [0, 0, 0, 1, 1, 1], [0], [0]>} : vector<4x8x64xf32>, vector<4x8x64xf32>, vector<4x8x8xf32> -> vector<4x8x8xf32>
    "tpu.trace_stop"() : () -> ()
    %39 = vector.shape_cast %18 : vector<8x8xf32> to vector<1x8x8xf32>
    %40 = vector.broadcast %39 : vector<1x8x8xf32> to vector<4x8x8xf32>
    %41 = arith.addf %38, %40 : vector<4x8x8xf32>
    %cst_27 = arith.constant dense<0xFF800000> : vector<4x8xf32>
    %42 = vector.multi_reduction <maximumf>, %41, %cst_27 [2] : vector<4x8x8xf32> to vector<4x8xf32>
    %43 = vector.shape_cast %42 : vector<4x8xf32> to vector<4x8x1xf32>
    %44 = vector.broadcast %43 : vector<4x8x1xf32> to vector<4x8x8xf32>
    %45 = arith.subf %41, %44 : vector<4x8x8xf32>
    %46 = math.exp %45 : vector<4x8x8xf32>
    %cst_28 = arith.constant dense<0.000000e+00> : vector<4x8xf32>
    %47 = vector.multi_reduction <add>, %46, %cst_28 [2] : vector<4x8x8xf32> to vector<4x8xf32>
    %48 = vector.shape_cast %47 : vector<4x8xf32> to vector<4x8x1xf32>
    %49 = tpu.reciprocal %48 : vector<4x8x1xf32> -> vector<4x8x1xf32>
    %50 = vector.broadcast %49 : vector<4x8x1xf32> to vector<4x8x8xf32>
    %51 = arith.mulf %46, %50 : vector<4x8x8xf32>
    "tpu.trace_start"() <{level = 10 : i32, message = "hqk,hke->hqe"}> : () -> ()
    %cst_29 = arith.constant dense<0.000000e+00> : vector<4x8x64xf32>
    %52 = tpu.matmul %51, %37, %cst_29 {dimension_numbers = #tpu.dot_dimension_numbers<[2], [1], [1], [2], [0, 0, 0, 1, 1, 2], [0], [0]>} : vector<4x8x8xf32>, vector<4x8x64xf32>, vector<4x8x64xf32> -> vector<4x8x64xf32>
    "tpu.trace_stop"() : () -> ()
    %53 = tpu.transpose %52, [1, 0, 2] : vector<4x8x64xf32> -> vector<8x4x64xf32>
    %54 = vector.shape_cast %53 : vector<8x4x64xf32> to vector<8x256xf32>
    %c0_30 = arith.constant 0 : index
    %c0_31 = arith.constant 0 : index
    %55 = vector.load %arg8[%c0_30, %c0_31] : memref<256x256xf32, #tpu.memory_space<vmem>>, vector<256x256xf32>
    %cst_32 = arith.constant dense<0.000000e+00> : vector<8x256xf32>
    %56 = tpu.matmul %54, %55, %cst_32 {dimension_numbers = #tpu.dot_dimension_numbers<[1], [0], [0], [1], [0, 0, 1, 1], [], []>} : vector<8x256xf32>, vector<256x256xf32>, vector<8x256xf32> -> vector<8x256xf32>
    %57 = arith.addf %6, %56 : vector<8x256xf32>
    %cst_33 = arith.constant dense<0.000000e+00> : vector<8xf32>
    %58 = vector.multi_reduction <add>, %57, %cst_33 [1] : vector<8x256xf32> to vector<8xf32>
    %59 = vector.shape_cast %58 : vector<8xf32> to vector<8x1xf32>
    %cst_34 = arith.constant 2.560000e+02 : f32
    %60 = vector.broadcast %cst_34 : f32 to vector<8x1xf32>
    %61 = arith.divf %59, %60 : vector<8x1xf32>
    %62 = vector.broadcast %61 : vector<8x1xf32> to vector<8x256xf32>
    %63 = arith.subf %57, %62 : vector<8x256xf32>
    %64 = arith.mulf %63, %63 : vector<8x256xf32>
    %cst_35 = arith.constant dense<0.000000e+00> : vector<8xf32>
    %65 = vector.multi_reduction <add>, %64, %cst_35 [1] : vector<8x256xf32> to vector<8xf32>
    %66 = vector.shape_cast %65 : vector<8xf32> to vector<8x1xf32>
    %cst_36 = arith.constant 2.560000e+02 : f32
    %67 = vector.broadcast %cst_36 : f32 to vector<8x1xf32>
    %68 = arith.divf %66, %67 : vector<8x1xf32>
    %cst_37 = arith.constant 9.99999974E-6 : f32
    %69 = vector.broadcast %cst_37 : f32 to vector<8x1xf32>
    %70 = arith.addf %68, %69 : vector<8x1xf32>
    %71 = math.rsqrt %70 : vector<8x1xf32>
    %72 = vector.broadcast %71 : vector<8x1xf32> to vector<8x256xf32>
    %73 = arith.mulf %63, %72 : vector<8x256xf32>
    %74 = vector.broadcast %9 : vector<1x256xf32> to vector<8x256xf32>
    %75 = arith.mulf %73, %74 : vector<8x256xf32>
    %76 = vector.broadcast %10 : vector<1x256xf32> to vector<8x256xf32>
    %77 = arith.addf %75, %76 : vector<8x256xf32>
    %c0_38 = arith.constant 0 : index
    %c0_39 = arith.constant 0 : index
    %78 = vector.load %arg9[%c0_38, %c0_39] : memref<256x256xf32, #tpu.memory_space<vmem>>, vector<256x256xf32>
    %cst_40 = arith.constant dense<0.000000e+00> : vector<8x256xf32>
    %79 = tpu.matmul %77, %78, %cst_40 {dimension_numbers = #tpu.dot_dimension_numbers<[1], [0], [0], [1], [0, 0, 1, 1], [], []>} : vector<8x256xf32>, vector<256x256xf32>, vector<8x256xf32> -> vector<8x256xf32>
    %c0_41 = arith.constant 0 : index
    %c0_42 = arith.constant 0 : index
    %80 = vector.load %arg10[%c0_41, %c0_42] : memref<256x256xf32, #tpu.memory_space<vmem>>, vector<256x256xf32>
    %cst_43 = arith.constant dense<0.000000e+00> : vector<8x256xf32>
    %81 = tpu.matmul %8, %80, %cst_43 {dimension_numbers = #tpu.dot_dimension_numbers<[1], [0], [0], [1], [0, 0, 1, 1], [], []>} : vector<8x256xf32>, vector<256x256xf32>, vector<8x256xf32> -> vector<8x256xf32>
    %c0_44 = arith.constant 0 : index
    %c0_45 = arith.constant 0 : index
    %82 = vector.load %arg11[%c0_44, %c0_45] : memref<256x256xf32, #tpu.memory_space<vmem>>, vector<256x256xf32>
    %cst_46 = arith.constant dense<0.000000e+00> : vector<8x256xf32>
    %83 = tpu.matmul %8, %82, %cst_46 {dimension_numbers = #tpu.dot_dimension_numbers<[1], [0], [0], [1], [0, 0, 1, 1], [], []>} : vector<8x256xf32>, vector<256x256xf32>, vector<8x256xf32> -> vector<8x256xf32>
    %84 = vector.shape_cast %79 : vector<8x256xf32> to vector<8x4x64xf32>
    %85 = tpu.transpose %84, [1, 0, 2] : vector<8x4x64xf32> -> vector<4x8x64xf32>
    %86 = vector.shape_cast %81 : vector<8x256xf32> to vector<8x4x64xf32>
    %87 = tpu.transpose %86, [1, 0, 2] : vector<8x4x64xf32> -> vector<4x8x64xf32>
    %88 = vector.shape_cast %83 : vector<8x256xf32> to vector<8x4x64xf32>
    %89 = tpu.transpose %88, [1, 0, 2] : vector<8x4x64xf32> -> vector<4x8x64xf32>
    "tpu.trace_start"() <{level = 10 : i32, message = "hqe,hke->hqk"}> : () -> ()
    %cst_47 = arith.constant dense<0.000000e+00> : vector<4x8x8xf32>
    %90 = tpu.matmul %85, %87, %cst_47 {dimension_numbers = #tpu.dot_dimension_numbers<[2], [2], [1], [1], [0, 0, 0, 1, 1, 1], [0], [0]>} : vector<4x8x64xf32>, vector<4x8x64xf32>, vector<4x8x8xf32> -> vector<4x8x8xf32>
    "tpu.trace_stop"() : () -> ()
    %91 = vector.shape_cast %25 : vector<8x1xf32> to vector<1x8x1xf32>
    %92 = vector.broadcast %91 : vector<1x8x1xf32> to vector<4x8x8xf32>
    %93 = arith.addf %90, %92 : vector<4x8x8xf32>
    %cst_48 = arith.constant dense<0xFF800000> : vector<4x8xf32>
    %94 = vector.multi_reduction <maximumf>, %93, %cst_48 [2] : vector<4x8x8xf32> to vector<4x8xf32>
    %95 = vector.shape_cast %94 : vector<4x8xf32> to vector<4x8x1xf32>
    %96 = vector.broadcast %95 : vector<4x8x1xf32> to vector<4x8x8xf32>
    %97 = arith.subf %93, %96 : vector<4x8x8xf32>
    %98 = math.exp %97 : vector<4x8x8xf32>
    %cst_49 = arith.constant dense<0.000000e+00> : vector<4x8xf32>
    %99 = vector.multi_reduction <add>, %98, %cst_49 [2] : vector<4x8x8xf32> to vector<4x8xf32>
    %100 = vector.shape_cast %99 : vector<4x8xf32> to vector<4x8x1xf32>
    %101 = tpu.reciprocal %100 : vector<4x8x1xf32> -> vector<4x8x1xf32>
    %102 = vector.broadcast %101 : vector<4x8x1xf32> to vector<4x8x8xf32>
    %103 = arith.mulf %98, %102 : vector<4x8x8xf32>
    "tpu.trace_start"() <{level = 10 : i32, message = "hqk,hke->hqe"}> : () -> ()
    %cst_50 = arith.constant dense<0.000000e+00> : vector<4x8x64xf32>
    %104 = tpu.matmul %103, %89, %cst_50 {dimension_numbers = #tpu.dot_dimension_numbers<[2], [1], [1], [2], [0, 0, 0, 1, 1, 2], [0], [0]>} : vector<4x8x8xf32>, vector<4x8x64xf32>, vector<4x8x64xf32> -> vector<4x8x64xf32>
    "tpu.trace_stop"() : () -> ()
    %105 = tpu.transpose %104, [1, 0, 2] : vector<4x8x64xf32> -> vector<8x4x64xf32>
    %106 = vector.shape_cast %105 : vector<8x4x64xf32> to vector<8x256xf32>
    %c0_51 = arith.constant 0 : index
    %c0_52 = arith.constant 0 : index
    %107 = vector.load %arg12[%c0_51, %c0_52] : memref<256x256xf32, #tpu.memory_space<vmem>>, vector<256x256xf32>
    %cst_53 = arith.constant dense<0.000000e+00> : vector<8x256xf32>
    %108 = tpu.matmul %106, %107, %cst_53 {dimension_numbers = #tpu.dot_dimension_numbers<[1], [0], [0], [1], [0, 0, 1, 1], [], []>} : vector<8x256xf32>, vector<256x256xf32>, vector<8x256xf32> -> vector<8x256xf32>
    %109 = arith.addf %77, %108 : vector<8x256xf32>
    %cst_54 = arith.constant dense<0.000000e+00> : vector<8xf32>
    %110 = vector.multi_reduction <add>, %109, %cst_54 [1] : vector<8x256xf32> to vector<8xf32>
    %111 = vector.shape_cast %110 : vector<8xf32> to vector<8x1xf32>
    %cst_55 = arith.constant 2.560000e+02 : f32
    %112 = vector.broadcast %cst_55 : f32 to vector<8x1xf32>
    %113 = arith.divf %111, %112 : vector<8x1xf32>
    %114 = vector.broadcast %113 : vector<8x1xf32> to vector<8x256xf32>
    %115 = arith.subf %109, %114 : vector<8x256xf32>
    %116 = arith.mulf %115, %115 : vector<8x256xf32>
    %cst_56 = arith.constant dense<0.000000e+00> : vector<8xf32>
    %117 = vector.multi_reduction <add>, %116, %cst_56 [1] : vector<8x256xf32> to vector<8xf32>
    %118 = vector.shape_cast %117 : vector<8xf32> to vector<8x1xf32>
    %cst_57 = arith.constant 2.560000e+02 : f32
    %119 = vector.broadcast %cst_57 : f32 to vector<8x1xf32>
    %120 = arith.divf %118, %119 : vector<8x1xf32>
    %cst_58 = arith.constant 9.99999974E-6 : f32
    %121 = vector.broadcast %cst_58 : f32 to vector<8x1xf32>
    %122 = arith.addf %120, %121 : vector<8x1xf32>
    %123 = math.rsqrt %122 : vector<8x1xf32>
    %124 = vector.broadcast %123 : vector<8x1xf32> to vector<8x256xf32>
    %125 = arith.mulf %115, %124 : vector<8x256xf32>
    %126 = vector.broadcast %9 : vector<1x256xf32> to vector<8x256xf32>
    %127 = arith.mulf %125, %126 : vector<8x256xf32>
    %128 = vector.broadcast %10 : vector<1x256xf32> to vector<8x256xf32>
    %129 = arith.addf %127, %128 : vector<8x256xf32>
    %c0_59 = arith.constant 0 : index
    %c0_60 = arith.constant 0 : index
    %130 = vector.load %arg15[%c0_59, %c0_60] : memref<256x1024xf32, #tpu.memory_space<vmem>>, vector<256x1024xf32>
    %cst_61 = arith.constant dense<0.000000e+00> : vector<8x1024xf32>
    %131 = tpu.matmul %129, %130, %cst_61 {dimension_numbers = #tpu.dot_dimension_numbers<[1], [0], [0], [1], [0, 0, 1, 1], [], []>} : vector<8x256xf32>, vector<256x1024xf32>, vector<8x1024xf32> -> vector<8x1024xf32>
    %c0_62 = arith.constant 0 : index
    %c0_63 = arith.constant 0 : index
    %132 = vector.load %arg16[%c0_62, %c0_63] : memref<1x1024xf32, #tpu.memory_space<vmem>>, vector<1x1024xf32>
    %133 = vector.broadcast %132 : vector<1x1024xf32> to vector<8x1024xf32>
    %134 = arith.addf %131, %133 : vector<8x1024xf32>
    %cst_64 = arith.constant 0.000000e+00 : f32
    %135 = vector.broadcast %cst_64 : f32 to vector<8x1024xf32>
    %136 = arith.maximumf %134, %135 : vector<8x1024xf32>
    %c0_65 = arith.constant 0 : index
    %c0_66 = arith.constant 0 : index
    %137 = vector.load %arg17[%c0_65, %c0_66] : memref<1024x256xf32, #tpu.memory_space<vmem>>, vector<1024x256xf32>
    %cst_67 = arith.constant dense<0.000000e+00> : vector<8x256xf32>
    %138 = tpu.matmul %136, %137, %cst_67 {dimension_numbers = #tpu.dot_dimension_numbers<[1], [0], [0], [1], [0, 0, 1, 1], [], []>} : vector<8x1024xf32>, vector<1024x256xf32>, vector<8x256xf32> -> vector<8x256xf32>
    %c0_68 = arith.constant 0 : index
    %c0_69 = arith.constant 0 : index
    %139 = vector.load %arg18[%c0_68, %c0_69] : memref<1x256xf32, #tpu.memory_space<vmem>>, vector<1x256xf32>
    %140 = vector.broadcast %139 : vector<1x256xf32> to vector<8x256xf32>
    %141 = arith.addf %138, %140 : vector<8x256xf32>
    %142 = arith.addf %129, %141 : vector<8x256xf32>
    %cst_70 = arith.constant dense<0.000000e+00> : vector<8xf32>
    %143 = vector.multi_reduction <add>, %142, %cst_70 [1] : vector<8x256xf32> to vector<8xf32>
    %144 = vector.shape_cast %143 : vector<8xf32> to vector<8x1xf32>
    %cst_71 = arith.constant 2.560000e+02 : f32
    %145 = vector.broadcast %cst_71 : f32 to vector<8x1xf32>
    %146 = arith.divf %144, %145 : vector<8x1xf32>
    %147 = vector.broadcast %146 : vector<8x1xf32> to vector<8x256xf32>
    %148 = arith.subf %142, %147 : vector<8x256xf32>
    %149 = arith.mulf %148, %148 : vector<8x256xf32>
    %cst_72 = arith.constant dense<0.000000e+00> : vector<8xf32>
    %150 = vector.multi_reduction <add>, %149, %cst_72 [1] : vector<8x256xf32> to vector<8xf32>
    %151 = vector.shape_cast %150 : vector<8xf32> to vector<8x1xf32>
    %cst_73 = arith.constant 2.560000e+02 : f32
    %152 = vector.broadcast %cst_73 : f32 to vector<8x1xf32>
    %153 = arith.divf %151, %152 : vector<8x1xf32>
    %cst_74 = arith.constant 9.99999974E-6 : f32
    %154 = vector.broadcast %cst_74 : f32 to vector<8x1xf32>
    %155 = arith.addf %153, %154 : vector<8x1xf32>
    %156 = math.rsqrt %155 : vector<8x1xf32>
    %157 = vector.broadcast %156 : vector<8x1xf32> to vector<8x256xf32>
    %158 = arith.mulf %148, %157 : vector<8x256xf32>
    %159 = vector.broadcast %9 : vector<1x256xf32> to vector<8x256xf32>
    %160 = arith.mulf %158, %159 : vector<8x256xf32>
    %161 = vector.broadcast %10 : vector<1x256xf32> to vector<8x256xf32>
    %162 = arith.addf %160, %161 : vector<8x256xf32>
    %c0_75 = arith.constant 0 : index
    %c0_76 = arith.constant 0 : index
    %c0_77 = arith.constant 0 : index
    %163 = vector.load %arg19[%c0_75, %c0_76, %c0_77] : memref<1x8x256xf32, #tpu.memory_space<vmem>>, vector<1x8x256xf32>
    %164 = vector.shape_cast %163 : vector<1x8x256xf32> to vector<8x256xf32>
    %165 = vector.shape_cast %162 : vector<8x256xf32> to vector<1x8x256xf32>
    tpu.vector_store %arg19[%c0_75, %c0_76, %c0_77], %165 {strides = array<i32>} : memref<1x8x256xf32, #tpu.memory_space<vmem>>, vector<1x8x256xf32>,
    return
  }
  func.func @transform_0(%arg0: i32, %arg1: i32) -> (i32, i32, i32) {
    %c0_i32 = arith.constant 0 : i32
    %c0_i32_0 = arith.constant 0 : i32
    %c0_i32_1 = arith.constant 0 : i32
    return %arg0, %c0_i32, %c0_i32_0 : i32, i32, i32
  }
  func.func @transform_1(%arg0: i32, %arg1: i32) -> (i32, i32, i32) {
    %c0_i32 = arith.constant 0 : i32
    %c0_i32_0 = arith.constant 0 : i32
    %c0_i32_1 = arith.constant 0 : i32
    return %arg0, %c0_i32, %c0_i32_0 : i32, i32, i32
  }
  func.func @transform_2(%arg0: i32, %arg1: i32) -> (i32, i32, i32) {
    %c0_i32 = arith.constant 0 : i32
    %c0_i32_0 = arith.constant 0 : i32
    return %arg0, %arg1, %c0_i32 : i32, i32, i32
  }
  func.func @transform_3(%arg0: i32, %arg1: i32) -> (i32, i32) {
    %c0_i32 = arith.constant 0 : i32
    %c0_i32_0 = arith.constant 0 : i32
    %c0_i32_1 = arith.constant 0 : i32
    return %c0_i32, %c0_i32_0 : i32, i32
  }
  func.func @transform_4(%arg0: i32, %arg1: i32) -> (i32, i32) {
    %c0_i32 = arith.constant 0 : i32
    %c0_i32_0 = arith.constant 0 : i32
    %c0_i32_1 = arith.constant 0 : i32
    return %c0_i32, %c0_i32_0 : i32, i32
  }
  func.func @transform_5(%arg0: i32, %arg1: i32) -> (i32, i32) {
    %c0_i32 = arith.constant 0 : i32
    %c0_i32_0 = arith.constant 0 : i32
    %c0_i32_1 = arith.constant 0 : i32
    return %c0_i32, %c0_i32_0 : i32, i32
  }
  func.func @transform_6(%arg0: i32, %arg1: i32) -> (i32, i32) {
    %c0_i32 = arith.constant 0 : i32
    %c0_i32_0 = arith.constant 0 : i32
    %c0_i32_1 = arith.constant 0 : i32
    return %c0_i32, %c0_i32_0 : i32, i32
  }
  func.func @transform_7(%arg0: i32, %arg1: i32) -> (i32, i32) {
    %c0_i32 = arith.constant 0 : i32
    %c0_i32_0 = arith.constant 0 : i32
    %c0_i32_1 = arith.constant 0 : i32
    return %c0_i32, %c0_i32_0 : i32, i32
  }
  func.func @transform_8(%arg0: i32, %arg1: i32) -> (i32, i32) {
    %c0_i32 = arith.constant 0 : i32
    %c0_i32_0 = arith.constant 0 : i32
    %c0_i32_1 = arith.constant 0 : i32
    return %c0_i32, %c0_i32_0 : i32, i32
  }
  func.func @transform_9(%arg0: i32, %arg1: i32) -> (i32, i32) {
    %c0_i32 = arith.constant 0 : i32
    %c0_i32_0 = arith.constant 0 : i32
    %c0_i32_1 = arith.constant 0 : i32
    return %c0_i32, %c0_i32_0 : i32, i32
  }
  func.func @transform_10(%arg0: i32, %arg1: i32) -> (i32, i32) {
    %c0_i32 = arith.constant 0 : i32
    %c0_i32_0 = arith.constant 0 : i32
    %c0_i32_1 = arith.constant 0 : i32
    return %c0_i32, %c0_i32_0 : i32, i32
  }
  func.func @transform_11(%arg0: i32, %arg1: i32) -> (i32, i32) {
    %c0_i32 = arith.constant 0 : i32
    %c0_i32_0 = arith.constant 0 : i32
    %c0_i32_1 = arith.constant 0 : i32
    return %c0_i32, %c0_i32_0 : i32, i32
  }
  func.func @transform_12(%arg0: i32, %arg1: i32) -> (i32, i32) {
    %c0_i32 = arith.constant 0 : i32
    %c0_i32_0 = arith.constant 0 : i32
    %c0_i32_1 = arith.constant 0 : i32
    return %c0_i32, %c0_i32_0 : i32, i32
  }
  func.func @transform_13(%arg0: i32, %arg1: i32) -> (i32, i32) {
    %c0_i32 = arith.constant 0 : i32
    %c0_i32_0 = arith.constant 0 : i32
    %c0_i32_1 = arith.constant 0 : i32
    return %c0_i32, %c0_i32_0 : i32, i32
  }
  func.func @transform_14(%arg0: i32, %arg1: i32) -> (i32, i32) {
    %c0_i32 = arith.constant 0 : i32
    %c0_i32_0 = arith.constant 0 : i32
    %c0_i32_1 = arith.constant 0 : i32
    return %c0_i32, %c0_i32_0 : i32, i32
  }
  func.func @transform_15(%arg0: i32, %arg1: i32) -> (i32, i32) {
    %c0_i32 = arith.constant 0 : i32
    %c0_i32_0 = arith.constant 0 : i32
    %c0_i32_1 = arith.constant 0 : i32
    return %c0_i32, %c0_i32_0 : i32, i32
  }
  func.func @transform_16(%arg0: i32, %arg1: i32) -> (i32, i32) {
    %c0_i32 = arith.constant 0 : i32
    %c0_i32_0 = arith.constant 0 : i32
    %c0_i32_1 = arith.constant 0 : i32
    return %c0_i32, %c0_i32_0 : i32, i32
  }
  func.func @transform_17(%arg0: i32, %arg1: i32) -> (i32, i32, i32) {
    %c0_i32 = arith.constant 0 : i32
    %c0_i32_0 = arith.constant 0 : i32
    return %arg0, %arg1, %c0_i32 : i32, i32, i32
  }
}

</mosaic_0001>

<bundles_post_ra>
// kernel: tpu_custom_call.1
= control target key start
LH: loop header
LB: loop body
LE: loop exit
PB: predicated region body
PF: predicated region fallthrough
CT: control target
= control target key end

     0   :  { %s8818_s0 = inlined_call_operand.hbm [shape: f32[2,8,256], index: 0, kind: input, shape index: {}]   ;;  %s8819_s1 = inlined_call_operand.hbm [shape: f32[2,8,256], index: 1, kind: input, shape index: {}]   ;;  %s8820_s2 = inlined_call_operand.vmem [shape: s32[2,8,1], index: 2, kind: input, shape index: {}]   ;;  %s8821_s3 = inlined_call_operand.hbm [shape: f32[256,256], index: 3, kind: input, shape index: {}]   ;;  %s8822_s4 = inlined_call_operand.hbm [shape: f32[256,256], index: 4, kind: input, shape index: {}]   ;;  %s8823_s5 = inlined_call_operand.hbm [shape: f32[256,256], index: 5, kind: input, shape index: {}]   ;;  %s8824_s6 = inlined_call_operand.hbm [shape: f32[256,256], index: 6, kind: input, shape index: {}]   ;;  %s8825_s7 = inlined_call_operand.hbm [shape: f32[256,256], index: 7, kind: input, shape index: {}]   ;;  %s8826_s8 = inlined_call_operand.hbm [shape: f32[256,256], index: 8, kind: input, shape index: {}]   ;;  %s8827_s9 = inlined_call_operand.hbm [shape: f32[256,256], index: 9, kind: input, shape index: {}]   ;;  %s8828_s10 = inlined_call_operand.hbm [shape: f32[256,256], index: 10, kind: input, shape index: {}]   ;;  %s8829_s11 = inlined_call_operand.vmem [shape: f32[1,256], index: 11, kind: input, shape index: {}]   ;;  %s8830_s12 = inlined_call_operand.vmem [shape: f32[1,256], index: 12, kind: input, shape index: {}]   ;;  %s8831_s13 = inlined_call_operand.hbm [shape: f32[256,1024], index: 13, kind: input, shape index: {}]   ;;  %s8832_s14 = inlined_call_operand.vmem [shape: f32[1,1024], index: 14, kind: input, shape index: {}]   ;;  %s8833_s15 = inlined_call_operand.hbm [shape: f32[1024,256], index: 15, kind: input, shape index: {}]   ;;  %s8834_s16 = inlined_call_operand.vmem [shape: f32[1,256], index: 16, kind: input, shape index: {}]   ;;  %s8835_s17 = inlined_call_operand.hbm [shape: f32[2,8,256], index: 17, kind: output, shape index: {}]  }
   0x1   :  { %8849 = sst [smem:[#allocation35_spill]] %s8818_s0 }
   0x2   :  { %8850 = sst [smem:[#allocation36_spill]] %s8819_s1 }
   0x3   :  { %8851 = sst [smem:[#allocation37_spill]] %s8820_s2 }
   0x4   :  { %8852 = sst [smem:[#allocation38_spill]] %s8821_s3 }
   0x5   :  { %8853 = sst [smem:[#allocation39_spill]] %s8822_s4 }
   0x6   :  { %8854 = sst [smem:[#allocation40_spill]] %s8823_s5 }
   0x7   :  { %8855 = sst [smem:[#allocation41_spill]] %s8824_s6 }
   0x8   :  { %8856 = sst [smem:[#allocation42_spill]] %s8825_s7 }
   0x9   :  { %8857 = sst [smem:[#allocation43_spill]] %s8826_s8 }
   0xa   :  { %8858 = sst [smem:[#allocation44_spill]] %s8827_s9 }
   0xb   :  { %8859 = sst [smem:[#allocation45_spill]] %s8829_s11 }
   0xc   :  { %8860 = sst [smem:[#allocation46_spill]] %s8830_s12 }
   0xd   :  { %8861 = sst [smem:[#allocation47_spill]] %s8832_s14 }
   0xe   :  { %8862 = sst [smem:[#allocation48_spill]] %s8834_s16 }
   0xf   :  { %8863 = sst [smem:[#allocation49_spill]] %s8835_s17 }
  0x10   :  { %22 = vsyncpa [#allocation3], 0 }
  0x11   :  { %24 = vsyncpa [#allocation3 + $0x1], 0 }
  0x12   :  { %25 = vsyncpa [#allocation6], 0 }
  0x13   :  { %27 = vsyncpa [#allocation6 + $0x1], 0 }
  0x14   :  { %28 = vsyncpa [#allocation9], 0 }
  0x15   :  { %29 = vsyncpa [#allocation12], 0 }
  0x16   :  { %30 = vsyncpa [#allocation15], 0 }
  0x17   :  { %31 = vsyncpa [#allocation18], 0 }
  0x18   :  { %32 = vsyncpa [#allocation21], 0 }
  0x19   :  { %33 = vsyncpa [#allocation4], 0 }
  0x1a   :  { %35 = vsyncpa [#allocation4 + $0x1], 0  ;;  %s7826_s24 = smov 0   ;;  %s7828_s25 = smov 0  }
  0x1b   :  { %s7830_s26 = smov 0   ;;  %s7832_s27 = smov 0  }
  0x1c   :  { %s7834_s28 = smov 0   ;;  %s7836_s29 = smov 0  }
  0x1d LB: > { %8864 = sst [smem:[#allocation32_spill]] %s7703_s27  ;;  %s7857_s0 = sadd.s32 4294967295, %s7711_s29   ;;  %s7711_s29 = sphi %s7836_s29, %s41_s29   ;;  %s7707_s28 = sphi %s7834_s28, %s8917_s28   ;;  %s7703_s27 = sphi %s7832_s27, %s8916_s27   ;;  %s7699_s26 = sphi %s7830_s26, %s8915_s26   ;;  %s7695_s25 = sphi %s7828_s25, %s8914_s25   ;;  %s7691_s24 = sphi %s7826_s24, %s8913_s24  }
  0x1e   : > { %8865 = sst [smem:[#allocation33_spill]] %s7857_s0  ;;  %p5806_p0 = scmp.ge.s32.totalorder %s7711_s29, 1 }
  0x1f   : > { %p8844_p1 = scmp.eq.s32.totalorder %s7857_s0, 0  ;;  %p460_p2 = scmp.lt.s32.totalorder %s7711_s29, 3 }
  0x20   : > { %s7713_s18 = smov [#allocation7]   ;;  %s7714_s20 = smov [#allocation8]  }
  0x21   : > { %p7862_p3 = pnand %p5806_p0, %p460_p2  ;;  %s472_s19 = sshll.u32 %s7713_s18, 4  ;;  %s7866_s19 = int_to_ptr.vmem [resolvable:$true] %s472_s19 }
  0x22   : > { %s485_s21 = sshll.u32 %s7714_s20, 4  ;;  %s7715_s22 = smov [#allocation11]   ;;  %s7877_s21 = int_to_ptr.vmem [resolvable:$true] %s485_s21 }
  0x23   : > { %s8866_s30 = scalar_select %p7862_p3, 1, 0 }
  0x24   : > { %p7077_p4 = pneg %p7862_p3  ;;  %s7879_s23 = sshll.u32 %s7715_s22, 4  ;;  %s512_s23 = int_to_ptr.vmem [resolvable:$true] %s7879_s23 }
  0x25   : > { %8867 = sst [smem:[#allocation34_spill]] %s8866_s30  ;;  %s8869_s3 = sld [smem:[#allocation38_spill]] }
  0x26   : > { %p7873_p6 = pnand %p7077_p4, %p8844_p1 }
  0x28   : > { %p7889_p8 = pneg %p7873_p6 }
  0x2b   : > { %s7261_s16 = scalar_lea.hbm %s8869_s3, 8192 }
  0x2c   : > { %p7262_p7 = scmp.ne.s32.totalorder %s8869_s3, %s7261_s16  ;;  %p7268_p11 = scmp.lt.u32.totalorder %s7261_s16, %s8869_s3 }
  0x2e   : > { %p7264_p9 = pnand %p7889_p8, %p7262_p7 }
  0x30   : > { %p7265_p10 = pneg %p7264_p9 }
  0x32   : > { %p7270_p12 = pnand %p7268_p11, %p7265_p10 }
  0x34   : > { %7273 = shalt.err (!%p7270_p12)
}
  0x35   : > { %s7274_s2 = scalar_lea.vmem %s7866_s19, 8192  ;;  %p7282_p4 = scmp.lt.s32.totalorder %s7866_s19, %s7866_s19 }
  0x36   : > { %p7275_p13 = scmp.ne.s32.totalorder %s7866_s19, %s7274_s2  ;;  %p7283_p5 = scmp.lt.s32.totalorder %s7274_s2, %s7274_s2 }
  0x38   : > { %p7277_p0 = pnand %p7275_p13, %p7889_p8  ;;  %p7284_p7 = por %p7283_p5, %p7282_p4 }
  0x3a   : > { %p7278_p2 = pneg %p7277_p0 }
  0x3c   : > { %p7285_p9 = pnand %p7284_p7, %p7278_p2 }
  0x3e   : > { %7288 = shalt.err (!%p7285_p9)
}
  0x3f   : > { %s8846_s14 = smov 256   ;;  %s7717_s16 = smov 16  }
  0x40   : > { %7080 = dma.hbm_to_vmem [thread:$0]  (!%p7873_p6), %s8869_s3, 8192, %s7866_s19, [#allocation6], %s8846_s14, %s8846_s14, %s7717_s16  }
  0x41   : > { %s8871_s4 = sld [smem:[#allocation39_spill]] }
  0x47   : > { %s7289_s2 = scalar_lea.hbm %s8871_s4, 8192 }
  0x48   : > { %p7290_p5 = scmp.ne.s32.totalorder %s8871_s4, %s7289_s2  ;;  %p7296_p12 = scmp.lt.u32.totalorder %s7289_s2, %s8871_s4 }
  0x4a   : > { %p7292_p10 = pnand %p7290_p5, %p7889_p8 }
  0x4c   : > { %p7293_p11 = pneg %p7292_p10 }
  0x4e   : > { %p7298_p13 = pnand %p7296_p12, %p7293_p11 }
  0x50   : > { %7301 = shalt.err (!%p7298_p13)
}
  0x51   : > { %s7302_s19 = scalar_lea.vmem %s7877_s21, 8192  ;;  %p7310_p7 = scmp.lt.s32.totalorder %s7877_s21, %s7877_s21 }
  0x52   : > { %p7303_p0 = scmp.ne.s32.totalorder %s7877_s21, %s7302_s19  ;;  %p7311_p9 = scmp.lt.s32.totalorder %s7302_s19, %s7302_s19 }
  0x54   : > { %p7305_p2 = pnand %p7303_p0, %p7889_p8  ;;  %p7312_p5 = por %p7311_p9, %p7310_p7 }
  0x56   : > { %p7306_p4 = pneg %p7305_p2 }
  0x58   : > { %p7313_p10 = pnand %p7312_p5, %p7306_p4 }
  0x5a   : > { %7316 = shalt.err (!%p7313_p10)
}
  0x5b   : > { %7083 = dma.hbm_to_vmem [thread:$0]  (!%p7873_p6), %s8871_s4, 8192, %s7877_s21, [#allocation9], %s8846_s14, %s8846_s14, %s7717_s16  }
  0x5c   : > { %s8872_s6 = sld [smem:[#allocation41_spill]] }
  0x62   : > { %s7317_s17 = scalar_lea.hbm %s8872_s6, 8192 }
  0x63   : > { %p7318_p11 = scmp.ne.s32.totalorder %s8872_s6, %s7317_s17  ;;  %p7324_p0 = scmp.lt.u32.totalorder %s7317_s17, %s8872_s6 }
  0x65   : > { %p7320_p12 = pnand %p7318_p11, %p7889_p8 }
  0x67   : > { %p7321_p13 = pneg %p7320_p12 }
  0x69   : > { %p7326_p2 = pnand %p7324_p0, %p7321_p13 }
  0x6b   : > { %7329 = shalt.err (!%p7326_p2)
}
  0x6c   : > { %s7330_s19 = scalar_lea.vmem %s512_s23, 8192  ;;  %p7338_p5 = scmp.lt.s32.totalorder %s512_s23, %s512_s23 }
  0x6d   : > { %p7331_p4 = scmp.ne.s32.totalorder %s512_s23, %s7330_s19  ;;  %p7339_p10 = scmp.lt.s32.totalorder %s7330_s19, %s7330_s19 }
  0x6f   : > { %p7333_p7 = pnand %p7331_p4, %p7889_p8  ;;  %p7340_p1 = por %p7339_p10, %p7338_p5 }
  0x71   : > { %p7334_p9 = pneg %p7333_p7 }
  0x73   : > { %p7341_p3 = pnand %p7340_p1, %p7334_p9 }
  0x75   : > { %7344 = shalt.err (!%p7341_p3)
}
  0x76   : > { %7089 = dma.hbm_to_vmem [thread:$0]  (!%p7873_p6), %s8872_s6, 8192, %s512_s23, [#allocation12], %s8846_s14, %s8846_s14, %s7717_s16  }
  0x77   : > { %s7718_s12 = smov [#allocation14]   ;;  %s7719_s30 = smov [#allocation17]  }
  0x78   : > { %s537_s0 = sshll.u32 %s7718_s12, 4  ;;  %s563_s17 = sshll.u32 %s7719_s30, 4  ;;  %s538_s0 = int_to_ptr.vmem [resolvable:$true] %s537_s0  ;;  %s564_s17 = int_to_ptr.vmem [resolvable:$true] %s563_s17 }
  0x79   : > { %s8873_s8 = sld [smem:[#allocation43_spill]] }
  0x7f   : > { %s7345_s22 = scalar_lea.hbm %s8873_s8, 8192 }
  0x80   : > { %p7346_p1 = scmp.ne.s32.totalorder %s8873_s8, %s7345_s22  ;;  %p7352_p12 = scmp.lt.u32.totalorder %s7345_s22, %s8873_s8 }
  0x82   : > { %p7348_p3 = pnand %p7346_p1, %p7889_p8 }
  0x84   : > { %p7349_p11 = pneg %p7348_p3 }
  0x86   : > { %p7354_p13 = pnand %p7352_p12, %p7349_p11 }
  0x88   : > { %7357 = shalt.err (!%p7354_p13)
}
  0x89   : > { %s7358_s23 = scalar_lea.vmem %s538_s0, 8192  ;;  %p7366_p7 = scmp.lt.s32.totalorder %s538_s0, %s538_s0 }
  0x8a   : > { %p7359_p0 = scmp.ne.s32.totalorder %s538_s0, %s7358_s23  ;;  %p7367_p9 = scmp.lt.s32.totalorder %s7358_s23, %s7358_s23 }
  0x8c   : > { %p7361_p2 = pnand %p7359_p0, %p7889_p8  ;;  %p7368_p5 = por %p7367_p9, %p7366_p7 }
  0x8e   : > { %p7362_p4 = pneg %p7361_p2 }
  0x90   : > { %p7369_p10 = pnand %p7368_p5, %p7362_p4 }
  0x92   : > { %7372 = shalt.err (!%p7369_p10)
}
  0x93   : > { %7095 = dma.hbm_to_vmem [thread:$0]  (!%p7873_p6), %s8873_s8, 8192, %s538_s0, [#allocation15], %s8846_s14, %s8846_s14, %s7717_s16  }
  0x94   : > { %s7373_s18 = scalar_lea.hbm %s8828_s10, 8192 }
  0x95   : > { %p7374_p1 = scmp.ne.s32.totalorder %s8828_s10, %s7373_s18  ;;  %p7380_p12 = scmp.lt.u32.totalorder %s7373_s18, %s8828_s10 }
  0x97   : > { %p7376_p3 = pnand %p7374_p1, %p7889_p8 }
  0x99   : > { %p7377_p11 = pneg %p7376_p3 }
  0x9b   : > { %p7382_p13 = pnand %p7380_p12, %p7377_p11 }
  0x9d   : > { %7385 = shalt.err (!%p7382_p13)
}
  0x9e   : > { %s7386_s21 = scalar_lea.vmem %s564_s17, 8192  ;;  %p7394_p7 = scmp.lt.s32.totalorder %s564_s17, %s564_s17 }
  0x9f   : > { %p7387_p0 = scmp.ne.s32.totalorder %s564_s17, %s7386_s21  ;;  %p7395_p9 = scmp.lt.s32.totalorder %s7386_s21, %s7386_s21 }
  0xa1   : > { %p7389_p2 = pnand %p7387_p0, %p7889_p8  ;;  %p7396_p5 = por %p7395_p9, %p7394_p7 }
  0xa3   : > { %p7390_p4 = pneg %p7389_p2 }
  0xa5   : > { %p7397_p10 = pnand %p7396_p5, %p7390_p4 }
  0xa7   : > { %7400 = shalt.err (!%p7397_p10)
}
  0xa8   : > { %7101 = dma.hbm_to_vmem [thread:$0]  (!%p7873_p6), %s8828_s10, 8192, %s564_s17, [#allocation18], %s8846_s14, %s8846_s14, %s7717_s16  }
  0xa9   : > { %s7720_s3 = smov [#allocation10]   ;;  %s7721_s12 = smov [#allocation13]  }
  0xaa   : > { %s498_s11 = sshll.u32 %s7720_s3, 4  ;;  %s524_s30 = sshll.u32 %s7721_s12, 4  ;;  %s499_s11 = int_to_ptr.vmem [resolvable:$true] %s498_s11  ;;  %s525_s30 = int_to_ptr.vmem [resolvable:$true] %s524_s30 }
  0xab   : > { %s8874_s5 = sld [smem:[#allocation40_spill]] }
  0xb1   : > { %s7401_s22 = scalar_lea.hbm %s8874_s5, 8192 }
  0xb2   : > { %p7402_p1 = scmp.ne.s32.totalorder %s8874_s5, %s7401_s22  ;;  %p7408_p12 = scmp.lt.u32.totalorder %s7401_s22, %s8874_s5 }
  0xb4   : > { %p7404_p3 = pnand %p7402_p1, %p7889_p8 }
  0xb6   : > { %p7405_p11 = pneg %p7404_p3 }
  0xb8   : > { %p7410_p13 = pnand %p7408_p12, %p7405_p11 }
  0xba   : > { %7413 = shalt.err (!%p7410_p13)
}
  0xbb   : > { %s7414_s17 = scalar_lea.vmem %s499_s11, 8192  ;;  %p7422_p7 = scmp.lt.s32.totalorder %s499_s11, %s499_s11 }
  0xbc   : > { %p7415_p0 = scmp.ne.s32.totalorder %s499_s11, %s7414_s17  ;;  %p7423_p9 = scmp.lt.s32.totalorder %s7414_s17, %s7414_s17 }
  0xbe   : > { %p7417_p2 = pnand %p7415_p0, %p7889_p8  ;;  %p7424_p5 = por %p7423_p9, %p7422_p7 }
  0xc0   : > { %p7418_p4 = pneg %p7417_p2 }
  0xc2   : > { %p7425_p10 = pnand %p7424_p5, %p7418_p4 }
  0xc4   : > { %7428 = shalt.err (!%p7425_p10)
}
  0xc5   : > { %7086 = dma.hbm_to_vmem [thread:$0]  (!%p7873_p6), %s8874_s5, 8192, %s499_s11, [#allocation9], %s8846_s14, %s8846_s14, %s7717_s16  }
  0xc6   : > { %s8875_s7 = sld [smem:[#allocation42_spill]] }
  0xcc   : > { %s7429_s20 = scalar_lea.hbm %s8875_s7, 8192 }
  0xcd   : > { %p7430_p1 = scmp.ne.s32.totalorder %s8875_s7, %s7429_s20  ;;  %p7436_p12 = scmp.lt.u32.totalorder %s7429_s20, %s8875_s7 }
  0xcf   : > { %p7432_p3 = pnand %p7430_p1, %p7889_p8 }
  0xd1   : > { %p7433_p11 = pneg %p7432_p3 }
  0xd3   : > { %p7438_p13 = pnand %p7436_p12, %p7433_p11 }
  0xd5   : > { %7441 = shalt.err (!%p7438_p13)
}
  0xd6   : > { %s7442_s0 = scalar_lea.vmem %s525_s30, 8192  ;;  %p7450_p7 = scmp.lt.s32.totalorder %s525_s30, %s525_s30 }
  0xd7   : > { %p7443_p0 = scmp.ne.s32.totalorder %s525_s30, %s7442_s0  ;;  %p7451_p9 = scmp.lt.s32.totalorder %s7442_s0, %s7442_s0 }
  0xd9   : > { %p7445_p2 = pnand %p7443_p0, %p7889_p8  ;;  %p7452_p5 = por %p7451_p9, %p7450_p7 }
  0xdb   : > { %p7446_p4 = pneg %p7445_p2 }
  0xdd   : > { %p7453_p10 = pnand %p7452_p5, %p7446_p4 }
  0xdf   : > { %7456 = shalt.err (!%p7453_p10)
}
  0xe0   : > { %7092 = dma.hbm_to_vmem [thread:$0]  (!%p7873_p6), %s8875_s7, 8192, %s525_s30, [#allocation12], %s8846_s14, %s8846_s14, %s7717_s16  }
  0xe1   : > { %s7722_s23 = smov [#allocation16]   ;;  %s7723_s12 = smov [#allocation19]  }
  0xe2   : > { %s550_s3 = sshll.u32 %s7722_s23, 4  ;;  %s582_s18 = sshll.u32 %s7723_s12, 4  ;;  %s551_s3 = int_to_ptr.vmem [resolvable:$true] %s550_s3  ;;  %s583_s18 = int_to_ptr.vmem [resolvable:$true] %s582_s18 }
  0xe3   : > { %s8876_s9 = sld [smem:[#allocation44_spill]] }
  0xe9   : > { %s7457_s2 = scalar_lea.hbm %s8876_s9, 8192 }
  0xea   : > { %p7458_p1 = scmp.ne.s32.totalorder %s8876_s9, %s7457_s2  ;;  %p7464_p12 = scmp.lt.u32.totalorder %s7457_s2, %s8876_s9 }
  0xec   : > { %p7460_p3 = pnand %p7458_p1, %p7889_p8 }
  0xee   : > { %p7461_p11 = pneg %p7460_p3 }
  0xf0   : > { %p7466_p13 = pnand %p7464_p12, %p7461_p11 }
  0xf2   : > { %7469 = shalt.err (!%p7466_p13)
}
  0xf3   : > { %s7470_s30 = scalar_lea.vmem %s551_s3, 8192  ;;  %p7478_p7 = scmp.lt.s32.totalorder %s551_s3, %s551_s3 }
  0xf4   : > { %p7471_p0 = scmp.ne.s32.totalorder %s551_s3, %s7470_s30  ;;  %p7479_p9 = scmp.lt.s32.totalorder %s7470_s30, %s7470_s30 }
  0xf6   : > { %p7473_p2 = pnand %p7471_p0, %p7889_p8  ;;  %p7480_p5 = por %p7479_p9, %p7478_p7 }
  0xf8   : > { %p7474_p4 = pneg %p7473_p2 }
  0xfa   : > { %p7481_p10 = pnand %p7480_p5, %p7474_p4 }
  0xfc   : > { %7484 = shalt.err (!%p7481_p10)
}
  0xfd   : > { %7098 = dma.hbm_to_vmem [thread:$0]  (!%p7873_p6), %s8876_s9, 8192, %s551_s3, [#allocation15], %s8846_s14, %s8846_s14, %s7717_s16  }
  0xfe   : > { %s7485_s22 = scalar_lea.hbm %s8831_s13, 32768 }
  0xff   : > { %p7486_p1 = scmp.ne.s32.totalorder %s8831_s13, %s7485_s22  ;;  %p7492_p12 = scmp.lt.u32.totalorder %s7485_s22, %s8831_s13 }
 0x101   : > { %p7488_p3 = pnand %p7486_p1, %p7889_p8 }
 0x103   : > { %p7489_p11 = pneg %p7488_p3 }
 0x105   : > { %p7494_p13 = pnand %p7492_p12, %p7489_p11 }
 0x107   : > { %7497 = shalt.err (!%p7494_p13)
}
 0x108   : > { %s7498_s11 = scalar_lea.vmem %s583_s18, 32768  ;;  %p7506_p7 = scmp.lt.s32.totalorder %s583_s18, %s583_s18 }
 0x109   : > { %p7499_p0 = scmp.ne.s32.totalorder %s583_s18, %s7498_s11  ;;  %p7507_p9 = scmp.lt.s32.totalorder %s7498_s11, %s7498_s11 }
 0x10b   : > { %p7501_p2 = pnand %p7499_p0, %p7889_p8  ;;  %p7508_p5 = por %p7507_p9, %p7506_p7 }
 0x10d   : > { %p7502_p4 = pneg %p7501_p2 }
 0x10f   : > { %p7509_p10 = pnand %p7508_p5, %p7502_p4 }
 0x111   : > { %7512 = shalt.err (!%p7509_p10)
}
 0x112   : > { %s7724_s3 = smov 1024   ;;  %s7725_s30 = smov 64  }
 0x113   : > { %7104 = dma.hbm_to_vmem [thread:$0]  (!%p7873_p6), %s8831_s13, 32768, %s583_s18, [#allocation18], %s7724_s3, %s7724_s3, %s7725_s30  }
 0x114   : > { %s7726_s12 = smov [#allocation20]   ;;  %s7513_s19 = scalar_lea.hbm %s8833_s15, 32768 }
 0x115   : > { %s598_s20 = sshll.u32 %s7726_s12, 4  ;;  %p7514_p1 = scmp.ne.s32.totalorder %s8833_s15, %s7513_s19  ;;  %s599_s20 = int_to_ptr.vmem [resolvable:$true] %s598_s20 }
 0x116   : > { %p7520_p12 = scmp.lt.u32.totalorder %s7513_s19, %s8833_s15 }
 0x117   : > { %p7516_p3 = pnand %p7514_p1, %p7889_p8 }
 0x119   : > { %p7517_p11 = pneg %p7516_p3 }
 0x11b   : > { %p7522_p13 = pnand %p7520_p12, %p7517_p11 }
 0x11d   : > { %7525 = shalt.err (!%p7522_p13)
}
 0x11e   : > { %s7526_s18 = scalar_lea.vmem %s599_s20, 32768  ;;  %p7534_p7 = scmp.lt.s32.totalorder %s599_s20, %s599_s20 }
 0x11f   : > { %p7527_p0 = scmp.ne.s32.totalorder %s599_s20, %s7526_s18  ;;  %p7535_p9 = scmp.lt.s32.totalorder %s7526_s18, %s7526_s18 }
 0x121   : > { %p7529_p2 = pnand %p7527_p0, %p7889_p8  ;;  %p7536_p5 = por %p7535_p9, %p7534_p7 }
 0x123   : > { %p7530_p4 = pneg %p7529_p2 }
 0x125   : > { %p7537_p10 = pnand %p7536_p5, %p7530_p4 }
 0x127   : > { %7540 = shalt.err (!%p7537_p10)
}
 0x128   : > { %s8877_s3 = smov 256   ;;  %s8878_s27 = sld [smem:[#allocation33_spill]] }
 0x129   : > { %7107 = dma.hbm_to_vmem [thread:$0]  (!%p7873_p6), %s8833_s15, 32768, %s599_s20, [#allocation21], %s8877_s3, %s8877_s3, %s7717_s16  }
 0x12a   : > { %s5805_s1 = sadd.s32 4294967294, %s7711_s29   ;;  %s53_s17 = sadd.s32 1, %s7707_s28 }
 0x12b   : > { %p55_p8 = scmp.ge.s32.totalorder %s53_s17, 2  ;;  %s60_s23 = sadd.s32 1, %s7699_s26 }
 0x12c   : > { %p67_p1 = scmp.ne.s32.totalorder %s7699_s26, %s7695_s25  ;;  %p68_p3 = scmp.eq.s32.totalorder %s7711_s29, 0 }
 0x12d   : > { %s8919_s17 = smov (%p55_p8, %s53_s17), 0  ;;  %p73_p12 = scmp.ne.s32.totalorder %s7695_s25, %s7691_s24 }
 0x12e   : > { %p8113_p11 = por %p68_p3, %p67_p1  ;;  %s57_s16 = ssub.s32 %s7707_s28, %s8919_s17 }
 0x12f   : > { %p447_p6 = scmp.eq.s32.totalorder %s8878_s27, 1  ;;  %p58_p13 = scmp.eq.s32.totalorder %s57_s16, 0 }
 0x130   : > { %p8880_p0 = scmp.eq.s32.totalorder %s8878_s27, 0  ;;  %p453_p7 = scmp.eq.s32.totalorder %s5805_s1, 1 }
 0x131   : > { %p8128_p4 = por %p447_p6, %p67_p1  ;;  %p7129_p5 = scmp.lt.s32.totalorder %s7711_s29, 2 }
 0x132   : > { %p8124_p2 = por %p8880_p0, %p73_p12  ;;  %p8135_p9 = por %p453_p7, %p73_p12 }
 0x133   : > { %s8882_s22 = scalar_select %p8128_p4, 1, 0 }
 0x134   : > { %s8881_s20 = scalar_select %p8124_p2, 1, 0 }
 0x135   : > { %s8133_s2 = scalar_select %p58_p13, %s7699_s26, %s60_s23  }
 0x136   : > { %s8883_s19 = scalar_select %p8135_p9, 1, 0 }
 0x137   : > { %s615_s21 = sand.u32 1, %s7699_s26   ;;  %s5884_s0 = sshll.u32 %s7707_s28, 8 }
 0x138   : > { %s8142_s11 = sshll.u32 %s615_s21, 4  ;;  %s8884_s14 = sld [smem:[#allocation35_spill]] }
 0x139   : > { %s619_s27 = scalar_lea.vmem [#allocation2], %s8142_s11  ;;  %p8152_p10 = pnand %p7129_p5, %p8113_p11 }
 0x13a   : > { %s627_s1 = sshll.u32 %s619_s27, 4  ;;  %s8886_s3 = sld [smem:[#allocation36_spill]]  ;;  %s8156_s1 = int_to_ptr.vmem [resolvable:$true] %s627_s1 }
 0x13b   : > { %s616_s5 = scalar_lea.sflag [#allocation3], %s615_s21  ;;  %p7543_p1 = pneg %p8152_p10 }
 0x13e   : > { %s8147_s30 = scalar_lea.hbm %s8884_s14, %s5884_s0  ;;  %s7546_s7 = scalar_lea.hbm %s8884_s14, 512 }
 0x13f   : > { %s7541_s6 = scalar_lea.hbm %s8147_s30, 256  ;;  %p7547_p12 = scmp.lt.u32.totalorder %s8147_s30, %s8884_s14 }
 0x140   : > { %s8161_s4 = scalar_lea.hbm %s8886_s3, %s5884_s0  ;;  %p7542_p8 = scmp.ne.s32.totalorder %s8147_s30, %s7541_s6 }
 0x141   : > { %p7548_p6 = scmp.lt.u32.totalorder %s7546_s7, %s7541_s6  ;;  %p7550_p0 = scmp.lt.u32.totalorder %s7541_s6, %s8147_s30 }
 0x142   : > { %p7544_p3 = pnand %p7543_p1, %p7542_p8 }
 0x143   : > { %p7549_p13 = por %p7548_p6, %p7547_p12 }
 0x144   : > { %p7545_p11 = pneg %p7544_p3 }
 0x145   : > { %p7551_p7 = por %p7550_p0, %p7549_p13 }
 0x147   : > { %p7552_p5 = pnand %p7551_p7, %p7545_p11 }
 0x149   : > { %7555 = shalt.err (!%p7552_p5)
}
 0x14a   : > { %s7556_s21 = scalar_lea.vmem %s8156_s1, 256  ;;  %s7727_s0 = smov [#allocation2]  }
 0x14b   : > { %p7557_p8 = scmp.ne.s32.totalorder %s8156_s1, %s7556_s21  ;;  %s7561_s16 = sshll.u32 %s7727_s0, 4  ;;  %s7562_s16 = int_to_ptr.vmem [resolvable:$false] %s7561_s16 }
 0x14c   : > { %s7563_s8 = scalar_lea.vmem %s7562_s16, 512  ;;  %p7564_p4 = scmp.lt.s32.totalorder %s8156_s1, %s7562_s16 }
 0x14d   : > { %p7559_p3 = pnand %p7557_p8, %p7543_p1  ;;  %p7565_p12 = scmp.lt.s32.totalorder %s7563_s8, %s7556_s21 }
 0x14f   : > { %p7560_p9 = pneg %p7559_p3  ;;  %p7566_p6 = por %p7565_p12, %p7564_p4 }
 0x151   : > { %p7567_p13 = pnand %p7566_p6, %p7560_p9 }
 0x153   : > { %7570 = shalt.err (!%p7567_p13)
}
 0x154   : > { %7111 = dma.hbm_to_vmem [thread:$0]  (!%p8152_p10), %s8147_s30, 256, %s8156_s1, %s616_s5  }
 0x155   : > { %s634_s6 = sand.u32 1, %s7711_s29   ;;  %s638_s7 = scalar_lea.vmem [#allocation5], %s8142_s11 }
 0x156   : > { %s646_s9 = sshll.u32 %s638_s7, 4  ;;  %s635_s18 = scalar_lea.sflag [#allocation6], %s634_s6  ;;  %s647_s9 = int_to_ptr.vmem [resolvable:$true] %s646_s9 }
 0x157   : > { %s7571_s12 = scalar_lea.hbm %s8161_s4, 256  ;;  %s7576_s0 = scalar_lea.hbm %s8886_s3, 512 }
 0x158   : > { %p7572_p4 = scmp.ne.s32.totalorder %s8161_s4, %s7571_s12  ;;  %p7577_p0 = scmp.lt.u32.totalorder %s8161_s4, %s8886_s3 }
 0x159   : > { %p7578_p7 = scmp.lt.u32.totalorder %s7576_s0, %s7571_s12  ;;  %p7580_p8 = scmp.lt.u32.totalorder %s7571_s12, %s8161_s4 }
 0x15a   : > { %p7574_p9 = pnand %p7572_p4, %p7543_p1 }
 0x15b   : > { %p7579_p5 = por %p7578_p7, %p7577_p0 }
 0x15c   : > { %p7575_p11 = pneg %p7574_p9 }
 0x15d   : > { %p7581_p3 = por %p7580_p8, %p7579_p5 }
 0x15f   : > { %p7582_p12 = pnand %p7581_p3, %p7575_p11 }
 0x161   : > { %7585 = shalt.err (!%p7582_p12)
}
 0x162   : > { %s7586_s5 = scalar_lea.vmem %s647_s9, 256  ;;  %s7728_s11 = smov [#allocation5]  }
 0x163   : > { %p7587_p6 = scmp.ne.s32.totalorder %s647_s9, %s7586_s5  ;;  %s7591_s30 = sshll.u32 %s7728_s11, 4  ;;  %s7592_s30 = int_to_ptr.vmem [resolvable:$false] %s7591_s30 }
 0x164   : > { %s7593_s1 = scalar_lea.vmem %s7592_s30, 512  ;;  %p7594_p9 = scmp.lt.s32.totalorder %s647_s9, %s7592_s30 }
 0x165   : > { %p7589_p13 = pnand %p7587_p6, %p7543_p1  ;;  %p7595_p2 = scmp.lt.s32.totalorder %s7593_s1, %s7586_s5 }
 0x167   : > { %p7590_p4 = pneg %p7589_p13  ;;  %p7596_p0 = por %p7595_p2, %p7594_p9 }
 0x169   : > { %p7597_p7 = pnand %p7596_p0, %p7590_p4 }
 0x16b   : > { %7600 = shalt.err (!%p7597_p7)
}
 0x16c   : > { %7114 = dma.hbm_to_vmem [thread:$0]  (!%p8152_p10), %s8161_s4, 256, %s647_s9, %s635_s18  }
 0x16d   : > { %s8887_s6 = sld [smem:[#allocation34_spill]] }
 0x173   : > { %p8888_p11 = scmp.ne.s32.totalorder %s8887_s6, 0 }
 0x174   : > { %s8212_s7 = sand.u32 (!%p8888_p11), 1, %s7695_s25   ;;  %p8889_p2 = scmp.ne.s32.totalorder (!%p8888_p11), %s8881_s20, 0 }
 0x175   : > { %665 = sbr.rel (%p8888_p11) target bundleno = 5131 (0x140b), region = 88  ;;  %s8215_s12 = sshll.u32 (!%p8888_p11), %s8212_s7, 4 }
 0x176   : > { %s668_s27 = scalar_lea.sflag (!%p8888_p11), [#allocation3], %s8212_s7  ;;  %s8219_s21 = scalar_lea.vmem (!%p8888_p11), [#allocation2], %s8215_s12 }
 0x17c   : > { %7654 = dma.done.wait (%p8889_p2), %s668_s27, 256  }
 0x17d   : > { %7656 = vsyncadd (%p8889_p2), %s668_s27, 4294967040  ;;  %s8890_s4 = sld [smem:[#allocation33_spill]]  ;;  %s680_s18 = scalar_lea.vmem [#allocation5], %s8215_s12 }
 0x183   : > { %s676_s23 = sand.u32 1, %s8890_s4  }
 0x184   : > { %s677_s9 = scalar_lea.sflag [#allocation6], %s676_s23 }
 0x185   : > { %7658 = dma.done.wait (%p8889_p2), %s677_s9, 256  }
 0x186   : > { %7660 = vsyncadd (%p8889_p2), %s677_s9, 4294967040  ;;  %p8891_p10 = scmp.eq.s32.totalorder %s8890_s4, 0 }
 0x188   : > { %7662 = dma.done.wait (%p8891_p10), [#allocation6], 8192   ;;  %p8892_p1 = pmov %p8891_p10 }
 0x18a   : > { %7664 = vsyncadd (%p8892_p1), [#allocation6], 4294959104  ;;  %p8893_p5 = pmov %p8892_p1 }
 0x18b   : > { %p8894_p8 = pmov %p8892_p1 }
 0x18c   : > { %7666 = dma.done.wait (%p8893_p5), [#allocation9], 16384  }
 0x18d   : > { %7668 = vsyncadd (%p8894_p8), [#allocation9], 4294950912  ;;  %p8895_p3 = pmov %p8892_p1 }
 0x18e   : > { %p8896_p12 = pmov %p8892_p1 }
 0x18f   : > { %7670 = dma.done.wait (%p8895_p3), [#allocation12], 16384  }
 0x190   : > { %7672 = vsyncadd (%p8896_p12), [#allocation12], 4294950912  ;;  %p8897_p6 = pmov %p8892_p1 }
 0x191   : > { %p8898_p13 = pmov %p8892_p1 }
 0x192   : > { %7674 = dma.done.wait (%p8897_p6), [#allocation15], 16384  }
 0x193   : > { %7676 = vsyncadd (%p8898_p13), [#allocation15], 4294950912  ;;  %p8899_p4 = pmov %p8892_p1 }
 0x194   : > { %p8900_p9 = pmov %p8892_p1 }
 0x195   : > { %7678 = dma.done.wait (%p8899_p4), [#allocation18], 40960  }
 0x196   : > { %7680 = vsyncadd (%p8900_p9), [#allocation18], 4294926336  ;;  %p8901_p0 = pmov %p8892_p1 }
 0x198   : > { %7682 = dma.done.wait (%p8901_p0), [#allocation21], 32768   ;;  %p8902_p7 = pmov %p8901_p0 }
 0x199   : > { %v816_v0 = vld [vmem:[#allocation7 + $0x8] sm:$0xff]  ;;  %v818_v1 = vld [vmem:[#allocation7 + $0x18] sm:$0xff]  ;;  %v815_v2 = vld [vmem:[#allocation7] sm:$0xff]  ;;  %s7729_s20 = smov 64   ;;  %vm7731_vm0 = vmmov 0   ;;  %vm1652_vm1 = vcmask 523264  }
 0x19a   : > { %7684 = vsyncadd (%p8902_p7), [#allocation21], 4294934528  ;;  %v5999_v3 = vpack.c.bf16 %v818_v1, %v816_v0  ;;  %v817_v4 = vld [vmem:[#allocation7 + $0x10] sm:$0xff]  ;;  %v820_v5 = vld [vmem:[#allocation7 + $0x28] sm:$0xff]  ;;  %vm1957_vm3 = vcmask 64512   ;;  %s8903_s8 = sld [smem:[#allocation45_spill]] }
 0x19b   : > { %v822_v6 = vld [vmem:[#allocation7 + $0x38] sm:$0xff]  ;;  %v6001_v7 = vpack.c.bf16 %v817_v4, %v815_v2  ;;  %v819_v9 = vld [vmem:[#allocation7 + $0x20] sm:$0xff]  ;;  %v821_v10 = vld [vmem:[#allocation7 + $0x30] sm:$0xff]  ;;  %s8904_s30 = sld [smem:[#allocation46_spill]]  ;;  %s8905_s1 = sld [smem:[#allocation32_spill]] }
 0x19c   : > { %v6003_v8 = vpack.c.bf16 %v822_v6, %v820_v5  ;;  %v824_v11 = vld [vmem:[#allocation7 + $0x48] sm:$0xff]  ;;  %6000 = vmatprep.subr.bf16.mxu0 %v5999_v3  ;;  %v826_v12 = vld [vmem:[#allocation7 + $0x58] sm:$0xff]  ;;  %v6005_v13 = vpack.c.bf16 %v821_v10, %v819_v9  ;;  %v823_v15 = vld [vmem:[#allocation7 + $0x40] sm:$0xff]  ;;  %s8906_s23 = sld [smem:[#allocation37_spill]]  ;;  %s8907_s0 = sld [smem:[#allocation47_spill]] }
 0x19d   : > { %6002 = vmatpush1.bf16.msra.mxu0 %v6001_v7  ;;  %v6007_v14 = vpack.c.bf16 %v826_v12, %v824_v11  ;;  %v825_v16 = vld [vmem:[#allocation7 + $0x50] sm:$0xff]  ;;  %v828_v17 = vld [vmem:[#allocation7 + $0x68] sm:$0xff]  ;;  %v830_v18 = vld [vmem:[#allocation7 + $0x78] sm:$0xff]  ;;  %s8908_s5 = sld [smem:[#allocation48_spill]]  ;;  %s8909_s4 = sld [smem:[#allocation49_spill]] }
 0x19e   : > { %6004 = vmatprep.subr.bf16.mxu0 %v6003_v8  ;;  %v6009_v19 = vpack.c.bf16 %v825_v16, %v823_v15  ;;  %v6011_v20 = vpack.c.bf16 %v830_v18, %v828_v17  ;;  %v827_v21 = vld [vmem:[#allocation7 + $0x60] sm:$0xff]  ;;  %v829_v22 = vld [vmem:[#allocation7 + $0x70] sm:$0xff]  ;;  %v832_v23 = vld [vmem:[#allocation7 + $0x88] sm:$0xff]  ;;  %p8910_p10 = scmp.ne.s32.totalorder %s8882_s22, 0 }
 0x19f   : > { %v834_v24 = vld [vmem:[#allocation7 + $0x98] sm:$0xff]  ;;  %v6013_v25 = vpack.c.bf16 %v829_v22, %v827_v21  ;;  %v831_v27 = vld [vmem:[#allocation7 + $0x80] sm:$0xff]  ;;  %v833_v28 = vld [vmem:[#allocation7 + $0x90] sm:$0xff] }
 0x1a0   : > { %v6015_v26 = vpack.c.bf16 %v834_v24, %v832_v23  ;;  %v836_v29 = vld [vmem:[#allocation7 + $0xa8] sm:$0xff]  ;;  %v838_v30 = vld [vmem:[#allocation7 + $0xb8] sm:$0xff]  ;;  %v6017_v31 = vpack.c.bf16 %v833_v28, %v831_v27  ;;  %v835_v33 = vld [vmem:[#allocation7 + $0xa0] sm:$0xff] }
 0x1a1   : > { %6006 = vmatpush1.bf16.msra.mxu0 %v6005_v13  ;;  %v6019_v32 = vpack.c.bf16 %v838_v30, %v836_v29  ;;  %v837_v34 = vld [vmem:[#allocation7 + $0xb0] sm:$0xff]  ;;  %v840_v35 = vld [vmem:[#allocation7 + $0xc8] sm:$0xff]  ;;  %v842_v36 = vld [vmem:[#allocation7 + $0xd8] sm:$0xff]  ;;  %p783_p11 = scmp.lt.s32.totalorder %s8905_s1, 1  ;;  %s5886_s11 = sshll.u32 %s8905_s1, 8 }
 0x1a2   : > { %6008 = vmatprep.subr.bf16.mxu0 %v6007_v14  ;;  %v6021_v37 = vpack.c.bf16 %v837_v34, %v835_v33  ;;  %v6023_v38 = vpack.c.bf16 %v842_v36, %v840_v35  ;;  %v839_v39 = vld [vmem:[#allocation7 + $0xc0] sm:$0xff]  ;;  %v841_v40 = vld [vmem:[#allocation7 + $0xd0] sm:$0xff]  ;;  %v8256_v41 = vld [vmem:[%s8219_s21 + $0x8] sm:$0xff] }
 0x1a3   : > { %v844_v42 = vld [vmem:[#allocation7 + $0xe8] sm:$0xff]  ;;  %v846_v43 = vld [vmem:[#allocation7 + $0xf8] sm:$0xff]  ;;  %943 = vmatprep.mubr.f32.mxu0 %v8256_v41  ;;  %v6025_v44 = vpack.c.bf16 %v841_v40, %v839_v39  ;;  %v843_v46 = vld [vmem:[#allocation7 + $0xe0] sm:$0xff]  ;;  %s784_s6 = scalar_select %p783_p11, %s8905_s1, 1 }
 0x1a4   : > { %v6027_v45 = vpack.c.bf16 %v846_v43, %v844_v42  ;;  %v845_v47 = vld [vmem:[#allocation7 + $0xf0] sm:$0xff]  ;;  %v848_v48 = vld [vmem:[#allocation7 + $0x108] sm:$0xff]  ;;  %v850_v49 = vld [vmem:[#allocation7 + $0x118] sm:$0xff] }
 0x1a5   : > { %6010 = vmatpush1.bf16.msra.mxu0 %v6009_v19  ;;  %v6029_v50 = vpack.c.bf16 %v845_v47, %v843_v46  ;;  %v6031_v51 = vpack.c.bf16 %v850_v49, %v848_v48  ;;  %v847_v52 = vld [vmem:[#allocation7 + $0x100] sm:$0xff]  ;;  %v849_v53 = vld [vmem:[#allocation7 + $0x110] sm:$0xff]  ;;  %v852_v54 = vld [vmem:[#allocation7 + $0x128] sm:$0xff]  ;;  %s5838_s27 = sshll.u32 %s784_s6, 3 }
 0x1a6   : > { %6012 = vmatprep.subr.bf16.mxu0 %v6011_v20  ;;  %v854_v55 = vld [vmem:[#allocation7 + $0x138] sm:$0xff]  ;;  %v6033_v56 = vpack.c.bf16 %v849_v53, %v847_v52  ;;  %v851_v58 = vld [vmem:[#allocation7 + $0x120] sm:$0xff]  ;;  %v853_v59 = vld [vmem:[#allocation7 + $0x130] sm:$0xff]  ;;  %s789_s9 = scalar_lea.vmem %s8906_s23, %s5838_s27  ;;  %s8769_s23 = scalar_lea.hbm %s8909_s4, %s5886_s11 }
 0x1a7   : > { %v6035_v57 = vpack.c.bf16 %v854_v55, %v852_v54  ;;  %v856_v60 = vld [vmem:[#allocation7 + $0x148] sm:$0xff]  ;;  %v858_v61 = vld [vmem:[#allocation7 + $0x158] sm:$0xff]  ;;  %v6037_v62 = vpack.c.bf16 %v853_v59, %v851_v58  ;;  %v855_v0 = vld [vmem:[#allocation7 + $0x140] sm:$0xff] }
 0x1a8   : > { %v6039_v63 = vpack.c.bf16 %v858_v61, %v856_v60  ;;  %v857_v1 = vld [vmem:[#allocation7 + $0x150] sm:$0xff]  ;;  %v860_v2 = vld [vmem:[#allocation7 + $0x168] sm:$0xff]  ;;  %v862_v3 = vld [vmem:[#allocation7 + $0x178] sm:$0xff] }
 0x1a9   : > { %6014 = vmatpush1.bf16.msra.mxu0 %v6013_v25  ;;  %v6041_v4 = vpack.c.bf16 %v857_v1, %v855_v0  ;;  %v6043_v5 = vpack.c.bf16 %v862_v3, %v860_v2  ;;  %v859_v6 = vld [vmem:[#allocation7 + $0x160] sm:$0xff]  ;;  %v861_v7 = vld [vmem:[#allocation7 + $0x170] sm:$0xff]  ;;  %v864_v8 = vld [vmem:[#allocation7 + $0x188] sm:$0xff] }
 0x1aa   : > { %6016 = vmatprep.subr.bf16.mxu0 %v6015_v26  ;;  %v866_v9 = vld [vmem:[#allocation7 + $0x198] sm:$0xff]  ;;  %v6045_v10 = vpack.c.bf16 %v861_v7, %v859_v6  ;;  %v863_v12 = vld [vmem:[#allocation7 + $0x180] sm:$0xff]  ;;  %v865_v13 = vld [vmem:[#allocation7 + $0x190] sm:$0xff] }
 0x1ab   : > { %v6047_v11 = vpack.c.bf16 %v866_v9, %v864_v8  ;;  %v868_v14 = vld [vmem:[#allocation7 + $0x1a8] sm:$0xff]  ;;  %v870_v15 = vld [vmem:[#allocation7 + $0x1b8] sm:$0xff]  ;;  %v6049_v16 = vpack.c.bf16 %v865_v13, %v863_v12  ;;  %v867_v18 = vld [vmem:[#allocation7 + $0x1a0] sm:$0xff] }
 0x1ac   : > { %v6051_v17 = vpack.c.bf16 %v870_v15, %v868_v14  ;;  %v869_v19 = vld [vmem:[#allocation7 + $0x1b0] sm:$0xff]  ;;  %v872_v20 = vld [vmem:[#allocation7 + $0x1c8] sm:$0xff]  ;;  %v874_v21 = vld [vmem:[#allocation7 + $0x1d8] sm:$0xff] }
 0x1ad   : > { %6018 = vmatpush1.bf16.msra.mxu0 %v6017_v31  ;;  %v6053_v22 = vpack.c.bf16 %v869_v19, %v867_v18  ;;  %v6055_v23 = vpack.c.bf16 %v874_v21, %v872_v20  ;;  %v871_v24 = vld [vmem:[#allocation7 + $0x1c0] sm:$0xff]  ;;  %v873_v25 = vld [vmem:[#allocation7 + $0x1d0] sm:$0xff]  ;;  %v876_v26 = vld [vmem:[#allocation7 + $0x1e8] sm:$0xff] }
 0x1ae   : > { %6020 = vmatprep.subr.bf16.mxu0 %v6019_v32  ;;  %v878_v27 = vld [vmem:[#allocation7 + $0x1f8] sm:$0xff]  ;;  %v6057_v28 = vpack.c.bf16 %v873_v25, %v871_v24  ;;  %v875_v30 = vld [vmem:[#allocation7 + $0x1e0] sm:$0xff]  ;;  %v877_v31 = vld [vmem:[#allocation7 + $0x1f0] sm:$0xff] }
 0x1af   : > { %v6059_v29 = vpack.c.bf16 %v878_v27, %v876_v26  ;;  %v951_v32 = vld [vmem:[#allocation8 + $0x8] sm:$0xff]  ;;  %v953_v33 = vld [vmem:[#allocation8 + $0x18] sm:$0xff]  ;;  %v6061_v34 = vpack.c.bf16 %v877_v31, %v875_v30  ;;  %v950_v36 = vld [vmem:[#allocation8] sm:$0xff] }
 0x1b0   : > { %v6063_v35 = vpack.c.bf16 %v953_v33, %v951_v32  ;;  %v957_v39 = vld [vmem:[#allocation8 + $0x38] sm:$0xff]  ;;  %v8260_v40 = vld [vmem:[%s8219_s21] sm:$0xff]  ;;  %v959_v46 = vld [vmem:[#allocation8 + $0x48] sm:$0xff] }
 0x1b1   : > { %6022 = vmatpush1.bf16.msra.mxu0 %v6021_v37  ;;  %v952_v37 = vld [vmem:[#allocation8 + $0x10] sm:$0xff]  ;;  %v961_v47 = vld [vmem:[#allocation8 + $0x58] sm:$0xff]  ;;  %v963_v52 = vld [vmem:[#allocation8 + $0x68] sm:$0xff] }
 0x1b2   : > { %6024 = vmatprep.subr.bf16.mxu0 %v6023_v38  ;;  %v955_v38 = vld [vmem:[#allocation8 + $0x28] sm:$0xff]  ;;  %v6065_v42 = vpack.c.bf16 %v952_v37, %v950_v36  ;;  %v6071_v49 = vpack.c.bf16 %v961_v47, %v959_v46  ;;  %v965_v53 = vld [vmem:[#allocation8 + $0x78] sm:$0xff] }
 0x1b3   : > { %v6067_v43 = vpack.c.bf16 %v957_v39, %v955_v38  ;;  %v6075_v55 = vpack.c.bf16 %v965_v53, %v963_v52  ;;  %v967_v58 = vld [vmem:[#allocation8 + $0x88] sm:$0xff]  ;;  %v969_v59 = vld [vmem:[#allocation8 + $0x98] sm:$0xff] }
 0x1b4   : > { %v6079_v61 = vpack.c.bf16 %v969_v59, %v967_v58  ;;  %v971_v0 = vld [vmem:[#allocation8 + $0xa8] sm:$0xff]  ;;  %v973_v1 = vld [vmem:[#allocation8 + $0xb8] sm:$0xff] }
 0x1b5   : > { %6026 = vmatpush1.bf16.msra.mxu0 %v6025_v44  ;;  %v954_v44 = vld [vmem:[#allocation8 + $0x20] sm:$0xff]  ;;  %v6083_v3 = vpack.c.bf16 %v973_v1, %v971_v0  ;;  %v975_v6 = vld [vmem:[#allocation8 + $0xc8] sm:$0xff]  ;;  %v977_v7 = vld [vmem:[#allocation8 + $0xd8] sm:$0xff] }
 0x1b6   : > { %6028 = vmatprep.subr.bf16.mxu0 %v6027_v45  ;;  %v956_v45 = vld [vmem:[#allocation8 + $0x30] sm:$0xff]  ;;  %v6087_v9 = vpack.c.bf16 %v977_v7, %v975_v6  ;;  %v979_v12 = vld [vmem:[#allocation8 + $0xe8] sm:$0xff]  ;;  %v981_v13 = vld [vmem:[#allocation8 + $0xf8] sm:$0xff] }
 0x1b7   : > { %v6069_v48 = vpack.c.bf16 %v956_v45, %v954_v44  ;;  %v6091_v15 = vpack.c.bf16 %v981_v13, %v979_v12  ;;  %v983_v18 = vld [vmem:[#allocation8 + $0x108] sm:$0xff]  ;;  %v985_v19 = vld [vmem:[#allocation8 + $0x118] sm:$0xff]  ;;  %v1085_v12 = vld [vmem:[#allocation10] sm:$0xff] }
 0x1b8   : > { %v6095_v21 = vpack.c.bf16 %v985_v19, %v983_v18  ;;  %v987_v24 = vld [vmem:[#allocation8 + $0x128] sm:$0xff]  ;;  %v989_v25 = vld [vmem:[#allocation8 + $0x138] sm:$0xff]  ;;  %v1087_v13 = vld [vmem:[#allocation10 + $0x10] sm:$0xff] }
 0x1b9   : > { %6030 = vmatpush1.bf16.msra.mxu0 %v6029_v50  ;;  %v958_v50 = vld [vmem:[#allocation8 + $0x40] sm:$0xff]  ;;  %v6099_v27 = vpack.c.bf16 %v989_v25, %v987_v24  ;;  %v991_v30 = vld [vmem:[#allocation8 + $0x148] sm:$0xff]  ;;  %v993_v31 = vld [vmem:[#allocation8 + $0x158] sm:$0xff] }
 0x1ba   : > { %6032 = vmatprep.subr.bf16.mxu0 %v6031_v51  ;;  %v960_v51 = vld [vmem:[#allocation8 + $0x50] sm:$0xff]  ;;  %v6103_v33 = vpack.c.bf16 %v993_v31, %v991_v30  ;;  %v995_v36 = vld [vmem:[#allocation8 + $0x168] sm:$0xff]  ;;  %v997_v37 = vld [vmem:[#allocation8 + $0x178] sm:$0xff] }
 0x1bb   : > { %v6073_v54 = vpack.c.bf16 %v960_v51, %v958_v50  ;;  %v6107_v39 = vpack.c.bf16 %v997_v37, %v995_v36  ;;  %v999_v44 = vld [vmem:[#allocation8 + $0x188] sm:$0xff]  ;;  %v1001_v45 = vld [vmem:[#allocation8 + $0x198] sm:$0xff]  ;;  %v1091_v18 = vld [vmem:[#allocation10 + $0x30] sm:$0xff] }
 0x1bc   : > { %v6111_v47 = vpack.c.bf16 %v1001_v45, %v999_v44  ;;  %v1003_v50 = vld [vmem:[#allocation8 + $0x1a8] sm:$0xff]  ;;  %v1005_v51 = vld [vmem:[#allocation8 + $0x1b8] sm:$0xff]  ;;  %v1095_v24 = vld [vmem:[#allocation10 + $0x50] sm:$0xff] }
 0x1bd   : > { %6034 = vmatpush1.bf16.msra.mxu0 %v6033_v56  ;;  %v962_v56 = vld [vmem:[#allocation8 + $0x60] sm:$0xff]  ;;  %v6115_v53 = vpack.c.bf16 %v1005_v51, %v1003_v50  ;;  %v1086_v7 = vld [vmem:[#allocation10 + $0x8] sm:$0xff]  ;;  %v1099_v30 = vld [vmem:[#allocation10 + $0x70] sm:$0xff] }
 0x1be   : > { %6036 = vmatprep.subr.bf16.mxu0 %v6035_v57  ;;  %v964_v57 = vld [vmem:[#allocation8 + $0x70] sm:$0xff]  ;;  %v1094_v19 = vld [vmem:[#allocation10 + $0x48] sm:$0xff] }
 0x1bf   : > { %v6077_v60 = vpack.c.bf16 %v964_v57, %v962_v56  ;;  %v1007_v56 = vld [vmem:[#allocation8 + $0x1c8] sm:$0xff]  ;;  %v1009_v57 = vld [vmem:[#allocation8 + $0x1d8] sm:$0xff]  ;;  %v1103_v36 = vld [vmem:[#allocation10 + $0x90] sm:$0xff] }
 0x1c0   : > { %v6119_v59 = vpack.c.bf16 %v1009_v57, %v1007_v56  ;;  %v1098_v25 = vld [vmem:[#allocation10 + $0x68] sm:$0xff]  ;;  %v1107_v44 = vld [vmem:[#allocation10 + $0xb0] sm:$0xff] }
 0x1c1   : > { %6038 = vmatpush1.bf16.msra.mxu0 %v6037_v62  ;;  %v966_v62 = vld [vmem:[#allocation8 + $0x80] sm:$0xff]  ;;  %v1102_v31 = vld [vmem:[#allocation10 + $0x88] sm:$0xff]  ;;  %v1111_v50 = vld [vmem:[#allocation10 + $0xd0] sm:$0xff] }
 0x1c2   : > { %6040 = vmatprep.subr.bf16.mxu0 %v6039_v63  ;;  %v968_v63 = vld [vmem:[#allocation8 + $0x90] sm:$0xff]  ;;  %v1106_v37 = vld [vmem:[#allocation10 + $0xa8] sm:$0xff] }
 0x1c3   : > { %v6081_v2 = vpack.c.bf16 %v968_v63, %v966_v62  ;;  %v1011_v62 = vld [vmem:[#allocation8 + $0x1e8] sm:$0xff]  ;;  %v1013_v63 = vld [vmem:[#allocation8 + $0x1f8] sm:$0xff]  ;;  %v1115_v56 = vld [vmem:[#allocation10 + $0xf0] sm:$0xff] }
 0x1c4   : > { %v6123_v1 = vpack.c.bf16 %v1013_v63, %v1011_v62  ;;  %v1110_v45 = vld [vmem:[#allocation10 + $0xc8] sm:$0xff]  ;;  %v1119_v62 = vld [vmem:[#allocation10 + $0x110] sm:$0xff] }
 0x1c5   : > { %6042 = vmatpush1.bf16.msra.mxu0 %v6041_v4  ;;  %v970_v4 = vld [vmem:[#allocation8 + $0xa0] sm:$0xff]  ;;  %v1114_v51 = vld [vmem:[#allocation10 + $0xe8] sm:$0xff] }
 0x1c6   : > { %6044 = vmatprep.subr.bf16.mxu0 %v6043_v5  ;;  %v972_v5 = vld [vmem:[#allocation8 + $0xb0] sm:$0xff]  ;;  %v1118_v57 = vld [vmem:[#allocation10 + $0x108] sm:$0xff] }
 0x1c7   : > { %v6085_v8 = vpack.c.bf16 %v972_v5, %v970_v4  ;;  %v1122_v63 = vld [vmem:[#allocation10 + $0x128] sm:$0xff] }
 0x1c9   : > { %6046 = vmatpush1.bf16.msra.mxu0 %v6045_v10  ;;  %v974_v10 = vld [vmem:[#allocation8 + $0xc0] sm:$0xff] }
 0x1ca   : > { %6048 = vmatprep.subr.bf16.mxu0 %v6047_v11  ;;  %v976_v11 = vld [vmem:[#allocation8 + $0xd0] sm:$0xff] }
 0x1cb   : > { %v6089_v14 = vpack.c.bf16 %v976_v11, %v974_v10 }
 0x1cd   : > { %6050 = vmatpush1.bf16.msra.mxu0 %v6049_v16  ;;  %v978_v16 = vld [vmem:[#allocation8 + $0xe0] sm:$0xff] }
 0x1ce   : > { %6052 = vmatprep.subr.bf16.mxu0 %v6051_v17  ;;  %v980_v17 = vld [vmem:[#allocation8 + $0xf0] sm:$0xff] }
 0x1cf   : > { %v6093_v20 = vpack.c.bf16 %v980_v17, %v978_v16  ;;  %v1089_v16 = vld [vmem:[#allocation10 + $0x20] sm:$0xff] }
 0x1d1   : > { %6054 = vmatpush1.bf16.msra.mxu0 %v6053_v22  ;;  %v982_v22 = vld [vmem:[#allocation8 + $0x100] sm:$0xff] }
 0x1d2   : > { %6056 = vmatprep.subr.bf16.mxu0 %v6055_v23  ;;  %v984_v23 = vld [vmem:[#allocation8 + $0x110] sm:$0xff] }
 0x1d3   : > { %v6097_v26 = vpack.c.bf16 %v984_v23, %v982_v22  ;;  %v1093_v23 = vld [vmem:[#allocation10 + $0x40] sm:$0xff] }
 0x1d5   : > { %6058 = vmatpush1.bf16.msra.mxu0 %v6057_v28  ;;  %v986_v28 = vld [vmem:[#allocation8 + $0x120] sm:$0xff] }
 0x1d6   : > { %6060 = vmatprep.subr.bf16.mxu0 %v6059_v29  ;;  %v988_v29 = vld [vmem:[#allocation8 + $0x130] sm:$0xff] }
 0x1d7   : > { %v6101_v32 = vpack.c.bf16 %v988_v29, %v986_v28  ;;  %v1097_v29 = vld [vmem:[#allocation10 + $0x60] sm:$0xff] }
 0x1d9   : > { %6062 = vmatpush1.bf16.msra.mxu0 %v6061_v34  ;;  %v990_v34 = vld [vmem:[#allocation8 + $0x140] sm:$0xff] }
 0x1da   : > { %6064 = vmatprep.subr.bf16.mxu0 %v6063_v35  ;;  %v992_v35 = vld [vmem:[#allocation8 + $0x150] sm:$0xff] }
 0x1db   : > { %v6105_v38 = vpack.c.bf16 %v992_v35, %v990_v34  ;;  %v1101_v35 = vld [vmem:[#allocation10 + $0x80] sm:$0xff] }
 0x1dc   : > { %944 = vmatmul.mubr.f32.vlgmr.msra.gmra.mrb[0].mxu0 %v8260_v40 }
 0x1dd   : > { %6066 = vmatpush1.bf16.msra.mxu0 %v6065_v42  ;;  %1078 = vmatprep.mubr.f32.mxu0 %v8256_v41  ;;  %v994_v42 = vld [vmem:[#allocation8 + $0x160] sm:$0xff] }
 0x1de   : > { %6068 = vmatprep.subr.bf16.mxu0 %v6067_v43  ;;  %v996_v43 = vld [vmem:[#allocation8 + $0x170] sm:$0xff] }
 0x1df   : > { %v6109_v46 = vpack.c.bf16 %v996_v43, %v994_v42  ;;  %v1105_v43 = vld [vmem:[#allocation10 + $0xa0] sm:$0xff] }
 0x1e1   : > { %6070 = vmatpush1.bf16.msra.mxu0 %v6069_v48  ;;  %v998_v48 = vld [vmem:[#allocation8 + $0x180] sm:$0xff] }
 0x1e2   : > { %6072 = vmatprep.subr.bf16.mxu0 %v6071_v49  ;;  %v1000_v49 = vld [vmem:[#allocation8 + $0x190] sm:$0xff] }
 0x1e3   : > { %v6113_v52 = vpack.c.bf16 %v1000_v49, %v998_v48  ;;  %v1109_v49 = vld [vmem:[#allocation10 + $0xc0] sm:$0xff] }
 0x1e5   : > { %6074 = vmatpush1.bf16.msra.mxu0 %v6073_v54  ;;  %v1002_v54 = vld [vmem:[#allocation8 + $0x1a0] sm:$0xff] }
 0x1e6   : > { %6076 = vmatprep.subr.bf16.mxu0 %v6075_v55  ;;  %v1004_v55 = vld [vmem:[#allocation8 + $0x1b0] sm:$0xff] }
 0x1e7   : > { %v6117_v58 = vpack.c.bf16 %v1004_v55, %v1002_v54  ;;  %v1113_v55 = vld [vmem:[#allocation10 + $0xe0] sm:$0xff] }
 0x1e9   : > { %6078 = vmatpush1.bf16.msra.mxu0 %v6077_v60  ;;  %v1006_v60 = vld [vmem:[#allocation8 + $0x1c0] sm:$0xff] }
 0x1ea   : > { %6080 = vmatprep.subr.bf16.mxu0 %v6079_v61  ;;  %v1008_v61 = vld [vmem:[#allocation8 + $0x1d0] sm:$0xff] }
 0x1eb   : > { %v6121_v0 = vpack.c.bf16 %v1008_v61, %v1006_v60  ;;  %v1117_v61 = vld [vmem:[#allocation10 + $0x100] sm:$0xff] }
 0x1ed   : > { %6082 = vmatpush1.bf16.msra.mxu0 %v6081_v2  ;;  %v1010_v2 = vld [vmem:[#allocation8 + $0x1e0] sm:$0xff] }
 0x1ee   : > { %6084 = vmatprep.subr.bf16.mxu0 %v6083_v3  ;;  %v1012_v3 = vld [vmem:[#allocation8 + $0x1f0] sm:$0xff] }
 0x1ef   : > { %v6125_v4 = vpack.c.bf16 %v1012_v3, %v1010_v2  ;;  %v1121_v3 = vld [vmem:[#allocation10 + $0x120] sm:$0xff] }
 0x1f1   : > { %6086 = vmatpush1.bf16.msra.mxu0 %v6085_v8  ;;  %v1088_v8 = vld [vmem:[#allocation10 + $0x18] sm:$0xff] }
 0x1f2   : > { %6088 = vmatprep.subr.bf16.mxu0 %v6087_v9  ;;  %v6127_v11 = vpack.c.bf16 %v1088_v8, %v1086_v7  ;;  %v1126_v7 = vld [vmem:[#allocation10 + $0x148] sm:$0xff]  ;;  %v1128_v8 = vld [vmem:[#allocation10 + $0x158] sm:$0xff] }
 0x1f5   : > { %6090 = vmatpush1.bf16.msra.mxu0 %v6089_v14  ;;  %v1090_v14 = vld [vmem:[#allocation10 + $0x28] sm:$0xff] }
 0x1f6   : > { %6092 = vmatprep.subr.bf16.mxu0 %v6091_v15  ;;  %v1092_v15 = vld [vmem:[#allocation10 + $0x38] sm:$0xff] }
 0x1f7   : > { %v6131_v17 = vpack.c.bf16 %v1092_v15, %v1090_v14  ;;  %v1130_v14 = vld [vmem:[#allocation10 + $0x168] sm:$0xff]  ;;  %v1132_v15 = vld [vmem:[#allocation10 + $0x178] sm:$0xff] }
 0x1f9   : > { %6094 = vmatpush1.bf16.msra.mxu0 %v6093_v20  ;;  %v1096_v20 = vld [vmem:[#allocation10 + $0x58] sm:$0xff] }
 0x1fa   : > { %6096 = vmatprep.subr.bf16.mxu0 %v6095_v21  ;;  %v6133_v21 = vpack.c.bf16 %v1091_v18, %v1089_v16  ;;  %v6135_v22 = vpack.c.bf16 %v1096_v20, %v1094_v19  ;;  %v1129_v18 = vld [vmem:[#allocation10 + $0x160] sm:$0xff]  ;;  %v1131_v19 = vld [vmem:[#allocation10 + $0x170] sm:$0xff] }
 0x1fb   : > { %v6173_v20 = vpack.c.bf16 %v1131_v19, %v1129_v18 }
 0x1fd   : > { %6098 = vmatpush1.bf16.msra.mxu0 %v6097_v26  ;;  %v1100_v26 = vld [vmem:[#allocation10 + $0x78] sm:$0xff] }
 0x1fe   : > { %6100 = vmatprep.subr.bf16.mxu0 %v6099_v27  ;;  %v6137_v27 = vpack.c.bf16 %v1095_v24, %v1093_v23  ;;  %v6139_v28 = vpack.c.bf16 %v1100_v26, %v1098_v25  ;;  %v1133_v24 = vld [vmem:[#allocation10 + $0x180] sm:$0xff]  ;;  %v1135_v25 = vld [vmem:[#allocation10 + $0x190] sm:$0xff] }
 0x1ff   : > { %v6177_v26 = vpack.c.bf16 %v1135_v25, %v1133_v24 }
 0x201   : > { %6102 = vmatpush1.bf16.msra.mxu0 %v6101_v32  ;;  %v1104_v32 = vld [vmem:[#allocation10 + $0x98] sm:$0xff] }
 0x202   : > { %6104 = vmatprep.subr.bf16.mxu0 %v6103_v33  ;;  %v6141_v33 = vpack.c.bf16 %v1099_v30, %v1097_v29  ;;  %v6143_v34 = vpack.c.bf16 %v1104_v32, %v1102_v31  ;;  %v1137_v30 = vld [vmem:[#allocation10 + $0x1a0] sm:$0xff]  ;;  %v1139_v31 = vld [vmem:[#allocation10 + $0x1b0] sm:$0xff] }
 0x203   : > { %v6181_v32 = vpack.c.bf16 %v1139_v31, %v1137_v30 }
 0x205   : > { %6106 = vmatpush1.bf16.msra.mxu0 %v6105_v38  ;;  %v1108_v38 = vld [vmem:[#allocation10 + $0xb8] sm:$0xff] }
 0x206   : > { %6108 = vmatprep.subr.bf16.mxu0 %v6107_v39  ;;  %v6145_v39 = vpack.c.bf16 %v1103_v36, %v1101_v35  ;;  %v6147_v42 = vpack.c.bf16 %v1108_v38, %v1106_v37  ;;  %v1141_v36 = vld [vmem:[#allocation10 + $0x1c0] sm:$0xff]  ;;  %v1143_v37 = vld [vmem:[#allocation10 + $0x1d0] sm:$0xff] }
 0x207   : > { %v6185_v38 = vpack.c.bf16 %v1143_v37, %v1141_v36 }
 0x209   : > { %6110 = vmatpush1.bf16.msra.mxu0 %v6109_v46  ;;  %v1112_v46 = vld [vmem:[#allocation10 + $0xd8] sm:$0xff] }
 0x20a   : > { %6112 = vmatprep.subr.bf16.mxu0 %v6111_v47  ;;  %v6149_v47 = vpack.c.bf16 %v1107_v44, %v1105_v43  ;;  %v6151_v48 = vpack.c.bf16 %v1112_v46, %v1110_v45  ;;  %v1145_v44 = vld [vmem:[#allocation10 + $0x1e0] sm:$0xff]  ;;  %v1147_v45 = vld [vmem:[#allocation10 + $0x1f0] sm:$0xff] }
 0x20b   : > { %v6189_v46 = vpack.c.bf16 %v1147_v45, %v1145_v44 }
 0x20d   : > { %6114 = vmatpush1.bf16.msra.mxu0 %v6113_v52  ;;  %v1116_v52 = vld [vmem:[#allocation10 + $0xf8] sm:$0xff] }
 0x20e   : > { %6116 = vmatprep.subr.bf16.mxu0 %v6115_v53  ;;  %v6153_v53 = vpack.c.bf16 %v1111_v50, %v1109_v49  ;;  %v6155_v54 = vpack.c.bf16 %v1116_v52, %v1114_v51  ;;  %v7730_v51 = vmov 0.0   ;;  %v804_v52 = vlaneseq }
 0x211   : > { %6118 = vmatpush1.bf16.msra.mxu0 %v6117_v58  ;;  %v1120_v58 = vld [vmem:[#allocation10 + $0x118] sm:$0xff] }
 0x212   : > { %6120 = vmatprep.subr.bf16.mxu0 %v6119_v59  ;;  %v6157_v59 = vpack.c.bf16 %v1115_v56, %v1113_v55  ;;  %v6159_v60 = vpack.c.bf16 %v1120_v58, %v1118_v57  ;;  %v7733_v55 = vmov 1934713408   ;;  %v8290_v57 = vshrl.u32 %v804_v52, 7 }
 0x213   : > { %v1263_v56 = vunpack.c.l.s4 %v7733_v55 }
 0x215   : > { %6122 = vmatpush1.bf16.msra.mxu0 %v6121_v0  ;;  %v1124_v0 = vld [vmem:[#allocation10 + $0x138] sm:$0xff] }
 0x216   : > { %6124 = vmatprep.subr.bf16.mxu0 %v6123_v1  ;;  %v6161_v1 = vpack.c.bf16 %v1119_v62, %v1117_v61  ;;  %v6163_v2 = vpack.c.bf16 %v1124_v0, %v1122_v63 }
 0x219   : > { %6126 = vmatpush1.bf16.msra.mxu0 %v6125_v4  ;;  %v1123_v4 = vld [vmem:[#allocation10 + $0x130] sm:$0xff] }
 0x21a   : > { %6128 = vmatprep.subr.bf16.mxu0 %v6127_v11  ;;  %v6165_v11 = vpack.c.bf16 %v1123_v4, %v1121_v3 }
 0x21c   : > { %1079 = vmatmul.mubr.f32.vlgmr.msra.gmra.mrb[2].mxu0 %v8260_v40 }
 0x21d   : > { %1213 = vmatprep.mubr.f32.mxu0 %v8256_v41  ;;  %v6129_v41 = vpack.c.bf16 %v1087_v13, %v1085_v12  ;;  %v6167_v12 = vpack.c.bf16 %v1128_v8, %v1126_v7  ;;  %v1125_v13 = vld [vmem:[#allocation10 + $0x140] sm:$0xff] }
 0x21f   : > { %6130 = vmatpush1.bf16.msra.mxu0 %v6129_v41  ;;  %v1127_v41 = vld [vmem:[#allocation10 + $0x150] sm:$0xff] }
 0x220   : > { %6132 = vmatprep.subr.bf16.mxu0 %v6131_v17  ;;  %v6169_v16 = vpack.c.bf16 %v1127_v41, %v1125_v13  ;;  %v6171_v17 = vpack.c.bf16 %v1132_v15, %v1130_v14 }
 0x223   : > { %6134 = vmatpush1.bf16.msra.mxu0 %v6133_v21  ;;  %v1134_v21 = vld [vmem:[#allocation10 + $0x188] sm:$0xff] }
 0x224   : > { %6136 = vmatprep.subr.bf16.mxu0 %v6135_v22  ;;  %v1136_v22 = vld [vmem:[#allocation10 + $0x198] sm:$0xff] }
 0x225   : > { %v6175_v23 = vpack.c.bf16 %v1136_v22, %v1134_v21 }
 0x227   : > { %6138 = vmatpush1.bf16.msra.mxu0 %v6137_v27  ;;  %v1138_v27 = vld [vmem:[#allocation10 + $0x1a8] sm:$0xff] }
 0x228   : > { %6140 = vmatprep.subr.bf16.mxu0 %v6139_v28  ;;  %v1140_v28 = vld [vmem:[#allocation10 + $0x1b8] sm:$0xff] }
 0x229   : > { %v6179_v29 = vpack.c.bf16 %v1140_v28, %v1138_v27 }
 0x22b   : > { %6142 = vmatpush1.bf16.msra.mxu0 %v6141_v33  ;;  %v1142_v33 = vld [vmem:[#allocation10 + $0x1c8] sm:$0xff] }
 0x22c   : > { %6144 = vmatprep.subr.bf16.mxu0 %v6143_v34  ;;  %v1144_v34 = vld [vmem:[#allocation10 + $0x1d8] sm:$0xff] }
 0x22d   : > { %v6183_v35 = vpack.c.bf16 %v1144_v34, %v1142_v33 }
 0x22f   : > { %6146 = vmatpush1.bf16.msra.mxu0 %v6145_v39  ;;  %v1146_v39 = vld [vmem:[#allocation10 + $0x1e8] sm:$0xff] }
 0x230   : > { %6148 = vmatprep.subr.bf16.mxu0 %v6147_v42  ;;  %v1148_v42 = vld [vmem:[#allocation10 + $0x1f8] sm:$0xff] }
 0x231   : > { %v6187_v43 = vpack.c.bf16 %v1148_v42, %v1146_v39 }
 0x233   : > { %6150 = vmatpush1.bf16.msra.mxu0 %v6149_v47 }
 0x234   : > { %6152 = vmatprep.subr.bf16.mxu0 %v6151_v48 }
 0x237   : > { %6154 = vmatpush1.bf16.msra.mxu0 %v6153_v53  ;;  %v7732_v53 = vmov 1983009808  }
 0x238   : > { %6156 = vmatprep.subr.bf16.mxu0 %v6155_v54  ;;  %v1231_v54 = vunpack.c.l.s4 %v7732_v53 }
 0x23a   : > { %v1232_v58 = vunpack.c.0.s8 %v1231_v54 }
 0x23b   : > { %6158 = vmatpush1.bf16.msra.mxu0 %v6157_v59 }
 0x23c   : > { %6160 = vmatprep.subr.bf16.mxu0 %v6159_v60  ;;  %v8293_v60 = vsub.s32 %v1232_v58, %v8290_v57 }
 0x23f   : > { %6162 = vmatpush1.bf16.msra.mxu0 %v6161_v1 }
 0x240   : > { %6164 = vmatprep.subr.bf16.mxu0 %v6163_v2 }
 0x243   : > { %6166 = vmatpush1.bf16.msra.mxu0 %v6165_v11 }
 0x244   : > { %6168 = vmatprep.subr.bf16.mxu0 %v6167_v12 }
 0x247   : > { %6170 = vmatpush1.bf16.msra.mxu0 %v6169_v16 }
 0x248   : > { %6172 = vmatprep.subr.bf16.mxu0 %v6171_v17 }
 0x24b   : > { %6174 = vmatpush1.bf16.msra.mxu0 %v6173_v20 }
 0x24c   : > { %6176 = vmatprep.subr.bf16.mxu0 %v6175_v23 }
 0x24f   : > { %6178 = vmatpush1.bf16.msra.mxu0 %v6177_v26 }
 0x250   : > { %6180 = vmatprep.subr.bf16.mxu0 %v6179_v29 }
 0x253   : > { %6182 = vmatpush1.bf16.msra.mxu0 %v6181_v32 }
 0x254   : > { %6184 = vmatprep.subr.bf16.mxu0 %v6183_v35 }
 0x257   : > { %6186 = vmatpush1.bf16.msra.mxu0 %v6185_v38 }
 0x258   : > { %6188 = vmatprep.subr.bf16.mxu0 %v6187_v43 }
 0x25b   : > { %6190 = vmatpush1.bf16.msra.mxu0 %v6189_v46 }
 0x25c   : > { %5919 = vmatprep.subr.mxu0 %v7730_v51 }
 0x25e   : > { %1214 = vmatmul.mubr.f32.vlgmr.msra.gmra.mrb[4].mxu0 %v8260_v40  ;;  %v1264_v40 = vunpack.c.0.s8 %v1263_v56 }
 0x25f   : > { %5921 = vmatprep.mubr.msk.f32.mxu0 %vm7731_vm0, %v7730_v51 }
 0x260   : > { %v8296_v0 = vsub.s32 %v1264_v40, %v8290_v57 }
 0x2af   : > { %v8266_v5 = vpop.f32.mrb[0].mxu0 }
 0x2b0   : > { %1221 = vrot.lane.b32.xlu1 %v8266_v5, %s7729_s20  ;;  %v8270_v6 = vpop.f32.mrb[1].mxu0 }
 0x2b1   : > { %v1228_v9 = vcombine.low %v8266_v5, %v8270_v6  ;;  %v1229_v10 = vcombine.high %v8266_v5, %v8270_v6 }
 0x2b3   : > { %v1236_v1 = vrot.slane %v1228_v9, %v8293_v60  ;;  %v1243_v2 = vrot.slane %v1229_v10, %v8293_v60 }
 0x2b4   : > { %1225 = vrot.lane.b32.xlu1 %v8270_v6, %s7729_s20 }
 0x2ef   : > { %v8278_v47 = vpop.f32.mrb[2].mxu0 }
 0x2f0   : > { %1365 = vrot.lane.b32.xlu0 %v8278_v47, %s7729_s20  ;;  %v1082_v48 = vpop.f32.mrb[3].mxu0 }
 0x2f1   : > { %v1372_v49 = vcombine.low %v8278_v47, %v1082_v48  ;;  %v1373_v50 = vcombine.high %v8278_v47, %v1082_v48 }
 0x2f3   : > { %v1380_v36 = vrot.slane %v1372_v49, %v8293_v60  ;;  %v1387_v37 = vrot.slane %v1373_v50, %v8293_v60 }
 0x2f4   : > { %1369 = vrot.lane.b32.xlu0 %v1082_v48, %s7729_s20 }
 0x322   : > { %v1222_v59 = vpop.permute.xlu1 %1221 }
 0x326   : > { %v1226_v61 = vpop.permute.xlu1 %1225 }
 0x327   : > { %v1244_v62 = vcombine.low %v1222_v59, %v1226_v61  ;;  %v1245_v63 = vcombine.high %v1222_v59, %v1226_v61 }
 0x329   : > { %v1252_v3 = vrot.slane %v1244_v62, %v8293_v60  ;;  %v1259_v4 = vrot.slane %v1245_v63, %v8293_v60 }
 0x32b   : > { %v1260_v7 = vcombine.low %v1236_v1, %v1252_v3  ;;  %v1261_v8 = vcombine.high %v1236_v1, %v1252_v3  ;;  %v1276_v11 = vcombine.low %v1243_v2, %v1259_v4  ;;  %v1277_v12 = vcombine.high %v1243_v2, %v1259_v4 }
 0x32d   : > { %v1268_v13 = vrot.slane %v1260_v7, %v8296_v0  ;;  %v1275_v41 = vrot.slane %v1261_v8, %v8296_v0  ;;  %v1284_v14 = vrot.slane %v1276_v11, %v8296_v0  ;;  %v1291_v9 = vrot.slane %v1277_v12, %v8296_v0 }
 0x32f   : > { %v1296_v15 = vcombine.low %v1268_v13, %v1275_v41  ;;  %v5839_v16 = vcombine.high %v1268_v13, %v1275_v41  ;;  %v1312_v5 = vcombine.low %v1284_v14, %v1291_v9  ;;  %v5840_v6 = vcombine.high %v1284_v14, %v1291_v9 }
 0x331   : > { %v1303_v10 = vrot.slane %v1296_v15, %v8293_v60  ;;  %v1311_v17 = vrot.slane %v5839_v16, %v8293_v60  ;;  %v1319_v18 = vrot.slane %v1312_v5, %v8293_v60  ;;  %v1327_v19 = vrot.slane %v5840_v6, %v8293_v60  ;;  %v8356_v41 = vpop.f32.mrb[4].mxu0 }
 0x332   : > { %v8358_v14 = vpop.f32.mrb[5].mxu0  ;;  %v809_v16 = vand.u32 127, %v804_v52 }
 0x333   : > { %v1328_v20 = vcombine.low %v1303_v10, %v1311_v17  ;;  %v1329_v21 = vcombine.high %v1303_v10, %v1311_v17  ;;  %v1344_v22 = vcombine.low %v1319_v18, %v1327_v19  ;;  %v1345_v23 = vcombine.high %v1319_v18, %v1327_v19 }
 0x334   : > { %v1516_v9 = vcombine.low %v8356_v41, %v8358_v14  ;;  %v1517_v15 = vcombine.high %v8356_v41, %v8358_v14  ;;  %vm810_vm2 = vcmp.gt.s32.totalorder %v809_v16, %v8290_v57 }
 0x335   : > { %v1336_v24 = vrot.slane %v1328_v20, %v8296_v0  ;;  %v1352_v25 = vrot.slane %v1344_v22, %v8296_v0  ;;  %v1343_v26 = vrot.slane %v1329_v21, %v8296_v0  ;;  %v1359_v27 = vrot.slane %v1345_v23, %v8296_v0 }
 0x336   : > { %v811_v5 = vsel %vm810_vm2, -1e+09, %v7730_v51 }
 0x337   : > { %v1360_v28 = vcombine.low %v1336_v24, %v1352_v25  ;;  %v1361_v29 = vcombine.high %v1336_v24, %v1352_v25  ;;  %v1362_v30 = vcombine.low %v1343_v26, %v1359_v27  ;;  %v1363_v31 = vcombine.high %v1343_v26, %v1359_v27 }
 0x362   : > { %v1366_v32 = vpop.permute.xlu0 %1365 }
 0x366   : > { %v1370_v33 = vpop.permute.xlu0 %1369 }
 0x367   : > { %v1388_v34 = vcombine.low %v1366_v32, %v1370_v33  ;;  %v1389_v35 = vcombine.high %v1366_v32, %v1370_v33 }
 0x369   : > { %v1396_v38 = vrot.slane %v1388_v34, %v8293_v60  ;;  %v1403_v39 = vrot.slane %v1389_v35, %v8293_v60 }
 0x36b   : > { %v1404_v42 = vcombine.low %v1380_v36, %v1396_v38  ;;  %v1405_v43 = vcombine.high %v1380_v36, %v1396_v38  ;;  %v1420_v44 = vcombine.low %v1387_v37, %v1403_v39  ;;  %v1421_v45 = vcombine.high %v1387_v37, %v1403_v39 }
 0x36d   : > { %v1412_v46 = vrot.slane %v1404_v42, %v8296_v0  ;;  %v1419_v47 = vrot.slane %v1405_v43, %v8296_v0  ;;  %v1428_v48 = vrot.slane %v1420_v44, %v8296_v0  ;;  %v1435_v53 = vrot.slane %v1421_v45, %v8296_v0 }
 0x36f   : > { %v1440_v54 = vcombine.low %v1412_v46, %v1419_v47  ;;  %v5841_v49 = vcombine.high %v1412_v46, %v1419_v47  ;;  %v1456_v55 = vcombine.low %v1428_v48, %v1435_v53  ;;  %v5842_v50 = vcombine.high %v1428_v48, %v1435_v53 }
 0x371   : > { %v1447_v56 = vrot.slane %v1440_v54, %v8293_v60  ;;  %v1455_v58 = vrot.slane %v5841_v49, %v8293_v60  ;;  %v1463_v59 = vrot.slane %v1456_v55, %v8293_v60  ;;  %v1471_v40 = vrot.slane %v5842_v50, %v8293_v60 }
 0x373   : > { %v1472_v61 = vcombine.low %v1447_v56, %v1455_v58  ;;  %v1473_v62 = vcombine.high %v1447_v56, %v1455_v58  ;;  %v1488_v63 = vcombine.low %v1463_v59, %v1471_v40  ;;  %v1489_v1 = vcombine.high %v1463_v59, %v1471_v40 }
 0x375   : > { %v1480_v2 = vrot.slane %v1472_v61, %v8296_v0  ;;  %v1496_v3 = vrot.slane %v1488_v63, %v8296_v0  ;;  %v1487_v4 = vrot.slane %v1473_v62, %v8296_v0  ;;  %v1503_v7 = vrot.slane %v1489_v1, %v8296_v0 }
 0x376   : > { %v1524_v61 = vrot.slane %v1516_v9, %v8293_v60  ;;  %v1531_v62 = vrot.slane %v1517_v15, %v8293_v60 }
 0x377   : > { %v1504_v8 = vcombine.low %v1480_v2, %v1496_v3  ;;  %v1505_v11 = vcombine.high %v1480_v2, %v1496_v3  ;;  %v1506_v12 = vcombine.low %v1487_v4, %v1503_v7  ;;  %v1507_v13 = vcombine.high %v1487_v4, %v1503_v7 }
 0x379   : > { %5920 = vmatpush3.xpose.msk.msra.mxu0 %vm1652_vm1, %v1504_v8 }
 0x37a   : > { %5924 = vmatprep.subr.mxu0 %v7730_v51 }
 0x37c   : > { %5922 = vmatmul.mubr.msk.f32.vlgmr.msra.gmra.mrb[6].mxu0 %vm1652_vm1, %v1360_v28 }
 0x37d   : > { %5925 = vmatpush3.xpose.msk.msra.mxu0 %vm1652_vm1, %v1505_v11  ;;  %5926 = vmatprep.mubr.msk.f32.mxu0 %vm7731_vm0, %v7730_v51 }
 0x37e   : > { %5929 = vmatprep.subr.mxu0 %v7730_v51 }
 0x380   : > { %5927 = vmatmul.mubr.msk.f32.vlgmr.msra.gmra.mrb[8].mxu0 %vm1652_vm1, %v1361_v29 }
 0x381   : > { %5930 = vmatpush3.xpose.msk.msra.mxu0 %vm1652_vm1, %v1506_v12  ;;  %5931 = vmatprep.mubr.msk.f32.mxu0 %vm7731_vm0, %v7730_v51 }
 0x382   : > { %5934 = vmatprep.subr.mxu0 %v7730_v51 }
 0x384   : > { %5932 = vmatmul.mubr.msk.f32.vlgmr.msra.gmra.mrb[10].mxu0 %vm1652_vm1, %v1362_v30 }
 0x385   : > { %5935 = vmatpush3.xpose.msk.msra.mxu0 %vm1652_vm1, %v1507_v13  ;;  %5936 = vmatprep.mubr.msk.f32.mxu0 %vm7731_vm0, %v7730_v51 }
 0x386   : > { %5939 = vmatprep.subr.mxu0 %v7730_v51 }
 0x388   : > { %5937 = vmatmul.mubr.msk.f32.vlgmr.msra.gmra.mrb[12].mxu0 %vm1652_vm1, %v1363_v31 }
 0x389   : > { %5941 = vmatprep.mubr.msk.f32.mxu0 %vm7731_vm0, %v7730_v51 }
 0x44f   : > { %v1725_v6 = vpop.f32.mrb[6].mxu0 }
 0x450   : > { %v1726_v10 = vadd.f32 %v1725_v6, %v811_v5  ;;  %v5923_v17 = vpop.f32.mrb[7].mxu0 }
 0x452   : > { %v1958_v18 = vsel %vm1957_vm3, %v1726_v10, -inf }
 0x453   : > { %1959 = vmax.xlane.f32.xlu0 %v1958_v18  ;;  %v1801_v19 = vpop.f32.mrb[8].mxu0 }
 0x454   : > { %v1802_v20 = vadd.f32 %v1801_v19, %v811_v5  ;;  %v5928_v21 = vpop.f32.mrb[9].mxu0 }
 0x456   : > { %v1961_v22 = vsel %vm1957_vm3, %v1802_v20, -inf }
 0x457   : > { %1962 = vmax.xlane.f32.xlu1 %v1961_v22  ;;  %v1877_v23 = vpop.f32.mrb[10].mxu0 }
 0x458   : > { %v1878_v24 = vadd.f32 %v1877_v23, %v811_v5  ;;  %v5933_v52 = vpop.f32.mrb[11].mxu0 }
 0x45a   : > { %v1964_v25 = vsel %vm1957_vm3, %v1878_v24, -inf }
 0x45b   : > { %1965 = vmax.xlane.f32.xlu0 %v1964_v25  ;;  %v1953_v26 = vpop.f32.mrb[12].mxu0 }
 0x45c   : > { %v1954_v27 = vadd.f32 %v1953_v26, %v811_v5  ;;  %v5938_v28 = vpop.f32.mrb[13].mxu0 }
 0x45e   : > { %v1967_v29 = vsel %vm1957_vm3, %v1954_v27, -inf }
 0x45f   : > { %1968 = vmax.xlane.f32.xlu0 %v1967_v29 }
 0x4e0   : > { %v1960_v30 = vpop.xlane.xlu0 %1959 }
 0x4e1   : > { %v1970_v31 = vsub.f32 %v1726_v10, %v1960_v30 }
 0x4e3   : > { %v1974_v32 = vmul.f32 1.442695, %v1970_v31 }
 0x4e4   : > { %v1963_v33 = vpop.xlane.xlu1 %1962 }
 0x4e5   : > { %7221 = vpow2.f32 %v1974_v32  ;;  %v1971_v34 = vsub.f32 %v1802_v20, %v1963_v33 }
 0x4e7   : > { %v1976_v35 = vmul.f32 1.442695, %v1971_v34 }
 0x4e8   : > { %v1966_v42 = vpop.xlane.xlu0 %1965 }
 0x4e9   : > { %7223 = vpow2.f32 %v1976_v35  ;;  %v1972_v43 = vsub.f32 %v1878_v24, %v1966_v42  ;;  %v2440_v42 = vld [vmem:[#allocation11] sm:$0xff] }
 0x4eb   : > { %v1978_v45 = vmul.f32 1.442695, %v1972_v43 }
 0x4ec   : > { %v1969_v44 = vpop.xlane.xlu0 %1968 }
 0x4ed   : > { %v1973_v46 = vsub.f32 %v1954_v27, %v1969_v44  ;;  %7225 = vpow2.f32 %v1978_v45  ;;  %v2442_v44 = vld [vmem:[#allocation11 + $0x10] sm:$0xff]  ;;  %v2445_v45 = vld [vmem:[#allocation11 + $0x28] sm:$0xff] }
 0x4ef   : > { %v8371_v36 = vpop.eup %7221  ;;  %v1980_v47 = vmul.f32 1.442695, %v1973_v46  ;;  %v2447_v46 = vld [vmem:[#allocation11 + $0x38] sm:$0xff] }
 0x4f0   : > { %v1982_v37 = vsel %vm1957_vm3, %v8371_v36, 0.0 }
 0x4f1   : > { %1983 = vadd.xlane.f32.xlu1 %v1982_v37  ;;  %7227 = vpow2.f32 %v1980_v47  ;;  %v6193_v47 = vpack.c.bf16 %v2442_v44, %v2440_v42  ;;  %v2482_v44 = vld [vmem:[#allocation11 + $0x150] sm:$0xff] }
 0x4f3   : > { %v8375_v38 = vpop.eup %7223 }
 0x4f4   : > { %v1985_v39 = vsel %vm1957_vm3, %v8375_v38, 0.0 }
 0x4f5   : > { %1986 = vadd.xlane.f32.xlu0 %v1985_v39  ;;  %v2443_v39 = vld [vmem:[#allocation11 + $0x18] sm:$0xff] }
 0x4f7   : > { %v8383_v48 = vpop.eup %7225 }
 0x4f8   : > { %v1988_v53 = vsel %vm1957_vm3, %v8383_v48, 0.0 }
 0x4fb   : > { %v8387_v54 = vpop.eup %7227 }
 0x4fc   : > { %v1991_v49 = vsel %vm1957_vm3, %v8387_v54, 0.0 }
 0x502   : > { %1509 = vrot.lane.b32.xlu1 %v8356_v41, %s7729_s20 }
 0x50b   : > { %1513 = vrot.lane.b32.xlu0 %v8358_v14, %s7729_s20 }
 0x526   : > { %1989 = vadd.xlane.f32.xlu1 %v1988_v53  ;;  %v2444_v53 = vld [vmem:[#allocation11 + $0x20] sm:$0xff] }
 0x52a   : > { %1992 = vadd.xlane.f32.xlu0 %v1991_v49  ;;  %v2446_v49 = vld [vmem:[#allocation11 + $0x30] sm:$0xff] }
 0x57e   : > { %v1984_v55 = vpop.xlane.xlu1 %1983 }
 0x57f   : > { %7229 = vrcp.f32 %v1984_v55  ;;  %v2449_v55 = vld [vmem:[#allocation11 + $0x48] sm:$0xff] }
 0x582   : > { %v1987_v50 = vpop.xlane.xlu0 %1986  ;;  %v1510_v56 = vpop.permute.xlu1 %1509 }
 0x583   : > { %7231 = vrcp.f32 %v1987_v50  ;;  %v2451_v50 = vld [vmem:[#allocation11 + $0x58] sm:$0xff] }
 0x586   : > { %v1514_v58 = vpop.permute.xlu0 %1513 }
 0x587   : > { %v1532_v59 = vcombine.low %v1510_v56, %v1514_v58  ;;  %v1533_v40 = vcombine.high %v1510_v56, %v1514_v58  ;;  %v6197_v56 = vpack.c.bf16 %v2446_v49, %v2444_v53  ;;  %v2448_v58 = vld [vmem:[#allocation11 + $0x40] sm:$0xff]  ;;  %v2486_v49 = vld [vmem:[#allocation11 + $0x170] sm:$0xff] }
 0x588   : > { %v2484_v53 = vld [vmem:[#allocation11 + $0x160] sm:$0xff] }
 0x589   : > { %v1540_v63 = vrot.slane %v1532_v59, %v8293_v60  ;;  %v1547_v1 = vrot.slane %v1533_v40, %v8293_v60  ;;  %v7230_v21 = vpop.eup %7229  ;;  %v2450_v59 = vld [vmem:[#allocation11 + $0x50] sm:$0xff]  ;;  %v2453_v40 = vld [vmem:[#allocation11 + $0x68] sm:$0xff] }
 0x58a   : > { %v1998_v30 = vmul.f32 %v7230_v21, %v8371_v36  ;;  %v2471_v21 = vld [vmem:[#allocation11 + $0xf8] sm:$0xff] }
 0x58b   : > { %v1548_v2 = vcombine.low %v1524_v61, %v1540_v63  ;;  %v1549_v3 = vcombine.high %v1524_v61, %v1540_v63  ;;  %v1564_v4 = vcombine.low %v1531_v62, %v1547_v1  ;;  %v1565_v7 = vcombine.high %v1531_v62, %v1547_v1  ;;  %v2455_v61 = vld [vmem:[#allocation11 + $0x78] sm:$0xff]  ;;  %v2452_v1 = vld [vmem:[#allocation11 + $0x60] sm:$0xff] }
 0x58c   : > { %v6201_v62 = vpack.c.bf16 %v2450_v59, %v2448_v58  ;;  %v6203_v63 = vpack.c.bf16 %v2455_v61, %v2453_v40  ;;  %v2488_v58 = vld [vmem:[#allocation11 + $0x180] sm:$0xff]  ;;  %v2490_v59 = vld [vmem:[#allocation11 + $0x190] sm:$0xff]  ;;  %v2493_v40 = vld [vmem:[#allocation11 + $0x1a8] sm:$0xff] }
 0x58d   : > { %v1556_v8 = vrot.slane %v1548_v2, %v8296_v0  ;;  %v1563_v11 = vrot.slane %v1549_v3, %v8296_v0  ;;  %v1572_v12 = vrot.slane %v1564_v4, %v8296_v0  ;;  %v1579_v13 = vrot.slane %v1565_v7, %v8296_v0  ;;  %v7232_v29 = vpop.eup %7231  ;;  %v2454_v2 = vld [vmem:[#allocation11 + $0x70] sm:$0xff]  ;;  %v2457_v3 = vld [vmem:[#allocation11 + $0x88] sm:$0xff]  ;;  %v2459_v4 = vld [vmem:[#allocation11 + $0x98] sm:$0xff] }
 0x58e   : > { %v1999_v31 = vmul.f32 %v7232_v29, %v8375_v38  ;;  %v2441_v38 = vld [vmem:[#allocation11 + $0x8] sm:$0xff]  ;;  %v6205_v7 = vpack.c.bf16 %v2454_v2, %v2452_v1  ;;  %v2472_v29 = vld [vmem:[#allocation11 + $0x100] sm:$0xff]  ;;  %v2495_v61 = vld [vmem:[#allocation11 + $0x1b8] sm:$0xff] }
 0x58f   : > { %v1584_v41 = vcombine.low %v1556_v8, %v1563_v11  ;;  %v5843_v14 = vcombine.high %v1556_v8, %v1563_v11  ;;  %v1600_v9 = vcombine.low %v1572_v12, %v1579_v13  ;;  %v5844_v15 = vcombine.high %v1572_v12, %v1579_v13  ;;  %v2456_v11 = vld [vmem:[#allocation11 + $0x80] sm:$0xff]  ;;  %v2458_v12 = vld [vmem:[#allocation11 + $0x90] sm:$0xff]  ;;  %v2461_v13 = vld [vmem:[#allocation11 + $0xa8] sm:$0xff] }
 0x590   : > { %v6191_v43 = vpack.c.bf16 %v2443_v39, %v2441_v38  ;;  %v6207_v8 = vpack.c.bf16 %v2459_v4, %v2457_v3  ;;  %v2483_v38 = vld [vmem:[#allocation11 + $0x158] sm:$0xff]  ;;  %v2492_v1 = vld [vmem:[#allocation11 + $0x1a0] sm:$0xff]  ;;  %v2494_v2 = vld [vmem:[#allocation11 + $0x1b0] sm:$0xff] }
 0x591   : > { %v1591_v16 = vrot.slane %v1584_v41, %v8293_v60  ;;  %v1599_v5 = vrot.slane %v5843_v14, %v8293_v60  ;;  %v1607_v6 = vrot.slane %v1600_v9, %v8293_v60  ;;  %v1615_v10 = vrot.slane %v5844_v15, %v8293_v60  ;;  %v2463_v41 = vld [vmem:[#allocation11 + $0xb8] sm:$0xff]  ;;  %v2460_v15 = vld [vmem:[#allocation11 + $0xa0] sm:$0xff]  ;;  %v2497_v3 = vld [vmem:[#allocation11 + $0x1c8] sm:$0xff] }
 0x592   : > { %6192 = vmatprep.subr.bf16.mxu1 %v6191_v43  ;;  %v6209_v14 = vpack.c.bf16 %v2458_v12, %v2456_v11  ;;  %v6211_v9 = vpack.c.bf16 %v2463_v41, %v2461_v13  ;;  %v2480_v43 = vld [vmem:[#allocation11 + $0x140] sm:$0xff]  ;;  %v2499_v4 = vld [vmem:[#allocation11 + $0x1d8] sm:$0xff]  ;;  %v2498_v12 = vld [vmem:[#allocation11 + $0x1d0] sm:$0xff] }
 0x593   : > { %v1616_v17 = vcombine.low %v1591_v16, %v1599_v5  ;;  %v1632_v18 = vcombine.low %v1607_v6, %v1615_v10  ;;  %v1617_v19 = vcombine.high %v1591_v16, %v1599_v5  ;;  %v1633_v20 = vcombine.high %v1607_v6, %v1615_v10  ;;  %6194 = vmatpush1.bf16.msra.mxu1 %v6193_v47  ;;  %v2462_v16 = vld [vmem:[#allocation11 + $0xb0] sm:$0xff]  ;;  %v2465_v5 = vld [vmem:[#allocation11 + $0xc8] sm:$0xff]  ;;  %v2467_v6 = vld [vmem:[#allocation11 + $0xd8] sm:$0xff] }
 0x594   : > { %v6213_v10 = vpack.c.bf16 %v2462_v16, %v2460_v15  ;;  %v6233_v47 = vpack.c.bf16 %v2482_v44, %v2480_v43  ;;  %v2496_v11 = vld [vmem:[#allocation11 + $0x1c0] sm:$0xff] }
 0x595   : > { %v1624_v22 = vrot.slane %v1616_v17, %v8296_v0  ;;  %v1640_v23 = vrot.slane %v1632_v18, %v8296_v0  ;;  %v1631_v24 = vrot.slane %v1617_v19, %v8296_v0  ;;  %v1647_v52 = vrot.slane %v1633_v20, %v8296_v0  ;;  %v2464_v18 = vld [vmem:[#allocation11 + $0xc0] sm:$0xff]  ;;  %v2466_v19 = vld [vmem:[#allocation11 + $0xd0] sm:$0xff]  ;;  %v2469_v20 = vld [vmem:[#allocation11 + $0xe8] sm:$0xff] }
 0x596   : > { %v6215_v17 = vpack.c.bf16 %v2467_v6, %v2465_v5  ;;  %v6249_v13 = vpack.c.bf16 %v2498_v12, %v2496_v11  ;;  %v2758_v11 = vld [vmem:[#allocation14 + $0x18] sm:$0xff]  ;;  %v2755_v12 = vld [vmem:[#allocation14] sm:$0xff] }
 0x597   : > { %v1648_v25 = vcombine.low %v1624_v22, %v1640_v23  ;;  %v1649_v26 = vcombine.high %v1624_v22, %v1640_v23  ;;  %v1650_v27 = vcombine.low %v1631_v24, %v1647_v52  ;;  %v1651_v28 = vcombine.high %v1631_v24, %v1647_v52  ;;  %v2468_v24 = vld [vmem:[#allocation11 + $0xe0] sm:$0xff]  ;;  %v2470_v52 = vld [vmem:[#allocation11 + $0xf0] sm:$0xff] }
 0x598   : > { %v6217_v22 = vpack.c.bf16 %v2466_v19, %v2464_v18  ;;  %v6219_v23 = vpack.c.bf16 %v2471_v21, %v2469_v20 }
 0x599   : > { %5940 = vmatpush3.msra.mxu0 %v1648_v25  ;;  %v2473_v25 = vld [vmem:[#allocation11 + $0x108] sm:$0xff] }
 0x59a   : > { %5942 = vmatmul.mubr.msk.f32.vlgmr.msra.gmra.mrb[14].mxu0 %vm1957_vm3, %v1998_v30  ;;  %5944 = vmatprep.subr.mxu0 %v7730_v51  ;;  %v2474_v30 = vld [vmem:[#allocation11 + $0x110] sm:$0xff] }
 0x59b   : > { %5945 = vmatpush3.msra.mxu0 %v1649_v26  ;;  %5946 = vmatprep.mubr.msk.f32.mxu0 %vm7731_vm0, %v7730_v51  ;;  %v2475_v26 = vld [vmem:[#allocation11 + $0x118] sm:$0xff] }
 0x59c   : > { %5949 = vmatprep.subr.mxu0 %v7730_v51 }
 0x59e   : > { %5947 = vmatmul.mubr.msk.f32.vlgmr.msra.gmra.mrb[16].mxu0 %vm1957_vm3, %v1999_v31  ;;  %v2477_v31 = vld [vmem:[#allocation11 + $0x128] sm:$0xff] }
 0x59f   : > { %5950 = vmatpush3.msra.mxu0 %v1650_v27  ;;  %5951 = vmatprep.mubr.msk.f32.mxu0 %vm7731_vm0, %v7730_v51  ;;  %v6221_v27 = vpack.c.bf16 %v2470_v52, %v2468_v24 }
 0x5a0   : > { %5954 = vmatprep.subr.mxu0 %v7730_v51 }
 0x5b3   : > { %v1990_v32 = vpop.xlane.xlu1 %1989 }
 0x5b4   : > { %7233 = vrcp.f32 %v1990_v32  ;;  %v2479_v32 = vld [vmem:[#allocation11 + $0x138] sm:$0xff] }
 0x5b7   : > { %v1993_v33 = vpop.xlane.xlu0 %1992 }
 0x5b8   : > { %7235 = vrcp.f32 %v1993_v33  ;;  %v6225_v33 = vpack.c.bf16 %v2474_v30, %v2472_v29  ;;  %v2503_v29 = vld [vmem:[#allocation11 + $0x1f8] sm:$0xff] }
 0x5be   : > { %v7234_v34 = vpop.eup %7233 }
 0x5bf   : > { %v2000_v35 = vmul.f32 %v7234_v34, %v8383_v48  ;;  %v6195_v48 = vpack.c.bf16 %v2447_v46, %v2445_v45  ;;  %v6227_v34 = vpack.c.bf16 %v2479_v32, %v2477_v31  ;;  %v2485_v45 = vld [vmem:[#allocation11 + $0x168] sm:$0xff]  ;;  %v2487_v46 = vld [vmem:[#allocation11 + $0x178] sm:$0xff] }
 0x5c1   : > { %5952 = vmatmul.mubr.msk.f32.vlgmr.msra.gmra.mrb[18].mxu0 %vm1957_vm3, %v2000_v35  ;;  %6196 = vmatprep.subr.bf16.mxu1 %v6195_v48  ;;  %v2476_v35 = vld [vmem:[#allocation11 + $0x120] sm:$0xff]  ;;  %v6235_v48 = vpack.c.bf16 %v2487_v46, %v2485_v45 }
 0x5c2   : > { %v7236_v36 = vpop.eup %7235  ;;  %5955 = vmatpush3.msra.mxu0 %v1651_v28  ;;  %5956 = vmatprep.mubr.msk.f32.mxu0 %vm7731_vm0, %v7730_v51  ;;  %v6223_v28 = vpack.c.bf16 %v2475_v26, %v2473_v25 }
 0x5c3   : > { %v2001_v37 = vmul.f32 %v7236_v36, %v8387_v54  ;;  %v6199_v54 = vpack.c.bf16 %v2451_v50, %v2449_v55  ;;  %6198 = vmatpush1.bf16.msra.mxu1 %v6197_v56  ;;  %v2478_v36 = vld [vmem:[#allocation11 + $0x130] sm:$0xff]  ;;  %v2489_v55 = vld [vmem:[#allocation11 + $0x188] sm:$0xff]  ;;  %v2491_v50 = vld [vmem:[#allocation11 + $0x198] sm:$0xff]  ;;  %v6237_v56 = vpack.c.bf16 %v2486_v49, %v2484_v53 }
 0x5c4   : > { %v6229_v39 = vpack.c.bf16 %v2478_v36, %v2476_v35  ;;  %v2502_v35 = vld [vmem:[#allocation11 + $0x1f0] sm:$0xff] }
 0x5c5   : > { %5957 = vmatmul.mubr.msk.f32.vlgmr.msra.gmra.mrb[20].mxu0 %vm1957_vm3, %v2001_v37  ;;  %6200 = vmatprep.subr.bf16.mxu1 %v6199_v54  ;;  %v2481_v37 = vld [vmem:[#allocation11 + $0x148] sm:$0xff]  ;;  %v6239_v54 = vpack.c.bf16 %v2491_v50, %v2489_v55 }
 0x5c6   : > { %v6231_v42 = vpack.c.bf16 %v2483_v38, %v2481_v37 }
 0x5c7   : > { %6202 = vmatpush1.bf16.msra.mxu1 %v6201_v62  ;;  %v6241_v62 = vpack.c.bf16 %v2490_v59, %v2488_v58 }
 0x5c8   : > { %6204 = vmatprep.subr.bf16.mxu1 %v6203_v63  ;;  %v6243_v63 = vpack.c.bf16 %v2495_v61, %v2493_v40 }
 0x5cb   : > { %6206 = vmatpush1.bf16.msra.mxu1 %v6205_v7  ;;  %v6245_v7 = vpack.c.bf16 %v2494_v2, %v2492_v1 }
 0x5cc   : > { %6208 = vmatprep.subr.bf16.mxu1 %v6207_v8  ;;  %v6247_v8 = vpack.c.bf16 %v2499_v4, %v2497_v3 }
 0x5cf   : > { %6210 = vmatpush1.bf16.msra.mxu1 %v6209_v14 }
 0x5d0   : > { %6212 = vmatprep.subr.bf16.mxu1 %v6211_v9 }
 0x5d3   : > { %6214 = vmatpush1.bf16.msra.mxu1 %v6213_v10 }
 0x5d4   : > { %6216 = vmatprep.subr.bf16.mxu1 %v6215_v17 }
 0x5d7   : > { %6218 = vmatpush1.bf16.msra.mxu1 %v6217_v22 }
 0x5d8   : > { %6220 = vmatprep.subr.bf16.mxu1 %v6219_v23 }
 0x5db   : > { %6222 = vmatpush1.bf16.msra.mxu1 %v6221_v27 }
 0x5dc   : > { %6224 = vmatprep.subr.bf16.mxu1 %v6223_v28  ;;  %v2501_v28 = vld [vmem:[#allocation11 + $0x1e8] sm:$0xff] }
 0x5dd   : > { %v6251_v36 = vpack.c.bf16 %v2503_v29, %v2501_v28  ;;  %v2768_v29 = vld [vmem:[#allocation14 + $0x68] sm:$0xff] }
 0x5df   : > { %6226 = vmatpush1.bf16.msra.mxu1 %v6225_v33 }
 0x5e0   : > { %6228 = vmatprep.subr.bf16.mxu1 %v6227_v34  ;;  %v2500_v34 = vld [vmem:[#allocation11 + $0x1e0] sm:$0xff] }
 0x5e1   : > { %v6253_v37 = vpack.c.bf16 %v2502_v35, %v2500_v34  ;;  %v2772_v35 = vld [vmem:[#allocation14 + $0x88] sm:$0xff] }
 0x5e3   : > { %6230 = vmatpush1.bf16.msra.mxu1 %v6229_v39 }
 0x5e4   : > { %6232 = vmatprep.subr.bf16.mxu1 %v6231_v42 }
 0x5e7   : > { %6234 = vmatpush1.bf16.msra.mxu1 %v6233_v47 }
 0x5e8   : > { %6236 = vmatprep.subr.bf16.mxu1 %v6235_v48 }
 0x5eb   : > { %6238 = vmatpush1.bf16.msra.mxu1 %v6237_v56 }
 0x5ec   : > { %6240 = vmatprep.subr.bf16.mxu1 %v6239_v54 }
 0x5ef   : > { %6242 = vmatpush1.bf16.msra.mxu1 %v6241_v62 }
 0x5f0   : > { %6244 = vmatprep.subr.bf16.mxu1 %v6243_v63 }
 0x5f3   : > { %6246 = vmatpush1.bf16.msra.mxu1 %v6245_v7 }
 0x5f4   : > { %6248 = vmatprep.subr.bf16.mxu1 %v6247_v8  ;;  %v2756_v8 = vld [vmem:[#allocation14 + $0x8] sm:$0xff] }
 0x5f7   : > { %6250 = vmatpush1.bf16.msra.mxu1 %v6249_v13  ;;  %v6319_v13 = vpack.c.bf16 %v2758_v11, %v2756_v8  ;;  %v2792_v8 = vld [vmem:[#allocation14 + $0x128] sm:$0xff]  ;;  %v2794_v11 = vld [vmem:[#allocation14 + $0x138] sm:$0xff] }
 0x5f8   : > { %6252 = vmatprep.subr.bf16.mxu1 %v6251_v36  ;;  %v2774_v36 = vld [vmem:[#allocation14 + $0x98] sm:$0xff] }
 0x5fb   : > { %6254 = vmatpush1.bf16.msra.mxu1 %v6253_v37  ;;  %v6335_v37 = vpack.c.bf16 %v2774_v36, %v2772_v35  ;;  %v2799_v36 = vld [vmem:[#allocation14 + $0x160] sm:$0xff] }
 0x5fc   : > { %6320 = vmatprep.subr.bf16.mxu1 %v6319_v13  ;;  %v6355_v13 = vpack.c.bf16 %v2794_v11, %v2792_v8  ;;  %v2814_v8 = vld [vmem:[#allocation14 + $0x1d8] sm:$0xff] }
 0x66d   : > { %v2071_v41 = vpop.f32.mrb[14].mxu0 }
 0x66e   : > { %v5943_v14 = vpop.f32.mrb[15].mxu0 }
 0x66f   : > { %v2760_v14 = vld [vmem:[#allocation14 + $0x28] sm:$0xff] }
 0x671   : > { %v2144_v9 = vpop.f32.mrb[16].mxu0 }
 0x672   : > { %v5948_v15 = vpop.f32.mrb[17].mxu0 }
 0x694   : > { %v2217_v16 = vpop.f32.mrb[18].mxu0 }
 0x695   : > { %v2294_v5 = vcombine.low %v2071_v41, %v2217_v16  ;;  %v2295_v6 = vcombine.high %v2071_v41, %v2217_v16  ;;  %v5953_v10 = vpop.f32.mrb[19].mxu0  ;;  %v2757_v41 = vld [vmem:[#allocation14 + $0x10] sm:$0xff] }
 0x696   : > { %v6321_v15 = vpack.c.bf16 %v2757_v41, %v2755_v12  ;;  %v2764_v10 = vld [vmem:[#allocation14 + $0x48] sm:$0xff]  ;;  %v2791_v41 = vld [vmem:[#allocation14 + $0x120] sm:$0xff] }
 0x697   : > { %v2302_v21 = vrot.slane %v2294_v5, %v8293_v60  ;;  %v2309_v22 = vrot.slane %v2295_v6, %v8293_v60  ;;  %v2759_v5 = vld [vmem:[#allocation14 + $0x20] sm:$0xff]  ;;  %v2761_v6 = vld [vmem:[#allocation14 + $0x30] sm:$0xff] }
 0x698   : > { %v2290_v17 = vpop.f32.mrb[20].mxu0 }
 0x699   : > { %v2310_v18 = vcombine.low %v2144_v9, %v2290_v17  ;;  %v2311_v19 = vcombine.high %v2144_v9, %v2290_v17  ;;  %v5958_v20 = vpop.f32.mrb[21].mxu0  ;;  %v2762_v9 = vld [vmem:[#allocation14 + $0x38] sm:$0xff] }
 0x69a   : > { %v6323_v16 = vpack.c.bf16 %v2762_v9, %v2760_v14  ;;  %v2766_v17 = vld [vmem:[#allocation14 + $0x58] sm:$0xff]  ;;  %v2763_v20 = vld [vmem:[#allocation14 + $0x40] sm:$0xff]  ;;  %v2793_v14 = vld [vmem:[#allocation14 + $0x130] sm:$0xff] }
 0x69b   : > { %v2318_v23 = vrot.slane %v2310_v18, %v8293_v60  ;;  %v2325_v24 = vrot.slane %v2311_v19, %v8293_v60  ;;  %v6325_v18 = vpack.c.bf16 %v2761_v6, %v2759_v5  ;;  %v6327_v19 = vpack.c.bf16 %v2766_v17, %v2764_v10  ;;  %v2796_v9 = vld [vmem:[#allocation14 + $0x148] sm:$0xff]  ;;  %v2797_v5 = vld [vmem:[#allocation14 + $0x150] sm:$0xff]  ;;  %v2802_v17 = vld [vmem:[#allocation14 + $0x178] sm:$0xff] }
 0x69c   : > { %v6357_v6 = vpack.c.bf16 %v2793_v14, %v2791_v41  ;;  %v2800_v10 = vld [vmem:[#allocation14 + $0x168] sm:$0xff]  ;;  %v2643_v14 = vld [vmem:[#allocation13 + $0xb8] sm:$0xff] }
 0x69d   : > { %v2326_v52 = vcombine.low %v2302_v21, %v2318_v23  ;;  %v2327_v25 = vcombine.high %v2302_v21, %v2318_v23  ;;  %v2342_v26 = vcombine.low %v2309_v22, %v2325_v24  ;;  %v2343_v27 = vcombine.high %v2309_v22, %v2325_v24  ;;  %v2765_v21 = vld [vmem:[#allocation14 + $0x50] sm:$0xff]  ;;  %v2641_v41 = vld [vmem:[#allocation13 + $0xa8] sm:$0xff] }
 0x69e   : > { %v6329_v22 = vpack.c.bf16 %v2765_v21, %v2763_v20  ;;  %v7259_v24 = vld [vmem:[%s8219_s21] sm:$0xff]  ;;  %v2621_v20 = vld [vmem:[#allocation13 + $0x8] sm:$0xff]  ;;  %v2623_v21 = vld [vmem:[#allocation13 + $0x18] sm:$0xff]  ;;  %v6363_v35 = vpack.c.bf16 %v2802_v17, %v2800_v10 }
 0x69f   : > { %v2334_v30 = vrot.slane %v2326_v52, %v8296_v0  ;;  %v2341_v31 = vrot.slane %v2327_v25, %v8296_v0  ;;  %v2350_v32 = vrot.slane %v2342_v26, %v8296_v0  ;;  %v2357_v33 = vrot.slane %v2343_v27, %v8296_v0  ;;  %v7260_v26 = vld [vmem:[%s8219_s21 + $0x8] sm:$0xff] }
 0x6a0   : > { %v2818_v17 = vld [vmem:[#allocation14 + $0x1f8] sm:$0xff] }
 0x6a1   : > { %v2362_v38 = vcombine.low %v2334_v30, %v2341_v31  ;;  %v5857_v39 = vcombine.high %v2334_v30, %v2341_v31  ;;  %v2378_v42 = vcombine.low %v2350_v32, %v2357_v33  ;;  %v5858_v43 = vcombine.high %v2350_v32, %v2357_v33  ;;  %v2770_v30 = vld [vmem:[#allocation14 + $0x78] sm:$0xff]  ;;  %v2767_v32 = vld [vmem:[#allocation14 + $0x60] sm:$0xff]  ;;  %v2769_v33 = vld [vmem:[#allocation14 + $0x70] sm:$0xff] }
 0x6a2   : > { %v6331_v31 = vpack.c.bf16 %v2770_v30, %v2768_v29  ;;  %v6333_v34 = vpack.c.bf16 %v2769_v33, %v2767_v32  ;;  %v2624_v30 = vld [vmem:[#allocation13 + $0x20] sm:$0xff]  ;;  %v2629_v32 = vld [vmem:[#allocation13 + $0x48] sm:$0xff] }
 0x6a3   : > { %v2369_v44 = vrot.slane %v2362_v38, %v8293_v60  ;;  %v2377_v45 = vrot.slane %v5857_v39, %v8293_v60  ;;  %v2385_v46 = vrot.slane %v2378_v42, %v8293_v60  ;;  %v2393_v47 = vrot.slane %v5858_v43, %v8293_v60  ;;  %v2771_v38 = vld [vmem:[#allocation14 + $0x80] sm:$0xff]  ;;  %v2773_v39 = vld [vmem:[#allocation14 + $0x90] sm:$0xff]  ;;  %v2776_v42 = vld [vmem:[#allocation14 + $0xa8] sm:$0xff] }
 0x6a4   : > { %v6337_v43 = vpack.c.bf16 %v2773_v39, %v2771_v38  ;;  %v2804_v38 = vld [vmem:[#allocation14 + $0x188] sm:$0xff] }
 0x6a5   : > { %v2394_v48 = vcombine.low %v2369_v44, %v2377_v45  ;;  %v2395_v53 = vcombine.high %v2369_v44, %v2377_v45  ;;  %v2410_v49 = vcombine.low %v2385_v46, %v2393_v47  ;;  %v2411_v55 = vcombine.high %v2385_v46, %v2393_v47  ;;  %v2778_v44 = vld [vmem:[#allocation14 + $0xb8] sm:$0xff]  ;;  %v2775_v46 = vld [vmem:[#allocation14 + $0xa0] sm:$0xff]  ;;  %v2777_v47 = vld [vmem:[#allocation14 + $0xb0] sm:$0xff] }
 0x6a6   : > { %v6339_v45 = vpack.c.bf16 %v2778_v44, %v2776_v42  ;;  %v2806_v42 = vld [vmem:[#allocation14 + $0x198] sm:$0xff]  ;;  %v2628_v44 = vld [vmem:[#allocation13 + $0x40] sm:$0xff] }
 0x6a7   : > { %v2402_v50 = vrot.slane %v2394_v48, %v8296_v0  ;;  %v2409_v56 = vrot.slane %v2395_v53, %v8296_v0  ;;  %v2418_v54 = vrot.slane %v2410_v49, %v8296_v0  ;;  %v2425_v58 = vrot.slane %v2411_v55, %v8296_v0  ;;  %v2780_v53 = vld [vmem:[#allocation14 + $0xc8] sm:$0xff]  ;;  %v2782_v49 = vld [vmem:[#allocation14 + $0xd8] sm:$0xff]  ;;  %v2779_v55 = vld [vmem:[#allocation14 + $0xc0] sm:$0xff] }
 0x6a8   : > { %v6341_v48 = vpack.c.bf16 %v2777_v47, %v2775_v46  ;;  %v2633_v46 = vld [vmem:[#allocation13 + $0x68] sm:$0xff]  ;;  %v2635_v47 = vld [vmem:[#allocation13 + $0x78] sm:$0xff] }
 0x6a9   : > { %v2427_v59 = vcombine.high %v2402_v50, %v2418_v54  ;;  %v2429_v40 = vcombine.high %v2409_v56, %v2425_v58  ;;  %v2428_v61 = vcombine.low %v2409_v56, %v2425_v58  ;;  %v2426_v62 = vcombine.low %v2402_v50, %v2418_v54  ;;  %v2781_v56 = vld [vmem:[#allocation14 + $0xd0] sm:$0xff]  ;;  %v2784_v54 = vld [vmem:[#allocation14 + $0xe8] sm:$0xff]  ;;  %v2786_v58 = vld [vmem:[#allocation14 + $0xf8] sm:$0xff] }
 0x6aa   : > { %v6343_v50 = vpack.c.bf16 %v2782_v49, %v2780_v53  ;;  %v6367_v53 = vpack.c.bf16 %v2806_v42, %v2804_v38  ;;  %v2803_v49 = vld [vmem:[#allocation14 + $0x180] sm:$0xff]  ;;  %v2653_v42 = vld [vmem:[#allocation13 + $0x108] sm:$0xff] }
 0x6ab   : > { %v7209_v63 = vpack.i.bf16 %v2427_v59, %v2429_v40  ;;  %v6345_v59 = vpack.c.bf16 %v2781_v56, %v2779_v55  ;;  %v6347_v40 = vpack.c.bf16 %v2786_v58, %v2784_v54  ;;  %v2805_v55 = vld [vmem:[#allocation14 + $0x190] sm:$0xff]  ;;  %v2810_v54 = vld [vmem:[#allocation14 + $0x1b8] sm:$0xff]  ;;  %v6267_v58 = vpack.c.bf16 %v2635_v47, %v2633_v46  ;;  %v2648_v38 = vld [vmem:[#allocation13 + $0xe0] sm:$0xff] }
 0x6ac   : > { %v2652_v47 = vld [vmem:[#allocation13 + $0x100] sm:$0xff] }
 0x6ad   : > { %7210 = vrot.lane.b32.xlu1 %v7209_v63, %s7729_s20  ;;  %v2788_v63 = vld [vmem:[#allocation14 + $0x108] sm:$0xff] }
 0x71f   : > { %v7211_v1 = vpop.permute.xlu1 %7210 }
 0x720   : > { %v7213_v2 = vunpack.i.h.bf16 %v7211_v1  ;;  %v7212_v3 = vunpack.i.l.bf16 %v7211_v1  ;;  %v2790_v1 = vld [vmem:[#allocation14 + $0x118] sm:$0xff] }
 0x722   : > { %v2439_v4 = vsel %vm1652_vm1, %v2428_v61, %v7212_v3  ;;  %v2438_v7 = vsel %vm1652_vm1, %v2426_v62, %v7213_v2  ;;  %v2783_v61 = vld [vmem:[#allocation14 + $0xe0] sm:$0xff]  ;;  %v2785_v62 = vld [vmem:[#allocation14 + $0xf0] sm:$0xff]  ;;  %v6351_v3 = vpack.c.bf16 %v2790_v1, %v2788_v63  ;;  %v6369_v63 = vpack.c.bf16 %v2805_v55, %v2803_v49  ;;  %v2659_v49 = vld [vmem:[#allocation13 + $0x138] sm:$0xff] }
 0x723   : > { %2568 = vmatprep.mubr.f32.mxu1 %v2439_v4  ;;  %v6349_v2 = vpack.c.bf16 %v2785_v62, %v2783_v61  ;;  %v2787_v4 = vld [vmem:[#allocation14 + $0x100] sm:$0xff]  ;;  %v2637_v61 = vld [vmem:[#allocation13 + $0x88] sm:$0xff]  ;;  %v2639_v62 = vld [vmem:[#allocation13 + $0x98] sm:$0xff] }
 0x724   : > { %2569 = vmatmul.mubr.f32.vlgmr.msra.gmra.mrb[0].mxu1 %v2438_v7  ;;  %v2789_v7 = vld [vmem:[#allocation14 + $0x110] sm:$0xff]  ;;  %v6271_v11 = vpack.c.bf16 %v2639_v62, %v2637_v61  ;;  %v2660_v62 = vld [vmem:[#allocation13 + $0x140] sm:$0xff] }
 0x725   : > { %6322 = vmatpush1.bf16.msra.mxu1 %v6321_v15  ;;  %v6353_v12 = vpack.c.bf16 %v2789_v7, %v2787_v4  ;;  %v2798_v15 = vld [vmem:[#allocation14 + $0x158] sm:$0xff]  ;;  %v2812_v4 = vld [vmem:[#allocation14 + $0x1c8] sm:$0xff] }
 0x726   : > { %6324 = vmatprep.subr.bf16.mxu1 %v6323_v16  ;;  %v2795_v16 = vld [vmem:[#allocation14 + $0x140] sm:$0xff] }
 0x727   : > { %v6361_v33 = vpack.c.bf16 %v2797_v5, %v2795_v16  ;;  %v2811_v16 = vld [vmem:[#allocation14 + $0x1c0] sm:$0xff]  ;;  %v2813_v5 = vld [vmem:[#allocation14 + $0x1d0] sm:$0xff] }
 0x729   : > { %6326 = vmatpush1.bf16.msra.mxu1 %v6325_v18  ;;  %v8453_v18 = vld [vmem:[%s680_s18 + $0x8] sm:$0xff] }
 0x72a   : > { %6328 = vmatprep.subr.bf16.mxu1 %v6327_v19  ;;  %v6359_v19 = vpack.c.bf16 %v2798_v15, %v2796_v9  ;;  %2883 = vmatprep.mubr.f32.mxu1 %v8453_v18  ;;  %v6375_v15 = vpack.c.bf16 %v2814_v8, %v2812_v4 }
 0x72d   : > { %6330 = vmatpush1.bf16.msra.mxu1 %v6329_v22  ;;  %v2620_v22 = vld [vmem:[#allocation13] sm:$0xff] }
 0x72e   : > { %6332 = vmatprep.subr.bf16.mxu1 %v6331_v31  ;;  %v2626_v31 = vld [vmem:[#allocation13 + $0x30] sm:$0xff] }
 0x72f   : > { %v6261_v39 = vpack.c.bf16 %v2626_v31, %v2624_v30  ;;  %v2644_v31 = vld [vmem:[#allocation13 + $0xc0] sm:$0xff] }
 0x731   : > { %6334 = vmatpush1.bf16.msra.mxu1 %v6333_v34  ;;  %v2631_v34 = vld [vmem:[#allocation13 + $0x58] sm:$0xff] }
 0x732   : > { %6336 = vmatprep.subr.bf16.mxu1 %v6335_v37  ;;  %v2801_v37 = vld [vmem:[#allocation14 + $0x170] sm:$0xff] }
 0x735   : > { %6338 = vmatpush1.bf16.msra.mxu1 %v6337_v43  ;;  %v6263_v43 = vpack.c.bf16 %v2631_v34, %v2629_v32  ;;  %v2646_v32 = vld [vmem:[#allocation13 + $0xd0] sm:$0xff]  ;;  %v2651_v34 = vld [vmem:[#allocation13 + $0xf8] sm:$0xff] }
 0x736   : > { %6340 = vmatprep.subr.bf16.mxu1 %v6339_v45  ;;  %v2630_v45 = vld [vmem:[#allocation13 + $0x50] sm:$0xff] }
 0x737   : > { %v6265_v56 = vpack.c.bf16 %v2630_v45, %v2628_v44  ;;  %v8458_v44 = vld [vmem:[%s680_s18] sm:$0xff] }
 0x739   : > { %6342 = vmatpush1.bf16.msra.mxu1 %v6341_v48  ;;  %v6365_v48 = vpack.c.bf16 %v2801_v37, %v2799_v36  ;;  %v6281_v36 = vpack.c.bf16 %v2646_v32, %v2644_v31  ;;  %v2681_v31 = vld [vmem:[#allocation13 + $0x1e8] sm:$0xff]  ;;  %v2683_v32 = vld [vmem:[#allocation13 + $0x1f8] sm:$0xff] }
 0x73a   : > { %6344 = vmatprep.subr.bf16.mxu1 %v6343_v50  ;;  %v2808_v50 = vld [vmem:[#allocation14 + $0x1a8] sm:$0xff] }
 0x73b   : > { %v6371_v1 = vpack.c.bf16 %v2810_v54, %v2808_v50  ;;  %v2658_v54 = vld [vmem:[#allocation13 + $0x130] sm:$0xff] }
 0x73d   : > { %6346 = vmatpush1.bf16.msra.mxu1 %v6345_v59  ;;  %v2632_v59 = vld [vmem:[#allocation13 + $0x60] sm:$0xff] }
 0x73e   : > { %6348 = vmatprep.subr.bf16.mxu1 %v6347_v40  ;;  %v2634_v40 = vld [vmem:[#allocation13 + $0x70] sm:$0xff] }
 0x73f   : > { %v6269_v7 = vpack.c.bf16 %v2634_v40, %v2632_v59  ;;  %v2663_v59 = vld [vmem:[#allocation13 + $0x158] sm:$0xff] }
 0x741   : > { %6350 = vmatpush1.bf16.msra.mxu1 %v6349_v2  ;;  %v2807_v2 = vld [vmem:[#allocation14 + $0x1a0] sm:$0xff] }
 0x742   : > { %6352 = vmatprep.subr.bf16.mxu1 %v6351_v3  ;;  %v2809_v3 = vld [vmem:[#allocation14 + $0x1b0] sm:$0xff] }
 0x743   : > { %v6373_v9 = vpack.c.bf16 %v2809_v3, %v2807_v2 }
 0x745   : > { %6354 = vmatpush1.bf16.msra.mxu1 %v6353_v12  ;;  %v2636_v12 = vld [vmem:[#allocation13 + $0x80] sm:$0xff] }
 0x746   : > { %6356 = vmatprep.subr.bf16.mxu1 %v6355_v13  ;;  %v2638_v13 = vld [vmem:[#allocation13 + $0x90] sm:$0xff] }
 0x747   : > { %v6273_v10 = vpack.c.bf16 %v2638_v13, %v2636_v12  ;;  %v2665_v13 = vld [vmem:[#allocation13 + $0x168] sm:$0xff] }
 0x749   : > { %6358 = vmatpush1.bf16.msra.mxu1 %v6357_v6  ;;  %v2816_v6 = vld [vmem:[#allocation14 + $0x1e8] sm:$0xff] }
 0x74a   : > { %6360 = vmatprep.subr.bf16.mxu1 %v6359_v19  ;;  %v6275_v19 = vpack.c.bf16 %v2643_v14, %v2641_v41  ;;  %v2667_v41 = vld [vmem:[#allocation13 + $0x178] sm:$0xff] }
 0x74b   : > { %v6299_v14 = vpack.c.bf16 %v2667_v41, %v2665_v13 }
 0x74d   : > { %6362 = vmatpush1.bf16.msra.mxu1 %v6361_v33  ;;  %v2649_v33 = vld [vmem:[#allocation13 + $0xe8] sm:$0xff] }
 0x74e   : > { %6364 = vmatprep.subr.bf16.mxu1 %v6363_v35  ;;  %v6283_v37 = vpack.c.bf16 %v2651_v34, %v2649_v33  ;;  %v6315_v34 = vpack.c.bf16 %v2683_v32, %v2681_v31 }
 0x751   : > { %6366 = vmatpush1.bf16.msra.mxu1 %v6365_v48  ;;  %v2654_v48 = vld [vmem:[#allocation13 + $0x110] sm:$0xff] }
 0x752   : > { %6368 = vmatprep.subr.bf16.mxu1 %v6367_v53  ;;  %v2657_v53 = vld [vmem:[#allocation13 + $0x128] sm:$0xff]  ;;  %v6289_v55 = vpack.c.bf16 %v2654_v48, %v2652_v47  ;;  %v8473_v48 = vsub.s32 0, %v8290_v57 }
 0x753   : > { %v6291_v50 = vpack.c.bf16 %v2659_v49, %v2657_v53  ;;  %v8476_v53 = vsub.s32 1, %v8290_v57  ;;  %v802_v49 = vld [vmem:[%s8903_s8] sm:$0x3] }
 0x755   : > { %6370 = vmatpush1.bf16.msra.mxu1 %v6369_v63  ;;  %v2662_v63 = vld [vmem:[#allocation13 + $0x150] sm:$0xff] }
 0x756   : > { %6372 = vmatprep.subr.bf16.mxu1 %v6371_v1  ;;  %v6297_v1 = vpack.c.bf16 %v2662_v63, %v2660_v62 }
 0x759   : > { %6374 = vmatpush1.bf16.msra.mxu1 %v6373_v9  ;;  %v2664_v9 = vld [vmem:[#allocation13 + $0x160] sm:$0xff] }
 0x75a   : > { %6376 = vmatprep.subr.bf16.mxu1 %v6375_v15  ;;  %v2666_v15 = vld [vmem:[#allocation13 + $0x170] sm:$0xff] }
 0x7f7   : > { %v2570_v23 = vpop.f32.mrb[0].mxu1 }
 0x7f8   : > { %v8444_v52 = vadd.f32 %v7259_v24, %v2570_v23  ;;  %v2572_v25 = vpop.f32.mrb[1].mxu1  ;;  %v6255_v23 = vpack.c.bf16 %v2623_v21, %v2621_v20  ;;  %v2622_v24 = vld [vmem:[#allocation13 + $0x10] sm:$0xff]  ;;  %v2640_v20 = vld [vmem:[#allocation13 + $0xa0] sm:$0xff] }
 0x7f9   : > { %v8447_v27 = vadd.f32 %v7260_v26, %v2572_v25  ;;  %v2625_v25 = vld [vmem:[#allocation13 + $0x28] sm:$0xff]  ;;  %v2627_v26 = vld [vmem:[#allocation13 + $0x38] sm:$0xff]  ;;  %v2642_v21 = vld [vmem:[#allocation13 + $0xb0] sm:$0xff] }
 0x7fa   : > { %v6259_v29 = vpack.c.bf16 %v2627_v26, %v2625_v25  ;;  %6256 = vmatprep.subr.bf16.mxu0 %v6255_v23  ;;  %v2647_v23 = vld [vmem:[#allocation13 + $0xd8] sm:$0xff]  ;;  %v6379_v25 = vpack.c.bf16 %v2818_v17, %v2816_v6  ;;  %v2815_v26 = vld [vmem:[#allocation14 + $0x1e0] sm:$0xff]  ;;  %v2670_v17 = vld [vmem:[#allocation13 + $0x190] sm:$0xff] }
 0x7fb   : > { %v2577_v28 = vadd.f32 %v8447_v27, %v8444_v52  ;;  %v2671_v6 = vld [vmem:[#allocation13 + $0x198] sm:$0xff] }
 0x7fd   : > { %2578 = vadd.xlane.f32.xlu0 %v2577_v28  ;;  %v6257_v28 = vpack.c.bf16 %v2622_v24, %v2620_v22  ;;  %v2645_v22 = vld [vmem:[#allocation13 + $0xc8] sm:$0xff]  ;;  %v6377_v24 = vpack.c.bf16 %v2813_v5, %v2811_v16  ;;  %v6301_v16 = vpack.c.bf16 %v2666_v15, %v2664_v9 }
 0x7fe   : > { %v6279_v30 = vpack.c.bf16 %v2647_v23, %v2645_v22  ;;  %v2669_v5 = vld [vmem:[#allocation13 + $0x188] sm:$0xff]  ;;  %v2672_v22 = vld [vmem:[#allocation13 + $0x1a0] sm:$0xff]  ;;  %v2674_v23 = vld [vmem:[#allocation13 + $0x1b0] sm:$0xff] }
 0x7ff   : > { %6258 = vmatpush1.bf16.msra.mxu0 %v6257_v28  ;;  %v2817_v28 = vld [vmem:[#allocation14 + $0x1f0] sm:$0xff]  ;;  %6378 = vmatpush1.bf16.msra.mxu1 %v6377_v24  ;;  %v2677_v24 = vld [vmem:[#allocation13 + $0x1c8] sm:$0xff] }
 0x800   : > { %6260 = vmatprep.subr.bf16.mxu0 %v6259_v29  ;;  %v6277_v29 = vpack.c.bf16 %v2642_v21, %v2640_v20  ;;  %v6381_v35 = vpack.c.bf16 %v2817_v28, %v2815_v26  ;;  %6380 = vmatprep.subr.bf16.mxu1 %v6379_v25  ;;  %v2679_v25 = vld [vmem:[#allocation13 + $0x1d8] sm:$0xff]  ;;  %v6309_v26 = vpack.c.bf16 %v2674_v23, %v2672_v22 }
 0x801   : > { %v6311_v28 = vpack.c.bf16 %v2679_v25, %v2677_v24 }
 0x803   : > { %6262 = vmatpush1.bf16.msra.mxu0 %v6261_v39  ;;  %v2650_v39 = vld [vmem:[#allocation13 + $0xf0] sm:$0xff]  ;;  %6382 = vmatpush1.bf16.msra.mxu1 %v6381_v35  ;;  %v2680_v35 = vld [vmem:[#allocation13 + $0x1e0] sm:$0xff] }
 0x804   : > { %6264 = vmatprep.subr.bf16.mxu0 %v6263_v43  ;;  %v2655_v43 = vld [vmem:[#allocation13 + $0x118] sm:$0xff]  ;;  %v6285_v45 = vpack.c.bf16 %v2650_v39, %v2648_v38  ;;  %5959 = vmatprep.subr.mxu1 %v7730_v51 }
 0x805   : > { %v6287_v46 = vpack.c.bf16 %v2655_v43, %v2653_v42 }
 0x806   : > { %2884 = vmatmul.mubr.f32.vlgmr.msra.gmra.mrb[2].mxu1 %v8458_v44 }
 0x807   : > { %6266 = vmatpush1.bf16.msra.mxu0 %v6265_v56  ;;  %5961 = vmatprep.mubr.msk.f32.mxu1 %vm7731_vm0, %v7730_v51  ;;  %v2656_v56 = vld [vmem:[#allocation13 + $0x120] sm:$0xff] }
 0x808   : > { %6268 = vmatprep.subr.bf16.mxu0 %v6267_v58  ;;  %v2661_v58 = vld [vmem:[#allocation13 + $0x148] sm:$0xff]  ;;  %v6293_v40 = vpack.c.bf16 %v2658_v54, %v2656_v56  ;;  %v8488_v56 = vrot.slane %v802_v49, %v8476_v53 }
 0x809   : > { %v6295_v61 = vpack.c.bf16 %v2663_v59, %v2661_v58 }
 0x80b   : > { %6270 = vmatpush1.bf16.msra.mxu0 %v6269_v7 }
 0x80c   : > { %6272 = vmatprep.subr.bf16.mxu0 %v6271_v11 }
 0x80f   : > { %6274 = vmatpush1.bf16.msra.mxu0 %v6273_v10  ;;  %v6303_v10 = vpack.c.bf16 %v2671_v6, %v2669_v5 }
 0x810   : > { %6276 = vmatprep.subr.bf16.mxu0 %v6275_v19  ;;  %v2675_v19 = vld [vmem:[#allocation13 + $0x1b8] sm:$0xff] }
 0x813   : > { %6278 = vmatpush1.bf16.msra.mxu0 %v6277_v29  ;;  %v2676_v29 = vld [vmem:[#allocation13 + $0x1c0] sm:$0xff] }
 0x814   : > { %6280 = vmatprep.subr.bf16.mxu0 %v6279_v30  ;;  %v2678_v30 = vld [vmem:[#allocation13 + $0x1d0] sm:$0xff] }
 0x815   : > { %v6313_v33 = vpack.c.bf16 %v2678_v30, %v2676_v29 }
 0x817   : > { %6282 = vmatpush1.bf16.msra.mxu0 %v6281_v36  ;;  %v2682_v36 = vld [vmem:[#allocation13 + $0x1f0] sm:$0xff] }
 0x818   : > { %6284 = vmatprep.subr.bf16.mxu0 %v6283_v37  ;;  %v6317_v37 = vpack.c.bf16 %v2682_v36, %v2680_v35 }
 0x81b   : > { %6286 = vmatpush1.bf16.msra.mxu0 %v6285_v45 }
 0x81c   : > { %6288 = vmatprep.subr.bf16.mxu0 %v6287_v46 }
 0x81f   : > { %6290 = vmatpush1.bf16.msra.mxu0 %v6289_v55  ;;  %v803_v55 = vld [vmem:[%s8904_s30] sm:$0x3]  ;;  %s782_s30 = scalar_lea.vmem [#allocation22], %s8215_s12  ;;  %s5572_s12 = scalar_lea.sflag [#allocation4], %s8212_s7 }
 0x820   : > { %6292 = vmatprep.subr.bf16.mxu0 %v6291_v50  ;;  %v8485_v50 = vrot.slane %v802_v49, %v8473_v48  ;;  %v8491_v59 = vrot.slane %v803_v55, %v8473_v48  ;;  %s5588_s6 = sshll.u32 %s782_s30, 4  ;;  %s8771_s6 = int_to_ptr.vmem [resolvable:$true] %s5588_s6 }
 0x821   : > { %s7601_s1 = scalar_lea.vmem %s8771_s6, 256 }
 0x822   : > { %p7602_p2 = scmp.ne.s32.totalorder %s8771_s6, %s7601_s1 }
 0x823   : > { %6294 = vmatpush1.bf16.msra.mxu0 %v6293_v40  ;;  %v8494_v40 = vrot.slane %v803_v55, %v8476_v53  ;;  %v2892_v55 = vld [vmem:[#allocation16 + $0x10] sm:$0xff] }
 0x824   : > { %6296 = vmatprep.subr.bf16.mxu0 %v6295_v61  ;;  %p7603_p1 = pnand %p7602_p2, %p8910_p10 }
 0x826   : > { %p7604_p5 = pneg %p7603_p1 }
 0x827   : > { %6298 = vmatpush1.bf16.msra.mxu0 %v6297_v1 }
 0x828   : > { %6300 = vmatprep.subr.bf16.mxu0 %v6299_v14 }
 0x82b   : > { %6302 = vmatpush1.bf16.msra.mxu0 %v6301_v16 }
 0x82c   : > { %6304 = vmatprep.subr.bf16.mxu0 %v6303_v10 }
 0x88a   : > { %v2579_v2 = vpop.xlane.xlu0 %2578 }
 0x88b   : > { %v2581_v3 = vmul.f32 0.00390625, %v2579_v2 }
 0x88d   : > { %v8465_v4 = vsub.f32 %v8444_v52, %v2581_v3  ;;  %v2583_v7 = vsub.f32 %v8447_v27, %v2581_v3  ;;  %v2668_v52 = vld [vmem:[#allocation13 + $0x180] sm:$0xff]  ;;  %v2673_v27 = vld [vmem:[#allocation13 + $0x1a8] sm:$0xff] }
 0x88e   : > { %v6305_v20 = vpack.c.bf16 %v2670_v17, %v2668_v52  ;;  %v6307_v21 = vpack.c.bf16 %v2675_v19, %v2673_v27 }
 0x88f   : > { %v2584_v8 = vmul.f32 %v8465_v4, %v8465_v4  ;;  %v2585_v11 = vmul.f32 %v2583_v7, %v2583_v7 }
 0x890   : > { %6306 = vmatpush1.bf16.msra.mxu0 %v6305_v20 }
 0x891   : > { %v2586_v12 = vadd.f32 %v2585_v11, %v2584_v8  ;;  %6308 = vmatprep.subr.bf16.mxu0 %v6307_v21 }
 0x893   : > { %2587 = vadd.xlane.f32.xlu0 %v2586_v12 }
 0x894   : > { %6310 = vmatpush1.bf16.msra.mxu0 %v6309_v26 }
 0x895   : > { %6312 = vmatprep.subr.bf16.mxu0 %v6311_v28 }
 0x898   : > { %6314 = vmatpush1.bf16.msra.mxu0 %v6313_v33 }
 0x899   : > { %6316 = vmatprep.subr.bf16.mxu0 %v6315_v34 }
 0x89c   : > { %6318 = vmatpush1.bf16.msra.mxu0 %v6317_v37 }
 0x8d9   : > { %v2885_v38 = vpop.f32.mrb[2].mxu1 }
 0x8da   : > { %v2887_v39 = vpop.f32.mrb[3].mxu1  ;;  %3170 = vrot.lane.b32.xlu0 %v2885_v38, %s7729_s20 }
 0x8db   : > { %v3177_v42 = vcombine.low %v2885_v38, %v2887_v39  ;;  %v3178_v43 = vcombine.high %v2885_v38, %v2887_v39  ;;  %3174 = vrot.lane.b32.xlu1 %v2887_v39, %s7729_s20 }
 0x8dd   : > { %v3192_v8 = vrot.slane %v3178_v43, %v8293_v60  ;;  %v2891_v43 = vld [vmem:[#allocation16 + $0x8] sm:$0xff] }
 0x920   : > { %v2588_v45 = vpop.xlane.xlu0 %2587 }
 0x921   : > { %v2589_v46 = vmul.f32 0.00390625, %v2588_v45  ;;  %v2893_v45 = vld [vmem:[#allocation16 + $0x18] sm:$0xff] }
 0x922   : > { %v6383_v49 = vpack.c.bf16 %v2893_v45, %v2891_v43 }
 0x923   : > { %v2590_v47 = vadd.f32 1e-05, %v2589_v46  ;;  %v2890_v46 = vld [vmem:[#allocation16] sm:$0xff] }
 0x924   : > { %6384 = vmatprep.subr.bf16.mxu0 %v6383_v49  ;;  %v2919_v49 = vld [vmem:[#allocation16 + $0xe8] sm:$0xff] }
 0x925   : > { %7237 = vrsqrt.f32 %v2590_v47  ;;  %v7734_v47 = vmov 0  }
 0x926   : > { %7214 = vset.pattern.permute.xlu1 %v7734_v47  ;;  %7220 = vset.pattern.permute.xlu0 %v7734_v47  ;;  %v2916_v47 = vld [vmem:[#allocation16 + $0xd0] sm:$0xff] }
 0x92f   : > { %v7238_v54 = vpop.eup %7237 }
 0x930   : > { %v2593_v58 = vmul.f32 %v7238_v54, %v2583_v7  ;;  %v2592_v61 = vmul.f32 %v7238_v54, %v8465_v4  ;;  %v3185_v4 = vrot.slane %v3177_v42, %v8293_v60  ;;  %v2895_v54 = vld [vmem:[#allocation16 + $0x28] sm:$0xff] }
 0x932   : > { %v2606_v62 = vmul.f32 %v8488_v56, %v2593_v58  ;;  %v2605_v63 = vmul.f32 %v8485_v50, %v2592_v61  ;;  %v2897_v58 = vld [vmem:[#allocation16 + $0x38] sm:$0xff]  ;;  %v6385_v61 = vpack.c.bf16 %v2892_v55, %v2890_v46  ;;  %v2914_v46 = vld [vmem:[#allocation16 + $0xc0] sm:$0xff] }
 0x933   : > { %v2921_v55 = vld [vmem:[#allocation16 + $0xf8] sm:$0xff] }
 0x934   : > { %v8500_v1 = vadd.f32 %v8494_v40, %v2606_v62  ;;  %v8503_v2 = vadd.f32 %v8491_v59, %v2605_v63  ;;  %v6387_v62 = vpack.c.bf16 %v2897_v58, %v2895_v54  ;;  %v2894_v63 = vld [vmem:[#allocation16 + $0x20] sm:$0xff]  ;;  %v6409_v54 = vpack.c.bf16 %v2916_v47, %v2914_v46 }
 0x935   : > { %v6411_v58 = vpack.c.bf16 %v2921_v55, %v2919_v49  ;;  %v2942_v49 = vld [vmem:[#allocation16 + $0x1a0] sm:$0xff]  ;;  %v2944_v55 = vld [vmem:[#allocation16 + $0x1b0] sm:$0xff] }
 0x936   : > { %2748 = vmatprep.mubr.f32.mxu0 %v8500_v1 }
 0x937   : > { %2749 = vmatmul.mubr.f32.vlgmr.msra.gmra.mrb[22].mxu0 %v8503_v2 }
 0x938   : > { %3018 = vmatprep.mubr.f32.mxu0 %v8453_v18  ;;  %6386 = vmatpush1.bf16.msra.mxu0 %v6385_v61  ;;  %v2918_v61 = vld [vmem:[#allocation16 + $0xe0] sm:$0xff] }
 0x939   : > { %6388 = vmatprep.subr.bf16.mxu0 %v6387_v62  ;;  %v2920_v62 = vld [vmem:[#allocation16 + $0xf0] sm:$0xff] }
 0x94c   : > { %v3171_v3 = vpop.permute.xlu0 %3170 }
 0x94d   : > { %v3175_v7 = vpop.permute.xlu1 %3174 }
 0x94e   : > { %v3193_v11 = vcombine.low %v3171_v3, %v3175_v7  ;;  %v3194_v12 = vcombine.high %v3171_v3, %v3175_v7  ;;  %v2896_v3 = vld [vmem:[#allocation16 + $0x30] sm:$0xff]  ;;  %v2899_v7 = vld [vmem:[#allocation16 + $0x48] sm:$0xff] }
 0x950   : > { %v3201_v13 = vrot.slane %v3193_v11, %v8293_v60  ;;  %v3208_v41 = vrot.slane %v3194_v12, %v8293_v60  ;;  %v2898_v12 = vld [vmem:[#allocation16 + $0x40] sm:$0xff] }
 0x952   : > { %v3209_v14 = vcombine.low %v3185_v4, %v3201_v13  ;;  %v3210_v9 = vcombine.high %v3185_v4, %v3201_v13  ;;  %v3225_v15 = vcombine.low %v3192_v8, %v3208_v41  ;;  %v3226_v16 = vcombine.high %v3192_v8, %v3208_v41  ;;  %v2901_v4 = vld [vmem:[#allocation16 + $0x58] sm:$0xff]  ;;  %v2900_v13 = vld [vmem:[#allocation16 + $0x50] sm:$0xff]  ;;  %v812_v41 = vld [vmem:[%s789_s9] sm:$0xff]  ;;  %s7735_s9 = smov [#allocation22]  }
 0x953   : > { %v6389_v8 = vpack.c.bf16 %v2896_v3, %v2894_v63  ;;  %v6391_v11 = vpack.c.bf16 %v2901_v4, %v2899_v7  ;;  %vm813_vm4 = vcmp.ne.s32.totalorder %v812_v41, 0  ;;  %v2923_v63 = vld [vmem:[#allocation16 + $0x108] sm:$0xff]  ;;  %v2925_v3 = vld [vmem:[#allocation16 + $0x118] sm:$0xff]  ;;  %v6413_v7 = vpack.c.bf16 %v2920_v62, %v2918_v61  ;;  %s7605_s18 = sshll.u32 %s7735_s9, 4  ;;  %s7606_s18 = int_to_ptr.vmem [resolvable:$false] %s7605_s18 }
 0x954   : > { %v3217_v5 = vrot.slane %v3209_v14, %v8296_v0  ;;  %v3224_v18 = vrot.slane %v3210_v9, %v8296_v0  ;;  %v3233_v6 = vrot.slane %v3225_v15, %v8296_v0  ;;  %v3240_v52 = vrot.slane %v3226_v16, %v8296_v0  ;;  %v2903_v14 = vld [vmem:[#allocation16 + $0x68] sm:$0xff]  ;;  %v2905_v9 = vld [vmem:[#allocation16 + $0x78] sm:$0xff]  ;;  %p7608_p8 = scmp.lt.s32.totalorder %s8771_s6, %s7606_s18 }
 0x955   : > { %v814_v15 = vsel %vm813_vm4, -1e+09, %v7730_v51  ;;  %6390 = vmatpush1.bf16.msra.mxu0 %v6389_v8  ;;  %v6393_v16 = vpack.c.bf16 %v2900_v13, %v2898_v12  ;;  %v6415_v4 = vpack.c.bf16 %v2925_v3, %v2923_v63  ;;  %v2922_v8 = vld [vmem:[#allocation16 + $0x100] sm:$0xff]  ;;  %v2927_v12 = vld [vmem:[#allocation16 + $0x128] sm:$0xff]  ;;  %v2929_v13 = vld [vmem:[#allocation16 + $0x138] sm:$0xff]  ;;  %v6437_v61 = vpack.c.bf16 %v2944_v55, %v2942_v49 }
 0x956   : > { %v3245_v10 = vcombine.low %v3217_v5, %v3224_v18  ;;  %v5861_v17 = vcombine.high %v3217_v5, %v3224_v18  ;;  %v3261_v27 = vcombine.low %v3233_v6, %v3240_v52  ;;  %v5862_v19 = vcombine.high %v3233_v6, %v3240_v52  ;;  %6392 = vmatprep.subr.bf16.mxu0 %v6391_v11  ;;  %v2902_v18 = vld [vmem:[#allocation16 + $0x60] sm:$0xff]  ;;  %v2904_v6 = vld [vmem:[#allocation16 + $0x70] sm:$0xff]  ;;  %v2907_v52 = vld [vmem:[#allocation16 + $0x88] sm:$0xff] }
 0x957   : > { %v6395_v5 = vpack.c.bf16 %v2905_v9, %v2903_v14  ;;  %v2924_v11 = vld [vmem:[#allocation16 + $0x110] sm:$0xff]  ;;  %v6419_v14 = vpack.c.bf16 %v2929_v13, %v2927_v12  ;;  %v2926_v9 = vld [vmem:[#allocation16 + $0x120] sm:$0xff] }
 0x958   : > { %v3252_v20 = vrot.slane %v3245_v10, %v8293_v60  ;;  %v3260_v21 = vrot.slane %v5861_v17, %v8293_v60  ;;  %v3268_v22 = vrot.slane %v3261_v27, %v8293_v60  ;;  %v3276_v23 = vrot.slane %v5862_v19, %v8293_v60  ;;  %v2909_v10 = vld [vmem:[#allocation16 + $0x98] sm:$0xff]  ;;  %v2906_v19 = vld [vmem:[#allocation16 + $0x80] sm:$0xff]  ;;  %v2948_v3 = vld [vmem:[#allocation16 + $0x1d0] sm:$0xff] }
 0x959   : > { %6394 = vmatpush1.bf16.msra.mxu0 %v6393_v16  ;;  %v6397_v17 = vpack.c.bf16 %v2904_v6, %v2902_v18  ;;  %v6399_v27 = vpack.c.bf16 %v2909_v10, %v2907_v52  ;;  %v6417_v41 = vpack.c.bf16 %v2924_v11, %v2922_v8  ;;  %v2931_v16 = vld [vmem:[#allocation16 + $0x148] sm:$0xff]  ;;  %v2930_v52 = vld [vmem:[#allocation16 + $0x140] sm:$0xff]  ;;  %v2932_v10 = vld [vmem:[#allocation16 + $0x150] sm:$0xff] }
 0x95a   : > { %v3277_v24 = vcombine.low %v3252_v20, %v3260_v21  ;;  %v3278_v25 = vcombine.high %v3252_v20, %v3260_v21  ;;  %v3293_v26 = vcombine.low %v3268_v22, %v3276_v23  ;;  %v3294_v28 = vcombine.high %v3268_v22, %v3276_v23  ;;  %6396 = vmatprep.subr.bf16.mxu0 %v6395_v5  ;;  %v2908_v20 = vld [vmem:[#allocation16 + $0x90] sm:$0xff]  ;;  %v2911_v21 = vld [vmem:[#allocation16 + $0xa8] sm:$0xff]  ;;  %v2913_v22 = vld [vmem:[#allocation16 + $0xb8] sm:$0xff] }
 0x95b   : > { %v6401_v23 = vpack.c.bf16 %v2908_v20, %v2906_v19  ;;  %v2933_v5 = vld [vmem:[#allocation16 + $0x158] sm:$0xff]  ;;  %v6425_v19 = vpack.c.bf16 %v2932_v10, %v2930_v52  ;;  %v2946_v63 = vld [vmem:[#allocation16 + $0x1c0] sm:$0xff]  ;;  %v2952_v13 = vld [vmem:[#allocation16 + $0x1f0] sm:$0xff] }
 0x95c   : > { %v8521_v29 = vrot.slane %v3277_v24, %v8296_v0  ;;  %v8524_v30 = vrot.slane %v3293_v26, %v8296_v0  ;;  %v8527_v31 = vrot.slane %v3278_v25, %v8296_v0  ;;  %v8530_v32 = vrot.slane %v3294_v28, %v8296_v0  ;;  %v2910_v25 = vld [vmem:[#allocation16 + $0xa0] sm:$0xff]  ;;  %v2912_v26 = vld [vmem:[#allocation16 + $0xb0] sm:$0xff]  ;;  %v2915_v28 = vld [vmem:[#allocation16 + $0xc8] sm:$0xff] }
 0x95d   : > { %6398 = vmatpush1.bf16.msra.mxu0 %v6397_v17  ;;  %v6403_v24 = vpack.c.bf16 %v2913_v22, %v2911_v21  ;;  %v6405_v43 = vpack.c.bf16 %v2912_v26, %v2910_v25  ;;  %v6423_v6 = vpack.c.bf16 %v2933_v5, %v2931_v16  ;;  %v2935_v17 = vld [vmem:[#allocation16 + $0x168] sm:$0xff]  ;;  %v2934_v21 = vld [vmem:[#allocation16 + $0x160] sm:$0xff]  ;;  %v2936_v22 = vld [vmem:[#allocation16 + $0x170] sm:$0xff]  ;;  %v6441_v8 = vpack.c.bf16 %v2948_v3, %v2946_v63 }
 0x95e   : > { %v3309_v33 = vcombine.low %v8521_v29, %v8524_v30  ;;  %v3310_v34 = vcombine.high %v8521_v29, %v8524_v30  ;;  %v3311_v35 = vcombine.low %v8527_v31, %v8530_v32  ;;  %v3312_v36 = vcombine.high %v8527_v31, %v8530_v32  ;;  %6400 = vmatprep.subr.bf16.mxu0 %v6399_v27  ;;  %v2937_v27 = vld [vmem:[#allocation16 + $0x178] sm:$0xff]  ;;  %v2950_v12 = vld [vmem:[#allocation16 + $0x1e0] sm:$0xff] }
 0x95f   : > { %v6427_v20 = vpack.c.bf16 %v2937_v27, %v2935_v17  ;;  %v6429_v25 = vpack.c.bf16 %v2936_v22, %v2934_v21 }
 0x960   : > { %5960 = vmatpush3.xpose.msk.msra.mxu1 %vm1652_vm1, %v3309_v33  ;;  %v2917_v33 = vld [vmem:[#allocation16 + $0xd8] sm:$0xff] }
 0x961   : > { %5964 = vmatprep.subr.mxu1 %v7730_v51  ;;  %6402 = vmatpush1.bf16.msra.mxu0 %v6401_v23  ;;  %v6407_v45 = vpack.c.bf16 %v2917_v33, %v2915_v28  ;;  %v2939_v23 = vld [vmem:[#allocation16 + $0x188] sm:$0xff]  ;;  %v2938_v28 = vld [vmem:[#allocation16 + $0x180] sm:$0xff]  ;;  %v2940_v33 = vld [vmem:[#allocation16 + $0x190] sm:$0xff] }
 0x962   : > { %6404 = vmatprep.subr.bf16.mxu0 %v6403_v24  ;;  %v2941_v24 = vld [vmem:[#allocation16 + $0x198] sm:$0xff]  ;;  %v6433_v46 = vpack.c.bf16 %v2940_v33, %v2938_v28 }
 0x963   : > { %v6431_v26 = vpack.c.bf16 %v2941_v24, %v2939_v23 }
 0x965   : > { %6406 = vmatpush1.bf16.msra.mxu0 %v6405_v43  ;;  %v2943_v43 = vld [vmem:[#allocation16 + $0x1a8] sm:$0xff] }
 0x966   : > { %6408 = vmatprep.subr.bf16.mxu0 %v6407_v45  ;;  %v2945_v45 = vld [vmem:[#allocation16 + $0x1b8] sm:$0xff] }
 0x967   : > { %v6435_v47 = vpack.c.bf16 %v2945_v45, %v2943_v43 }
 0x969   : > { %6410 = vmatpush1.bf16.msra.mxu0 %v6409_v54  ;;  %v2947_v54 = vld [vmem:[#allocation16 + $0x1c8] sm:$0xff] }
 0x96a   : > { %6412 = vmatprep.subr.bf16.mxu0 %v6411_v58  ;;  %v2949_v58 = vld [vmem:[#allocation16 + $0x1d8] sm:$0xff] }
 0x96b   : > { %v6439_v62 = vpack.c.bf16 %v2949_v58, %v2947_v54 }
 0x96d   : > { %6414 = vmatpush1.bf16.msra.mxu0 %v6413_v7  ;;  %v2951_v7 = vld [vmem:[#allocation16 + $0x1e8] sm:$0xff] }
 0x96e   : > { %6416 = vmatprep.subr.bf16.mxu0 %v6415_v4  ;;  %v2953_v4 = vld [vmem:[#allocation16 + $0x1f8] sm:$0xff] }
 0x96f   : > { %v6443_v11 = vpack.c.bf16 %v2953_v4, %v2951_v7 }
 0x971   : > { %6418 = vmatpush1.bf16.msra.mxu0 %v6417_v41  ;;  %v6445_v41 = vpack.c.bf16 %v2952_v13, %v2950_v12 }
 0x972   : > { %6420 = vmatprep.subr.bf16.mxu0 %v6419_v14 }
 0xa0a   : > { %v8542_v37 = vpop.f32.mrb[22].mxu0 }
 0xa0b   : > { %3026 = vrot.lane.b32.xlu1 %v8542_v37, %s7729_s20  ;;  %v8546_v38 = vpop.f32.mrb[23].mxu0 }
 0xa0c   : > { %v3033_v39 = vcombine.low %v8542_v37, %v8546_v38  ;;  %v3034_v42 = vcombine.high %v8542_v37, %v8546_v38 }
 0xa0e   : > { %v3041_v5 = vrot.slane %v3033_v39, %v8293_v60 }
 0xa0f   : > { %3030 = vrot.lane.b32.xlu1 %v8546_v38, %s7729_s20 }
 0xa13   : > { %3459 = vperm.xlu1 %7214, %v814_v15   ;;  %v2928_v15 = vld [vmem:[#allocation16 + $0x130] sm:$0xff] }
 0xa14   : > { %v6421_v18 = vpack.c.bf16 %v2928_v15, %v2926_v9 }
 0xa16   : > { %6422 = vmatpush1.bf16.msra.mxu0 %v6421_v18  ;;  %v3048_v18 = vrot.slane %v3034_v42, %v8293_v60 }
 0xa17   : > { %6424 = vmatprep.subr.bf16.mxu0 %v6423_v6 }
 0xa1a   : > { %6426 = vmatpush1.bf16.msra.mxu0 %v6425_v19 }
 0xa1b   : > { %6428 = vmatprep.subr.bf16.mxu0 %v6427_v20 }
 0xa1e   : > { %6430 = vmatpush1.bf16.msra.mxu0 %v6429_v25 }
 0xa1f   : > { %6432 = vmatprep.subr.bf16.mxu0 %v6431_v26 }
 0xa22   : > { %6434 = vmatpush1.bf16.msra.mxu0 %v6433_v46 }
 0xa23   : > { %6436 = vmatprep.subr.bf16.mxu0 %v6435_v47 }
 0xa26   : > { %6438 = vmatpush1.bf16.msra.mxu0 %v6437_v61 }
 0xa27   : > { %6440 = vmatprep.subr.bf16.mxu0 %v6439_v62 }
 0xa2a   : > { %6442 = vmatpush1.bf16.msra.mxu0 %v6441_v8 }
 0xa2b   : > { %6444 = vmatprep.subr.bf16.mxu0 %v6443_v11 }
 0xa2e   : > { %6446 = vmatpush1.bf16.msra.mxu0 %v6445_v41 }
 0xa31   : > { %3019 = vmatmul.mubr.f32.vlgmr.msra.gmra.mrb[24].mxu0 %v8458_v44 }
 0xa7d   : > { %v3027_v14 = vpop.permute.xlu1 %3026 }
 0xa81   : > { %v3031_v9 = vpop.permute.xlu1 %3030 }
 0xa82   : > { %v3049_v15 = vcombine.low %v3027_v14, %v3031_v9  ;;  %v3050_v16 = vcombine.high %v3027_v14, %v3031_v9 }
 0xa84   : > { %v3057_v6 = vrot.slane %v3049_v15, %v8293_v60  ;;  %v3064_v52 = vrot.slane %v3050_v16, %v8293_v60 }
 0xa86   : > { %v3065_v10 = vcombine.low %v3041_v5, %v3057_v6  ;;  %v3066_v44 = vcombine.high %v3041_v5, %v3057_v6  ;;  %v3081_v17 = vcombine.low %v3048_v18, %v3064_v52  ;;  %v3082_v27 = vcombine.high %v3048_v18, %v3064_v52 }
 0xa88   : > { %v3073_v19 = vrot.slane %v3065_v10, %v8296_v0  ;;  %v3080_v20 = vrot.slane %v3066_v44, %v8296_v0  ;;  %v3089_v21 = vrot.slane %v3081_v17, %v8296_v0  ;;  %v3096_v39 = vrot.slane %v3082_v27, %v8296_v0 }
 0xa8a   : > { %v3101_v22 = vcombine.low %v3073_v19, %v3080_v20  ;;  %v5859_v23 = vcombine.high %v3073_v19, %v3080_v20  ;;  %v3117_v37 = vcombine.low %v3089_v21, %v3096_v39  ;;  %v5860_v38 = vcombine.high %v3089_v21, %v3096_v39 }
 0xa8c   : > { %v3108_v42 = vrot.slane %v3101_v22, %v8293_v60  ;;  %v3116_v24 = vrot.slane %v5859_v23, %v8293_v60  ;;  %v3124_v25 = vrot.slane %v3117_v37, %v8293_v60  ;;  %v3132_v26 = vrot.slane %v5860_v38, %v8293_v60 }
 0xa8e   : > { %v3133_v28 = vcombine.low %v3108_v42, %v3116_v24  ;;  %v3134_v33 = vcombine.high %v3108_v42, %v3116_v24  ;;  %v3149_v43 = vcombine.low %v3124_v25, %v3132_v26  ;;  %v3150_v45 = vcombine.high %v3124_v25, %v3132_v26 }
 0xa90   : > { %v3141_v46 = vrot.slane %v3133_v28, %v8296_v0  ;;  %v3157_v47 = vrot.slane %v3149_v43, %v8296_v0  ;;  %v3148_v49 = vrot.slane %v3134_v33, %v8296_v0  ;;  %v3164_v55 = vrot.slane %v3150_v45, %v8296_v0 }
 0xa92   : > { %v3165_v54 = vcombine.low %v3141_v46, %v3157_v47  ;;  %v3166_v58 = vcombine.high %v3141_v46, %v3157_v47  ;;  %v3167_v61 = vcombine.low %v3148_v49, %v3164_v55  ;;  %v3168_v62 = vcombine.high %v3148_v49, %v3164_v55  ;;  %v3460_v29 = vpop.permute.xlu1 %3459 }
 0xa94   : > { %5962 = vmatmul.mubr.msk.f32.vlgmr.msra.gmra.mrb[4].mxu1 %vm1652_vm1, %v3165_v54 }
 0xa95   : > { %5965 = vmatpush3.xpose.msk.msra.mxu1 %vm1652_vm1, %v3310_v34  ;;  %5966 = vmatprep.mubr.msk.f32.mxu1 %vm7731_vm0, %v7730_v51 }
 0xa96   : > { %5969 = vmatprep.subr.mxu1 %v7730_v51 }
 0xa98   : > { %5967 = vmatmul.mubr.msk.f32.vlgmr.msra.gmra.mrb[6].mxu1 %vm1652_vm1, %v3166_v58 }
 0xa99   : > { %5970 = vmatpush3.xpose.msk.msra.mxu1 %vm1652_vm1, %v3311_v35  ;;  %5971 = vmatprep.mubr.msk.f32.mxu1 %vm7731_vm0, %v7730_v51 }
 0xa9a   : > { %5974 = vmatprep.subr.mxu1 %v7730_v51 }
 0xa9c   : > { %5972 = vmatmul.mubr.msk.f32.vlgmr.msra.gmra.mrb[8].mxu1 %vm1652_vm1, %v3167_v61 }
 0xa9d   : > { %5975 = vmatpush3.xpose.msk.msra.mxu1 %vm1652_vm1, %v3312_v36  ;;  %5976 = vmatprep.mubr.msk.f32.mxu1 %vm7731_vm0, %v7730_v51 }
 0xa9e   : > { %5979 = vmatprep.subr.mxu1 %v7730_v51 }
 0xaa0   : > { %5977 = vmatmul.mubr.msk.f32.vlgmr.msra.gmra.mrb[10].mxu1 %vm1652_vm1, %v3168_v62 }
 0xaa1   : > { %5981 = vmatprep.mubr.msk.f32.mxu1 %vm7731_vm0, %v7730_v51 }
 0xb04   : > { %v3020_v9 = vpop.f32.mrb[24].mxu0 }
 0xb05   : > { %v3022_v15 = vpop.f32.mrb[25].mxu0 }
 0xb06   : > { %v3321_v16 = vcombine.low %v3020_v9, %v3022_v15  ;;  %v3322_v5 = vcombine.high %v3020_v9, %v3022_v15 }
 0xb08   : > { %v3329_v55 = vrot.slane %v3321_v16, %v8293_v60  ;;  %v3336_v54 = vrot.slane %v3322_v5, %v8293_v60 }
 0xb67   : > { %v3534_v30 = vpop.f32.mrb[4].mxu1 }
 0xb68   : > { %v3535_v34 = vadd.f32 %v3534_v30, %v3460_v29  ;;  %v5963_v35 = vpop.f32.mrb[5].mxu1 }
 0xb6a   : > { %v3766_v63 = vsel %vm1957_vm3, %v3535_v34, -inf }
 0xb6b   : > { %3767 = vmax.xlane.f32.xlu0 %v3766_v63  ;;  %v3610_v31 = vpop.f32.mrb[6].mxu1 }
 0xb6c   : > { %v3611_v32 = vadd.f32 %v3610_v31, %v3460_v29  ;;  %v5968_v36 = vpop.f32.mrb[7].mxu1 }
 0xb6e   : > { %v3769_v3 = vsel %vm1957_vm3, %v3611_v32, -inf }
 0xb6f   : > { %3770 = vmax.xlane.f32.xlu1 %v3769_v3  ;;  %v3686_v7 = vpop.f32.mrb[8].mxu1 }
 0xb70   : > { %v3687_v4 = vadd.f32 %v3686_v7, %v3460_v29  ;;  %v5973_v8 = vpop.f32.mrb[9].mxu1 }
 0xb72   : > { %v3772_v11 = vsel %vm1957_vm3, %v3687_v4, -inf }
 0xb73   : > { %3773 = vmax.xlane.f32.xlu0 %v3772_v11  ;;  %v3762_v12 = vpop.f32.mrb[10].mxu1 }
 0xb74   : > { %v3763_v13 = vadd.f32 %v3762_v12, %v3460_v29  ;;  %v5978_v41 = vpop.f32.mrb[11].mxu1 }
 0xb76   : > { %v3775_v14 = vsel %vm1957_vm3, %v3763_v13, -inf }
 0xb77   : > { %3776 = vmax.xlane.f32.xlu0 %v3775_v14 }
 0xbf8   : > { %v3768_v18 = vpop.xlane.xlu0 %3767 }
 0xbf9   : > { %v3778_v6 = vsub.f32 %v3535_v34, %v3768_v18 }
 0xbfb   : > { %v3782_v52 = vmul.f32 1.442695, %v3778_v6 }
 0xbfc   : > { %v3771_v10 = vpop.xlane.xlu1 %3770 }
 0xbfd   : > { %7239 = vpow2.f32 %v3782_v52  ;;  %v3779_v44 = vsub.f32 %v3611_v32, %v3771_v10 }
 0xbff   : > { %v3784_v17 = vmul.f32 1.442695, %v3779_v44 }
 0xc00   : > { %v3774_v39 = vpop.xlane.xlu0 %3773 }
 0xc01   : > { %7241 = vpow2.f32 %v3784_v17  ;;  %v3780_v22 = vsub.f32 %v3687_v4, %v3774_v39 }
 0xc03   : > { %v3786_v37 = vmul.f32 1.442695, %v3780_v22 }
 0xc04   : > { %v3777_v23 = vpop.xlane.xlu0 %3776 }
 0xc05   : > { %v3781_v38 = vsub.f32 %v3763_v13, %v3777_v23  ;;  %7243 = vpow2.f32 %v3786_v37 }
 0xc07   : > { %v8614_v27 = vpop.eup %7239  ;;  %v3788_v42 = vmul.f32 1.442695, %v3781_v38 }
 0xc08   : > { %v3790_v19 = vsel %vm1957_vm3, %v8614_v27, 0.0 }
 0xc09   : > { %3791 = vadd.xlane.f32.xlu1 %v3790_v19  ;;  %7245 = vpow2.f32 %v3788_v42 }
 0xc0b   : > { %v8618_v20 = vpop.eup %7241 }
 0xc0c   : > { %v3793_v21 = vsel %vm1957_vm3, %v8618_v20, 0.0 }
 0xc0d   : > { %3794 = vadd.xlane.f32.xlu0 %v3793_v21 }
 0xc0f   : > { %v8624_v24 = vpop.eup %7243 }
 0xc10   : > { %v3796_v25 = vsel %vm1957_vm3, %v8624_v24, 0.0 }
 0xc13   : > { %v8628_v26 = vpop.eup %7245 }
 0xc14   : > { %v3799_v28 = vsel %vm1957_vm3, %v8628_v26, 0.0 }
 0xc1a   : > { %3314 = vrot.lane.b32.xlu1 %v3020_v9, %s7729_s20 }
 0xc23   : > { %3318 = vrot.lane.b32.xlu0 %v3022_v15, %s7729_s20 }
 0xc3e   : > { %3797 = vadd.xlane.f32.xlu1 %v3796_v25  ;;  %v4249_v25 = vld [vmem:[#allocation17 + $0x8] sm:$0xff] }
 0xc42   : > { %3800 = vadd.xlane.f32.xlu0 %v3799_v28  ;;  %v4251_v28 = vld [vmem:[#allocation17 + $0x18] sm:$0xff] }
 0xc96   : > { %v3792_v33 = vpop.xlane.xlu1 %3791 }
 0xc97   : > { %7247 = vrcp.f32 %v3792_v33  ;;  %v4248_v33 = vld [vmem:[#allocation17] sm:$0xff] }
 0xc9a   : > { %v3795_v43 = vpop.xlane.xlu0 %3794  ;;  %v3315_v45 = vpop.permute.xlu1 %3314 }
 0xc9b   : > { %7249 = vrcp.f32 %v3795_v43  ;;  %v6447_v43 = vpack.c.bf16 %v4251_v28, %v4249_v25  ;;  %v4285_v25 = vld [vmem:[#allocation17 + $0x128] sm:$0xff]  ;;  %v4287_v28 = vld [vmem:[#allocation17 + $0x138] sm:$0xff] }
 0xc9d   : > { %6448 = vmatprep.subr.bf16.mxu0 %v6447_v43  ;;  %v6483_v43 = vpack.c.bf16 %v4287_v28, %v4285_v25 }
 0xc9e   : > { %v3319_v46 = vpop.permute.xlu0 %3318 }
 0xc9f   : > { %v3337_v47 = vcombine.low %v3315_v45, %v3319_v46  ;;  %v3338_v49 = vcombine.high %v3315_v45, %v3319_v46  ;;  %v4250_v45 = vld [vmem:[#allocation17 + $0x10] sm:$0xff]  ;;  %v4253_v46 = vld [vmem:[#allocation17 + $0x28] sm:$0xff] }
 0xca1   : > { %v3345_v58 = vrot.slane %v3337_v47, %v8293_v60  ;;  %v3352_v61 = vrot.slane %v3338_v49, %v8293_v60  ;;  %v7248_v16 = vpop.eup %7247  ;;  %v4255_v47 = vld [vmem:[#allocation17 + $0x38] sm:$0xff]  ;;  %v6449_v49 = vpack.c.bf16 %v4250_v45, %v4248_v33  ;;  %v4284_v45 = vld [vmem:[#allocation17 + $0x120] sm:$0xff] }
 0xca2   : > { %v3806_v39 = vmul.f32 %v7248_v16, %v8614_v27  ;;  %v4273_v16 = vld [vmem:[#allocation17 + $0xc8] sm:$0xff] }
 0xca3   : > { %v3353_v62 = vcombine.low %v3329_v55, %v3345_v58  ;;  %v3354_v29 = vcombine.high %v3329_v55, %v3345_v58  ;;  %v3369_v30 = vcombine.low %v3336_v54, %v3352_v61  ;;  %v3370_v34 = vcombine.high %v3336_v54, %v3352_v61  ;;  %v4252_v55 = vld [vmem:[#allocation17 + $0x20] sm:$0xff]  ;;  %v4254_v54 = vld [vmem:[#allocation17 + $0x30] sm:$0xff]  ;;  %v4257_v58 = vld [vmem:[#allocation17 + $0x48] sm:$0xff]  ;;  %6450 = vmatpush1.bf16.msra.mxu0 %v6449_v49 }
 0xca4   : > { %v4259_v61 = vld [vmem:[#allocation17 + $0x58] sm:$0xff] }
 0xca5   : > { %v3361_v35 = vrot.slane %v3353_v62, %v8296_v0  ;;  %v3368_v63 = vrot.slane %v3354_v29, %v8296_v0  ;;  %v3377_v31 = vrot.slane %v3369_v30, %v8296_v0  ;;  %v3384_v32 = vrot.slane %v3370_v34, %v8296_v0  ;;  %v7250_v21 = vpop.eup %7249  ;;  %v4256_v62 = vld [vmem:[#allocation17 + $0x40] sm:$0xff]  ;;  %v4258_v29 = vld [vmem:[#allocation17 + $0x50] sm:$0xff]  ;;  %v4261_v30 = vld [vmem:[#allocation17 + $0x68] sm:$0xff] }
 0xca6   : > { %v3807_v22 = vmul.f32 %v7250_v21, %v8618_v20  ;;  %v4263_v34 = vld [vmem:[#allocation17 + $0x78] sm:$0xff] }
 0xca7   : > { %v3389_v36 = vcombine.low %v3361_v35, %v3368_v63  ;;  %v5863_v3 = vcombine.high %v3361_v35, %v3368_v63  ;;  %v3405_v7 = vcombine.low %v3377_v31, %v3384_v32  ;;  %v5864_v4 = vcombine.high %v3377_v31, %v3384_v32  ;;  %v4260_v31 = vld [vmem:[#allocation17 + $0x60] sm:$0xff]  ;;  %v4262_v32 = vld [vmem:[#allocation17 + $0x70] sm:$0xff]  ;;  %v4291_v49 = vld [vmem:[#allocation17 + $0x158] sm:$0xff] }
 0xca8   : > { %v6457_v35 = vpack.c.bf16 %v4258_v29, %v4256_v62  ;;  %v6459_v63 = vpack.c.bf16 %v4263_v34, %v4261_v30  ;;  %v4292_v29 = vld [vmem:[#allocation17 + $0x160] sm:$0xff]  ;;  %v4294_v30 = vld [vmem:[#allocation17 + $0x170] sm:$0xff]  ;;  %v4297_v34 = vld [vmem:[#allocation17 + $0x188] sm:$0xff] }
 0xca9   : > { %v3396_v8 = vrot.slane %v3389_v36, %v8293_v60  ;;  %v3404_v11 = vrot.slane %v5863_v3, %v8293_v60  ;;  %v3412_v12 = vrot.slane %v3405_v7, %v8293_v60  ;;  %v3420_v13 = vrot.slane %v5864_v4, %v8293_v60  ;;  %v4265_v36 = vld [vmem:[#allocation17 + $0x88] sm:$0xff]  ;;  %v4267_v3 = vld [vmem:[#allocation17 + $0x98] sm:$0xff] }
 0xcaa   : > { %v6461_v7 = vpack.c.bf16 %v4262_v32, %v4260_v31  ;;  %v6463_v4 = vpack.c.bf16 %v4267_v3, %v4265_v36  ;;  %v4296_v32 = vld [vmem:[#allocation17 + $0x180] sm:$0xff]  ;;  %v4298_v36 = vld [vmem:[#allocation17 + $0x190] sm:$0xff]  ;;  %v4301_v3 = vld [vmem:[#allocation17 + $0x1a8] sm:$0xff] }
 0xcab   : > { %v3421_v41 = vcombine.low %v3396_v8, %v3404_v11  ;;  %v3437_v14 = vcombine.low %v3412_v12, %v3420_v13  ;;  %v3422_v9 = vcombine.high %v3396_v8, %v3404_v11  ;;  %v3438_v15 = vcombine.high %v3412_v12, %v3420_v13  ;;  %v4264_v8 = vld [vmem:[#allocation17 + $0x80] sm:$0xff]  ;;  %v4266_v11 = vld [vmem:[#allocation17 + $0x90] sm:$0xff]  ;;  %v4269_v12 = vld [vmem:[#allocation17 + $0xa8] sm:$0xff] }
 0xcac   : > { %v4271_v13 = vld [vmem:[#allocation17 + $0xb8] sm:$0xff] }
 0xcad   : > { %v3429_v5 = vrot.slane %v3421_v41, %v8296_v0  ;;  %v3445_v18 = vrot.slane %v3437_v14, %v8296_v0  ;;  %v3436_v6 = vrot.slane %v3422_v9, %v8296_v0  ;;  %v3452_v52 = vrot.slane %v3438_v15, %v8296_v0  ;;  %v4268_v9 = vld [vmem:[#allocation17 + $0xa0] sm:$0xff]  ;;  %v4270_v15 = vld [vmem:[#allocation17 + $0xb0] sm:$0xff] }
 0xcae   : > { %v6465_v41 = vpack.c.bf16 %v4266_v11, %v4264_v8  ;;  %v6467_v14 = vpack.c.bf16 %v4271_v13, %v4269_v12  ;;  %v4300_v11 = vld [vmem:[#allocation17 + $0x1a0] sm:$0xff]  ;;  %v4302_v12 = vld [vmem:[#allocation17 + $0x1b0] sm:$0xff]  ;;  %v4305_v13 = vld [vmem:[#allocation17 + $0x1c8] sm:$0xff] }
 0xcaf   : > { %v3453_v10 = vcombine.low %v3429_v5, %v3445_v18  ;;  %v3454_v44 = vcombine.high %v3429_v5, %v3445_v18  ;;  %v3455_v17 = vcombine.low %v3436_v6, %v3452_v52  ;;  %v3456_v19 = vcombine.high %v3436_v6, %v3452_v52  ;;  %v4275_v5 = vld [vmem:[#allocation17 + $0xd8] sm:$0xff]  ;;  %v4272_v52 = vld [vmem:[#allocation17 + $0xc0] sm:$0xff] }
 0xcb0   : > { %v6469_v18 = vpack.c.bf16 %v4270_v15, %v4268_v9  ;;  %v6471_v6 = vpack.c.bf16 %v4275_v5, %v4273_v16  ;;  %v4304_v15 = vld [vmem:[#allocation17 + $0x1c0] sm:$0xff]  ;;  %v4306_v16 = vld [vmem:[#allocation17 + $0x1d0] sm:$0xff] }
 0xcb1   : > { %5980 = vmatpush3.msra.mxu1 %v3453_v10  ;;  %v4274_v10 = vld [vmem:[#allocation17 + $0xd0] sm:$0xff]  ;;  %v6505_v5 = vpack.c.bf16 %v4306_v16, %v4304_v15 }
 0xcb2   : > { %5982 = vmatmul.mubr.msk.f32.vlgmr.msra.gmra.mrb[12].mxu1 %vm1957_vm3, %v3806_v39  ;;  %5984 = vmatprep.subr.mxu1 %v7730_v51  ;;  %v4276_v39 = vld [vmem:[#allocation17 + $0xe0] sm:$0xff] }
 0xcb3   : > { %5985 = vmatpush3.msra.mxu1 %v3454_v44  ;;  %5986 = vmatprep.mubr.msk.f32.mxu1 %vm7731_vm0, %v7730_v51  ;;  %v4277_v44 = vld [vmem:[#allocation17 + $0xe8] sm:$0xff] }
 0xcb4   : > { %5989 = vmatprep.subr.mxu1 %v7730_v51 }
 0xcb6   : > { %5987 = vmatmul.mubr.msk.f32.vlgmr.msra.gmra.mrb[14].mxu1 %vm1957_vm3, %v3807_v22  ;;  %v4278_v22 = vld [vmem:[#allocation17 + $0xf0] sm:$0xff] }
 0xcb7   : > { %5990 = vmatpush3.msra.mxu1 %v3455_v17  ;;  %5991 = vmatprep.mubr.msk.f32.mxu1 %vm7731_vm0, %v7730_v51  ;;  %v4279_v17 = vld [vmem:[#allocation17 + $0xf8] sm:$0xff] }
 0xcb8   : > { %5994 = vmatprep.subr.mxu1 %v7730_v51  ;;  %v6475_v21 = vpack.c.bf16 %v4279_v17, %v4277_v44 }
 0xccb   : > { %v3798_v27 = vpop.xlane.xlu1 %3797 }
 0xccc   : > { %7251 = vrcp.f32 %v3798_v27  ;;  %v4281_v27 = vld [vmem:[#allocation17 + $0x108] sm:$0xff] }
 0xccf   : > { %v3801_v23 = vpop.xlane.xlu0 %3800 }
 0xcd0   : > { %7253 = vrcp.f32 %v3801_v23  ;;  %v4283_v23 = vld [vmem:[#allocation17 + $0x118] sm:$0xff] }
 0xcd6   : > { %v7252_v37 = vpop.eup %7251 }
 0xcd7   : > { %v3808_v38 = vmul.f32 %v7252_v37, %v8624_v24  ;;  %v6451_v24 = vpack.c.bf16 %v4255_v47, %v4253_v46  ;;  %v6477_v37 = vpack.c.bf16 %v4278_v22, %v4276_v39  ;;  %v4286_v46 = vld [vmem:[#allocation17 + $0x130] sm:$0xff]  ;;  %v4289_v47 = vld [vmem:[#allocation17 + $0x148] sm:$0xff] }
 0xcd9   : > { %5992 = vmatmul.mubr.msk.f32.vlgmr.msra.gmra.mrb[16].mxu1 %vm1957_vm3, %v3808_v38  ;;  %6452 = vmatprep.subr.bf16.mxu0 %v6451_v24  ;;  %v6479_v38 = vpack.c.bf16 %v4283_v23, %v4281_v27  ;;  %v6485_v24 = vpack.c.bf16 %v4286_v46, %v4284_v45  ;;  %v4309_v45 = vld [vmem:[#allocation17 + $0x1e8] sm:$0xff]  ;;  %v4311_v46 = vld [vmem:[#allocation17 + $0x1f8] sm:$0xff] }
 0xcda   : > { %v7254_v20 = vpop.eup %7253  ;;  %5995 = vmatpush3.msra.mxu1 %v3456_v19  ;;  %5996 = vmatprep.mubr.msk.f32.mxu1 %vm7731_vm0, %v7730_v51  ;;  %v6453_v51 = vpack.c.bf16 %v4254_v54, %v4252_v55  ;;  %v6473_v19 = vpack.c.bf16 %v4274_v10, %v4272_v52  ;;  %v6487_v55 = vpack.c.bf16 %v4291_v49, %v4289_v47  ;;  %v4288_v54 = vld [vmem:[#allocation17 + $0x140] sm:$0xff] }
 0xcdb   : > { %v3809_v42 = vmul.f32 %v7254_v20, %v8628_v26  ;;  %v6455_v26 = vpack.c.bf16 %v4259_v61, %v4257_v58  ;;  %v4280_v20 = vld [vmem:[#allocation17 + $0x100] sm:$0xff]  ;;  %v4290_v58 = vld [vmem:[#allocation17 + $0x150] sm:$0xff]  ;;  %v4293_v61 = vld [vmem:[#allocation17 + $0x168] sm:$0xff] }
 0xcdc   : > { %6454 = vmatpush1.bf16.msra.mxu0 %v6453_v51  ;;  %v4295_v51 = vld [vmem:[#allocation17 + $0x178] sm:$0xff] }
 0xcdd   : > { %5997 = vmatmul.mubr.msk.f32.vlgmr.msra.gmra.mrb[18].mxu1 %vm1957_vm3, %v3809_v42  ;;  %6456 = vmatprep.subr.bf16.mxu0 %v6455_v26  ;;  %v4282_v42 = vld [vmem:[#allocation17 + $0x110] sm:$0xff]  ;;  %v6489_v26 = vpack.c.bf16 %v4290_v58, %v4288_v54  ;;  %v6491_v62 = vpack.c.bf16 %v4295_v51, %v4293_v61  ;;  %v4308_v54 = vld [vmem:[#allocation17 + $0x1e0] sm:$0xff]  ;;  %v6507_v61 = vpack.c.bf16 %v4311_v46, %v4309_v45 }
 0xcde   : > { %v6481_v33 = vpack.c.bf16 %v4282_v42, %v4280_v20  ;;  %v4310_v58 = vld [vmem:[#allocation17 + $0x1f0] sm:$0xff] }
 0xcdf   : > { %v6509_v51 = vpack.c.bf16 %v4310_v58, %v4308_v54  ;;  %v4431_v54 = vld [vmem:[#allocation19 + $0xd0] sm:$0xff]  ;;  %v4438_v58 = vld [vmem:[#allocation19 + $0x108] sm:$0xff] }
 0xce0   : > { %6458 = vmatpush1.bf16.msra.mxu0 %v6457_v35  ;;  %v4299_v35 = vld [vmem:[#allocation17 + $0x198] sm:$0xff] }
 0xce1   : > { %6460 = vmatprep.subr.bf16.mxu0 %v6459_v63  ;;  %v6493_v63 = vpack.c.bf16 %v4294_v30, %v4292_v29  ;;  %v6495_v31 = vpack.c.bf16 %v4299_v35, %v4297_v34 }
 0xce4   : > { %6462 = vmatpush1.bf16.msra.mxu0 %v6461_v7  ;;  %v4303_v7 = vld [vmem:[#allocation17 + $0x1b8] sm:$0xff] }
 0xce5   : > { %6464 = vmatprep.subr.bf16.mxu0 %v6463_v4  ;;  %v6497_v4 = vpack.c.bf16 %v4298_v36, %v4296_v32  ;;  %v6499_v8 = vpack.c.bf16 %v4303_v7, %v4301_v3 }
 0xce8   : > { %6466 = vmatpush1.bf16.msra.mxu0 %v6465_v41  ;;  %v4307_v41 = vld [vmem:[#allocation17 + $0x1d8] sm:$0xff] }
 0xce9   : > { %6468 = vmatprep.subr.bf16.mxu0 %v6467_v14  ;;  %v6501_v14 = vpack.c.bf16 %v4302_v12, %v4300_v11  ;;  %v6503_v9 = vpack.c.bf16 %v4307_v41, %v4305_v13 }
 0xcec   : > { %6470 = vmatpush1.bf16.msra.mxu0 %v6469_v18 }
 0xced   : > { %6472 = vmatprep.subr.bf16.mxu0 %v6471_v6 }
 0xcf0   : > { %6474 = vmatpush1.bf16.msra.mxu0 %v6473_v19 }
 0xcf1   : > { %6476 = vmatprep.subr.bf16.mxu0 %v6475_v21 }
 0xcf4   : > { %6478 = vmatpush1.bf16.msra.mxu0 %v6477_v37 }
 0xcf5   : > { %6480 = vmatprep.subr.bf16.mxu0 %v6479_v38 }
 0xcf8   : > { %6482 = vmatpush1.bf16.msra.mxu0 %v6481_v33 }
 0xcf9   : > { %6484 = vmatprep.subr.bf16.mxu0 %v6483_v43 }
 0xcfc   : > { %6486 = vmatpush1.bf16.msra.mxu0 %v6485_v24 }
 0xcfd   : > { %6488 = vmatprep.subr.bf16.mxu0 %v6487_v55 }
 0xd00   : > { %6490 = vmatpush1.bf16.msra.mxu0 %v6489_v26 }
 0xd01   : > { %6492 = vmatprep.subr.bf16.mxu0 %v6491_v62 }
 0xd04   : > { %6494 = vmatpush1.bf16.msra.mxu0 %v6493_v63 }
 0xd05   : > { %6496 = vmatprep.subr.bf16.mxu0 %v6495_v31 }
 0xd08   : > { %6498 = vmatpush1.bf16.msra.mxu0 %v6497_v4 }
 0xd09   : > { %6500 = vmatprep.subr.bf16.mxu0 %v6499_v8 }
 0xd0c   : > { %6502 = vmatpush1.bf16.msra.mxu0 %v6501_v14 }
 0xd0d   : > { %6504 = vmatprep.subr.bf16.mxu0 %v6503_v9 }
 0xd10   : > { %6506 = vmatpush1.bf16.msra.mxu0 %v6505_v5 }
 0xd11   : > { %6508 = vmatprep.subr.bf16.mxu0 %v6507_v61  ;;  %v4446_v61 = vld [vmem:[#allocation19 + $0x148] sm:$0xff] }
 0xd14   : > { %6510 = vmatpush1.bf16.msra.mxu0 %v6509_v51 }
 0xd85   : > { %v3879_v18 = vpop.f32.mrb[12].mxu1 }
 0xd86   : > { %v5983_v6 = vpop.f32.mrb[13].mxu1 }
 0xd89   : > { %v3952_v52 = vpop.f32.mrb[14].mxu1 }
 0xd8a   : > { %v5988_v10 = vpop.f32.mrb[15].mxu1 }
 0xdac   : > { %v4025_v44 = vpop.f32.mrb[16].mxu1 }
 0xdad   : > { %v4102_v17 = vcombine.low %v3879_v18, %v4025_v44  ;;  %v4103_v19 = vcombine.high %v3879_v18, %v4025_v44  ;;  %v5993_v21 = vpop.f32.mrb[17].mxu1 }
 0xdae   : > { %v4414_v21 = vld [vmem:[#allocation19 + $0x48] sm:$0xff] }
 0xdaf   : > { %v4110_v37 = vrot.slane %v4102_v17, %v8293_v60  ;;  %v4117_v38 = vrot.slane %v4103_v19, %v8293_v60  ;;  %v4406_v19 = vld [vmem:[#allocation19 + $0x8] sm:$0xff] }
 0xdb0   : > { %v4098_v39 = vpop.f32.mrb[18].mxu1 }
 0xdb1   : > { %v4118_v22 = vcombine.low %v3952_v52, %v4098_v39  ;;  %v4119_v27 = vcombine.high %v3952_v52, %v4098_v39  ;;  %v5998_v23 = vpop.f32.mrb[19].mxu1  ;;  %v4408_v39 = vld [vmem:[#allocation19 + $0x18] sm:$0xff] }
 0xdb2   : > { %v4405_v23 = vld [vmem:[#allocation19] sm:$0xff] }
 0xdb3   : > { %v4126_v20 = vrot.slane %v4118_v22, %v8293_v60  ;;  %v4133_v42 = vrot.slane %v4119_v27, %v8293_v60  ;;  %v6511_v22 = vpack.c.bf16 %v4414_v21, %v4406_v19  ;;  %v4416_v27 = vld [vmem:[#allocation19 + $0x58] sm:$0xff]  ;;  %v4471_v19 = vld [vmem:[#allocation19 + $0x210] sm:$0xff] }
 0xdb5   : > { %v4134_v25 = vcombine.low %v4110_v37, %v4126_v20  ;;  %v4135_v28 = vcombine.high %v4110_v37, %v4126_v20  ;;  %v4150_v33 = vcombine.low %v4117_v38, %v4133_v42  ;;  %v4151_v43 = vcombine.high %v4117_v38, %v4133_v42  ;;  %v4413_v37 = vld [vmem:[#allocation19 + $0x40] sm:$0xff]  ;;  %v4407_v42 = vld [vmem:[#allocation19 + $0x10] sm:$0xff]  ;;  %6512 = vmatprep.subr.bf16.mxu1 %v6511_v22  ;;  %v4486_v22 = vld [vmem:[#allocation19 + $0x288] sm:$0xff] }
 0xdb6   : > { %v6575_v38 = vpack.c.bf16 %v4416_v27, %v4408_v39  ;;  %v6513_v20 = vpack.c.bf16 %v4413_v37, %v4405_v23  ;;  %v4479_v39 = vld [vmem:[#allocation19 + $0x250] sm:$0xff]  ;;  %v4494_v27 = vld [vmem:[#allocation19 + $0x2c8] sm:$0xff]  ;;  %v4488_v23 = vld [vmem:[#allocation19 + $0x298] sm:$0xff] }
 0xdb7   : > { %v4142_v47 = vrot.slane %v4134_v25, %v8296_v0  ;;  %v4149_v49 = vrot.slane %v4135_v28, %v8296_v0  ;;  %v4158_v24 = vrot.slane %v4150_v33, %v8296_v0  ;;  %v4165_v55 = vrot.slane %v4151_v43, %v8296_v0  ;;  %v4422_v25 = vld [vmem:[#allocation19 + $0x88] sm:$0xff]  ;;  %v4424_v33 = vld [vmem:[#allocation19 + $0x98] sm:$0xff] }
 0xdb8   : > { %v4432_v43 = vld [vmem:[#allocation19 + $0xd8] sm:$0xff]  ;;  %6576 = vmatprep.subr.bf16.mxu0 %v6575_v38  ;;  %6514 = vmatpush1.bf16.msra.mxu1 %v6513_v20  ;;  %v6593_v20 = vpack.c.bf16 %v4479_v39, %v4471_v19 }
 0xdb9   : > { %v4170_v26 = vcombine.low %v4142_v47, %v4149_v49  ;;  %v5877_v62 = vcombine.high %v4142_v47, %v4149_v49  ;;  %v4186_v29 = vcombine.low %v4158_v24, %v4165_v55  ;;  %v5878_v30 = vcombine.high %v4158_v24, %v4165_v55  ;;  %v4421_v47 = vld [vmem:[#allocation19 + $0x80] sm:$0xff]  ;;  %v4423_v24 = vld [vmem:[#allocation19 + $0x90] sm:$0xff]  ;;  %v4496_v37 = vld [vmem:[#allocation19 + $0x2d8] sm:$0xff] }
 0xdba   : > { %v6579_v46 = vpack.c.bf16 %v4432_v43, %v4424_v33  ;;  %v4429_v49 = vld [vmem:[#allocation19 + $0xc0] sm:$0xff]  ;;  %v6581_v51 = vpack.c.bf16 %v4431_v54, %v4423_v24  ;;  %v4495_v33 = vld [vmem:[#allocation19 + $0x2d0] sm:$0xff]  ;;  %v4502_v43 = vld [vmem:[#allocation19 + $0x308] sm:$0xff] }
 0xdbb   : > { %v4177_v34 = vrot.slane %v4170_v26, %v8293_v60  ;;  %v4185_v35 = vrot.slane %v5877_v62, %v8293_v60  ;;  %v4193_v63 = vrot.slane %v4186_v29, %v8293_v60  ;;  %v4201_v31 = vrot.slane %v5878_v30, %v8293_v60  ;;  %v4440_v62 = vld [vmem:[#allocation19 + $0x118] sm:$0xff]  ;;  %v4437_v30 = vld [vmem:[#allocation19 + $0x100] sm:$0xff] }
 0xdbc   : > { %v6517_v55 = vpack.c.bf16 %v4429_v49, %v4421_v47  ;;  %v6519_v26 = vpack.c.bf16 %v4446_v61, %v4438_v58  ;;  %v4448_v29 = vld [vmem:[#allocation19 + $0x158] sm:$0xff]  ;;  %v4501_v54 = vld [vmem:[#allocation19 + $0x300] sm:$0xff]  ;;  %v4503_v61 = vld [vmem:[#allocation19 + $0x310] sm:$0xff] }
 0xdbd   : > { %v4202_v32 = vcombine.low %v4177_v34, %v4185_v35  ;;  %v4203_v36 = vcombine.high %v4177_v34, %v4185_v35  ;;  %v4218_v3 = vcombine.low %v4193_v63, %v4201_v31  ;;  %v4219_v7 = vcombine.high %v4193_v63, %v4201_v31  ;;  %v4445_v35 = vld [vmem:[#allocation19 + $0x140] sm:$0xff]  ;;  %v4439_v63 = vld [vmem:[#allocation19 + $0x110] sm:$0xff]  ;;  %v4512_v47 = vld [vmem:[#allocation19 + $0x358] sm:$0xff] }
 0xdbe   : > { %v6583_v34 = vpack.c.bf16 %v4448_v29, %v4440_v62  ;;  %v4447_v31 = vld [vmem:[#allocation19 + $0x150] sm:$0xff]  ;;  %v4509_v58 = vld [vmem:[#allocation19 + $0x340] sm:$0xff]  ;;  %v4518_v62 = vld [vmem:[#allocation19 + $0x388] sm:$0xff] }
 0xdbf   : > { %v4210_v4 = vrot.slane %v4202_v32, %v8296_v0  ;;  %v4217_v8 = vrot.slane %v4203_v36, %v8296_v0  ;;  %v4226_v11 = vrot.slane %v4218_v3, %v8296_v0  ;;  %v4233_v12 = vrot.slane %v4219_v7, %v8296_v0  ;;  %v4454_v36 = vld [vmem:[#allocation19 + $0x188] sm:$0xff]  ;;  %v4456_v7 = vld [vmem:[#allocation19 + $0x198] sm:$0xff] }
 0xdc0   : > { %v6521_v32 = vpack.c.bf16 %v4445_v35, %v4437_v30  ;;  %v4462_v3 = vld [vmem:[#allocation19 + $0x1c8] sm:$0xff]  ;;  %v4520_v30 = vld [vmem:[#allocation19 + $0x398] sm:$0xff]  ;;  %v6537_v35 = vpack.c.bf16 %v4509_v58, %v4501_v54 }
 0xdc1   : > { %v4235_v13 = vcombine.high %v4210_v4, %v4226_v11  ;;  %v4237_v41 = vcombine.high %v4217_v8, %v4233_v12  ;;  %v4236_v14 = vcombine.low %v4217_v8, %v4233_v12  ;;  %v4234_v9 = vcombine.low %v4210_v4, %v4226_v11  ;;  %v4464_v11 = vld [vmem:[#allocation19 + $0x1d8] sm:$0xff]  ;;  %v4453_v12 = vld [vmem:[#allocation19 + $0x180] sm:$0xff]  ;;  %v4526_v29 = vld [vmem:[#allocation19 + $0x3c8] sm:$0xff] }
 0xdc2   : > { %v6585_v4 = vpack.c.bf16 %v4447_v31, %v4439_v63  ;;  %v6523_v8 = vpack.c.bf16 %v4462_v3, %v4454_v36  ;;  %v6539_v31 = vpack.c.bf16 %v4526_v29, %v4518_v62  ;;  %v4525_v36 = vld [vmem:[#allocation19 + $0x3c0] sm:$0xff]  ;;  %v4519_v3 = vld [vmem:[#allocation19 + $0x390] sm:$0xff] }
 0xdc3   : > { %v7215_v15 = vpack.i.bf16 %v4235_v13, %v4237_v41  ;;  %v4461_v13 = vld [vmem:[#allocation19 + $0x1c0] sm:$0xff]  ;;  %v6587_v41 = vpack.c.bf16 %v4464_v11, %v4456_v7  ;;  %v4542_v11 = vld [vmem:[#allocation19 + $0x448] sm:$0xff] }
 0xdc5   : > { %7216 = vrot.lane.b32.xlu1 %v7215_v15, %s7729_s20  ;;  %v4470_v15 = vld [vmem:[#allocation19 + $0x208] sm:$0xff]  ;;  %s7607_s20 = scalar_lea.vmem %s7606_s18, 512 }
 0xdc6   : > { %p7609_p3 = scmp.lt.s32.totalorder %s7607_s20, %s7601_s1 }
 0xdc8   : > { %p7610_p12 = por %p7609_p3, %p7608_p8 }
 0xdca   : > { %p7611_p6 = pnand %p7610_p12, %p7604_p5 }
 0xe37   : > { %v7217_v60 = vpop.permute.xlu1 %7216 }
 0xe38   : > { %v7219_v16 = vunpack.i.h.bf16 %v7217_v60  ;;  %v7218_v5 = vunpack.i.l.bf16 %v7217_v60  ;;  %v4478_v60 = vld [vmem:[#allocation19 + $0x248] sm:$0xff] }
 0xe3a   : > { %v4247_v18 = vsel %vm1652_vm1, %v4236_v14, %v7218_v5  ;;  %v4246_v6 = vsel %vm1652_vm1, %v4234_v9, %v7219_v16  ;;  %v4455_v14 = vld [vmem:[#allocation19 + $0x190] sm:$0xff]  ;;  %v4472_v16 = vld [vmem:[#allocation19 + $0x218] sm:$0xff] }
 0xe3b   : > { %4376 = vmatprep.mubr.f32.mxu0 %v4247_v18  ;;  %v4463_v9 = vld [vmem:[#allocation19 + $0x1d0] sm:$0xff]  ;;  %v4480_v5 = vld [vmem:[#allocation19 + $0x258] sm:$0xff]  ;;  %v6525_v18 = vpack.c.bf16 %v4461_v13, %v4453_v12 }
 0xe3c   : > { %4377 = vmatmul.mubr.f32.vlgmr.msra.gmra.mrb[26].mxu0 %v4246_v6  ;;  %v6589_v6 = vpack.c.bf16 %v4463_v9, %v4455_v14  ;;  %v6591_v21 = vpack.c.bf16 %v4480_v5, %v4472_v16  ;;  %v4536_v12 = vld [vmem:[#allocation19 + $0x418] sm:$0xff]  ;;  %v4535_v16 = vld [vmem:[#allocation19 + $0x410] sm:$0xff] }
 0xe3d   : > { %v4544_v13 = vld [vmem:[#allocation19 + $0x458] sm:$0xff] }
 0xe3e   : > { %v6607_v5 = vpack.c.bf16 %v4544_v13, %v4536_v12  ;;  %v4600_v12 = vld [vmem:[#allocation19 + $0x618] sm:$0xff] }
 0xf0f   : > { %v4378_v52 = vpop.f32.mrb[26].mxu0 }
 0xf10   : > { %v8685_v10 = vadd.f32 %v4378_v52, %v8503_v2  ;;  %v4380_v0 = vpop.f32.mrb[27].mxu0  ;;  %v4415_v2 = vld [vmem:[#allocation19 + $0x50] sm:$0xff]  ;;  %v6527_v52 = vpack.c.bf16 %v4478_v60, %v4470_v15  ;;  %v4533_v15 = vld [vmem:[#allocation19 + $0x400] sm:$0xff] }
 0xf11   : > { %v8688_v44 = vadd.f32 %v4380_v0, %v8500_v1  ;;  %v6577_v28 = vpack.c.bf16 %v4415_v2, %v4407_v42  ;;  %v4430_v1 = vld [vmem:[#allocation19 + $0xc8] sm:$0xff]  ;;  %v4469_v0 = vld [vmem:[#allocation19 + $0x200] sm:$0xff]  ;;  %v6531_v42 = vpack.c.bf16 %v4494_v27, %v4486_v22 }
 0xf12   : > { %v6515_v45 = vpack.c.bf16 %v4430_v1, %v4422_v25  ;;  %v4485_v2 = vld [vmem:[#allocation19 + $0x280] sm:$0xff]  ;;  %v6595_v1 = vpack.c.bf16 %v4496_v37, %v4488_v23  ;;  %v4551_v23 = vld [vmem:[#allocation19 + $0x490] sm:$0xff] }
 0xf13   : > { %v4385_v17 = vadd.f32 %v8688_v44, %v8685_v10  ;;  %6578 = vmatpush1.bf16.msra.mxu0 %v6577_v28  ;;  %v4493_v25 = vld [vmem:[#allocation19 + $0x2c0] sm:$0xff]  ;;  %v4487_v28 = vld [vmem:[#allocation19 + $0x290] sm:$0xff] }
 0xf14   : > { %6516 = vmatprep.subr.bf16.mxu1 %v6515_v45  ;;  %6580 = vmatprep.subr.bf16.mxu0 %v6579_v46  ;;  %v4510_v45 = vld [vmem:[#allocation19 + $0x348] sm:$0xff]  ;;  %v4504_v46 = vld [vmem:[#allocation19 + $0x318] sm:$0xff]  ;;  %v6533_v49 = vpack.c.bf16 %v4493_v25, %v4485_v2  ;;  %v6597_v24 = vpack.c.bf16 %v4495_v33, %v4487_v28  ;;  %v4541_v60 = vld [vmem:[#allocation19 + $0x440] sm:$0xff] }
 0xf15   : > { %4386 = vadd.xlane.f32.xlu0 %v4385_v17  ;;  %6518 = vmatpush1.bf16.msra.mxu1 %v6517_v55  ;;  %v4477_v17 = vld [vmem:[#allocation19 + $0x240] sm:$0xff]  ;;  %v6535_v55 = vpack.c.bf16 %v4510_v45, %v4502_v43  ;;  %v6545_v19 = vpack.c.bf16 %v4541_v60, %v4533_v15  ;;  %v4568_v2 = vld [vmem:[#allocation19 + $0x518] sm:$0xff] }
 0xf16   : > { %6520 = vmatprep.subr.bf16.mxu1 %v6519_v26  ;;  %v6529_v38 = vpack.c.bf16 %v4477_v17, %v4469_v0  ;;  %v4511_v26 = vld [vmem:[#allocation19 + $0x350] sm:$0xff]  ;;  %v4552_v0 = vld [vmem:[#allocation19 + $0x498] sm:$0xff]  ;;  %v4549_v22 = vld [vmem:[#allocation19 + $0x480] sm:$0xff] }
 0xf17   : > { %6582 = vmatpush1.bf16.msra.mxu0 %v6581_v51  ;;  %v6599_v51 = vpack.c.bf16 %v4512_v47, %v4504_v46  ;;  %v6601_v63 = vpack.c.bf16 %v4511_v26, %v4503_v61  ;;  %v4560_v17 = vld [vmem:[#allocation19 + $0x4d8] sm:$0xff]  ;;  %v4557_v27 = vld [vmem:[#allocation19 + $0x4c0] sm:$0xff]  ;;  %v4567_v47 = vld [vmem:[#allocation19 + $0x510] sm:$0xff] }
 0xf18   : > { %6584 = vmatprep.subr.bf16.mxu0 %v6583_v34  ;;  %v4528_v34 = vld [vmem:[#allocation19 + $0x3d8] sm:$0xff]  ;;  %v6611_v37 = vpack.c.bf16 %v4560_v17, %v4552_v0  ;;  %v6549_v28 = vpack.c.bf16 %v4557_v27, %v4549_v22  ;;  %v4565_v43 = vld [vmem:[#allocation19 + $0x500] sm:$0xff] }
 0xf19   : > { %6522 = vmatpush1.bf16.msra.mxu1 %v6521_v32  ;;  %v4517_v32 = vld [vmem:[#allocation19 + $0x380] sm:$0xff]  ;;  %v6603_v7 = vpack.c.bf16 %v4528_v34, %v4520_v30  ;;  %v4576_v25 = vld [vmem:[#allocation19 + $0x558] sm:$0xff]  ;;  %v4582_v30 = vld [vmem:[#allocation19 + $0x588] sm:$0xff] }
 0xf1a   : > { %6524 = vmatprep.subr.bf16.mxu1 %v6523_v8  ;;  %v4534_v8 = vld [vmem:[#allocation19 + $0x408] sm:$0xff]  ;;  %v4573_v45 = vld [vmem:[#allocation19 + $0x540] sm:$0xff]  ;;  %v6615_v46 = vpack.c.bf16 %v4576_v25, %v4568_v2  ;;  %v4616_v0 = vld [vmem:[#allocation19 + $0x698] sm:$0xff] }
 0xf1b   : > { %6586 = vmatpush1.bf16.msra.mxu0 %v6585_v4  ;;  %v4527_v4 = vld [vmem:[#allocation19 + $0x3d0] sm:$0xff]  ;;  %v6543_v9 = vpack.c.bf16 %v4542_v11, %v4534_v8  ;;  %v4590_v34 = vld [vmem:[#allocation19 + $0x5c8] sm:$0xff]  ;;  %v4632_v2 = vld [vmem:[#allocation19 + $0x718] sm:$0xff] }
 0xf1c   : > { %6588 = vmatprep.subr.bf16.mxu0 %v6587_v41  ;;  %v6541_v41 = vpack.c.bf16 %v4525_v36, %v4517_v32  ;;  %v6605_v14 = vpack.c.bf16 %v4527_v4, %v4519_v3  ;;  %v4581_v32 = vld [vmem:[#allocation19 + $0x580] sm:$0xff]  ;;  %v4598_v8 = vld [vmem:[#allocation19 + $0x608] sm:$0xff] }
 0xf1d   : > { %6526 = vmatpush1.bf16.msra.mxu1 %v6525_v18  ;;  %v4543_v18 = vld [vmem:[#allocation19 + $0x450] sm:$0xff]  ;;  %v4589_v36 = vld [vmem:[#allocation19 + $0x5c0] sm:$0xff]  ;;  %v4606_v11 = vld [vmem:[#allocation19 + $0x648] sm:$0xff] }
 0xf1e   : > { %6528 = vmatprep.subr.bf16.mxu1 %v6527_v52  ;;  %v4558_v52 = vld [vmem:[#allocation19 + $0x4c8] sm:$0xff]  ;;  %v6557_v3 = vpack.c.bf16 %v4589_v36, %v4581_v32  ;;  %v6559_v13 = vpack.c.bf16 %v4606_v11, %v4598_v8 }
 0xf1f   : > { %6590 = vmatpush1.bf16.msra.mxu0 %v6589_v6  ;;  %v4550_v6 = vld [vmem:[#allocation19 + $0x488] sm:$0xff] }
 0xf20   : > { %6592 = vmatprep.subr.bf16.mxu0 %v6591_v21  ;;  %v6609_v21 = vpack.c.bf16 %v4543_v18, %v4535_v16  ;;  %v6547_v39 = vpack.c.bf16 %v4558_v52, %v4550_v6  ;;  %v4599_v16 = vld [vmem:[#allocation19 + $0x610] sm:$0xff]  ;;  %v4614_v6 = vld [vmem:[#allocation19 + $0x688] sm:$0xff] }
 0xf21   : > { %6530 = vmatpush1.bf16.msra.mxu1 %v6529_v38  ;;  %v4559_v38 = vld [vmem:[#allocation19 + $0x4d0] sm:$0xff]  ;;  %v4622_v52 = vld [vmem:[#allocation19 + $0x6c8] sm:$0xff] }
 0xf22   : > { %6532 = vmatprep.subr.bf16.mxu1 %v6531_v42  ;;  %v4574_v42 = vld [vmem:[#allocation19 + $0x548] sm:$0xff]  ;;  %v6563_v17 = vpack.c.bf16 %v4622_v52, %v4614_v6  ;;  %v4428_v52 = vld [vmem:[#allocation19 + $0xb8] sm:$0xff] }
 0xf23   : > { %6594 = vmatpush1.bf16.msra.mxu0 %v6593_v20  ;;  %v4566_v20 = vld [vmem:[#allocation19 + $0x508] sm:$0xff] }
 0xf24   : > { %6596 = vmatprep.subr.bf16.mxu0 %v6595_v1  ;;  %v6613_v1 = vpack.c.bf16 %v4559_v38, %v4551_v23  ;;  %v6551_v33 = vpack.c.bf16 %v4574_v42, %v4566_v20  ;;  %v4615_v23 = vld [vmem:[#allocation19 + $0x690] sm:$0xff]  ;;  %v4630_v20 = vld [vmem:[#allocation19 + $0x708] sm:$0xff] }
 0xf25   : > { %6534 = vmatpush1.bf16.msra.mxu1 %v6533_v49  ;;  %v4575_v49 = vld [vmem:[#allocation19 + $0x550] sm:$0xff]  ;;  %v4638_v42 = vld [vmem:[#allocation19 + $0x748] sm:$0xff] }
 0xf26   : > { %6536 = vmatprep.subr.bf16.mxu1 %v6535_v55  ;;  %v6617_v55 = vpack.c.bf16 %v4575_v49, %v4567_v47  ;;  %v6567_v25 = vpack.c.bf16 %v4638_v42, %v4630_v20  ;;  %v4639_v47 = vld [vmem:[#allocation19 + $0x750] sm:$0xff]  ;;  %v4410_v32 = vld [vmem:[#allocation19 + $0x28] sm:$0xff]  ;;  %v4444_v42 = vld [vmem:[#allocation19 + $0x138] sm:$0xff] }
 0xf27   : > { %6598 = vmatpush1.bf16.msra.mxu0 %v6597_v24  ;;  %v6553_v24 = vpack.c.bf16 %v4573_v45, %v4565_v43  ;;  %v4418_v36 = vld [vmem:[#allocation19 + $0x68] sm:$0xff] }
 0xf28   : > { %6600 = vmatprep.subr.bf16.mxu0 %v6599_v51  ;;  %v4434_v6 = vld [vmem:[#allocation19 + $0xe8] sm:$0xff] }
 0xf29   : > { %6538 = vmatpush1.bf16.msra.mxu1 %v6537_v35  ;;  %v4584_v35 = vld [vmem:[#allocation19 + $0x598] sm:$0xff]  ;;  %v4450_v20 = vld [vmem:[#allocation19 + $0x168] sm:$0xff] }
 0xf2a   : > { %6540 = vmatprep.subr.bf16.mxu1 %v6539_v31  ;;  %v4592_v31 = vld [vmem:[#allocation19 + $0x5d8] sm:$0xff] }
 0xf2b   : > { %6602 = vmatpush1.bf16.msra.mxu0 %v6601_v63  ;;  %v6555_v63 = vpack.c.bf16 %v4590_v34, %v4582_v30 }
 0xf2c   : > { %6604 = vmatprep.subr.bf16.mxu0 %v6603_v7  ;;  %v4583_v7 = vld [vmem:[#allocation19 + $0x590] sm:$0xff] }
 0xf2d   : > { %6542 = vmatpush1.bf16.msra.mxu1 %v6541_v41  ;;  %v4608_v41 = vld [vmem:[#allocation19 + $0x658] sm:$0xff] }
 0xf2e   : > { %6544 = vmatprep.subr.bf16.mxu1 %v6543_v9  ;;  %v4605_v9 = vld [vmem:[#allocation19 + $0x640] sm:$0xff]  ;;  %v6623_v15 = vpack.c.bf16 %v4608_v41, %v4600_v12 }
 0xf2f   : > { %6606 = vmatpush1.bf16.msra.mxu0 %v6605_v14  ;;  %v4597_v14 = vld [vmem:[#allocation19 + $0x600] sm:$0xff] }
 0xf30   : > { %6608 = vmatprep.subr.bf16.mxu0 %v6607_v5  ;;  %v6561_v60 = vpack.c.bf16 %v4605_v9, %v4597_v14  ;;  %v4607_v5 = vld [vmem:[#allocation19 + $0x650] sm:$0xff]  ;;  %v4409_v14 = vld [vmem:[#allocation19 + $0x20] sm:$0xff] }
 0xf31   : > { %6546 = vmatpush1.bf16.msra.mxu1 %v6545_v19  ;;  %v6625_v18 = vpack.c.bf16 %v4607_v5, %v4599_v16  ;;  %v4624_v19 = vld [vmem:[#allocation19 + $0x6d8] sm:$0xff]  ;;  %v4417_v9 = vld [vmem:[#allocation19 + $0x60] sm:$0xff] }
 0xf32   : > { %6548 = vmatprep.subr.bf16.mxu1 %v6547_v39  ;;  %v4621_v39 = vld [vmem:[#allocation19 + $0x6c0] sm:$0xff]  ;;  %v6627_v22 = vpack.c.bf16 %v4624_v19, %v4616_v0  ;;  %v4436_v0 = vld [vmem:[#allocation19 + $0xf8] sm:$0xff] }
 0xf33   : > { %6610 = vmatpush1.bf16.msra.mxu0 %v6609_v21  ;;  %v4613_v21 = vld [vmem:[#allocation19 + $0x680] sm:$0xff] }
 0xf34   : > { %6612 = vmatprep.subr.bf16.mxu0 %v6611_v37  ;;  %v6565_v27 = vpack.c.bf16 %v4621_v39, %v4613_v21  ;;  %v4623_v37 = vld [vmem:[#allocation19 + $0x6d0] sm:$0xff]  ;;  %v4425_v21 = vld [vmem:[#allocation19 + $0xa0] sm:$0xff] }
 0xf35   : > { %6550 = vmatpush1.bf16.msra.mxu1 %v6549_v28  ;;  %v6629_v38 = vpack.c.bf16 %v4623_v37, %v4615_v23  ;;  %v4640_v28 = vld [vmem:[#allocation19 + $0x758] sm:$0xff]  ;;  %v4433_v39 = vld [vmem:[#allocation19 + $0xe0] sm:$0xff]  ;;  %v4442_v23 = vld [vmem:[#allocation19 + $0x128] sm:$0xff] }
 0xf36   : > { %6552 = vmatprep.subr.bf16.mxu1 %v6551_v33  ;;  %v4637_v33 = vld [vmem:[#allocation19 + $0x740] sm:$0xff]  ;;  %v6631_v43 = vpack.c.bf16 %v4640_v28, %v4632_v2  ;;  %v4452_v2 = vld [vmem:[#allocation19 + $0x178] sm:$0xff] }
 0xf37   : > { %6614 = vmatpush1.bf16.msra.mxu0 %v6613_v1  ;;  %v4629_v1 = vld [vmem:[#allocation19 + $0x700] sm:$0xff] }
 0xf38   : > { %6616 = vmatprep.subr.bf16.mxu0 %v6615_v46  ;;  %v6569_v45 = vpack.c.bf16 %v4637_v33, %v4629_v1  ;;  %v4631_v46 = vld [vmem:[#allocation19 + $0x710] sm:$0xff]  ;;  %v4441_v1 = vld [vmem:[#allocation19 + $0x120] sm:$0xff] }
 0xf39   : > { %6554 = vmatpush1.bf16.msra.mxu1 %v6553_v24  ;;  %v6633_v49 = vpack.c.bf16 %v4639_v47, %v4631_v46  ;;  %v4646_v24 = vld [vmem:[#allocation19 + $0x788] sm:$0xff]  ;;  %v4449_v33 = vld [vmem:[#allocation19 + $0x160] sm:$0xff]  ;;  %v4443_v46 = vld [vmem:[#allocation19 + $0x130] sm:$0xff] }
 0xf3a   : > { %6556 = vmatprep.subr.bf16.mxu1 %v6555_v63  ;;  %v4655_v63 = vld [vmem:[#allocation19 + $0x7d0] sm:$0xff] }
 0xf3b   : > { %6618 = vmatpush1.bf16.msra.mxu0 %v6617_v55  ;;  %v4654_v55 = vld [vmem:[#allocation19 + $0x7c8] sm:$0xff]  ;;  %v4451_v47 = vld [vmem:[#allocation19 + $0x170] sm:$0xff] }
 0xf3d   : > { %6558 = vmatpush1.bf16.msra.mxu1 %v6557_v3  ;;  %v6639_v3 = vpack.c.bf16 %v4418_v36, %v4410_v32  ;;  %v4482_v32 = vld [vmem:[#allocation19 + $0x268] sm:$0xff]  ;;  %v4476_v36 = vld [vmem:[#allocation19 + $0x238] sm:$0xff] }
 0xf3e   : > { %6560 = vmatprep.subr.bf16.mxu1 %v6559_v13 }
 0xf41   : > { %6562 = vmatpush1.bf16.msra.mxu1 %v6561_v60  ;;  %v4419_v60 = vld [vmem:[#allocation19 + $0x70] sm:$0xff] }
 0xf42   : > { %6564 = vmatprep.subr.bf16.mxu1 %v6563_v17 }
 0xf45   : > { %6566 = vmatpush1.bf16.msra.mxu1 %v6565_v27  ;;  %v4435_v27 = vld [vmem:[#allocation19 + $0xf0] sm:$0xff] }
 0xf46   : > { %6568 = vmatprep.subr.bf16.mxu1 %v6567_v25  ;;  %v6645_v25 = vpack.c.bf16 %v4433_v39, %v4425_v21  ;;  %v4514_v21 = vld [vmem:[#allocation19 + $0x368] sm:$0xff]  ;;  %v4508_v39 = vld [vmem:[#allocation19 + $0x338] sm:$0xff] }
 0xf49   : > { %6570 = vmatpush1.bf16.msra.mxu1 %v6569_v45  ;;  %v6711_v45 = vpack.c.bf16 %v4452_v2, %v4444_v42  ;;  %v4507_v2 = vld [vmem:[#allocation19 + $0x330] sm:$0xff] }
 0xfa2   : > { %v4387_v54 = vpop.xlane.xlu0 %4386 }
 0xfa3   : > { %v4388_v58 = vmul.f32 0.00390625, %v4387_v54  ;;  %v4648_v54 = vld [vmem:[#allocation19 + $0x798] sm:$0xff] }
 0xfa5   : > { %v8693_v61 = vsub.f32 %v8685_v10, %v4388_v58  ;;  %v8696_v51 = vsub.f32 %v8688_v44, %v4388_v58  ;;  %v6619_v10 = vpack.c.bf16 %v4592_v31, %v4584_v35  ;;  %v4591_v44 = vld [vmem:[#allocation19 + $0x5d0] sm:$0xff]  ;;  %v6571_v58 = vpack.c.bf16 %v4654_v55, %v4646_v24  ;;  %v4466_v24 = vld [vmem:[#allocation19 + $0x1e8] sm:$0xff]  ;;  %v4460_v55 = vld [vmem:[#allocation19 + $0x1b8] sm:$0xff] }
 0xfa6   : > { %v6621_v4 = vpack.c.bf16 %v4591_v44, %v4583_v7  ;;  %v4647_v35 = vld [vmem:[#allocation19 + $0x790] sm:$0xff]  ;;  %v4420_v7 = vld [vmem:[#allocation19 + $0x78] sm:$0xff] }
 0xfa7   : > { %v4391_v26 = vmul.f32 %v8693_v61, %v8693_v61  ;;  %v4392_v62 = vmul.f32 %v8696_v51, %v8696_v51  ;;  %6620 = vmatprep.subr.bf16.mxu0 %v6619_v10  ;;  %6572 = vmatprep.subr.bf16.mxu1 %v6571_v58  ;;  %v6637_v31 = vpack.c.bf16 %v4655_v63, %v4647_v35  ;;  %v4412_v10 = vld [vmem:[#allocation19 + $0x38] sm:$0xff]  ;;  %v4459_v35 = vld [vmem:[#allocation19 + $0x1b0] sm:$0xff] }
 0xfa8   : > { %6622 = vmatpush1.bf16.msra.mxu0 %v6621_v4  ;;  %v6703_v44 = vpack.c.bf16 %v4420_v7, %v4412_v10  ;;  %v6649_v58 = vpack.c.bf16 %v4449_v33, %v4441_v1  ;;  %v4467_v63 = vld [vmem:[#allocation19 + $0x1f0] sm:$0xff]  ;;  %v4484_v10 = vld [vmem:[#allocation19 + $0x278] sm:$0xff]  ;;  %v4530_v1 = vld [vmem:[#allocation19 + $0x3e8] sm:$0xff] }
 0xfa9   : > { %v4393_v29 = vadd.f32 %v4392_v62, %v4391_v26  ;;  %6624 = vmatprep.subr.bf16.mxu0 %v6623_v15  ;;  %v4656_v26 = vld [vmem:[#allocation19 + $0x7d8] sm:$0xff]  ;;  %v4645_v62 = vld [vmem:[#allocation19 + $0x780] sm:$0xff]  ;;  %v4411_v15 = vld [vmem:[#allocation19 + $0x30] sm:$0xff]  ;;  %v6717_v7 = vpack.c.bf16 %v4467_v63, %v4459_v35 }
 0xfaa   : > { %v6635_v30 = vpack.c.bf16 %v4656_v26, %v4648_v54  ;;  %v4468_v54 = vld [vmem:[#allocation19 + $0x1f8] sm:$0xff]  ;;  %v6713_v26 = vpack.c.bf16 %v4451_v47, %v4443_v46  ;;  %v4521_v47 = vld [vmem:[#allocation19 + $0x3a0] sm:$0xff] }
 0xfab   : > { %4394 = vadd.xlane.f32.xlu0 %v4393_v29  ;;  %v4653_v29 = vld [vmem:[#allocation19 + $0x7c0] sm:$0xff]  ;;  %v4524_v33 = vld [vmem:[#allocation19 + $0x3b8] sm:$0xff] }
 0xfac   : > { %6626 = vmatpush1.bf16.msra.mxu0 %v6625_v18  ;;  %v6573_v34 = vpack.c.bf16 %v4653_v29, %v4645_v62  ;;  %v4426_v18 = vld [vmem:[#allocation19 + $0xa8] sm:$0xff]  ;;  %v4457_v62 = vld [vmem:[#allocation19 + $0x1a0] sm:$0xff] }
 0xfad   : > { %6628 = vmatprep.subr.bf16.mxu0 %v6627_v22  ;;  %v4427_v22 = vld [vmem:[#allocation19 + $0xb0] sm:$0xff]  ;;  %v6643_v37 = vpack.c.bf16 %v4434_v6, %v4426_v18  ;;  %v4465_v29 = vld [vmem:[#allocation19 + $0x1e0] sm:$0xff] }
 0xfae   : > { %6574 = vmatpush1.bf16.msra.mxu1 %v6573_v34  ;;  %v6709_v28 = vpack.c.bf16 %v4435_v27, %v4427_v22  ;;  %v6715_v34 = vpack.c.bf16 %v4468_v54, %v4460_v55  ;;  %v4497_v18 = vld [vmem:[#allocation19 + $0x2e0] sm:$0xff]  ;;  %v4516_v22 = vld [vmem:[#allocation19 + $0x378] sm:$0xff]  ;;  %v4523_v54 = vld [vmem:[#allocation19 + $0x3b0] sm:$0xff] }
 0xfaf   : > { %6640 = vmatprep.subr.bf16.mxu1 %v6639_v3  ;;  %v6653_v3 = vpack.c.bf16 %v4465_v29, %v4457_v62  ;;  %v6727_v42 = vpack.c.bf16 %v4516_v22, %v4508_v39  ;;  %v4546_v62 = vld [vmem:[#allocation19 + $0x468] sm:$0xff]  ;;  %v4540_v29 = vld [vmem:[#allocation19 + $0x438] sm:$0xff]  ;;  %v4537_v63 = vld [vmem:[#allocation19 + $0x420] sm:$0xff] }
 0xfb0   : > { %6630 = vmatpush1.bf16.msra.mxu0 %v6629_v38  ;;  %v6707_v38 = vpack.c.bf16 %v4436_v0, %v4428_v52  ;;  %v4491_v0 = vld [vmem:[#allocation19 + $0x2b0] sm:$0xff] }
 0xfb1   : > { %6632 = vmatprep.subr.bf16.mxu0 %v6631_v43  ;;  %v6647_v43 = vpack.c.bf16 %v4450_v20, %v4442_v23  ;;  %v4571_v22 = vld [vmem:[#allocation19 + $0x530] sm:$0xff] }
 0xfb4   : > { %6634 = vmatpush1.bf16.msra.mxu0 %v6633_v49  ;;  %v4458_v49 = vld [vmem:[#allocation19 + $0x1a8] sm:$0xff] }
 0xfb5   : > { %6636 = vmatprep.subr.bf16.mxu0 %v6635_v30  ;;  %v6651_v30 = vpack.c.bf16 %v4466_v24, %v4458_v49  ;;  %v4529_v49 = vld [vmem:[#allocation19 + $0x3e0] sm:$0xff] }
 0xfb8   : > { %6638 = vmatpush1.bf16.msra.mxu0 %v6637_v31  ;;  %v4474_v31 = vld [vmem:[#allocation19 + $0x228] sm:$0xff] }
 0xfb9   : > { %6704 = vmatprep.subr.bf16.mxu0 %v6703_v44  ;;  %v4473_v44 = vld [vmem:[#allocation19 + $0x220] sm:$0xff] }
0x1038   : > { %v4395_v4 = vpop.xlane.xlu0 %4394 }
0x1039   : > { %v4396_v8 = vmul.f32 0.00390625, %v4395_v4  ;;  %v4481_v4 = vld [vmem:[#allocation19 + $0x260] sm:$0xff] }
0x103b   : > { %v4397_v11 = vadd.f32 1e-05, %v4396_v8  ;;  %v6655_v8 = vpack.c.bf16 %v4482_v32, %v4474_v31  ;;  %v4545_v31 = vld [vmem:[#allocation19 + $0x460] sm:$0xff] }
0x103d   : > { %7255 = vrsqrt.f32 %v4397_v11  ;;  %v6719_v11 = vpack.c.bf16 %v4484_v10, %v4476_v36  ;;  %v4539_v10 = vld [vmem:[#allocation19 + $0x430] sm:$0xff] }
0x1047   : > { %v7256_v12 = vpop.eup %7255 }
0x1048   : > { %v4399_v13 = vmul.f32 %v7256_v12, %v8693_v61  ;;  %v4400_v41 = vmul.f32 %v7256_v12, %v8696_v51  ;;  %v6641_v61 = vpack.c.bf16 %v4417_v9, %v4409_v14  ;;  %v6705_v51 = vpack.c.bf16 %v4419_v60, %v4411_v15  ;;  %v4475_v12 = vld [vmem:[#allocation19 + $0x230] sm:$0xff]  ;;  %v4498_v14 = vld [vmem:[#allocation19 + $0x2e8] sm:$0xff]  ;;  %v4492_v9 = vld [vmem:[#allocation19 + $0x2b8] sm:$0xff] }
0x1049   : > { %v4500_v15 = vld [vmem:[#allocation19 + $0x2f8] sm:$0xff]  ;;  %v6657_v60 = vpack.c.bf16 %v4481_v4, %v4473_v44  ;;  %v4562_v44 = vld [vmem:[#allocation19 + $0x4e8] sm:$0xff] }
0x104a   : > { %v4402_v16 = vmul.f32 %v4400_v41, %v8488_v56  ;;  %v4401_v5 = vmul.f32 %v4399_v13, %v8485_v50  ;;  %v4483_v13 = vld [vmem:[#allocation19 + $0x270] sm:$0xff]  ;;  %v4490_v41 = vld [vmem:[#allocation19 + $0x2a8] sm:$0xff]  ;;  %v6723_v52 = vpack.c.bf16 %v4500_v15, %v4492_v9  ;;  %v4556_v4 = vld [vmem:[#allocation19 + $0x4b8] sm:$0xff] }
0x104b   : > { %v6659_v6 = vpack.c.bf16 %v4498_v14, %v4490_v41  ;;  %v4561_v41 = vld [vmem:[#allocation19 + $0x4e0] sm:$0xff]  ;;  %v4555_v15 = vld [vmem:[#allocation19 + $0x4b0] sm:$0xff] }
0x104c   : > { %v8707_v17 = vadd.f32 %v4402_v16, %v8494_v40  ;;  %v8710_v19 = vadd.f32 %v4401_v5, %v8491_v59  ;;  %v6721_v16 = vpack.c.bf16 %v4483_v13, %v4475_v12  ;;  %v4489_v5 = vld [vmem:[#allocation19 + $0x2a0] sm:$0xff] }
0x104d   : > { %v6661_v27 = vpack.c.bf16 %v4497_v18, %v4489_v5  ;;  %v4553_v13 = vld [vmem:[#allocation19 + $0x4a0] sm:$0xff]  ;;  %v4578_v5 = vld [vmem:[#allocation19 + $0x568] sm:$0xff]  ;;  %v4572_v18 = vld [vmem:[#allocation19 + $0x538] sm:$0xff] }
0x104e   : > { %4767 = vmatprep.mubr.f32.mxu1 %v8707_v17  ;;  %4838 = vmatprep.mubr.f32.mxu0 %v8707_v17 }
0x104f   : > { %4768 = vmatmul.mubr.f32.vlgmr.msra.gmra.mrb[20].mxu1 %v8710_v19  ;;  %4839 = vmatmul.mubr.f32.vlgmr.msra.gmra.mrb[28].mxu0 %v8710_v19 }
0x1050   : > { %6642 = vmatpush1.bf16.msra.mxu1 %v6641_v61  ;;  %6706 = vmatpush1.bf16.msra.mxu0 %v6705_v51  ;;  %v4499_v61 = vld [vmem:[#allocation19 + $0x2f0] sm:$0xff]  ;;  %v4506_v51 = vld [vmem:[#allocation19 + $0x328] sm:$0xff] }
0x1051   : > { %4909 = vmatprep.mubr.f32.mxu1 %v8707_v17  ;;  %4980 = vmatprep.mubr.f32.mxu0 %v8707_v17  ;;  %v6725_v23 = vpack.c.bf16 %v4499_v61, %v4491_v0  ;;  %v6663_v20 = vpack.c.bf16 %v4514_v21, %v4506_v51  ;;  %v4569_v61 = vld [vmem:[#allocation19 + $0x520] sm:$0xff] }
0x1052   : > { %6644 = vmatprep.subr.bf16.mxu1 %v6643_v37  ;;  %6708 = vmatprep.subr.bf16.mxu0 %v6707_v38  ;;  %v4505_v37 = vld [vmem:[#allocation19 + $0x320] sm:$0xff] }
0x1053   : > { %v4513_v38 = vld [vmem:[#allocation19 + $0x360] sm:$0xff] }
0x1054   : > { %6646 = vmatpush1.bf16.msra.mxu1 %v6645_v25  ;;  %6710 = vmatpush1.bf16.msra.mxu0 %v6709_v28  ;;  %v4515_v25 = vld [vmem:[#allocation19 + $0x370] sm:$0xff]  ;;  %v4522_v28 = vld [vmem:[#allocation19 + $0x3a8] sm:$0xff]  ;;  %v4577_v51 = vld [vmem:[#allocation19 + $0x560] sm:$0xff] }
0x1055   : > { %6648 = vmatprep.subr.bf16.mxu1 %v6647_v43  ;;  %6712 = vmatprep.subr.bf16.mxu0 %v6711_v45  ;;  %v4532_v43 = vld [vmem:[#allocation19 + $0x3f8] sm:$0xff]  ;;  %v6665_v45 = vpack.c.bf16 %v4513_v38, %v4505_v37  ;;  %v6729_v46 = vpack.c.bf16 %v4515_v25, %v4507_v2  ;;  %v6667_v24 = vpack.c.bf16 %v4530_v1, %v4522_v28  ;;  %v4594_v37 = vld [vmem:[#allocation19 + $0x5e8] sm:$0xff]  ;;  %v4585_v25 = vld [vmem:[#allocation19 + $0x5a0] sm:$0xff] }
0x1056   : > { %v6731_v55 = vpack.c.bf16 %v4532_v43, %v4524_v33  ;;  %v4588_v38 = vld [vmem:[#allocation19 + $0x5b8] sm:$0xff]  ;;  %v4593_v28 = vld [vmem:[#allocation19 + $0x5e0] sm:$0xff]  ;;  %v4587_v43 = vld [vmem:[#allocation19 + $0x5b0] sm:$0xff] }
0x1058   : > { %6650 = vmatpush1.bf16.msra.mxu1 %v6649_v58  ;;  %6714 = vmatpush1.bf16.msra.mxu0 %v6713_v26  ;;  %v4531_v58 = vld [vmem:[#allocation19 + $0x3f0] sm:$0xff]  ;;  %v4538_v26 = vld [vmem:[#allocation19 + $0x428] sm:$0xff] }
0x1059   : > { %6652 = vmatprep.subr.bf16.mxu1 %v6651_v30  ;;  %6716 = vmatprep.subr.bf16.mxu0 %v6715_v34  ;;  %v4548_v30 = vld [vmem:[#allocation19 + $0x478] sm:$0xff]  ;;  %v6669_v34 = vpack.c.bf16 %v4529_v49, %v4521_v47  ;;  %v6733_v35 = vpack.c.bf16 %v4531_v58, %v4523_v54  ;;  %v6671_v32 = vpack.c.bf16 %v4546_v62, %v4538_v26  ;;  %v4610_v47 = vld [vmem:[#allocation19 + $0x668] sm:$0xff]  ;;  %v4601_v58 = vld [vmem:[#allocation19 + $0x620] sm:$0xff] }
0x105a   : > { %v6735_v36 = vpack.c.bf16 %v4548_v30, %v4540_v29  ;;  %v4604_v49 = vld [vmem:[#allocation19 + $0x638] sm:$0xff]  ;;  %v4609_v26 = vld [vmem:[#allocation19 + $0x660] sm:$0xff]  ;;  %v4603_v30 = vld [vmem:[#allocation19 + $0x630] sm:$0xff] }
0x105c   : > { %6654 = vmatpush1.bf16.msra.mxu1 %v6653_v3  ;;  %6718 = vmatpush1.bf16.msra.mxu0 %v6717_v7  ;;  %v4547_v3 = vld [vmem:[#allocation19 + $0x470] sm:$0xff]  ;;  %v4554_v7 = vld [vmem:[#allocation19 + $0x4a8] sm:$0xff] }
0x105d   : > { %6656 = vmatprep.subr.bf16.mxu1 %v6655_v8  ;;  %6720 = vmatprep.subr.bf16.mxu0 %v6719_v11  ;;  %v4564_v8 = vld [vmem:[#allocation19 + $0x4f8] sm:$0xff]  ;;  %v6673_v11 = vpack.c.bf16 %v4545_v31, %v4537_v63  ;;  %v6737_v12 = vpack.c.bf16 %v4547_v3, %v4539_v10  ;;  %v6675_v14 = vpack.c.bf16 %v4562_v44, %v4554_v7  ;;  %v4626_v63 = vld [vmem:[#allocation19 + $0x6e8] sm:$0xff]  ;;  %v4617_v3 = vld [vmem:[#allocation19 + $0x6a0] sm:$0xff] }
0x105e   : > { %v6739_v9 = vpack.c.bf16 %v4564_v8, %v4556_v4  ;;  %v4620_v31 = vld [vmem:[#allocation19 + $0x6b8] sm:$0xff]  ;;  %v4625_v7 = vld [vmem:[#allocation19 + $0x6e0] sm:$0xff]  ;;  %v4619_v8 = vld [vmem:[#allocation19 + $0x6b0] sm:$0xff] }
0x1060   : > { %6658 = vmatpush1.bf16.msra.mxu1 %v6657_v60  ;;  %6722 = vmatpush1.bf16.msra.mxu0 %v6721_v16  ;;  %v4563_v60 = vld [vmem:[#allocation19 + $0x4f0] sm:$0xff]  ;;  %v4570_v16 = vld [vmem:[#allocation19 + $0x528] sm:$0xff] }
0x1061   : > { %6660 = vmatprep.subr.bf16.mxu1 %v6659_v6  ;;  %6724 = vmatprep.subr.bf16.mxu0 %v6723_v52  ;;  %v4580_v6 = vld [vmem:[#allocation19 + $0x578] sm:$0xff]  ;;  %v6677_v52 = vpack.c.bf16 %v4561_v41, %v4553_v13  ;;  %v6741_v0 = vpack.c.bf16 %v4563_v60, %v4555_v15  ;;  %v6679_v21 = vpack.c.bf16 %v4578_v5, %v4570_v16  ;;  %v4642_v13 = vld [vmem:[#allocation19 + $0x768] sm:$0xff]  ;;  %v4633_v60 = vld [vmem:[#allocation19 + $0x720] sm:$0xff] }
0x1062   : > { %v6743_v39 = vpack.c.bf16 %v4580_v6, %v4572_v18  ;;  %v4636_v41 = vld [vmem:[#allocation19 + $0x738] sm:$0xff]  ;;  %v4641_v16 = vld [vmem:[#allocation19 + $0x760] sm:$0xff]  ;;  %v4635_v6 = vld [vmem:[#allocation19 + $0x730] sm:$0xff] }
0x1064   : > { %6662 = vmatpush1.bf16.msra.mxu1 %v6661_v27  ;;  %6726 = vmatpush1.bf16.msra.mxu0 %v6725_v23  ;;  %v4579_v27 = vld [vmem:[#allocation19 + $0x570] sm:$0xff]  ;;  %v4586_v23 = vld [vmem:[#allocation19 + $0x5a8] sm:$0xff] }
0x1065   : > { %6664 = vmatprep.subr.bf16.mxu1 %v6663_v20  ;;  %6728 = vmatprep.subr.bf16.mxu0 %v6727_v42  ;;  %v4596_v20 = vld [vmem:[#allocation19 + $0x5f8] sm:$0xff]  ;;  %v6681_v42 = vpack.c.bf16 %v4577_v51, %v4569_v61  ;;  %v6745_v2 = vpack.c.bf16 %v4579_v27, %v4571_v22  ;;  %v6683_v1 = vpack.c.bf16 %v4594_v37, %v4586_v23  ;;  %v4658_v61 = vld [vmem:[#allocation19 + $0x7e8] sm:$0xff]  ;;  %v4649_v27 = vld [vmem:[#allocation19 + $0x7a0] sm:$0xff] }
0x1066   : > { %v6747_v33 = vpack.c.bf16 %v4596_v20, %v4588_v38  ;;  %v4652_v51 = vld [vmem:[#allocation19 + $0x7b8] sm:$0xff]  ;;  %v4657_v38 = vld [vmem:[#allocation19 + $0x7e0] sm:$0xff]  ;;  %v4651_v20 = vld [vmem:[#allocation19 + $0x7b0] sm:$0xff] }
0x1068   : > { %6666 = vmatpush1.bf16.msra.mxu1 %v6665_v45  ;;  %6730 = vmatpush1.bf16.msra.mxu0 %v6729_v46  ;;  %v4595_v45 = vld [vmem:[#allocation19 + $0x5f0] sm:$0xff]  ;;  %v4602_v46 = vld [vmem:[#allocation19 + $0x628] sm:$0xff] }
0x1069   : > { %6668 = vmatprep.subr.bf16.mxu1 %v6667_v24  ;;  %6732 = vmatprep.subr.bf16.mxu0 %v6731_v55  ;;  %v4612_v24 = vld [vmem:[#allocation19 + $0x678] sm:$0xff]  ;;  %v6685_v55 = vpack.c.bf16 %v4593_v28, %v4585_v25  ;;  %v6749_v54 = vpack.c.bf16 %v4595_v45, %v4587_v43  ;;  %v6687_v62 = vpack.c.bf16 %v4610_v47, %v4602_v46  ;;  %v4995_v43 = vld [vmem:[#allocation20] sm:$0xff]  ;;  %v4997_v45 = vld [vmem:[#allocation20 + $0x10] sm:$0xff] }
0x106a   : > { %v6751_v29 = vpack.c.bf16 %v4612_v24, %v4604_v49  ;;  %v4998_v25 = vld [vmem:[#allocation20 + $0x18] sm:$0xff]  ;;  %v6701_v28 = vpack.c.bf16 %v4657_v38, %v4649_v27  ;;  %v5000_v46 = vld [vmem:[#allocation20 + $0x28] sm:$0xff]  ;;  %v6769_v49 = vpack.c.bf16 %v4997_v45, %v4995_v43  ;;  %v5033_v43 = vld [vmem:[#allocation20 + $0x130] sm:$0xff] }
0x106b   : > { %v5002_v47 = vld [vmem:[#allocation20 + $0x38] sm:$0xff]  ;;  %v5028_v27 = vld [vmem:[#allocation20 + $0x108] sm:$0xff] }
0x106c   : > { %6670 = vmatpush1.bf16.msra.mxu1 %v6669_v34  ;;  %6734 = vmatpush1.bf16.msra.mxu0 %v6733_v35  ;;  %v4611_v34 = vld [vmem:[#allocation19 + $0x670] sm:$0xff]  ;;  %v4618_v35 = vld [vmem:[#allocation19 + $0x6a8] sm:$0xff]  ;;  %v6771_v24 = vpack.c.bf16 %v5002_v47, %v5000_v46  ;;  %v5038_v46 = vld [vmem:[#allocation20 + $0x158] sm:$0xff] }
0x106d   : > { %6672 = vmatprep.subr.bf16.mxu1 %v6671_v32  ;;  %6736 = vmatprep.subr.bf16.mxu0 %v6735_v36  ;;  %v4628_v32 = vld [vmem:[#allocation19 + $0x6f8] sm:$0xff]  ;;  %v6689_v36 = vpack.c.bf16 %v4609_v26, %v4601_v58  ;;  %v6753_v10 = vpack.c.bf16 %v4611_v34, %v4603_v30  ;;  %v6691_v44 = vpack.c.bf16 %v4626_v63, %v4618_v35  ;;  %v5004_v58 = vld [vmem:[#allocation20 + $0x48] sm:$0xff]  ;;  %v5003_v30 = vld [vmem:[#allocation20 + $0x40] sm:$0xff] }
0x106e   : > { %v6755_v4 = vpack.c.bf16 %v4628_v32, %v4620_v31  ;;  %v5006_v26 = vld [vmem:[#allocation20 + $0x58] sm:$0xff]  ;;  %v5005_v34 = vld [vmem:[#allocation20 + $0x50] sm:$0xff]  ;;  %v5008_v35 = vld [vmem:[#allocation20 + $0x68] sm:$0xff] }
0x106f   : > { %v5010_v63 = vld [vmem:[#allocation20 + $0x78] sm:$0xff]  ;;  %v6777_v31 = vpack.c.bf16 %v5005_v34, %v5003_v30  ;;  %v5036_v45 = vld [vmem:[#allocation20 + $0x148] sm:$0xff]  ;;  %v5041_v30 = vld [vmem:[#allocation20 + $0x170] sm:$0xff] }
0x1070   : > { %6674 = vmatpush1.bf16.msra.mxu1 %v6673_v11  ;;  %6738 = vmatpush1.bf16.msra.mxu0 %v6737_v12  ;;  %v4627_v11 = vld [vmem:[#allocation19 + $0x6f0] sm:$0xff]  ;;  %v4634_v12 = vld [vmem:[#allocation19 + $0x728] sm:$0xff]  ;;  %v6779_v32 = vpack.c.bf16 %v5010_v63, %v5008_v35  ;;  %v5046_v35 = vld [vmem:[#allocation20 + $0x198] sm:$0xff] }
0x1071   : > { %6676 = vmatprep.subr.bf16.mxu1 %v6675_v14  ;;  %6740 = vmatprep.subr.bf16.mxu0 %v6739_v9  ;;  %v4644_v14 = vld [vmem:[#allocation19 + $0x778] sm:$0xff]  ;;  %v6693_v9 = vpack.c.bf16 %v4625_v7, %v4617_v3  ;;  %v6757_v15 = vpack.c.bf16 %v4627_v11, %v4619_v8  ;;  %v6695_v5 = vpack.c.bf16 %v4642_v13, %v4634_v12  ;;  %v5012_v3 = vld [vmem:[#allocation20 + $0x88] sm:$0xff]  ;;  %v5011_v8 = vld [vmem:[#allocation20 + $0x80] sm:$0xff] }
0x1072   : > { %v6759_v18 = vpack.c.bf16 %v4644_v14, %v4636_v41  ;;  %v5014_v7 = vld [vmem:[#allocation20 + $0x98] sm:$0xff]  ;;  %v5013_v11 = vld [vmem:[#allocation20 + $0x90] sm:$0xff]  ;;  %v5016_v12 = vld [vmem:[#allocation20 + $0xa8] sm:$0xff] }
0x1073   : > { %v5018_v13 = vld [vmem:[#allocation20 + $0xb8] sm:$0xff]  ;;  %v6785_v41 = vpack.c.bf16 %v5013_v11, %v5011_v8  ;;  %v5044_v34 = vld [vmem:[#allocation20 + $0x188] sm:$0xff]  ;;  %v5049_v8 = vld [vmem:[#allocation20 + $0x1b0] sm:$0xff] }
0x1074   : > { %6678 = vmatpush1.bf16.msra.mxu1 %v6677_v52  ;;  %6742 = vmatpush1.bf16.msra.mxu0 %v6741_v0  ;;  %v4643_v52 = vld [vmem:[#allocation19 + $0x770] sm:$0xff]  ;;  %v4650_v0 = vld [vmem:[#allocation19 + $0x7a8] sm:$0xff]  ;;  %v6787_v14 = vpack.c.bf16 %v5018_v13, %v5016_v12  ;;  %v5054_v12 = vld [vmem:[#allocation20 + $0x1d8] sm:$0xff] }
0x1075   : > { %6680 = vmatprep.subr.bf16.mxu1 %v6679_v21  ;;  %6744 = vmatprep.subr.bf16.mxu0 %v6743_v39  ;;  %v4660_v21 = vld [vmem:[#allocation19 + $0x7f8] sm:$0xff]  ;;  %v6697_v39 = vpack.c.bf16 %v4641_v16, %v4633_v60  ;;  %v6761_v22 = vpack.c.bf16 %v4643_v52, %v4635_v6  ;;  %v6699_v23 = vpack.c.bf16 %v4658_v61, %v4650_v0  ;;  %v5020_v60 = vld [vmem:[#allocation20 + $0xc8] sm:$0xff]  ;;  %v5019_v6 = vld [vmem:[#allocation20 + $0xc0] sm:$0xff] }
0x1076   : > { %v6763_v37 = vpack.c.bf16 %v4660_v21, %v4652_v51  ;;  %v5022_v16 = vld [vmem:[#allocation20 + $0xd8] sm:$0xff]  ;;  %v5021_v52 = vld [vmem:[#allocation20 + $0xd0] sm:$0xff]  ;;  %v5024_v0 = vld [vmem:[#allocation20 + $0xe8] sm:$0xff] }
0x1077   : > { %v5026_v61 = vld [vmem:[#allocation20 + $0xf8] sm:$0xff]  ;;  %v6793_v51 = vpack.c.bf16 %v5021_v52, %v5019_v6  ;;  %v5052_v11 = vld [vmem:[#allocation20 + $0x1c8] sm:$0xff]  ;;  %v5057_v6 = vld [vmem:[#allocation20 + $0x1f0] sm:$0xff] }
0x1078   : > { %6682 = vmatpush1.bf16.msra.mxu1 %v6681_v42  ;;  %6746 = vmatpush1.bf16.msra.mxu0 %v6745_v2  ;;  %v4659_v42 = vld [vmem:[#allocation19 + $0x7f0] sm:$0xff]  ;;  %v4996_v2 = vld [vmem:[#allocation20 + $0x8] sm:$0xff]  ;;  %v6795_v21 = vpack.c.bf16 %v5026_v61, %v5024_v0  ;;  %v5062_v0 = vld [vmem:[#allocation20 + $0x218] sm:$0xff] }
0x1079   : > { %6684 = vmatprep.subr.bf16.mxu1 %v6683_v1  ;;  %6748 = vmatprep.subr.bf16.mxu0 %v6747_v33  ;;  %v6765_v1 = vpack.c.bf16 %v4659_v42, %v4651_v20  ;;  %v6767_v33 = vpack.c.bf16 %v4998_v25, %v4996_v2  ;;  %v5027_v20 = vld [vmem:[#allocation20 + $0x100] sm:$0xff]  ;;  %v5029_v42 = vld [vmem:[#allocation20 + $0x110] sm:$0xff]  ;;  %v5032_v2 = vld [vmem:[#allocation20 + $0x128] sm:$0xff] }
0x107a   : > { %v5034_v25 = vld [vmem:[#allocation20 + $0x138] sm:$0xff]  ;;  %v5060_v52 = vld [vmem:[#allocation20 + $0x208] sm:$0xff] }
0x107c   : > { %6686 = vmatpush1.bf16.msra.mxu1 %v6685_v55  ;;  %6750 = vmatpush1.bf16.msra.mxu0 %v6749_v54  ;;  %v4999_v55 = vld [vmem:[#allocation20 + $0x20] sm:$0xff]  ;;  %v5001_v54 = vld [vmem:[#allocation20 + $0x30] sm:$0xff] }
0x107d   : > { %6688 = vmatprep.subr.bf16.mxu1 %v6687_v62  ;;  %6752 = vmatprep.subr.bf16.mxu0 %v6751_v29  ;;  %v6773_v62 = vpack.c.bf16 %v5001_v54, %v4999_v55  ;;  %v6775_v29 = vpack.c.bf16 %v5006_v26, %v5004_v58  ;;  %v5037_v55 = vld [vmem:[#allocation20 + $0x150] sm:$0xff]  ;;  %v5040_v54 = vld [vmem:[#allocation20 + $0x168] sm:$0xff]  ;;  %v5042_v58 = vld [vmem:[#allocation20 + $0x178] sm:$0xff] }
0x1080   : > { %6690 = vmatpush1.bf16.msra.mxu1 %v6689_v36  ;;  %6754 = vmatpush1.bf16.msra.mxu0 %v6753_v10  ;;  %v5007_v36 = vld [vmem:[#allocation20 + $0x60] sm:$0xff]  ;;  %v5009_v10 = vld [vmem:[#allocation20 + $0x70] sm:$0xff] }
0x1081   : > { %6692 = vmatprep.subr.bf16.mxu1 %v6691_v44  ;;  %6756 = vmatprep.subr.bf16.mxu0 %v6755_v4  ;;  %v6781_v44 = vpack.c.bf16 %v5009_v10, %v5007_v36  ;;  %v6783_v4 = vpack.c.bf16 %v5014_v7, %v5012_v3  ;;  %v5045_v36 = vld [vmem:[#allocation20 + $0x190] sm:$0xff]  ;;  %v5048_v10 = vld [vmem:[#allocation20 + $0x1a8] sm:$0xff]  ;;  %v5050_v3 = vld [vmem:[#allocation20 + $0x1b8] sm:$0xff] }
0x1084   : > { %6694 = vmatpush1.bf16.msra.mxu1 %v6693_v9  ;;  %6758 = vmatpush1.bf16.msra.mxu0 %v6757_v15  ;;  %v5015_v9 = vld [vmem:[#allocation20 + $0xa0] sm:$0xff]  ;;  %v5017_v15 = vld [vmem:[#allocation20 + $0xb0] sm:$0xff] }
0x1085   : > { %6696 = vmatprep.subr.bf16.mxu1 %v6695_v5  ;;  %6760 = vmatprep.subr.bf16.mxu0 %v6759_v18  ;;  %v6789_v5 = vpack.c.bf16 %v5017_v15, %v5015_v9  ;;  %v6791_v18 = vpack.c.bf16 %v5022_v16, %v5020_v60  ;;  %v5053_v9 = vld [vmem:[#allocation20 + $0x1d0] sm:$0xff]  ;;  %v5056_v15 = vld [vmem:[#allocation20 + $0x1e8] sm:$0xff]  ;;  %v5058_v60 = vld [vmem:[#allocation20 + $0x1f8] sm:$0xff] }
0x1088   : > { %6698 = vmatpush1.bf16.msra.mxu1 %v6697_v39  ;;  %6762 = vmatpush1.bf16.msra.mxu0 %v6761_v22  ;;  %v5023_v39 = vld [vmem:[#allocation20 + $0xe0] sm:$0xff]  ;;  %v5025_v22 = vld [vmem:[#allocation20 + $0xf0] sm:$0xff] }
0x1089   : > { %6700 = vmatprep.subr.bf16.mxu1 %v6699_v23  ;;  %6764 = vmatprep.subr.bf16.mxu0 %v6763_v37  ;;  %v5030_v23 = vld [vmem:[#allocation20 + $0x118] sm:$0xff]  ;;  %v6797_v37 = vpack.c.bf16 %v5025_v22, %v5023_v39  ;;  %v4677_v39 = vsub.s32 3, %v8290_v57 }
0x108a   : > { %v6799_v38 = vpack.c.bf16 %v5030_v23, %v5028_v27 }
0x108c   : > { %6702 = vmatpush1.bf16.msra.mxu1 %v6701_v28  ;;  %6766 = vmatpush1.bf16.msra.mxu0 %v6765_v1  ;;  %v6801_v28 = vpack.c.bf16 %v5029_v42, %v5027_v20  ;;  %v6803_v1 = vpack.c.bf16 %v5034_v25, %v5032_v2  ;;  %v5059_v25 = vld [vmem:[#allocation20 + $0x200] sm:$0xff] }
0x108d   : > { %6768 = vmatprep.subr.bf16.mxu1 %v6767_v33  ;;  %v5031_v33 = vld [vmem:[#allocation20 + $0x120] sm:$0xff] }
0x108e   : > { %v6805_v47 = vpack.c.bf16 %v5033_v43, %v5031_v33  ;;  %v5064_v43 = vld [vmem:[#allocation20 + $0x228] sm:$0xff] }
0x108f   : > { %4910 = vmatmul.mubr.f32.vlgmr.msra.gmra.mrb[22].mxu1 %v8710_v19  ;;  %4981 = vmatmul.mubr.f32.vlgmr.msra.gmra.mrb[30].mxu0 %v8710_v19 }
0x1090   : > { %6770 = vmatpush1.bf16.msra.mxu1 %v6769_v49  ;;  %v6807_v49 = vpack.c.bf16 %v5038_v46, %v5036_v45  ;;  %v5066_v45 = vld [vmem:[#allocation20 + $0x238] sm:$0xff] }
0x1091   : > { %6772 = vmatprep.subr.bf16.mxu1 %v6771_v24  ;;  %v5035_v24 = vld [vmem:[#allocation20 + $0x140] sm:$0xff] }
0x1092   : > { %v6809_v26 = vpack.c.bf16 %v5037_v55, %v5035_v24  ;;  %v6835_v24 = vpack.c.bf16 %v5066_v45, %v5064_v43  ;;  %v5063_v55 = vld [vmem:[#allocation20 + $0x220] sm:$0xff] }
0x1094   : > { %6774 = vmatpush1.bf16.msra.mxu1 %v6773_v62  ;;  %v6811_v62 = vpack.c.bf16 %v5042_v58, %v5040_v54  ;;  %v5065_v54 = vld [vmem:[#allocation20 + $0x230] sm:$0xff] }
0x1095   : > { %6776 = vmatprep.subr.bf16.mxu1 %v6775_v29  ;;  %v5039_v29 = vld [vmem:[#allocation20 + $0x160] sm:$0xff] }
0x1096   : > { %v6813_v63 = vpack.c.bf16 %v5041_v30, %v5039_v29  ;;  %v6837_v29 = vpack.c.bf16 %v5065_v54, %v5063_v55 }
0x1098   : > { %6778 = vmatpush1.bf16.msra.mxu1 %v6777_v31  ;;  %v6815_v31 = vpack.c.bf16 %v5046_v35, %v5044_v34  ;;  %v5067_v34 = vld [vmem:[#allocation20 + $0x240] sm:$0xff]  ;;  %v5069_v35 = vld [vmem:[#allocation20 + $0x250] sm:$0xff] }
0x1099   : > { %6780 = vmatprep.subr.bf16.mxu1 %v6779_v32  ;;  %v5043_v32 = vld [vmem:[#allocation20 + $0x180] sm:$0xff] }
0x109a   : > { %v6817_v7 = vpack.c.bf16 %v5045_v36, %v5043_v32  ;;  %v6841_v32 = vpack.c.bf16 %v5069_v35, %v5067_v34  ;;  %v5103_v35 = vld [vmem:[#allocation20 + $0x360] sm:$0xff] }
0x109c   : > { %6782 = vmatpush1.bf16.msra.mxu1 %v6781_v44  ;;  %v6819_v44 = vpack.c.bf16 %v5050_v3, %v5048_v10  ;;  %v5071_v10 = vld [vmem:[#allocation20 + $0x260] sm:$0xff]  ;;  %v5073_v3 = vld [vmem:[#allocation20 + $0x270] sm:$0xff] }
0x109d   : > { %6784 = vmatprep.subr.bf16.mxu1 %v6783_v4  ;;  %v5047_v4 = vld [vmem:[#allocation20 + $0x1a0] sm:$0xff] }
0x109e   : > { %v6821_v13 = vpack.c.bf16 %v5049_v8, %v5047_v4  ;;  %v6845_v4 = vpack.c.bf16 %v5073_v3, %v5071_v10  ;;  %v5107_v3 = vld [vmem:[#allocation20 + $0x380] sm:$0xff] }
0x10a0   : > { %6786 = vmatpush1.bf16.msra.mxu1 %v6785_v41  ;;  %v6823_v41 = vpack.c.bf16 %v5054_v12, %v5052_v11  ;;  %v5075_v11 = vld [vmem:[#allocation20 + $0x280] sm:$0xff]  ;;  %v5077_v12 = vld [vmem:[#allocation20 + $0x290] sm:$0xff] }
0x10a1   : > { %6788 = vmatprep.subr.bf16.mxu1 %v6787_v14  ;;  %v5051_v14 = vld [vmem:[#allocation20 + $0x1c0] sm:$0xff] }
0x10a2   : > { %v6825_v16 = vpack.c.bf16 %v5053_v9, %v5051_v14  ;;  %v6849_v14 = vpack.c.bf16 %v5077_v12, %v5075_v11  ;;  %v5111_v12 = vld [vmem:[#allocation20 + $0x3a0] sm:$0xff] }
0x10a4   : > { %6790 = vmatpush1.bf16.msra.mxu1 %v6789_v5  ;;  %v6827_v5 = vpack.c.bf16 %v5058_v60, %v5056_v15  ;;  %v5079_v15 = vld [vmem:[#allocation20 + $0x2a0] sm:$0xff]  ;;  %v5081_v60 = vld [vmem:[#allocation20 + $0x2b0] sm:$0xff] }
0x10a5   : > { %6792 = vmatprep.subr.bf16.mxu1 %v6791_v18  ;;  %v5055_v18 = vld [vmem:[#allocation20 + $0x1e0] sm:$0xff] }
0x10a6   : > { %v6829_v61 = vpack.c.bf16 %v5057_v6, %v5055_v18  ;;  %v6853_v18 = vpack.c.bf16 %v5081_v60, %v5079_v15  ;;  %v4673_v15 = vsub.s32 2, %v8290_v57 }
0x10a8   : > { %6794 = vmatpush1.bf16.msra.mxu1 %v6793_v51  ;;  %v6831_v51 = vpack.c.bf16 %v5062_v0, %v5060_v52  ;;  %v5083_v52 = vld [vmem:[#allocation20 + $0x2c0] sm:$0xff]  ;;  %v5085_v0 = vld [vmem:[#allocation20 + $0x2d0] sm:$0xff] }
0x10a9   : > { %6796 = vmatprep.subr.bf16.mxu1 %v6795_v21  ;;  %v8723_v21 = vld [vmem:[%s8907_s0] sm:$0xff] }
0x10aa   : > { %v4666_v22 = vrot.slane %v8723_v21, %v8473_v48  ;;  %v4670_v27 = vrot.slane %v8723_v21, %v8476_v53  ;;  %v4678_v23 = vrot.slane %v8723_v21, %v4677_v39  ;;  %v6857_v39 = vpack.c.bf16 %v5085_v0, %v5083_v52  ;;  %v5122_v52 = vld [vmem:[#allocation20 + $0x3f8] sm:$0xff] }
0x10ac   : > { %6798 = vmatpush1.bf16.msra.mxu1 %v6797_v37 }
0x10ad   : > { %6800 = vmatprep.subr.bf16.mxu1 %v6799_v38 }
0x10b0   : > { %6802 = vmatpush1.bf16.msra.mxu1 %v6801_v28  ;;  %v5061_v28 = vld [vmem:[#allocation20 + $0x210] sm:$0xff] }
0x10b1   : > { %6804 = vmatprep.subr.bf16.mxu1 %v6803_v1 }
0x10b4   : > { %6806 = vmatpush1.bf16.msra.mxu1 %v6805_v47  ;;  %v6833_v47 = vpack.c.bf16 %v5061_v28, %v5059_v25  ;;  %v5091_v25 = vld [vmem:[#allocation20 + $0x300] sm:$0xff]  ;;  %v5093_v28 = vld [vmem:[#allocation20 + $0x310] sm:$0xff] }
0x10b5   : > { %6808 = vmatprep.subr.bf16.mxu1 %v6807_v49  ;;  %v6865_v43 = vpack.c.bf16 %v5093_v28, %v5091_v25 }
0x10b8   : > { %6810 = vmatpush1.bf16.msra.mxu1 %v6809_v26  ;;  %v5068_v26 = vld [vmem:[#allocation20 + $0x248] sm:$0xff] }
0x10b9   : > { %6812 = vmatprep.subr.bf16.mxu1 %v6811_v62  ;;  %v5070_v62 = vld [vmem:[#allocation20 + $0x258] sm:$0xff] }
0x10ba   : > { %v6839_v30 = vpack.c.bf16 %v5070_v62, %v5068_v26  ;;  %v5101_v26 = vld [vmem:[#allocation20 + $0x350] sm:$0xff]  ;;  %v5104_v62 = vld [vmem:[#allocation20 + $0x368] sm:$0xff] }
0x10bc   : > { %6814 = vmatpush1.bf16.msra.mxu1 %v6813_v63  ;;  %v5072_v63 = vld [vmem:[#allocation20 + $0x268] sm:$0xff] }
0x10bd   : > { %6816 = vmatprep.subr.bf16.mxu1 %v6815_v31  ;;  %v5074_v31 = vld [vmem:[#allocation20 + $0x278] sm:$0xff] }
0x10be   : > { %v6843_v36 = vpack.c.bf16 %v5074_v31, %v5072_v63  ;;  %v5105_v63 = vld [vmem:[#allocation20 + $0x370] sm:$0xff]  ;;  %v5108_v31 = vld [vmem:[#allocation20 + $0x388] sm:$0xff] }
0x10c0   : > { %6818 = vmatpush1.bf16.msra.mxu1 %v6817_v7  ;;  %v5076_v7 = vld [vmem:[#allocation20 + $0x288] sm:$0xff] }
0x10c1   : > { %6820 = vmatprep.subr.bf16.mxu1 %v6819_v44  ;;  %v5078_v44 = vld [vmem:[#allocation20 + $0x298] sm:$0xff] }
0x10c2   : > { %v6847_v8 = vpack.c.bf16 %v5078_v44, %v5076_v7  ;;  %v5109_v7 = vld [vmem:[#allocation20 + $0x390] sm:$0xff]  ;;  %v5112_v44 = vld [vmem:[#allocation20 + $0x3a8] sm:$0xff] }
0x10c4   : > { %6822 = vmatpush1.bf16.msra.mxu1 %v6821_v13  ;;  %v5080_v13 = vld [vmem:[#allocation20 + $0x2a8] sm:$0xff] }
0x10c5   : > { %6824 = vmatprep.subr.bf16.mxu1 %v6823_v41  ;;  %v5082_v41 = vld [vmem:[#allocation20 + $0x2b8] sm:$0xff] }
0x10c6   : > { %v6851_v9 = vpack.c.bf16 %v5082_v41, %v5080_v13  ;;  %v5113_v13 = vld [vmem:[#allocation20 + $0x3b0] sm:$0xff]  ;;  %v5116_v41 = vld [vmem:[#allocation20 + $0x3c8] sm:$0xff] }
0x10c8   : > { %6826 = vmatpush1.bf16.msra.mxu1 %v6825_v16  ;;  %v5084_v16 = vld [vmem:[#allocation20 + $0x2c8] sm:$0xff] }
0x10c9   : > { %6828 = vmatprep.subr.bf16.mxu1 %v6827_v5  ;;  %v5086_v5 = vld [vmem:[#allocation20 + $0x2d8] sm:$0xff] }
0x10ca   : > { %v6855_v6 = vpack.c.bf16 %v5086_v5, %v5084_v16  ;;  %v5115_v16 = vld [vmem:[#allocation20 + $0x3c0] sm:$0xff]  ;;  %v5117_v5 = vld [vmem:[#allocation20 + $0x3d0] sm:$0xff] }
0x10cb   : > { %v6889_v0 = vpack.c.bf16 %v5117_v5, %v5115_v16  ;;  %v5145_v16 = vld [vmem:[#allocation20 + $0x4b0] sm:$0xff]  ;;  %v5148_v5 = vld [vmem:[#allocation20 + $0x4c8] sm:$0xff] }
0x10cc   : > { %6830 = vmatpush1.bf16.msra.mxu1 %v6829_v61  ;;  %v5088_v61 = vld [vmem:[#allocation20 + $0x2e8] sm:$0xff] }
0x10cd   : > { %6832 = vmatprep.subr.bf16.mxu1 %v6831_v51  ;;  %v5090_v51 = vld [vmem:[#allocation20 + $0x2f8] sm:$0xff] }
0x1122   : > { %v4769_v37 = vpop.f32.mrb[20].mxu1  ;;  %v8731_v38 = vpop.f32.mrb[28].mxu0 }
0x1123   : > { %v4770_v20 = vadd.f32 %v4769_v37, %v4666_v22  ;;  %v4771_v42 = vpop.f32.mrb[21].mxu1  ;;  %v4842_v2 = vpop.f32.mrb[29].mxu0  ;;  %v6859_v22 = vpack.c.bf16 %v5090_v51, %v5088_v61  ;;  %v5092_v37 = vld [vmem:[#allocation20 + $0x308] sm:$0xff]  ;;  %v4674_v61 = vrot.slane %v8723_v21, %v4673_v15 }
0x1124   : > { %v4772_v1 = vadd.f32 %v4771_v42, %v4670_v27  ;;  %v4843_v33 = vadd.f32 %v4842_v2, %v4678_v23  ;;  %v5087_v27 = vld [vmem:[#allocation20 + $0x2e0] sm:$0xff]  ;;  %v5089_v23 = vld [vmem:[#allocation20 + $0x2f0] sm:$0xff] }
0x1125   : > { %v4987_v49 = vmax.f32 %v4770_v20, 0.0  ;;  %v5094_v20 = vld [vmem:[#allocation20 + $0x318] sm:$0xff]  ;;  %v6861_v42 = vpack.c.bf16 %v5089_v23, %v5087_v27  ;;  %v5124_v23 = vld [vmem:[#allocation20 + $0x408] sm:$0xff]  ;;  %v4841_v25 = vadd.f32 %v8731_v38, %v4674_v61  ;;  %v5149_v61 = vld [vmem:[#allocation20 + $0x4d0] sm:$0xff] }
0x1126   : > { %v4988_v46 = vmax.f32 %v4772_v1, 0.0  ;;  %v4990_v58 = vmax.f32 %v4843_v33, 0.0  ;;  %v6863_v2 = vpack.c.bf16 %v5094_v20, %v5092_v37  ;;  %v5096_v1 = vld [vmem:[#allocation20 + $0x328] sm:$0xff]  ;;  %v5098_v33 = vld [vmem:[#allocation20 + $0x338] sm:$0xff] }
0x1127   : > { %v6867_v45 = vpack.c.bf16 %v5098_v33, %v5096_v1  ;;  %v5126_v37 = vld [vmem:[#allocation20 + $0x418] sm:$0xff] }
0x1128   : > { %5327 = vmatprep.mubr.f32.mxu1 %v4988_v46  ;;  %v5095_v46 = vld [vmem:[#allocation20 + $0x320] sm:$0xff]  ;;  %v6895_v33 = vpack.c.bf16 %v5126_v37, %v5124_v23  ;;  %v5134_v38 = vld [vmem:[#allocation20 + $0x458] sm:$0xff]  ;;  %v5153_v37 = vld [vmem:[#allocation20 + $0x4f0] sm:$0xff] }
0x1129   : > { %5328 = vmatmul.mubr.f32.vlgmr.msra.gmra.mrb[24].mxu1 %v4987_v49  ;;  %v5100_v49 = vld [vmem:[#allocation20 + $0x348] sm:$0xff]  ;;  %v5151_v23 = vld [vmem:[#allocation20 + $0x4e0] sm:$0xff] }
0x112a   : > { %6834 = vmatpush1.bf16.msra.mxu1 %v6833_v47  ;;  %5398 = vmatprep.mubr.f32.mxu1 %v4990_v58  ;;  %v5097_v47 = vld [vmem:[#allocation20 + $0x330] sm:$0xff]  ;;  %v5099_v58 = vld [vmem:[#allocation20 + $0x340] sm:$0xff] }
0x112b   : > { %6836 = vmatprep.subr.bf16.mxu1 %v6835_v24  ;;  %v5102_v24 = vld [vmem:[#allocation20 + $0x358] sm:$0xff]  ;;  %v6869_v55 = vpack.c.bf16 %v5097_v47, %v5095_v46  ;;  %v5128_v47 = vld [vmem:[#allocation20 + $0x428] sm:$0xff] }
0x112c   : > { %v6871_v54 = vpack.c.bf16 %v5102_v24, %v5100_v49  ;;  %v5130_v49 = vld [vmem:[#allocation20 + $0x438] sm:$0xff] }
0x112e   : > { %6838 = vmatpush1.bf16.msra.mxu1 %v6837_v29  ;;  %v5106_v29 = vld [vmem:[#allocation20 + $0x378] sm:$0xff] }
0x112f   : > { %6840 = vmatprep.subr.bf16.mxu1 %v6839_v30  ;;  %v6873_v30 = vpack.c.bf16 %v5101_v26, %v5099_v58  ;;  %v6875_v34 = vpack.c.bf16 %v5106_v29, %v5104_v62  ;;  %v5127_v58 = vld [vmem:[#allocation20 + $0x420] sm:$0xff]  ;;  %v5129_v26 = vld [vmem:[#allocation20 + $0x430] sm:$0xff]  ;;  %v5132_v29 = vld [vmem:[#allocation20 + $0x448] sm:$0xff] }
0x1132   : > { %6842 = vmatpush1.bf16.msra.mxu1 %v6841_v32  ;;  %v5110_v32 = vld [vmem:[#allocation20 + $0x398] sm:$0xff] }
0x1133   : > { %6844 = vmatprep.subr.bf16.mxu1 %v6843_v36  ;;  %v6877_v36 = vpack.c.bf16 %v5105_v63, %v5103_v35  ;;  %v6879_v10 = vpack.c.bf16 %v5110_v32, %v5108_v31  ;;  %v5131_v35 = vld [vmem:[#allocation20 + $0x440] sm:$0xff]  ;;  %v5133_v63 = vld [vmem:[#allocation20 + $0x450] sm:$0xff]  ;;  %v5136_v31 = vld [vmem:[#allocation20 + $0x468] sm:$0xff] }
0x1134   : > { %v5138_v32 = vld [vmem:[#allocation20 + $0x478] sm:$0xff] }
0x1136   : > { %6846 = vmatpush1.bf16.msra.mxu1 %v6845_v4  ;;  %v5114_v4 = vld [vmem:[#allocation20 + $0x3b8] sm:$0xff] }
0x1137   : > { %6848 = vmatprep.subr.bf16.mxu1 %v6847_v8  ;;  %v6881_v8 = vpack.c.bf16 %v5109_v7, %v5107_v3  ;;  %v6883_v11 = vpack.c.bf16 %v5114_v4, %v5112_v44  ;;  %v5135_v3 = vld [vmem:[#allocation20 + $0x460] sm:$0xff]  ;;  %v5137_v7 = vld [vmem:[#allocation20 + $0x470] sm:$0xff]  ;;  %v5140_v44 = vld [vmem:[#allocation20 + $0x488] sm:$0xff] }
0x1138   : > { %v5142_v4 = vld [vmem:[#allocation20 + $0x498] sm:$0xff] }
0x113a   : > { %6850 = vmatpush1.bf16.msra.mxu1 %v6849_v14  ;;  %v5118_v14 = vld [vmem:[#allocation20 + $0x3d8] sm:$0xff] }
0x113b   : > { %6852 = vmatprep.subr.bf16.mxu1 %v6851_v9  ;;  %v6885_v9 = vpack.c.bf16 %v5113_v13, %v5111_v12  ;;  %v6887_v60 = vpack.c.bf16 %v5118_v14, %v5116_v41  ;;  %v5139_v12 = vld [vmem:[#allocation20 + $0x480] sm:$0xff]  ;;  %v5141_v13 = vld [vmem:[#allocation20 + $0x490] sm:$0xff]  ;;  %v5144_v41 = vld [vmem:[#allocation20 + $0x4a8] sm:$0xff] }
0x113c   : > { %v5146_v14 = vld [vmem:[#allocation20 + $0x4b8] sm:$0xff] }
0x113d   : > { %v6915_v15 = vpack.c.bf16 %v5146_v14, %v5144_v41  ;;  %v5175_v14 = vld [vmem:[#allocation20 + $0x5a0] sm:$0xff] }
0x113e   : > { %6854 = vmatpush1.bf16.msra.mxu1 %v6853_v18  ;;  %v4685_v18 = vsub.s32 5, %v8290_v57 }
0x113f   : > { %6856 = vmatprep.subr.bf16.mxu1 %v6855_v6  ;;  %v5120_v6 = vld [vmem:[#allocation20 + $0x3e8] sm:$0xff] }
0x1140   : > { %v6891_v51 = vpack.c.bf16 %v5122_v52, %v5120_v6  ;;  %v4686_v27 = vrot.slane %v8723_v21, %v4685_v18  ;;  %v5150_v18 = vld [vmem:[#allocation20 + $0x4d8] sm:$0xff] }
0x1141   : > { %v6919_v52 = vpack.c.bf16 %v5150_v18, %v5148_v5  ;;  %v4681_v5 = vsub.s32 4, %v8290_v57 }
0x1142   : > { %6858 = vmatpush1.bf16.msra.mxu1 %v6857_v39  ;;  %v5119_v39 = vld [vmem:[#allocation20 + $0x3e0] sm:$0xff] }
0x1143   : > { %6860 = vmatprep.subr.bf16.mxu1 %v6859_v22  ;;  %v5121_v22 = vld [vmem:[#allocation20 + $0x3f0] sm:$0xff] }
0x1146   : > { %6862 = vmatpush1.bf16.msra.mxu1 %v6861_v42 }
0x1147   : > { %6864 = vmatprep.subr.bf16.mxu1 %v6863_v2  ;;  %v6893_v2 = vpack.c.bf16 %v5121_v22, %v5119_v39  ;;  %v5154_v39 = vld [vmem:[#allocation20 + $0x4f8] sm:$0xff] }
0x114a   : > { %6866 = vmatpush1.bf16.msra.mxu1 %v6865_v43  ;;  %v5123_v43 = vld [vmem:[#allocation20 + $0x400] sm:$0xff] }
0x114b   : > { %6868 = vmatprep.subr.bf16.mxu1 %v6867_v45  ;;  %v5125_v45 = vld [vmem:[#allocation20 + $0x410] sm:$0xff] }
0x114c   : > { %v6897_v24 = vpack.c.bf16 %v5125_v45, %v5123_v43  ;;  %v5155_v43 = vld [vmem:[#allocation20 + $0x500] sm:$0xff]  ;;  %v5157_v45 = vld [vmem:[#allocation20 + $0x510] sm:$0xff] }
0x114e   : > { %6870 = vmatpush1.bf16.msra.mxu1 %v6869_v55  ;;  %v4989_v55 = vmax.f32 %v4841_v25, 0.0  ;;  %v5158_v25 = vld [vmem:[#allocation20 + $0x518] sm:$0xff] }
0x114f   : > { %6872 = vmatprep.subr.bf16.mxu1 %v6871_v54  ;;  %v6899_v54 = vpack.c.bf16 %v5130_v49, %v5128_v47  ;;  %v5162_v47 = vld [vmem:[#allocation20 + $0x538] sm:$0xff]  ;;  %v6929_v49 = vpack.c.bf16 %v5157_v45, %v5155_v43 }
0x1152   : > { %6874 = vmatpush1.bf16.msra.mxu1 %v6873_v30  ;;  %v6901_v30 = vpack.c.bf16 %v5129_v26, %v5127_v58  ;;  %v5164_v58 = vld [vmem:[#allocation20 + $0x548] sm:$0xff]  ;;  %v5166_v26 = vld [vmem:[#allocation20 + $0x558] sm:$0xff] }
0x1153   : > { %6876 = vmatprep.subr.bf16.mxu1 %v6875_v34  ;;  %v6903_v34 = vpack.c.bf16 %v5134_v38, %v5132_v29  ;;  %v6935_v29 = vpack.c.bf16 %v5166_v26, %v5164_v58  ;;  %v5163_v38 = vld [vmem:[#allocation20 + $0x540] sm:$0xff] }
0x1156   : > { %6878 = vmatpush1.bf16.msra.mxu1 %v6877_v36  ;;  %v6905_v36 = vpack.c.bf16 %v5133_v63, %v5131_v35  ;;  %v5170_v35 = vld [vmem:[#allocation20 + $0x578] sm:$0xff] }
0x1157   : > { %6880 = vmatprep.subr.bf16.mxu1 %v6879_v10  ;;  %v6907_v10 = vpack.c.bf16 %v5138_v32, %v5136_v31  ;;  %v5167_v32 = vld [vmem:[#allocation20 + $0x560] sm:$0xff] }
0x115a   : > { %6882 = vmatpush1.bf16.msra.mxu1 %v6881_v8  ;;  %v6909_v8 = vpack.c.bf16 %v5137_v7, %v5135_v3  ;;  %v5174_v3 = vld [vmem:[#allocation20 + $0x598] sm:$0xff] }
0x115b   : > { %6884 = vmatprep.subr.bf16.mxu1 %v6883_v11  ;;  %v6911_v11 = vpack.c.bf16 %v5142_v4, %v5140_v44  ;;  %v5171_v4 = vld [vmem:[#allocation20 + $0x580] sm:$0xff] }
0x115e   : > { %6886 = vmatpush1.bf16.msra.mxu1 %v6885_v9  ;;  %v6913_v9 = vpack.c.bf16 %v5141_v13, %v5139_v12  ;;  %v5178_v12 = vld [vmem:[#allocation20 + $0x5b8] sm:$0xff] }
0x115f   : > { %6888 = vmatprep.subr.bf16.mxu1 %v6887_v60  ;;  %v5143_v60 = vld [vmem:[#allocation20 + $0x4a0] sm:$0xff] }
0x1160   : > { %v6917_v6 = vpack.c.bf16 %v5145_v16, %v5143_v60  ;;  %v5182_v60 = vld [vmem:[#allocation20 + $0x5d8] sm:$0xff] }
0x1162   : > { %v8737_v20 = vpop.f32.mrb[22].mxu1  ;;  %v8739_v42 = vpop.f32.mrb[30].mxu0  ;;  %6890 = vmatpush1.bf16.msra.mxu1 %v6889_v0  ;;  %v5147_v0 = vld [vmem:[#allocation20 + $0x4c0] sm:$0xff] }
0x1163   : > { %v4913_v28 = vpop.f32.mrb[23].mxu1  ;;  %v8742_v1 = vpop.f32.mrb[31].mxu0  ;;  %6892 = vmatprep.subr.bf16.mxu1 %v6891_v51  ;;  %v5152_v51 = vld [vmem:[#allocation20 + $0x4e8] sm:$0xff]  ;;  %v6921_v22 = vpack.c.bf16 %v5149_v61, %v5147_v0  ;;  %v4693_v0 = vsub.s32 7, %v8290_v57 }
0x1164   : > { %v4914_v46 = vadd.f32 %v4913_v28, %v4686_v27  ;;  %v6923_v27 = vpack.c.bf16 %v5154_v39, %v5152_v51  ;;  %v6925_v28 = vpack.c.bf16 %v5153_v37, %v5151_v23  ;;  %v5184_v61 = vld [vmem:[#allocation20 + $0x5e8] sm:$0xff]  ;;  %v5186_v51 = vld [vmem:[#allocation20 + $0x5f8] sm:$0xff]  ;;  %v5183_v23 = vld [vmem:[#allocation20 + $0x5e0] sm:$0xff] }
0x1165   : > { %v5185_v37 = vld [vmem:[#allocation20 + $0x5f0] sm:$0xff] }
0x1166   : > { %6894 = vmatpush1.bf16.msra.mxu1 %v6893_v2  ;;  %v4992_v62 = vmax.f32 %v4914_v46, 0.0  ;;  %v5156_v2 = vld [vmem:[#allocation20 + $0x508] sm:$0xff] }
0x1167   : > { %6896 = vmatprep.subr.bf16.mxu1 %v6895_v33  ;;  %v6927_v33 = vpack.c.bf16 %v5158_v25, %v5156_v2  ;;  %v5160_v46 = vld [vmem:[#allocation20 + $0x528] sm:$0xff]  ;;  %v4694_v2 = vrot.slane %v8723_v21, %v4693_v0  ;;  %v5211_v0 = vld [vmem:[#allocation20 + $0x6c0] sm:$0xff] }
0x1168   : > { %v5188_v25 = vld [vmem:[#allocation20 + $0x608] sm:$0xff] }
0x1169   : > { %5399 = vmatmul.mubr.f32.vlgmr.msra.gmra.mrb[24].mxu1 %v4989_v55  ;;  %v5159_v55 = vld [vmem:[#allocation20 + $0x520] sm:$0xff] }
0x116a   : > { %6898 = vmatpush1.bf16.msra.mxu1 %v6897_v24  ;;  %5469 = vmatprep.mubr.f32.mxu1 %v4992_v62  ;;  %v6931_v24 = vpack.c.bf16 %v5162_v47, %v5160_v46  ;;  %v5187_v46 = vld [vmem:[#allocation20 + $0x600] sm:$0xff]  ;;  %v5189_v47 = vld [vmem:[#allocation20 + $0x610] sm:$0xff] }
0x116b   : > { %6900 = vmatprep.subr.bf16.mxu1 %v6899_v54  ;;  %v5161_v54 = vld [vmem:[#allocation20 + $0x530] sm:$0xff] }
0x116c   : > { %v6933_v62 = vpack.c.bf16 %v5161_v54, %v5159_v55  ;;  %v5194_v55 = vld [vmem:[#allocation20 + $0x638] sm:$0xff]  ;;  %v6961_v54 = vpack.c.bf16 %v5189_v47, %v5187_v46  ;;  %v5224_v46 = vld [vmem:[#allocation20 + $0x728] sm:$0xff] }
0x116d   : > { %v5226_v47 = vld [vmem:[#allocation20 + $0x738] sm:$0xff] }
0x116e   : > { %6902 = vmatpush1.bf16.msra.mxu1 %v6901_v30  ;;  %v5165_v30 = vld [vmem:[#allocation20 + $0x550] sm:$0xff] }
0x116f   : > { %6904 = vmatprep.subr.bf16.mxu1 %v6903_v34  ;;  %v5168_v34 = vld [vmem:[#allocation20 + $0x568] sm:$0xff]  ;;  %v6937_v63 = vpack.c.bf16 %v5165_v30, %v5163_v38 }
0x1170   : > { %v6939_v31 = vpack.c.bf16 %v5170_v35, %v5168_v34  ;;  %v5196_v30 = vld [vmem:[#allocation20 + $0x648] sm:$0xff]  ;;  %v5198_v34 = vld [vmem:[#allocation20 + $0x658] sm:$0xff] }
0x1171   : > { %v6967_v35 = vpack.c.bf16 %v5198_v34, %v5196_v30  ;;  %v5229_v30 = vld [vmem:[#allocation20 + $0x750] sm:$0xff]  ;;  %v5232_v34 = vld [vmem:[#allocation20 + $0x768] sm:$0xff] }
0x1172   : > { %6906 = vmatpush1.bf16.msra.mxu1 %v6905_v36  ;;  %v5169_v36 = vld [vmem:[#allocation20 + $0x570] sm:$0xff] }
0x1173   : > { %6908 = vmatprep.subr.bf16.mxu1 %v6907_v10  ;;  %v5172_v10 = vld [vmem:[#allocation20 + $0x588] sm:$0xff]  ;;  %v6941_v7 = vpack.c.bf16 %v5169_v36, %v5167_v32  ;;  %v5202_v32 = vld [vmem:[#allocation20 + $0x678] sm:$0xff] }
0x1174   : > { %v6943_v44 = vpack.c.bf16 %v5174_v3, %v5172_v10  ;;  %v5199_v3 = vld [vmem:[#allocation20 + $0x660] sm:$0xff] }
0x1176   : > { %6910 = vmatpush1.bf16.msra.mxu1 %v6909_v8  ;;  %v5173_v8 = vld [vmem:[#allocation20 + $0x590] sm:$0xff] }
0x1177   : > { %6912 = vmatprep.subr.bf16.mxu1 %v6911_v11  ;;  %v5176_v11 = vld [vmem:[#allocation20 + $0x5a8] sm:$0xff]  ;;  %v6945_v13 = vpack.c.bf16 %v5173_v8, %v5171_v4  ;;  %v5206_v4 = vld [vmem:[#allocation20 + $0x698] sm:$0xff] }
0x1178   : > { %v6947_v41 = vpack.c.bf16 %v5178_v12, %v5176_v11  ;;  %v5203_v12 = vld [vmem:[#allocation20 + $0x680] sm:$0xff] }
0x117a   : > { %6914 = vmatpush1.bf16.msra.mxu1 %v6913_v9  ;;  %v5177_v9 = vld [vmem:[#allocation20 + $0x5b0] sm:$0xff] }
0x117b   : > { %6916 = vmatprep.subr.bf16.mxu1 %v6915_v15  ;;  %v5180_v15 = vld [vmem:[#allocation20 + $0x5c8] sm:$0xff]  ;;  %v6949_v16 = vpack.c.bf16 %v5177_v9, %v5175_v14  ;;  %v5210_v14 = vld [vmem:[#allocation20 + $0x6b8] sm:$0xff] }
0x117c   : > { %v6951_v18 = vpack.c.bf16 %v5182_v60, %v5180_v15  ;;  %v5207_v60 = vld [vmem:[#allocation20 + $0x6a0] sm:$0xff] }
0x117e   : > { %6918 = vmatpush1.bf16.msra.mxu1 %v6917_v6  ;;  %v5179_v6 = vld [vmem:[#allocation20 + $0x5c0] sm:$0xff] }
0x117f   : > { %6920 = vmatprep.subr.bf16.mxu1 %v6919_v52  ;;  %v5181_v52 = vld [vmem:[#allocation20 + $0x5d0] sm:$0xff] }
0x1180   : > { %v6953_v39 = vpack.c.bf16 %v5181_v52, %v5179_v6 }
0x1182   : > { %6922 = vmatpush1.bf16.msra.mxu1 %v6921_v22  ;;  %v4682_v22 = vrot.slane %v8723_v21, %v4681_v5  ;;  %v5212_v5 = vld [vmem:[#allocation20 + $0x6c8] sm:$0xff] }
0x1183   : > { %6924 = vmatprep.subr.bf16.mxu1 %v6923_v27  ;;  %v6955_v27 = vpack.c.bf16 %v5186_v51, %v5184_v61  ;;  %v5213_v61 = vld [vmem:[#allocation20 + $0x6d0] sm:$0xff]  ;;  %v5216_v51 = vld [vmem:[#allocation20 + $0x6e8] sm:$0xff] }
0x1184   : > { %v4912_v43 = vadd.f32 %v8737_v20, %v4682_v22  ;;  %v6985_v22 = vpack.c.bf16 %v5213_v61, %v5211_v0 }
0x1186   : > { %6926 = vmatpush1.bf16.msra.mxu1 %v6925_v28  ;;  %v5190_v28 = vld [vmem:[#allocation20 + $0x618] sm:$0xff]  ;;  %v4991_v58 = vmax.f32 %v4912_v43, 0.0  ;;  %v5219_v43 = vld [vmem:[#allocation20 + $0x700] sm:$0xff] }
0x1187   : > { %6928 = vmatprep.subr.bf16.mxu1 %v6927_v33  ;;  %v6957_v33 = vpack.c.bf16 %v5185_v37, %v5183_v23  ;;  %v6959_v45 = vpack.c.bf16 %v5190_v28, %v5188_v25  ;;  %v5215_v23 = vld [vmem:[#allocation20 + $0x6e0] sm:$0xff]  ;;  %v5217_v37 = vld [vmem:[#allocation20 + $0x6f0] sm:$0xff]  ;;  %v5222_v25 = vld [vmem:[#allocation20 + $0x718] sm:$0xff] }
0x1188   : > { %v6989_v28 = vpack.c.bf16 %v5217_v37, %v5215_v23  ;;  %v5251_v37 = vld [vmem:[%s8908_s5] sm:$0x3] }
0x118a   : > { %6930 = vmatpush1.bf16.msra.mxu1 %v6929_v49  ;;  %v4985_v49 = vadd.f32 %v8742_v1, %v4694_v2  ;;  %v5197_v1 = vld [vmem:[#allocation20 + $0x650] sm:$0xff]  ;;  %v5220_v2 = vld [vmem:[#allocation20 + $0x708] sm:$0xff] }
0x118b   : > { %6932 = vmatprep.subr.bf16.mxu1 %v6931_v24  ;;  %v5192_v24 = vld [vmem:[#allocation20 + $0x628] sm:$0xff] }
0x118c   : > { %v6963_v26 = vpack.c.bf16 %v5194_v55, %v5192_v24  ;;  %v4994_v38 = vmax.f32 %v4985_v49, 0.0  ;;  %v6995_v24 = vpack.c.bf16 %v5226_v47, %v5224_v46  ;;  %v5223_v55 = vld [vmem:[#allocation20 + $0x720] sm:$0xff] }
0x118e   : > { %6934 = vmatpush1.bf16.msra.mxu1 %v6933_v62  ;;  %v5191_v62 = vld [vmem:[#allocation20 + $0x620] sm:$0xff] }
0x118f   : > { %6936 = vmatprep.subr.bf16.mxu1 %v6935_v29  ;;  %v5193_v29 = vld [vmem:[#allocation20 + $0x630] sm:$0xff] }
0x1190   : > { %v6965_v20 = vpack.c.bf16 %v5193_v29, %v5191_v62 }
0x1192   : > { %6938 = vmatpush1.bf16.msra.mxu1 %v6937_v63  ;;  %v5195_v63 = vld [vmem:[#allocation20 + $0x640] sm:$0xff] }
0x1193   : > { %6940 = vmatprep.subr.bf16.mxu1 %v6939_v31  ;;  %v5200_v31 = vld [vmem:[#allocation20 + $0x668] sm:$0xff]  ;;  %v6969_v36 = vpack.c.bf16 %v5197_v1, %v5195_v63  ;;  %v5231_v1 = vld [vmem:[#allocation20 + $0x760] sm:$0xff] }
0x1194   : > { %v6971_v10 = vpack.c.bf16 %v5202_v32, %v5200_v31  ;;  %v5233_v31 = vld [vmem:[#allocation20 + $0x770] sm:$0xff]  ;;  %v5236_v32 = vld [vmem:[#allocation20 + $0x788] sm:$0xff] }
0x1196   : > { %6942 = vmatpush1.bf16.msra.mxu1 %v6941_v7  ;;  %v5201_v7 = vld [vmem:[#allocation20 + $0x670] sm:$0xff] }
0x1197   : > { %6944 = vmatprep.subr.bf16.mxu1 %v6943_v44  ;;  %v5204_v44 = vld [vmem:[#allocation20 + $0x688] sm:$0xff]  ;;  %v6973_v8 = vpack.c.bf16 %v5201_v7, %v5199_v3  ;;  %v5235_v7 = vld [vmem:[#allocation20 + $0x780] sm:$0xff] }
0x1198   : > { %v6975_v11 = vpack.c.bf16 %v5206_v4, %v5204_v44  ;;  %v5237_v44 = vld [vmem:[#allocation20 + $0x790] sm:$0xff]  ;;  %v5240_v4 = vld [vmem:[#allocation20 + $0x7a8] sm:$0xff] }
0x119a   : > { %6946 = vmatpush1.bf16.msra.mxu1 %v6945_v13  ;;  %v5205_v13 = vld [vmem:[#allocation20 + $0x690] sm:$0xff] }
0x119b   : > { %6948 = vmatprep.subr.bf16.mxu1 %v6947_v41  ;;  %v5208_v41 = vld [vmem:[#allocation20 + $0x6a8] sm:$0xff]  ;;  %v6977_v9 = vpack.c.bf16 %v5205_v13, %v5203_v12  ;;  %v5239_v13 = vld [vmem:[#allocation20 + $0x7a0] sm:$0xff] }
0x119c   : > { %v6979_v15 = vpack.c.bf16 %v5210_v14, %v5208_v41  ;;  %v5241_v41 = vld [vmem:[#allocation20 + $0x7b0] sm:$0xff]  ;;  %v5244_v14 = vld [vmem:[#allocation20 + $0x7c8] sm:$0xff] }
0x119e   : > { %6950 = vmatpush1.bf16.msra.mxu1 %v6949_v16  ;;  %v5209_v16 = vld [vmem:[#allocation20 + $0x6b0] sm:$0xff] }
0x119f   : > { %6952 = vmatprep.subr.bf16.mxu1 %v6951_v18  ;;  %v5214_v18 = vld [vmem:[#allocation20 + $0x6d8] sm:$0xff]  ;;  %v6981_v6 = vpack.c.bf16 %v5209_v16, %v5207_v60  ;;  %v4689_v60 = vsub.s32 6, %v8290_v57 }
0x11a0   : > { %v6983_v52 = vpack.c.bf16 %v5214_v18, %v5212_v5  ;;  %v5243_v5 = vld [vmem:[#allocation20 + $0x7c0] sm:$0xff]  ;;  %v5245_v18 = vld [vmem:[#allocation20 + $0x7d0] sm:$0xff] }
0x11a1   : > { %v7017_v0 = vpack.c.bf16 %v5245_v18, %v5243_v5  ;;  %v4690_v61 = vrot.slane %v8723_v21, %v4689_v60  ;;  %v5260_v21 = vrot.slane %v5251_v37, %v8476_v53 }
0x11a2   : > { %6954 = vmatpush1.bf16.msra.mxu1 %v6953_v39  ;;  %v5218_v39 = vld [vmem:[#allocation20 + $0x6f8] sm:$0xff] }
0x11a3   : > { %6956 = vmatprep.subr.bf16.mxu1 %v6955_v27  ;;  %v6987_v27 = vpack.c.bf16 %v5218_v39, %v5216_v51  ;;  %v5247_v39 = vld [vmem:[#allocation20 + $0x7e0] sm:$0xff]  ;;  %v4983_v23 = vadd.f32 %v8739_v42, %v4690_v61 }
0x11a5   : > { %v4993_v57 = vmax.f32 %v4983_v23, 0.0 }
0x11a6   : > { %6958 = vmatpush1.bf16.msra.mxu1 %v6957_v33  ;;  %v6991_v33 = vpack.c.bf16 %v5222_v25, %v5220_v2  ;;  %v5256_v2 = vrot.slane %v5251_v37, %v8473_v48 }
0x11a7   : > { %6960 = vmatprep.subr.bf16.mxu1 %v6959_v45  ;;  %v5221_v45 = vld [vmem:[#allocation20 + $0x710] sm:$0xff] }
0x11a8   : > { %v6993_v49 = vpack.c.bf16 %v5221_v45, %v5219_v43 }
0x11a9   : > { %5470 = vmatmul.mubr.f32.vlgmr.msra.gmra.mrb[24].mxu1 %v4991_v58  ;;  %v5228_v58 = vld [vmem:[#allocation20 + $0x748] sm:$0xff] }
0x11aa   : > { %6962 = vmatpush1.bf16.msra.mxu1 %v6961_v54  ;;  %5540 = vmatprep.mubr.f32.mxu1 %v4994_v38  ;;  %v5225_v54 = vld [vmem:[#allocation20 + $0x730] sm:$0xff]  ;;  %v5227_v38 = vld [vmem:[#allocation20 + $0x740] sm:$0xff] }
0x11ab   : > { %6964 = vmatprep.subr.bf16.mxu1 %v6963_v26  ;;  %v5230_v26 = vld [vmem:[#allocation20 + $0x758] sm:$0xff]  ;;  %v6997_v62 = vpack.c.bf16 %v5225_v54, %v5223_v55 }
0x11ac   : > { %v6999_v29 = vpack.c.bf16 %v5230_v26, %v5228_v58 }
0x11ae   : > { %6966 = vmatpush1.bf16.msra.mxu1 %v6965_v20  ;;  %v5234_v20 = vld [vmem:[#allocation20 + $0x778] sm:$0xff] }
0x11af   : > { %6968 = vmatprep.subr.bf16.mxu1 %v6967_v35  ;;  %v7001_v35 = vpack.c.bf16 %v5229_v30, %v5227_v38  ;;  %v7003_v63 = vpack.c.bf16 %v5234_v20, %v5232_v34 }
0x11b2   : > { %6970 = vmatpush1.bf16.msra.mxu1 %v6969_v36  ;;  %v5238_v36 = vld [vmem:[#allocation20 + $0x798] sm:$0xff] }
0x11b3   : > { %6972 = vmatprep.subr.bf16.mxu1 %v6971_v10  ;;  %v7005_v10 = vpack.c.bf16 %v5233_v31, %v5231_v1  ;;  %v7007_v3 = vpack.c.bf16 %v5238_v36, %v5236_v32 }
0x11b6   : > { %6974 = vmatpush1.bf16.msra.mxu1 %v6973_v8  ;;  %v5242_v8 = vld [vmem:[#allocation20 + $0x7b8] sm:$0xff] }
0x11b7   : > { %6976 = vmatprep.subr.bf16.mxu1 %v6975_v11  ;;  %v7009_v11 = vpack.c.bf16 %v5237_v44, %v5235_v7  ;;  %v7011_v12 = vpack.c.bf16 %v5242_v8, %v5240_v4 }
0x11ba   : > { %6978 = vmatpush1.bf16.msra.mxu1 %v6977_v9  ;;  %v5246_v9 = vld [vmem:[#allocation20 + $0x7d8] sm:$0xff] }
0x11bb   : > { %6980 = vmatprep.subr.bf16.mxu1 %v6979_v15  ;;  %v7013_v15 = vpack.c.bf16 %v5241_v41, %v5239_v13  ;;  %v7015_v16 = vpack.c.bf16 %v5246_v9, %v5244_v14 }
0x11be   : > { %6982 = vmatpush1.bf16.msra.mxu1 %v6981_v6  ;;  %v5248_v6 = vld [vmem:[#allocation20 + $0x7e8] sm:$0xff] }
0x11bf   : > { %6984 = vmatprep.subr.bf16.mxu1 %v6983_v52  ;;  %v5250_v52 = vld [vmem:[#allocation20 + $0x7f8] sm:$0xff] }
0x11c0   : > { %v7019_v51 = vpack.c.bf16 %v5250_v52, %v5248_v6 }
0x11c2   : > { %6986 = vmatpush1.bf16.msra.mxu1 %v6985_v22  ;;  %v5249_v22 = vld [vmem:[#allocation20 + $0x7f0] sm:$0xff] }
0x11c3   : > { %6988 = vmatprep.subr.bf16.mxu1 %v6987_v27  ;;  %v7021_v27 = vpack.c.bf16 %v5249_v22, %v5247_v39 }
0x11c6   : > { %6990 = vmatpush1.bf16.msra.mxu1 %v6989_v28 }
0x11c7   : > { %6992 = vmatprep.subr.bf16.mxu1 %v6991_v33 }
0x11ca   : > { %6994 = vmatpush1.bf16.msra.mxu1 %v6993_v49 }
0x11cb   : > { %6996 = vmatprep.subr.bf16.mxu1 %v6995_v24 }
0x11ce   : > { %6998 = vmatpush1.bf16.msra.mxu1 %v6997_v62 }
0x11cf   : > { %7000 = vmatprep.subr.bf16.mxu1 %v6999_v29 }
0x11d2   : > { %7002 = vmatpush1.bf16.msra.mxu1 %v7001_v35 }
0x11d3   : > { %7004 = vmatprep.subr.bf16.mxu1 %v7003_v63 }
0x11d6   : > { %7006 = vmatpush1.bf16.msra.mxu1 %v7005_v10 }
0x11d7   : > { %7008 = vmatprep.subr.bf16.mxu1 %v7007_v3 }
0x11da   : > { %7010 = vmatpush1.bf16.msra.mxu1 %v7009_v11 }
0x11db   : > { %7012 = vmatprep.subr.bf16.mxu1 %v7011_v12 }
0x11de   : > { %7014 = vmatpush1.bf16.msra.mxu1 %v7013_v15 }
0x11df   : > { %7016 = vmatprep.subr.bf16.mxu1 %v7015_v16 }
0x11e2   : > { %7018 = vmatpush1.bf16.msra.mxu1 %v7017_v0 }
0x11e3   : > { %7020 = vmatprep.subr.bf16.mxu1 %v7019_v51 }
0x11e6   : > { %7022 = vmatpush1.bf16.msra.mxu1 %v7021_v27 }
0x11e9   : > { %5541 = vmatmul.mubr.f32.vlgmr.msra.gmra.mrb[24].mxu1 %v4993_v57 }
0x12bc   : > { %v5542_v25 = vpop.f32.mrb[24].mxu1 }
0x12bd   : > { %v7023_v28 = vadd.f32 %v5542_v25, %v5256_v2  ;;  %v5544_v33 = vpop.f32.mrb[25].mxu1 }
0x12be   : > { %v7024_v43 = vadd.f32 %v5544_v33, %v5260_v21 }
0x12bf   : > { %v5547_v45 = vadd.f32 %v7023_v28, %v8710_v19 }
0x12c0   : > { %v5548_v42 = vadd.f32 %v7024_v43, %v8707_v17 }
0x12c2   : > { %v5549_v46 = vadd.f32 %v5548_v42, %v5547_v45 }
0x12c4   : > { %5550 = vadd.xlane.f32.xlu0 %v5549_v46 }
0x1351   : > { %v5551_v47 = vpop.xlane.xlu0 %5550 }
0x1352   : > { %v5552_v49 = vmul.f32 0.00390625, %v5551_v47 }
0x1354   : > { %v5553_v24 = vsub.f32 %v5547_v45, %v5552_v49  ;;  %v5554_v55 = vsub.f32 %v5548_v42, %v5552_v49 }
0x1356   : > { %v5555_v54 = vmul.f32 %v5553_v24, %v5553_v24  ;;  %v5556_v48 = vmul.f32 %v5554_v55, %v5554_v55 }
0x1358   : > { %v5557_v58 = vadd.f32 %v5556_v48, %v5555_v54 }
0x135a   : > { %5558 = vadd.xlane.f32.xlu0 %v5557_v58 }
0x13e7   : > { %v5559_v53 = vpop.xlane.xlu0 %5558 }
0x13e8   : > { %v5560_v26 = vmul.f32 0.00390625, %v5559_v53 }
0x13ea   : > { %v5561_v62 = vadd.f32 1e-05, %v5560_v26 }
0x13ec   : > { %7257 = vrsqrt.f32 %v5561_v62 }
0x13f6   : > { %v7258_v19 = vpop.eup %7257 }
0x13f7   : > { %v5563_v29 = vmul.f32 %v7258_v19, %v5553_v24  ;;  %v5564_v17 = vmul.f32 %v7258_v19, %v5554_v55 }
0x13f9   : > { %v5565_v38 = vmul.f32 %v5563_v29, %v8485_v50  ;;  %v5566_v30 = vmul.f32 %v5564_v17, %v8488_v56 }
0x13fb   : > { %v5567_v34 = vadd.f32 %v5565_v38, %v8491_v59  ;;  %v5568_v20 = vadd.f32 %v5566_v30, %v8494_v40 }
0x13fd   : > { %5569 = vst [vmem:[%s782_s30] sm:$0xff] %v5567_v34  ;;  %5570 = vst [vmem:[%s782_s30 + $0x8] sm:$0xff] %v5568_v20 }
0x13fe   : > { %7614 = shalt.err (!%p7611_p6)
}
0x13ff   : > { %s7615_s7 = scalar_lea.hbm %s8769_s23, 256  ;;  %s7619_s8 = scalar_lea.hbm %s8909_s4, 512 }
0x1400   : > { %p7616_p13 = scmp.ne.s32.totalorder %s8769_s23, %s7615_s7  ;;  %p7620_p0 = scmp.lt.u32.totalorder %s8769_s23, %s8909_s4 }
0x1401   : > { %p7621_p7 = scmp.lt.u32.totalorder %s7619_s8, %s7615_s7  ;;  %p7623_p2 = scmp.lt.u32.totalorder %s7615_s7, %s8769_s23 }
0x1402   : > { %p7617_p4 = pnand %p7616_p13, %p8910_p10 }
0x1403   : > { %p7622_p11 = por %p7621_p7, %p7620_p0 }
0x1404   : > { %p7618_p9 = pneg %p7617_p4 }
0x1405   : > { %p7624_p1 = por %p7623_p2, %p7622_p11 }
0x1407   : > { %p7625_p5 = pnand %p7624_p1, %p7618_p9 }
0x1409   : > { %7628 = shalt.err (!%p7625_p5)
}
0x140a   : > { %7075 = dma.vmem_to_hbm [thread:$0]  (%p8910_p10), %s8771_s6, 256, %s8769_s23, %s5572_s12  }
0x140b PF: > { %s5600_s30 = sand.u32 1, %s7691_s24   ;;  %p8911_p8 = scmp.ne.s32.totalorder %s8883_s19, 0 }
0x140c   : > { %p8912_p3 = scmp.ge.s32.totalorder %s7711_s29, 2  ;;  %s5601_s27 = scalar_lea.sflag [#allocation4], %s5600_s30 }
0x140e   : > { %p7116_p12 = pnand %p8912_p3, %p8911_p8 }
0x1410   : > { %7686 = dma.done.wait (!%p7116_p12), %s5601_s27, 256  }
0x1411   : > { %7688 = vsyncadd (!%p7116_p12), %s5601_s27, 4294967040  ;;  %s41_s29 = sadd.s32 1, %s7711_s29   ;;  %s8913_s24 = smov %s7695_s25 }
0x1412   : > { %p38_p6 = scmp.ge.s32.totalorder %s41_s29, 4   ;;  %s8914_s25 = smov %s7699_s26 }
0x1413   : > { %s8915_s26 = smov %s8133_s2  ;;  %s8916_s27 = smov %s7707_s28 }
0x1414   : > { %s8917_s28 = smov %s8919_s17  ;;  %40 = sbr.rel (!%p38_p6) target bundleno = 29 (0x1d), region = 190 }
0x141b   :  { %5606 = vsyncpa [#allocation3], 1 }
0x141c   :  { %5608 = vsyncpa [#allocation3 + $0x1], 1 }
0x141d   :  { %5609 = vsyncpa [#allocation6], 1 }
0x141e   :  { %5611 = vsyncpa [#allocation6 + $0x1], 1 }
0x141f   :  { %5612 = vsyncpa [#allocation9], 1 }
0x1420   :  { %5613 = vsyncpa [#allocation12], 1 }
0x1421   :  { %5614 = vsyncpa [#allocation15], 1 }
0x1422   :  { %5615 = vsyncpa [#allocation18], 1 }
0x1423   :  { %5616 = vsyncpa [#allocation21], 1 }
0x1424   :  { %5617 = vsyncpa [#allocation4], 1 }
0x1425   :  { %5619 = vsyncpa [#allocation4 + $0x1], 1 }

// kernel: tpu_custom_call.1
= control target key start
LH: loop header
LB: loop body
LE: loop exit
PB: predicated region body
PF: predicated region fallthrough
CT: control target
= control target key end

     0   :  { %s8818_s0 = inlined_call_operand.hbm [shape: f32[2,8,256], index: 0, kind: input, shape index: {}]   ;;  %s8819_s1 = inlined_call_operand.hbm [shape: f32[2,8,256], index: 1, kind: input, shape index: {}]   ;;  %s8820_s2 = inlined_call_operand.vmem [shape: s32[2,8,1], index: 2, kind: input, shape index: {}]   ;;  %s8821_s3 = inlined_call_operand.hbm [shape: f32[256,256], index: 3, kind: input, shape index: {}]   ;;  %s8822_s4 = inlined_call_operand.hbm [shape: f32[256,256], index: 4, kind: input, shape index: {}]   ;;  %s8823_s5 = inlined_call_operand.hbm [shape: f32[256,256], index: 5, kind: input, shape index: {}]   ;;  %s8824_s6 = inlined_call_operand.hbm [shape: f32[256,256], index: 6, kind: input, shape index: {}]   ;;  %s8825_s7 = inlined_call_operand.hbm [shape: f32[256,256], index: 7, kind: input, shape index: {}]   ;;  %s8826_s8 = inlined_call_operand.hbm [shape: f32[256,256], index: 8, kind: input, shape index: {}]   ;;  %s8827_s9 = inlined_call_operand.hbm [shape: f32[256,256], index: 9, kind: input, shape index: {}]   ;;  %s8828_s10 = inlined_call_operand.hbm [shape: f32[256,256], index: 10, kind: input, shape index: {}]   ;;  %s8829_s11 = inlined_call_operand.vmem [shape: f32[1,256], index: 11, kind: input, shape index: {}]   ;;  %s8830_s12 = inlined_call_operand.vmem [shape: f32[1,256], index: 12, kind: input, shape index: {}]   ;;  %s8831_s13 = inlined_call_operand.hbm [shape: f32[256,1024], index: 13, kind: input, shape index: {}]   ;;  %s8832_s14 = inlined_call_operand.vmem [shape: f32[1,1024], index: 14, kind: input, shape index: {}]   ;;  %s8833_s15 = inlined_call_operand.hbm [shape: f32[1024,256], index: 15, kind: input, shape index: {}]   ;;  %s8834_s16 = inlined_call_operand.vmem [shape: f32[1,256], index: 16, kind: input, shape index: {}]   ;;  %s8835_s17 = inlined_call_operand.hbm [shape: f32[2,8,256], index: 17, kind: output, shape index: {}]  }
   0x1   :  { %8849 = sst [smem:[#allocation35_spill]] %s8818_s0 }
   0x2   :  { %8850 = sst [smem:[#allocation36_spill]] %s8819_s1 }
   0x3   :  { %8851 = sst [smem:[#allocation37_spill]] %s8820_s2 }
   0x4   :  { %8852 = sst [smem:[#allocation38_spill]] %s8821_s3 }
   0x5   :  { %8853 = sst [smem:[#allocation39_spill]] %s8822_s4 }
   0x6   :  { %8854 = sst [smem:[#allocation40_spill]] %s8823_s5 }
   0x7   :  { %8855 = sst [smem:[#allocation41_spill]] %s8824_s6 }
   0x8   :  { %8856 = sst [smem:[#allocation42_spill]] %s8825_s7 }
   0x9   :  { %8857 = sst [smem:[#allocation43_spill]] %s8826_s8 }
   0xa   :  { %8858 = sst [smem:[#allocation44_spill]] %s8827_s9 }
   0xb   :  { %8859 = sst [smem:[#allocation45_spill]] %s8829_s11 }
   0xc   :  { %8860 = sst [smem:[#allocation46_spill]] %s8830_s12 }
   0xd   :  { %8861 = sst [smem:[#allocation47_spill]] %s8832_s14 }
   0xe   :  { %8862 = sst [smem:[#allocation48_spill]] %s8834_s16 }
   0xf   :  { %8863 = sst [smem:[#allocation49_spill]] %s8835_s17 }
  0x10   :  { %22 = vsyncpa [#allocation3], 0 }
  0x11   :  { %24 = vsyncpa [#allocation3 + $0x1], 0 }
  0x12   :  { %25 = vsyncpa [#allocation6], 0 }
  0x13   :  { %27 = vsyncpa [#allocation6 + $0x1], 0 }
  0x14   :  { %28 = vsyncpa [#allocation9], 0 }
  0x15   :  { %29 = vsyncpa [#allocation12], 0 }
  0x16   :  { %30 = vsyncpa [#allocation15], 0 }
  0x17   :  { %31 = vsyncpa [#allocation18], 0 }
  0x18   :  { %32 = vsyncpa [#allocation21], 0 }
  0x19   :  { %33 = vsyncpa [#allocation4], 0 }
  0x1a   :  { %35 = vsyncpa [#allocation4 + $0x1], 0  ;;  %s7826_s24 = smov 0   ;;  %s7828_s25 = smov 0  }
  0x1b   :  { %s7830_s26 = smov 0   ;;  %s7832_s27 = smov 0  }
  0x1c   :  { %s7834_s28 = smov 0   ;;  %s7836_s29 = smov 0  }
  0x1d LB: > { %8864 = sst [smem:[#allocation32_spill]] %s7703_s27  ;;  %s7857_s0 = sadd.s32 4294967295, %s7711_s29   ;;  %s7711_s29 = sphi %s7836_s29, %s41_s29   ;;  %s7707_s28 = sphi %s7834_s28, %s8917_s28   ;;  %s7703_s27 = sphi %s7832_s27, %s8916_s27   ;;  %s7699_s26 = sphi %s7830_s26, %s8915_s26   ;;  %s7695_s25 = sphi %s7828_s25, %s8914_s25   ;;  %s7691_s24 = sphi %s7826_s24, %s8913_s24  }
  0x1e   : > { %8865 = sst [smem:[#allocation33_spill]] %s7857_s0  ;;  %p5806_p0 = scmp.ge.s32.totalorder %s7711_s29, 1 }
  0x1f   : > { %p8844_p1 = scmp.eq.s32.totalorder %s7857_s0, 0  ;;  %p460_p2 = scmp.lt.s32.totalorder %s7711_s29, 3 }
  0x20   : > { %s7713_s18 = smov [#allocation7]   ;;  %s7714_s20 = smov [#allocation8]  }
  0x21   : > { %p7862_p3 = pnand %p5806_p0, %p460_p2  ;;  %s472_s19 = sshll.u32 %s7713_s18, 4  ;;  %s7866_s19 = int_to_ptr.vmem [resolvable:$true] %s472_s19 }
  0x22   : > { %s485_s21 = sshll.u32 %s7714_s20, 4  ;;  %s7715_s22 = smov [#allocation11]   ;;  %s7877_s21 = int_to_ptr.vmem [resolvable:$true] %s485_s21 }
  0x23   : > { %s8866_s30 = scalar_select %p7862_p3, 1, 0 }
  0x24   : > { %p7077_p4 = pneg %p7862_p3  ;;  %s7879_s23 = sshll.u32 %s7715_s22, 4  ;;  %s512_s23 = int_to_ptr.vmem [resolvable:$true] %s7879_s23 }
  0x25   : > { %8867 = sst [smem:[#allocation34_spill]] %s8866_s30  ;;  %s8869_s3 = sld [smem:[#allocation38_spill]] }
  0x26   : > { %p7873_p6 = pnand %p7077_p4, %p8844_p1 }
  0x28   : > { %p7889_p8 = pneg %p7873_p6 }
  0x2b   : > { %s7261_s16 = scalar_lea.hbm %s8869_s3, 8192 }
  0x2c   : > { %p7262_p7 = scmp.ne.s32.totalorder %s8869_s3, %s7261_s16  ;;  %p7268_p11 = scmp.lt.u32.totalorder %s7261_s16, %s8869_s3 }
  0x2e   : > { %p7264_p9 = pnand %p7889_p8, %p7262_p7 }
  0x30   : > { %p7265_p10 = pneg %p7264_p9 }
  0x32   : > { %p7270_p12 = pnand %p7268_p11, %p7265_p10 }
  0x34   : > { %7273 = shalt.err (!%p7270_p12)
}
  0x35   : > { %s7274_s2 = scalar_lea.vmem %s7866_s19, 8192  ;;  %p7282_p4 = scmp.lt.s32.totalorder %s7866_s19, %s7866_s19 }
  0x36   : > { %p7275_p13 = scmp.ne.s32.totalorder %s7866_s19, %s7274_s2  ;;  %p7283_p5 = scmp.lt.s32.totalorder %s7274_s2, %s7274_s2 }
  0x38   : > { %p7277_p0 = pnand %p7275_p13, %p7889_p8  ;;  %p7284_p7 = por %p7283_p5, %p7282_p4 }
  0x3a   : > { %p7278_p2 = pneg %p7277_p0 }
  0x3c   : > { %p7285_p9 = pnand %p7284_p7, %p7278_p2 }
  0x3e   : > { %7288 = shalt.err (!%p7285_p9)
}
  0x3f   : > { %s8846_s14 = smov 256   ;;  %s7717_s16 = smov 16  }
  0x40   : > { %7080 = dma.hbm_to_vmem [thread:$0]  (!%p7873_p6), %s8869_s3, 8192, %s7866_s19, [#allocation6], %s8846_s14, %s8846_s14, %s7717_s16  }
  0x41   : > { %s8871_s4 = sld [smem:[#allocation39_spill]] }
  0x47   : > { %s7289_s2 = scalar_lea.hbm %s8871_s4, 8192 }
  0x48   : > { %p7290_p5 = scmp.ne.s32.totalorder %s8871_s4, %s7289_s2  ;;  %p7296_p12 = scmp.lt.u32.totalorder %s7289_s2, %s8871_s4 }
  0x4a   : > { %p7292_p10 = pnand %p7290_p5, %p7889_p8 }
  0x4c   : > { %p7293_p11 = pneg %p7292_p10 }
  0x4e   : > { %p7298_p13 = pnand %p7296_p12, %p7293_p11 }
  0x50   : > { %7301 = shalt.err (!%p7298_p13)
}
  0x51   : > { %s7302_s19 = scalar_lea.vmem %s7877_s21, 8192  ;;  %p7310_p7 = scmp.lt.s32.totalorder %s7877_s21, %s7877_s21 }
  0x52   : > { %p7303_p0 = scmp.ne.s32.totalorder %s7877_s21, %s7302_s19  ;;  %p7311_p9 = scmp.lt.s32.totalorder %s7302_s19, %s7302_s19 }
  0x54   : > { %p7305_p2 = pnand %p7303_p0, %p7889_p8  ;;  %p7312_p5 = por %p7311_p9, %p7310_p7 }
  0x56   : > { %p7306_p4 = pneg %p7305_p2 }
  0x58   : > { %p7313_p10 = pnand %p7312_p5, %p7306_p4 }
  0x5a   : > { %7316 = shalt.err (!%p7313_p10)
}
  0x5b   : > { %7083 = dma.hbm_to_vmem [thread:$0]  (!%p7873_p6), %s8871_s4, 8192, %s7877_s21, [#allocation9], %s8846_s14, %s8846_s14, %s7717_s16  }
  0x5c   : > { %s8872_s6 = sld [smem:[#allocation41_spill]] }
  0x62   : > { %s7317_s17 = scalar_lea.hbm %s8872_s6, 8192 }
  0x63   : > { %p7318_p11 = scmp.ne.s32.totalorder %s8872_s6, %s7317_s17  ;;  %p7324_p0 = scmp.lt.u32.totalorder %s7317_s17, %s8872_s6 }
  0x65   : > { %p7320_p12 = pnand %p7318_p11, %p7889_p8 }
  0x67   : > { %p7321_p13 = pneg %p7320_p12 }
  0x69   : > { %p7326_p2 = pnand %p7324_p0, %p7321_p13 }
  0x6b   : > { %7329 = shalt.err (!%p7326_p2)
}
  0x6c   : > { %s7330_s19 = scalar_lea.vmem %s512_s23, 8192  ;;  %p7338_p5 = scmp.lt.s32.totalorder %s512_s23, %s512_s23 }
  0x6d   : > { %p7331_p4 = scmp.ne.s32.totalorder %s512_s23, %s7330_s19  ;;  %p7339_p10 = scmp.lt.s32.totalorder %s7330_s19, %s7330_s19 }
  0x6f   : > { %p7333_p7 = pnand %p7331_p4, %p7889_p8  ;;  %p7340_p1 = por %p7339_p10, %p7338_p5 }
  0x71   : > { %p7334_p9 = pneg %p7333_p7 }
  0x73   : > { %p7341_p3 = pnand %p7340_p1, %p7334_p9 }
  0x75   : > { %7344 = shalt.err (!%p7341_p3)
}
  0x76   : > { %7089 = dma.hbm_to_vmem [thread:$0]  (!%p7873_p6), %s8872_s6, 8192, %s512_s23, [#allocation12], %s8846_s14, %s8846_s14, %s7717_s16  }
  0x77   : > { %s7718_s12 = smov [#allocation14]   ;;  %s7719_s30 = smov [#allocation17]  }
  0x78   : > { %s537_s0 = sshll.u32 %s7718_s12, 4  ;;  %s563_s17 = sshll.u32 %s7719_s30, 4  ;;  %s538_s0 = int_to_ptr.vmem [resolvable:$true] %s537_s0  ;;  %s564_s17 = int_to_ptr.vmem [resolvable:$true] %s563_s17 }
  0x79   : > { %s8873_s8 = sld [smem:[#allocation43_spill]] }
  0x7f   : > { %s7345_s22 = scalar_lea.hbm %s8873_s8, 8192 }
  0x80   : > { %p7346_p1 = scmp.ne.s32.totalorder %s8873_s8, %s7345_s22  ;;  %p7352_p12 = scmp.lt.u32.totalorder %s7345_s22, %s8873_s8 }
  0x82   : > { %p7348_p3 = pnand %p7346_p1, %p7889_p8 }
  0x84   : > { %p7349_p11 = pneg %p7348_p3 }
  0x86   : > { %p7354_p13 = pnand %p7352_p12, %p7349_p11 }
  0x88   : > { %7357 = shalt.err (!%p7354_p13)
}
  0x89   : > { %s7358_s23 = scalar_lea.vmem %s538_s0, 8192  ;;  %p7366_p7 = scmp.lt.s32.totalorder %s538_s0, %s538_s0 }
  0x8a   : > { %p7359_p0 = scmp.ne.s32.totalorder %s538_s0, %s7358_s23  ;;  %p7367_p9 = scmp.lt.s32.totalorder %s7358_s23, %s7358_s23 }
  0x8c   : > { %p7361_p2 = pnand %p7359_p0, %p7889_p8  ;;  %p7368_p5 = por %p7367_p9, %p7366_p7 }
  0x8e   : > { %p7362_p4 = pneg %p7361_p2 }
  0x90   : > { %p7369_p10 = pnand %p7368_p5, %p7362_p4 }
  0x92   : > { %7372 = shalt.err (!%p7369_p10)
}
  0x93   : > { %7095 = dma.hbm_to_vmem [thread:$0]  (!%p7873_p6), %s8873_s8, 8192, %s538_s0, [#allocation15], %s8846_s14, %s8846_s14, %s7717_s16  }
  0x94   : > { %s7373_s18 = scalar_lea.hbm %s8828_s10, 8192 }
  0x95   : > { %p7374_p1 = scmp.ne.s32.totalorder %s8828_s10, %s7373_s18  ;;  %p7380_p12 = scmp.lt.u32.totalorder %s7373_s18, %s8828_s10 }
  0x97   : > { %p7376_p3 = pnand %p7374_p1, %p7889_p8 }
  0x99   : > { %p7377_p11 = pneg %p7376_p3 }
  0x9b   : > { %p7382_p13 = pnand %p7380_p12, %p7377_p11 }
  0x9d   : > { %7385 = shalt.err (!%p7382_p13)
}
  0x9e   : > { %s7386_s21 = scalar_lea.vmem %s564_s17, 8192  ;;  %p7394_p7 = scmp.lt.s32.totalorder %s564_s17, %s564_s17 }
  0x9f   : > { %p7387_p0 = scmp.ne.s32.totalorder %s564_s17, %s7386_s21  ;;  %p7395_p9 = scmp.lt.s32.totalorder %s7386_s21, %s7386_s21 }
  0xa1   : > { %p7389_p2 = pnand %p7387_p0, %p7889_p8  ;;  %p7396_p5 = por %p7395_p9, %p7394_p7 }
  0xa3   : > { %p7390_p4 = pneg %p7389_p2 }
  0xa5   : > { %p7397_p10 = pnand %p7396_p5, %p7390_p4 }
  0xa7   : > { %7400 = shalt.err (!%p7397_p10)
}
  0xa8   : > { %7101 = dma.hbm_to_vmem [thread:$0]  (!%p7873_p6), %s8828_s10, 8192, %s564_s17, [#allocation18], %s8846_s14, %s8846_s14, %s7717_s16  }
  0xa9   : > { %s7720_s3 = smov [#allocation10]   ;;  %s7721_s12 = smov [#allocation13]  }
  0xaa   : > { %s498_s11 = sshll.u32 %s7720_s3, 4  ;;  %s524_s30 = sshll.u32 %s7721_s12, 4  ;;  %s499_s11 = int_to_ptr.vmem [resolvable:$true] %s498_s11  ;;  %s525_s30 = int_to_ptr.vmem [resolvable:$true] %s524_s30 }
  0xab   : > { %s8874_s5 = sld [smem:[#allocation40_spill]] }
  0xb1   : > { %s7401_s22 = scalar_lea.hbm %s8874_s5, 8192 }
  0xb2   : > { %p7402_p1 = scmp.ne.s32.totalorder %s8874_s5, %s7401_s22  ;;  %p7408_p12 = scmp.lt.u32.totalorder %s7401_s22, %s8874_s5 }
  0xb4   : > { %p7404_p3 = pnand %p7402_p1, %p7889_p8 }
  0xb6   : > { %p7405_p11 = pneg %p7404_p3 }
  0xb8   : > { %p7410_p13 = pnand %p7408_p12, %p7405_p11 }
  0xba   : > { %7413 = shalt.err (!%p7410_p13)
}
  0xbb   : > { %s7414_s17 = scalar_lea.vmem %s499_s11, 8192  ;;  %p7422_p7 = scmp.lt.s32.totalorder %s499_s11, %s499_s11 }
  0xbc   : > { %p7415_p0 = scmp.ne.s32.totalorder %s499_s11, %s7414_s17  ;;  %p7423_p9 = scmp.lt.s32.totalorder %s7414_s17, %s7414_s17 }
  0xbe   : > { %p7417_p2 = pnand %p7415_p0, %p7889_p8  ;;  %p7424_p5 = por %p7423_p9, %p7422_p7 }
  0xc0   : > { %p7418_p4 = pneg %p7417_p2 }
  0xc2   : > { %p7425_p10 = pnand %p7424_p5, %p7418_p4 }
  0xc4   : > { %7428 = shalt.err (!%p7425_p10)
}
  0xc5   : > { %7086 = dma.hbm_to_vmem [thread:$0]  (!%p7873_p6), %s8874_s5, 8192, %s499_s11, [#allocation9], %s8846_s14, %s8846_s14, %s7717_s16  }
  0xc6   : > { %s8875_s7 = sld [smem:[#allocation42_spill]] }
  0xcc   : > { %s7429_s20 = scalar_lea.hbm %s8875_s7, 8192 }
  0xcd   : > { %p7430_p1 = scmp.ne.s32.totalorder %s8875_s7, %s7429_s20  ;;  %p7436_p12 = scmp.lt.u32.totalorder %s7429_s20, %s8875_s7 }
  0xcf   : > { %p7432_p3 = pnand %p7430_p1, %p7889_p8 }
  0xd1   : > { %p7433_p11 = pneg %p7432_p3 }
  0xd3   : > { %p7438_p13 = pnand %p7436_p12, %p7433_p11 }
  0xd5   : > { %7441 = shalt.err (!%p7438_p13)
}
  0xd6   : > { %s7442_s0 = scalar_lea.vmem %s525_s30, 8192  ;;  %p7450_p7 = scmp.lt.s32.totalorder %s525_s30, %s525_s30 }
  0xd7   : > { %p7443_p0 = scmp.ne.s32.totalorder %s525_s30, %s7442_s0  ;;  %p7451_p9 = scmp.lt.s32.totalorder %s7442_s0, %s7442_s0 }
  0xd9   : > { %p7445_p2 = pnand %p7443_p0, %p7889_p8  ;;  %p7452_p5 = por %p7451_p9, %p7450_p7 }
  0xdb   : > { %p7446_p4 = pneg %p7445_p2 }
  0xdd   : > { %p7453_p10 = pnand %p7452_p5, %p7446_p4 }
  0xdf   : > { %7456 = shalt.err (!%p7453_p10)
}
  0xe0   : > { %7092 = dma.hbm_to_vmem [thread:$0]  (!%p7873_p6), %s8875_s7, 8192, %s525_s30, [#allocation12], %s8846_s14, %s8846_s14, %s7717_s16  }
  0xe1   : > { %s7722_s23 = smov [#allocation16]   ;;  %s7723_s12 = smov [#allocation19]  }
  0xe2   : > { %s550_s3 = sshll.u32 %s7722_s23, 4  ;;  %s582_s18 = sshll.u32 %s7723_s12, 4  ;;  %s551_s3 = int_to_ptr.vmem [resolvable:$true] %s550_s3  ;;  %s583_s18 = int_to_ptr.vmem [resolvable:$true] %s582_s18 }
  0xe3   : > { %s8876_s9 = sld [smem:[#allocation44_spill]] }
  0xe9   : > { %s7457_s2 = scalar_lea.hbm %s8876_s9, 8192 }
  0xea   : > { %p7458_p1 = scmp.ne.s32.totalorder %s8876_s9, %s7457_s2  ;;  %p7464_p12 = scmp.lt.u32.totalorder %s7457_s2, %s8876_s9 }
  0xec   : > { %p7460_p3 = pnand %p7458_p1, %p7889_p8 }
  0xee   : > { %p7461_p11 = pneg %p7460_p3 }
  0xf0   : > { %p7466_p13 = pnand %p7464_p12, %p7461_p11 }
  0xf2   : > { %7469 = shalt.err (!%p7466_p13)
}
  0xf3   : > { %s7470_s30 = scalar_lea.vmem %s551_s3, 8192  ;;  %p7478_p7 = scmp.lt.s32.totalorder %s551_s3, %s551_s3 }
  0xf4   : > { %p7471_p0 = scmp.ne.s32.totalorder %s551_s3, %s7470_s30  ;;  %p7479_p9 = scmp.lt.s32.totalorder %s7470_s30, %s7470_s30 }
  0xf6   : > { %p7473_p2 = pnand %p7471_p0, %p7889_p8  ;;  %p7480_p5 = por %p7479_p9, %p7478_p7 }
  0xf8   : > { %p7474_p4 = pneg %p7473_p2 }
  0xfa   : > { %p7481_p10 = pnand %p7480_p5, %p7474_p4 }
  0xfc   : > { %7484 = shalt.err (!%p7481_p10)
}
  0xfd   : > { %7098 = dma.hbm_to_vmem [thread:$0]  (!%p7873_p6), %s8876_s9, 8192, %s551_s3, [#allocation15], %s8846_s14, %s8846_s14, %s7717_s16  }
  0xfe   : > { %s7485_s22 = scalar_lea.hbm %s8831_s13, 32768 }
  0xff   : > { %p7486_p1 = scmp.ne.s32.totalorder %s8831_s13, %s7485_s22  ;;  %p7492_p12 = scmp.lt.u32.totalorder %s7485_s22, %s8831_s13 }
 0x101   : > { %p7488_p3 = pnand %p7486_p1, %p7889_p8 }
 0x103   : > { %p7489_p11 = pneg %p7488_p3 }
 0x105   : > { %p7494_p13 = pnand %p7492_p12, %p7489_p11 }
 0x107   : > { %7497 = shalt.err (!%p7494_p13)
}
 0x108   : > { %s7498_s11 = scalar_lea.vmem %s583_s18, 32768  ;;  %p7506_p7 = scmp.lt.s32.totalorder %s583_s18, %s583_s18 }
 0x109   : > { %p7499_p0 = scmp.ne.s32.totalorder %s583_s18, %s7498_s11  ;;  %p7507_p9 = scmp.lt.s32.totalorder %s7498_s11, %s7498_s11 }
 0x10b   : > { %p7501_p2 = pnand %p7499_p0, %p7889_p8  ;;  %p7508_p5 = por %p7507_p9, %p7506_p7 }
 0x10d   : > { %p7502_p4 = pneg %p7501_p2 }
 0x10f   : > { %p7509_p10 = pnand %p7508_p5, %p7502_p4 }
 0x111   : > { %7512 = shalt.err (!%p7509_p10)
}
 0x112   : > { %s7724_s3 = smov 1024   ;;  %s7725_s30 = smov 64  }
 0x113   : > { %7104 = dma.hbm_to_vmem [thread:$0]  (!%p7873_p6), %s8831_s13, 32768, %s583_s18, [#allocation18], %s7724_s3, %s7724_s3, %s7725_s30  }
 0x114   : > { %s7726_s12 = smov [#allocation20]   ;;  %s7513_s19 = scalar_lea.hbm %s8833_s15, 32768 }
 0x115   : > { %s598_s20 = sshll.u32 %s7726_s12, 4  ;;  %p7514_p1 = scmp.ne.s32.totalorder %s8833_s15, %s7513_s19  ;;  %s599_s20 = int_to_ptr.vmem [resolvable:$true] %s598_s20 }
 0x116   : > { %p7520_p12 = scmp.lt.u32.totalorder %s7513_s19, %s8833_s15 }
 0x117   : > { %p7516_p3 = pnand %p7514_p1, %p7889_p8 }
 0x119   : > { %p7517_p11 = pneg %p7516_p3 }
 0x11b   : > { %p7522_p13 = pnand %p7520_p12, %p7517_p11 }
 0x11d   : > { %7525 = shalt.err (!%p7522_p13)
}
 0x11e   : > { %s7526_s18 = scalar_lea.vmem %s599_s20, 32768  ;;  %p7534_p7 = scmp.lt.s32.totalorder %s599_s20, %s599_s20 }
 0x11f   : > { %p7527_p0 = scmp.ne.s32.totalorder %s599_s20, %s7526_s18  ;;  %p7535_p9 = scmp.lt.s32.totalorder %s7526_s18, %s7526_s18 }
 0x121   : > { %p7529_p2 = pnand %p7527_p0, %p7889_p8  ;;  %p7536_p5 = por %p7535_p9, %p7534_p7 }
 0x123   : > { %p7530_p4 = pneg %p7529_p2 }
 0x125   : > { %p7537_p10 = pnand %p7536_p5, %p7530_p4 }
 0x127   : > { %7540 = shalt.err (!%p7537_p10)
}
 0x128   : > { %s8877_s3 = smov 256   ;;  %s8878_s27 = sld [smem:[#allocation33_spill]] }
 0x129   : > { %7107 = dma.hbm_to_vmem [thread:$0]  (!%p7873_p6), %s8833_s15, 32768, %s599_s20, [#allocation21], %s8877_s3, %s8877_s3, %s7717_s16  }
 0x12a   : > { %s5805_s1 = sadd.s32 4294967294, %s7711_s29   ;;  %s53_s17 = sadd.s32 1, %s7707_s28 }
 0x12b   : > { %p55_p8 = scmp.ge.s32.totalorder %s53_s17, 2  ;;  %s60_s23 = sadd.s32 1, %s7699_s26 }
 0x12c   : > { %p67_p1 = scmp.ne.s32.totalorder %s7699_s26, %s7695_s25  ;;  %p68_p3 = scmp.eq.s32.totalorder %s7711_s29, 0 }
 0x12d   : > { %s8919_s17 = smov (%p55_p8, %s53_s17), 0  ;;  %p73_p12 = scmp.ne.s32.totalorder %s7695_s25, %s7691_s24 }
 0x12e   : > { %p8113_p11 = por %p68_p3, %p67_p1  ;;  %s57_s16 = ssub.s32 %s7707_s28, %s8919_s17 }
 0x12f   : > { %p447_p6 = scmp.eq.s32.totalorder %s8878_s27, 1  ;;  %p58_p13 = scmp.eq.s32.totalorder %s57_s16, 0 }
 0x130   : > { %p8880_p0 = scmp.eq.s32.totalorder %s8878_s27, 0  ;;  %p453_p7 = scmp.eq.s32.totalorder %s5805_s1, 1 }
 0x131   : > { %p8128_p4 = por %p447_p6, %p67_p1  ;;  %p7129_p5 = scmp.lt.s32.totalorder %s7711_s29, 2 }
 0x132   : > { %p8124_p2 = por %p8880_p0, %p73_p12  ;;  %p8135_p9 = por %p453_p7, %p73_p12 }
 0x133   : > { %s8882_s22 = scalar_select %p8128_p4, 1, 0 }
 0x134   : > { %s8881_s20 = scalar_select %p8124_p2, 1, 0 }
 0x135   : > { %s8133_s2 = scalar_select %p58_p13, %s7699_s26, %s60_s23  }
 0x136   : > { %s8883_s19 = scalar_select %p8135_p9, 1, 0 }
 0x137   : > { %s615_s21 = sand.u32 1, %s7699_s26   ;;  %s5884_s0 = sshll.u32 %s7707_s28, 8 }
 0x138   : > { %s8142_s11 = sshll.u32 %s615_s21, 4  ;;  %s8884_s14 = sld [smem:[#allocation35_spill]] }
 0x139   : > { %s619_s27 = scalar_lea.vmem [#allocation2], %s8142_s11  ;;  %p8152_p10 = pnand %p7129_p5, %p8113_p11 }
 0x13a   : > { %s627_s1 = sshll.u32 %s619_s27, 4  ;;  %s8886_s3 = sld [smem:[#allocation36_spill]]  ;;  %s8156_s1 = int_to_ptr.vmem [resolvable:$true] %s627_s1 }
 0x13b   : > { %s616_s5 = scalar_lea.sflag [#allocation3], %s615_s21  ;;  %p7543_p1 = pneg %p8152_p10 }
 0x13e   : > { %s8147_s30 = scalar_lea.hbm %s8884_s14, %s5884_s0  ;;  %s7546_s7 = scalar_lea.hbm %s8884_s14, 512 }
 0x13f   : > { %s7541_s6 = scalar_lea.hbm %s8147_s30, 256  ;;  %p7547_p12 = scmp.lt.u32.totalorder %s8147_s30, %s8884_s14 }
 0x140   : > { %s8161_s4 = scalar_lea.hbm %s8886_s3, %s5884_s0  ;;  %p7542_p8 = scmp.ne.s32.totalorder %s8147_s30, %s7541_s6 }
 0x141   : > { %p7548_p6 = scmp.lt.u32.totalorder %s7546_s7, %s7541_s6  ;;  %p7550_p0 = scmp.lt.u32.totalorder %s7541_s6, %s8147_s30 }
 0x142   : > { %p7544_p3 = pnand %p7543_p1, %p7542_p8 }
 0x143   : > { %p7549_p13 = por %p7548_p6, %p7547_p12 }
 0x144   : > { %p7545_p11 = pneg %p7544_p3 }
 0x145   : > { %p7551_p7 = por %p7550_p0, %p7549_p13 }
 0x147   : > { %p7552_p5 = pnand %p7551_p7, %p7545_p11 }
 0x149   : > { %7555 = shalt.err (!%p7552_p5)
}
 0x14a   : > { %s7556_s21 = scalar_lea.vmem %s8156_s1, 256  ;;  %s7727_s0 = smov [#allocation2]  }
 0x14b   : > { %p7557_p8 = scmp.ne.s32.totalorder %s8156_s1, %s7556_s21  ;;  %s7561_s16 = sshll.u32 %s7727_s0, 4  ;;  %s7562_s16 = int_to_ptr.vmem [resolvable:$false] %s7561_s16 }
 0x14c   : > { %s7563_s8 = scalar_lea.vmem %s7562_s16, 512  ;;  %p7564_p4 = scmp.lt.s32.totalorder %s8156_s1, %s7562_s16 }
 0x14d   : > { %p7559_p3 = pnand %p7557_p8, %p7543_p1  ;;  %p7565_p12 = scmp.lt.s32.totalorder %s7563_s8, %s7556_s21 }
 0x14f   : > { %p7560_p9 = pneg %p7559_p3  ;;  %p7566_p6 = por %p7565_p12, %p7564_p4 }
 0x151   : > { %p7567_p13 = pnand %p7566_p6, %p7560_p9 }
 0x153   : > { %7570 = shalt.err (!%p7567_p13)
}
 0x154   : > { %7111 = dma.hbm_to_vmem [thread:$0]  (!%p8152_p10), %s8147_s30, 256, %s8156_s1, %s616_s5  }
 0x155   : > { %s634_s6 = sand.u32 1, %s7711_s29   ;;  %s638_s7 = scalar_lea.vmem [#allocation5], %s8142_s11 }
 0x156   : > { %s646_s9 = sshll.u32 %s638_s7, 4  ;;  %s635_s18 = scalar_lea.sflag [#allocation6], %s634_s6  ;;  %s647_s9 = int_to_ptr.vmem [resolvable:$true] %s646_s9 }
 0x157   : > { %s7571_s12 = scalar_lea.hbm %s8161_s4, 256  ;;  %s7576_s0 = scalar_lea.hbm %s8886_s3, 512 }
 0x158   : > { %p7572_p4 = scmp.ne.s32.totalorder %s8161_s4, %s7571_s12  ;;  %p7577_p0 = scmp.lt.u32.totalorder %s8161_s4, %s8886_s3 }
 0x159   : > { %p7578_p7 = scmp.lt.u32.totalorder %s7576_s0, %s7571_s12  ;;  %p7580_p8 = scmp.lt.u32.totalorder %s7571_s12, %s8161_s4 }
 0x15a   : > { %p7574_p9 = pnand %p7572_p4, %p7543_p1 }
 0x15b   : > { %p7579_p5 = por %p7578_p7, %p7577_p0 }
 0x15c   : > { %p7575_p11 = pneg %p7574_p9 }
 0x15d   : > { %p7581_p3 = por %p7580_p8, %p7579_p5 }
 0x15f   : > { %p7582_p12 = pnand %p7581_p3, %p7575_p11 }
 0x161   : > { %7585 = shalt.err (!%p7582_p12)
}
 0x162   : > { %s7586_s5 = scalar_lea.vmem %s647_s9, 256  ;;  %s7728_s11 = smov [#allocation5]  }
 0x163   : > { %p7587_p6 = scmp.ne.s32.totalorder %s647_s9, %s7586_s5  ;;  %s7591_s30 = sshll.u32 %s7728_s11, 4  ;;  %s7592_s30 = int_to_ptr.vmem [resolvable:$false] %s7591_s30 }
 0x164   : > { %s7593_s1 = scalar_lea.vmem %s7592_s30, 512  ;;  %p7594_p9 = scmp.lt.s32.totalorder %s647_s9, %s7592_s30 }
 0x165   : > { %p7589_p13 = pnand %p7587_p6, %p7543_p1  ;;  %p7595_p2 = scmp.lt.s32.totalorder %s7593_s1, %s7586_s5 }
 0x167   : > { %p7590_p4 = pneg %p7589_p13  ;;  %p7596_p0 = por %p7595_p2, %p7594_p9 }
 0x169   : > { %p7597_p7 = pnand %p7596_p0, %p7590_p4 }
 0x16b   : > { %7600 = shalt.err (!%p7597_p7)
}
 0x16c   : > { %7114 = dma.hbm_to_vmem [thread:$0]  (!%p8152_p10), %s8161_s4, 256, %s647_s9, %s635_s18  }
 0x16d   : > { %s8887_s6 = sld [smem:[#allocation34_spill]] }
 0x173   : > { %p8888_p11 = scmp.ne.s32.totalorder %s8887_s6, 0 }
 0x174   : > { %s8212_s7 = sand.u32 (!%p8888_p11), 1, %s7695_s25   ;;  %p8889_p2 = scmp.ne.s32.totalorder (!%p8888_p11), %s8881_s20, 0 }
 0x175   : > { %665 = sbr.rel (%p8888_p11) target bundleno = 5131 (0x140b), region = 88  ;;  %s8215_s12 = sshll.u32 (!%p8888_p11), %s8212_s7, 4 }
 0x176   : > { %s668_s27 = scalar_lea.sflag (!%p8888_p11), [#allocation3], %s8212_s7  ;;  %s8219_s21 = scalar_lea.vmem (!%p8888_p11), [#allocation2], %s8215_s12 }
 0x17c   : > { %7654 = dma.done.wait (%p8889_p2), %s668_s27, 256  }
 0x17d   : > { %7656 = vsyncadd (%p8889_p2), %s668_s27, 4294967040  ;;  %s8890_s4 = sld [smem:[#allocation33_spill]]  ;;  %s680_s18 = scalar_lea.vmem [#allocation5], %s8215_s12 }
 0x183   : > { %s676_s23 = sand.u32 1, %s8890_s4  }
 0x184   : > { %s677_s9 = scalar_lea.sflag [#allocation6], %s676_s23 }
 0x185   : > { %7658 = dma.done.wait (%p8889_p2), %s677_s9, 256  }
 0x186   : > { %7660 = vsyncadd (%p8889_p2), %s677_s9, 4294967040  ;;  %p8891_p10 = scmp.eq.s32.totalorder %s8890_s4, 0 }
 0x188   : > { %7662 = dma.done.wait (%p8891_p10), [#allocation6], 8192   ;;  %p8892_p1 = pmov %p8891_p10 }
 0x18a   : > { %7664 = vsyncadd (%p8892_p1), [#allocation6], 4294959104  ;;  %p8893_p5 = pmov %p8892_p1 }
 0x18b   : > { %p8894_p8 = pmov %p8892_p1 }
 0x18c   : > { %7666 = dma.done.wait (%p8893_p5), [#allocation9], 16384  }
 0x18d   : > { %7668 = vsyncadd (%p8894_p8), [#allocation9], 4294950912  ;;  %p8895_p3 = pmov %p8892_p1 }
 0x18e   : > { %p8896_p12 = pmov %p8892_p1 }
 0x18f   : > { %7670 = dma.done.wait (%p8895_p3), [#allocation12], 16384  }
 0x190   : > { %7672 = vsyncadd (%p8896_p12), [#allocation12], 4294950912  ;;  %p8897_p6 = pmov %p8892_p1 }
 0x191   : > { %p8898_p13 = pmov %p8892_p1 }
 0x192   : > { %7674 = dma.done.wait (%p8897_p6), [#allocation15], 16384  }
 0x193   : > { %7676 = vsyncadd (%p8898_p13), [#allocation15], 4294950912  ;;  %p8899_p4 = pmov %p8892_p1 }
 0x194   : > { %p8900_p9 = pmov %p8892_p1 }
 0x195   : > { %7678 = dma.done.wait (%p8899_p4), [#allocation18], 40960  }
 0x196   : > { %7680 = vsyncadd (%p8900_p9), [#allocation18], 4294926336  ;;  %p8901_p0 = pmov %p8892_p1 }
 0x198   : > { %7682 = dma.done.wait (%p8901_p0), [#allocation21], 32768   ;;  %p8902_p7 = pmov %p8901_p0 }
 0x199   : > { %v816_v0 = vld [vmem:[#allocation7 + $0x8] sm:$0xff]  ;;  %v818_v1 = vld [vmem:[#allocation7 + $0x18] sm:$0xff]  ;;  %v815_v2 = vld [vmem:[#allocation7] sm:$0xff]  ;;  %s7729_s20 = smov 64   ;;  %vm7731_vm0 = vmmov 0   ;;  %vm1652_vm1 = vcmask 523264  }
 0x19a   : > { %7684 = vsyncadd (%p8902_p7), [#allocation21], 4294934528  ;;  %v5999_v3 = vpack.c.bf16 %v818_v1, %v816_v0  ;;  %v817_v4 = vld [vmem:[#allocation7 + $0x10] sm:$0xff]  ;;  %v820_v5 = vld [vmem:[#allocation7 + $0x28] sm:$0xff]  ;;  %vm1957_vm3 = vcmask 64512   ;;  %s8903_s8 = sld [smem:[#allocation45_spill]] }
 0x19b   : > { %v822_v6 = vld [vmem:[#allocation7 + $0x38] sm:$0xff]  ;;  %v6001_v7 = vpack.c.bf16 %v817_v4, %v815_v2  ;;  %v819_v9 = vld [vmem:[#allocation7 + $0x20] sm:$0xff]  ;;  %v821_v10 = vld [vmem:[#allocation7 + $0x30] sm:$0xff]  ;;  %s8904_s30 = sld [smem:[#allocation46_spill]]  ;;  %s8905_s1 = sld [smem:[#allocation32_spill]] }
 0x19c   : > { %v6003_v8 = vpack.c.bf16 %v822_v6, %v820_v5  ;;  %v824_v11 = vld [vmem:[#allocation7 + $0x48] sm:$0xff]  ;;  %6000 = vmatprep.subr.bf16.mxu0 %v5999_v3  ;;  %v826_v12 = vld [vmem:[#allocation7 + $0x58] sm:$0xff]  ;;  %v6005_v13 = vpack.c.bf16 %v821_v10, %v819_v9  ;;  %v823_v15 = vld [vmem:[#allocation7 + $0x40] sm:$0xff]  ;;  %s8906_s23 = sld [smem:[#allocation37_spill]]  ;;  %s8907_s0 = sld [smem:[#allocation47_spill]] }
 0x19d   : > { %6002 = vmatpush1.bf16.msra.mxu0 %v6001_v7  ;;  %v6007_v14 = vpack.c.bf16 %v826_v12, %v824_v11  ;;  %v825_v16 = vld [vmem:[#allocation7 + $0x50] sm:$0xff]  ;;  %v828_v17 = vld [vmem:[#allocation7 + $0x68] sm:$0xff]  ;;  %v830_v18 = vld [vmem:[#allocation7 + $0x78] sm:$0xff]  ;;  %s8908_s5 = sld [smem:[#allocation48_spill]]  ;;  %s8909_s4 = sld [smem:[#allocation49_spill]] }
 0x19e   : > { %6004 = vmatprep.subr.bf16.mxu0 %v6003_v8  ;;  %v6009_v19 = vpack.c.bf16 %v825_v16, %v823_v15  ;;  %v6011_v20 = vpack.c.bf16 %v830_v18, %v828_v17  ;;  %v827_v21 = vld [vmem:[#allocation7 + $0x60] sm:$0xff]  ;;  %v829_v22 = vld [vmem:[#allocation7 + $0x70] sm:$0xff]  ;;  %v832_v23 = vld [vmem:[#allocation7 + $0x88] sm:$0xff]  ;;  %p8910_p10 = scmp.ne.s32.totalorder %s8882_s22, 0 }
 0x19f   : > { %v834_v24 = vld [vmem:[#allocation7 + $0x98] sm:$0xff]  ;;  %v6013_v25 = vpack.c.bf16 %v829_v22, %v827_v21  ;;  %v831_v27 = vld [vmem:[#allocation7 + $0x80] sm:$0xff]  ;;  %v833_v28 = vld [vmem:[#allocation7 + $0x90] sm:$0xff] }
 0x1a0   : > { %v6015_v26 = vpack.c.bf16 %v834_v24, %v832_v23  ;;  %v836_v29 = vld [vmem:[#allocation7 + $0xa8] sm:$0xff]  ;;  %v838_v30 = vld [vmem:[#allocation7 + $0xb8] sm:$0xff]  ;;  %v6017_v31 = vpack.c.bf16 %v833_v28, %v831_v27  ;;  %v835_v33 = vld [vmem:[#allocation7 + $0xa0] sm:$0xff] }
 0x1a1   : > { %6006 = vmatpush1.bf16.msra.mxu0 %v6005_v13  ;;  %v6019_v32 = vpack.c.bf16 %v838_v30, %v836_v29  ;;  %v837_v34 = vld [vmem:[#allocation7 + $0xb0] sm:$0xff]  ;;  %v840_v35 = vld [vmem:[#allocation7 + $0xc8] sm:$0xff]  ;;  %v842_v36 = vld [vmem:[#allocation7 + $0xd8] sm:$0xff]  ;;  %p783_p11 = scmp.lt.s32.totalorder %s8905_s1, 1  ;;  %s5886_s11 = sshll.u32 %s8905_s1, 8 }
 0x1a2   : > { %6008 = vmatprep.subr.bf16.mxu0 %v6007_v14  ;;  %v6021_v37 = vpack.c.bf16 %v837_v34, %v835_v33  ;;  %v6023_v38 = vpack.c.bf16 %v842_v36, %v840_v35  ;;  %v839_v39 = vld [vmem:[#allocation7 + $0xc0] sm:$0xff]  ;;  %v841_v40 = vld [vmem:[#allocation7 + $0xd0] sm:$0xff]  ;;  %v8256_v41 = vld [vmem:[%s8219_s21 + $0x8] sm:$0xff] }
 0x1a3   : > { %v844_v42 = vld [vmem:[#allocation7 + $0xe8] sm:$0xff]  ;;  %v846_v43 = vld [vmem:[#allocation7 + $0xf8] sm:$0xff]  ;;  %943 = vmatprep.mubr.f32.mxu0 %v8256_v41  ;;  %v6025_v44 = vpack.c.bf16 %v841_v40, %v839_v39  ;;  %v843_v46 = vld [vmem:[#allocation7 + $0xe0] sm:$0xff]  ;;  %s784_s6 = scalar_select %p783_p11, %s8905_s1, 1 }
 0x1a4   : > { %v6027_v45 = vpack.c.bf16 %v846_v43, %v844_v42  ;;  %v845_v47 = vld [vmem:[#allocation7 + $0xf0] sm:$0xff]  ;;  %v848_v48 = vld [vmem:[#allocation7 + $0x108] sm:$0xff]  ;;  %v850_v49 = vld [vmem:[#allocation7 + $0x118] sm:$0xff] }
 0x1a5   : > { %6010 = vmatpush1.bf16.msra.mxu0 %v6009_v19  ;;  %v6029_v50 = vpack.c.bf16 %v845_v47, %v843_v46  ;;  %v6031_v51 = vpack.c.bf16 %v850_v49, %v848_v48  ;;  %v847_v52 = vld [vmem:[#allocation7 + $0x100] sm:$0xff]  ;;  %v849_v53 = vld [vmem:[#allocation7 + $0x110] sm:$0xff]  ;;  %v852_v54 = vld [vmem:[#allocation7 + $0x128] sm:$0xff]  ;;  %s5838_s27 = sshll.u32 %s784_s6, 3 }
 0x1a6   : > { %6012 = vmatprep.subr.bf16.mxu0 %v6011_v20  ;;  %v854_v55 = vld [vmem:[#allocation7 + $0x138] sm:$0xff]  ;;  %v6033_v56 = vpack.c.bf16 %v849_v53, %v847_v52  ;;  %v851_v58 = vld [vmem:[#allocation7 + $0x120] sm:$0xff]  ;;  %v853_v59 = vld [vmem:[#allocation7 + $0x130] sm:$0xff]  ;;  %s789_s9 = scalar_lea.vmem %s8906_s23, %s5838_s27  ;;  %s8769_s23 = scalar_lea.hbm %s8909_s4, %s5886_s11 }
 0x1a7   : > { %v6035_v57 = vpack.c.bf16 %v854_v55, %v852_v54  ;;  %v856_v60 = vld [vmem:[#allocation7 + $0x148] sm:$0xff]  ;;  %v858_v61 = vld [vmem:[#allocation7 + $0x158] sm:$0xff]  ;;  %v6037_v62 = vpack.c.bf16 %v853_v59, %v851_v58  ;;  %v855_v0 = vld [vmem:[#allocation7 + $0x140] sm:$0xff] }
 0x1a8   : > { %v6039_v63 = vpack.c.bf16 %v858_v61, %v856_v60  ;;  %v857_v1 = vld [vmem:[#allocation7 + $0x150] sm:$0xff]  ;;  %v860_v2 = vld [vmem:[#allocation7 + $0x168] sm:$0xff]  ;;  %v862_v3 = vld [vmem:[#allocation7 + $0x178] sm:$0xff] }
 0x1a9   : > { %6014 = vmatpush1.bf16.msra.mxu0 %v6013_v25  ;;  %v6041_v4 = vpack.c.bf16 %v857_v1, %v855_v0  ;;  %v6043_v5 = vpack.c.bf16 %v862_v3, %v860_v2  ;;  %v859_v6 = vld [vmem:[#allocation7 + $0x160] sm:$0xff]  ;;  %v861_v7 = vld [vmem:[#allocation7 + $0x170] sm:$0xff]  ;;  %v864_v8 = vld [vmem:[#allocation7 + $0x188] sm:$0xff] }
 0x1aa   : > { %6016 = vmatprep.subr.bf16.mxu0 %v6015_v26  ;;  %v866_v9 = vld [vmem:[#allocation7 + $0x198] sm:$0xff]  ;;  %v6045_v10 = vpack.c.bf16 %v861_v7, %v859_v6  ;;  %v863_v12 = vld [vmem:[#allocation7 + $0x180] sm:$0xff]  ;;  %v865_v13 = vld [vmem:[#allocation7 + $0x190] sm:$0xff] }
 0x1ab   : > { %v6047_v11 = vpack.c.bf16 %v866_v9, %v864_v8  ;;  %v868_v14 = vld [vmem:[#allocation7 + $0x1a8] sm:$0xff]  ;;  %v870_v15 = vld [vmem:[#allocation7 + $0x1b8] sm:$0xff]  ;;  %v6049_v16 = vpack.c.bf16 %v865_v13, %v863_v12  ;;  %v867_v18 = vld [vmem:[#allocation7 + $0x1a0] sm:$0xff] }
 0x1ac   : > { %v6051_v17 = vpack.c.bf16 %v870_v15, %v868_v14  ;;  %v869_v19 = vld [vmem:[#allocation7 + $0x1b0] sm:$0xff]  ;;  %v872_v20 = vld [vmem:[#allocation7 + $0x1c8] sm:$0xff]  ;;  %v874_v21 = vld [vmem:[#allocation7 + $0x1d8] sm:$0xff] }
 0x1ad   : > { %6018 = vmatpush1.bf16.msra.mxu0 %v6017_v31  ;;  %v6053_v22 = vpack.c.bf16 %v869_v19, %v867_v18  ;;  %v6055_v23 = vpack.c.bf16 %v874_v21, %v872_v20  ;;  %v871_v24 = vld [vmem:[#allocation7 + $0x1c0] sm:$0xff]  ;;  %v873_v25 = vld [vmem:[#allocation7 + $0x1d0] sm:$0xff]  ;;  %v876_v26 = vld [vmem:[#allocation7 + $0x1e8] sm:$0xff] }
 0x1ae   : > { %6020 = vmatprep.subr.bf16.mxu0 %v6019_v32  ;;  %v878_v27 = vld [vmem:[#allocation7 + $0x1f8] sm:$0xff]  ;;  %v6057_v28 = vpack.c.bf16 %v873_v25, %v871_v24  ;;  %v875_v30 = vld [vmem:[#allocation7 + $0x1e0] sm:$0xff]  ;;  %v877_v31 = vld [vmem:[#allocation7 + $0x1f0] sm:$0xff] }
 0x1af   : > { %v6059_v29 = vpack.c.bf16 %v878_v27, %v876_v26  ;;  %v951_v32 = vld [vmem:[#allocation8 + $0x8] sm:$0xff]  ;;  %v953_v33 = vld [vmem:[#allocation8 + $0x18] sm:$0xff]  ;;  %v6061_v34 = vpack.c.bf16 %v877_v31, %v875_v30  ;;  %v950_v36 = vld [vmem:[#allocation8] sm:$0xff] }
 0x1b0   : > { %v6063_v35 = vpack.c.bf16 %v953_v33, %v951_v32  ;;  %v957_v39 = vld [vmem:[#allocation8 + $0x38] sm:$0xff]  ;;  %v8260_v40 = vld [vmem:[%s8219_s21] sm:$0xff]  ;;  %v959_v46 = vld [vmem:[#allocation8 + $0x48] sm:$0xff] }
 0x1b1   : > { %6022 = vmatpush1.bf16.msra.mxu0 %v6021_v37  ;;  %v952_v37 = vld [vmem:[#allocation8 + $0x10] sm:$0xff]  ;;  %v961_v47 = vld [vmem:[#allocation8 + $0x58] sm:$0xff]  ;;  %v963_v52 = vld [vmem:[#allocation8 + $0x68] sm:$0xff] }
 0x1b2   : > { %6024 = vmatprep.subr.bf16.mxu0 %v6023_v38  ;;  %v955_v38 = vld [vmem:[#allocation8 + $0x28] sm:$0xff]  ;;  %v6065_v42 = vpack.c.bf16 %v952_v37, %v950_v36  ;;  %v6071_v49 = vpack.c.bf16 %v961_v47, %v959_v46  ;;  %v965_v53 = vld [vmem:[#allocation8 + $0x78] sm:$0xff] }
 0x1b3   : > { %v6067_v43 = vpack.c.bf16 %v957_v39, %v955_v38  ;;  %v6075_v55 = vpack.c.bf16 %v965_v53, %v963_v52  ;;  %v967_v58 = vld [vmem:[#allocation8 + $0x88] sm:$0xff]  ;;  %v969_v59 = vld [vmem:[#allocation8 + $0x98] sm:$0xff] }
 0x1b4   : > { %v6079_v61 = vpack.c.bf16 %v969_v59, %v967_v58  ;;  %v971_v0 = vld [vmem:[#allocation8 + $0xa8] sm:$0xff]  ;;  %v973_v1 = vld [vmem:[#allocation8 + $0xb8] sm:$0xff] }
 0x1b5   : > { %6026 = vmatpush1.bf16.msra.mxu0 %v6025_v44  ;;  %v954_v44 = vld [vmem:[#allocation8 + $0x20] sm:$0xff]  ;;  %v6083_v3 = vpack.c.bf16 %v973_v1, %v971_v0  ;;  %v975_v6 = vld [vmem:[#allocation8 + $0xc8] sm:$0xff]  ;;  %v977_v7 = vld [vmem:[#allocation8 + $0xd8] sm:$0xff] }
 0x1b6   : > { %6028 = vmatprep.subr.bf16.mxu0 %v6027_v45  ;;  %v956_v45 = vld [vmem:[#allocation8 + $0x30] sm:$0xff]  ;;  %v6087_v9 = vpack.c.bf16 %v977_v7, %v975_v6  ;;  %v979_v12 = vld [vmem:[#allocation8 + $0xe8] sm:$0xff]  ;;  %v981_v13 = vld [vmem:[#allocation8 + $0xf8] sm:$0xff] }
 0x1b7   : > { %v6069_v48 = vpack.c.bf16 %v956_v45, %v954_v44  ;;  %v6091_v15 = vpack.c.bf16 %v981_v13, %v979_v12  ;;  %v983_v18 = vld [vmem:[#allocation8 + $0x108] sm:$0xff]  ;;  %v985_v19 = vld [vmem:[#allocation8 + $0x118] sm:$0xff]  ;;  %v1085_v12 = vld [vmem:[#allocation10] sm:$0xff] }
 0x1b8   : > { %v6095_v21 = vpack.c.bf16 %v985_v19, %v983_v18  ;;  %v987_v24 = vld [vmem:[#allocation8 + $0x128] sm:$0xff]  ;;  %v989_v25 = vld [vmem:[#allocation8 + $0x138] sm:$0xff]  ;;  %v1087_v13 = vld [vmem:[#allocation10 + $0x10] sm:$0xff] }
 0x1b9   : > { %6030 = vmatpush1.bf16.msra.mxu0 %v6029_v50  ;;  %v958_v50 = vld [vmem:[#allocation8 + $0x40] sm:$0xff]  ;;  %v6099_v27 = vpack.c.bf16 %v989_v25, %v987_v24  ;;  %v991_v30 = vld [vmem:[#allocation8 + $0x148] sm:$0xff]  ;;  %v993_v31 = vld [vmem:[#allocation8 + $0x158] sm:$0xff] }
 0x1ba   : > { %6032 = vmatprep.subr.bf16.mxu0 %v6031_v51  ;;  %v960_v51 = vld [vmem:[#allocation8 + $0x50] sm:$0xff]  ;;  %v6103_v33 = vpack.c.bf16 %v993_v31, %v991_v30  ;;  %v995_v36 = vld [vmem:[#allocation8 + $0x168] sm:$0xff]  ;;  %v997_v37 = vld [vmem:[#allocation8 + $0x178] sm:$0xff] }
 0x1bb   : > { %v6073_v54 = vpack.c.bf16 %v960_v51, %v958_v50  ;;  %v6107_v39 = vpack.c.bf16 %v997_v37, %v995_v36  ;;  %v999_v44 = vld [vmem:[#allocation8 + $0x188] sm:$0xff]  ;;  %v1001_v45 = vld [vmem:[#allocation8 + $0x198] sm:$0xff]  ;;  %v1091_v18 = vld [vmem:[#allocation10 + $0x30] sm:$0xff] }
 0x1bc   : > { %v6111_v47 = vpack.c.bf16 %v1001_v45, %v999_v44  ;;  %v1003_v50 = vld [vmem:[#allocation8 + $0x1a8] sm:$0xff]  ;;  %v1005_v51 = vld [vmem:[#allocation8 + $0x1b8] sm:$0xff]  ;;  %v1095_v24 = vld [vmem:[#allocation10 + $0x50] sm:$0xff] }
 0x1bd   : > { %6034 = vmatpush1.bf16.msra.mxu0 %v6033_v56  ;;  %v962_v56 = vld [vmem:[#allocation8 + $0x60] sm:$0xff]  ;;  %v6115_v53 = vpack.c.bf16 %v1005_v51, %v1003_v50  ;;  %v1086_v7 = vld [vmem:[#allocation10 + $0x8] sm:$0xff]  ;;  %v1099_v30 = vld [vmem:[#allocation10 + $0x70] sm:$0xff] }
 0x1be   : > { %6036 = vmatprep.subr.bf16.mxu0 %v6035_v57  ;;  %v964_v57 = vld [vmem:[#allocation8 + $0x70] sm:$0xff]  ;;  %v1094_v19 = vld [vmem:[#allocation10 + $0x48] sm:$0xff] }
 0x1bf   : > { %v6077_v60 = vpack.c.bf16 %v964_v57, %v962_v56  ;;  %v1007_v56 = vld [vmem:[#allocation8 + $0x1c8] sm:$0xff]  ;;  %v1009_v57 = vld [vmem:[#allocation8 + $0x1d8] sm:$0xff]  ;;  %v1103_v36 = vld [vmem:[#allocation10 + $0x90] sm:$0xff] }
 0x1c0   : > { %v6119_v59 = vpack.c.bf16 %v1009_v57, %v1007_v56  ;;  %v1098_v25 = vld [vmem:[#allocation10 + $0x68] sm:$0xff]  ;;  %v1107_v44 = vld [vmem:[#allocation10 + $0xb0] sm:$0xff] }
 0x1c1   : > { %6038 = vmatpush1.bf16.msra.mxu0 %v6037_v62  ;;  %v966_v62 = vld [vmem:[#allocation8 + $0x80] sm:$0xff]  ;;  %v1102_v31 = vld [vmem:[#allocation10 + $0x88] sm:$0xff]  ;;  %v1111_v50 = vld [vmem:[#allocation10 + $0xd0] sm:$0xff] }
 0x1c2   : > { %6040 = vmatprep.subr.bf16.mxu0 %v6039_v63  ;;  %v968_v63 = vld [vmem:[#allocation8 + $0x90] sm:$0xff]  ;;  %v1106_v37 = vld [vmem:[#allocation10 + $0xa8] sm:$0xff] }
 0x1c3   : > { %v6081_v2 = vpack.c.bf16 %v968_v63, %v966_v62  ;;  %v1011_v62 = vld [vmem:[#allocation8 + $0x1e8] sm:$0xff]  ;;  %v1013_v63 = vld [vmem:[#allocation8 + $0x1f8] sm:$0xff]  ;;  %v1115_v56 = vld [vmem:[#allocation10 + $0xf0] sm:$0xff] }
 0x1c4   : > { %v6123_v1 = vpack.c.bf16 %v1013_v63, %v1011_v62  ;;  %v1110_v45 = vld [vmem:[#allocation10 + $0xc8] sm:$0xff]  ;;  %v1119_v62 = vld [vmem:[#allocation10 + $0x110] sm:$0xff] }
 0x1c5   : > { %6042 = vmatpush1.bf16.msra.mxu0 %v6041_v4  ;;  %v970_v4 = vld [vmem:[#allocation8 + $0xa0] sm:$0xff]  ;;  %v1114_v51 = vld [vmem:[#allocation10 + $0xe8] sm:$0xff] }
 0x1c6   : > { %6044 = vmatprep.subr.bf16.mxu0 %v6043_v5  ;;  %v972_v5 = vld [vmem:[#allocation8 + $0xb0] sm:$0xff]  ;;  %v1118_v57 = vld [vmem:[#allocation10 + $0x108] sm:$0xff] }
 0x1c7   : > { %v6085_v8 = vpack.c.bf16 %v972_v5, %v970_v4  ;;  %v1122_v63 = vld [vmem:[#allocation10 + $0x128] sm:$0xff] }
 0x1c9   : > { %6046 = vmatpush1.bf16.msra.mxu0 %v6045_v10  ;;  %v974_v10 = vld [vmem:[#allocation8 + $0xc0] sm:$0xff] }
 0x1ca   : > { %6048 = vmatprep.subr.bf16.mxu0 %v6047_v11  ;;  %v976_v11 = vld [vmem:[#allocation8 + $0xd0] sm:$0xff] }
 0x1cb   : > { %v6089_v14 = vpack.c.bf16 %v976_v11, %v974_v10 }
 0x1cd   : > { %6050 = vmatpush1.bf16.msra.mxu0 %v6049_v16  ;;  %v978_v16 = vld [vmem:[#allocation8 + $0xe0] sm:$0xff] }
 0x1ce   : > { %6052 = vmatprep.subr.bf16.mxu0 %v6051_v17  ;;  %v980_v17 = vld [vmem:[#allocation8 + $0xf0] sm:$0xff] }
 0x1cf   : > { %v6093_v20 = vpack.c.bf16 %v980_v17, %v978_v16  ;;  %v1089_v16 = vld [vmem:[#allocation10 + $0x20] sm:$0xff] }
 0x1d1   : > { %6054 = vmatpush1.bf16.msra.mxu0 %v6053_v22  ;;  %v982_v22 = vld [vmem:[#allocation8 + $0x100] sm:$0xff] }
 0x1d2   : > { %6056 = vmatprep.subr.bf16.mxu0 %v6055_v23  ;;  %v984_v23 = vld [vmem:[#allocation8 + $0x110] sm:$0xff] }
 0x1d3   : > { %v6097_v26 = vpack.c.bf16 %v984_v23, %v982_v22  ;;  %v1093_v23 = vld [vmem:[#allocation10 + $0x40] sm:$0xff] }
 0x1d5   : > { %6058 = vmatpush1.bf16.msra.mxu0 %v6057_v28  ;;  %v986_v28 = vld [vmem:[#allocation8 + $0x120] sm:$0xff] }
 0x1d6   : > { %6060 = vmatprep.subr.bf16.mxu0 %v6059_v29  ;;  %v988_v29 = vld [vmem:[#allocation8 + $0x130] sm:$0xff] }
 0x1d7   : > { %v6101_v32 = vpack.c.bf16 %v988_v29, %v986_v28  ;;  %v1097_v29 = vld [vmem:[#allocation10 + $0x60] sm:$0xff] }
 0x1d9   : > { %6062 = vmatpush1.bf16.msra.mxu0 %v6061_v34  ;;  %v990_v34 = vld [vmem:[#allocation8 + $0x140] sm:$0xff] }
 0x1da   : > { %6064 = vmatprep.subr.bf16.mxu0 %v6063_v35  ;;  %v992_v35 = vld [vmem:[#allocation8 + $0x150] sm:$0xff] }
 0x1db   : > { %v6105_v38 = vpack.c.bf16 %v992_v35, %v990_v34  ;;  %v1101_v35 = vld [vmem:[#allocation10 + $0x80] sm:$0xff] }
 0x1dc   : > { %944 = vmatmul.mubr.f32.vlgmr.msra.gmra.mrb[0].mxu0 %v8260_v40 }
 0x1dd   : > { %6066 = vmatpush1.bf16.msra.mxu0 %v6065_v42  ;;  %1078 = vmatprep.mubr.f32.mxu0 %v8256_v41  ;;  %v994_v42 = vld [vmem:[#allocation8 + $0x160] sm:$0xff] }
 0x1de   : > { %6068 = vmatprep.subr.bf16.mxu0 %v6067_v43  ;;  %v996_v43 = vld [vmem:[#allocation8 + $0x170] sm:$0xff] }
 0x1df   : > { %v6109_v46 = vpack.c.bf16 %v996_v43, %v994_v42  ;;  %v1105_v43 = vld [vmem:[#allocation10 + $0xa0] sm:$0xff] }
 0x1e1   : > { %6070 = vmatpush1.bf16.msra.mxu0 %v6069_v48  ;;  %v998_v48 = vld [vmem:[#allocation8 + $0x180] sm:$0xff] }
 0x1e2   : > { %6072 = vmatprep.subr.bf16.mxu0 %v6071_v49  ;;  %v1000_v49 = vld [vmem:[#allocation8 + $0x190] sm:$0xff] }
 0x1e3   : > { %v6113_v52 = vpack.c.bf16 %v1000_v49, %v998_v48  ;;  %v1109_v49 = vld [vmem:[#allocation10 + $0xc0] sm:$0xff] }
 0x1e5   : > { %6074 = vmatpush1.bf16.msra.mxu0 %v6073_v54  ;;  %v1002_v54 = vld [vmem:[#allocation8 + $0x1a0] sm:$0xff] }
 0x1e6   : > { %6076 = vmatprep.subr.bf16.mxu0 %v6075_v55  ;;  %v1004_v55 = vld [vmem:[#allocation8 + $0x1b0] sm:$0xff] }
 0x1e7   : > { %v6117_v58 = vpack.c.bf16 %v1004_v55, %v1002_v54  ;;  %v1113_v55 = vld [vmem:[#allocation10 + $0xe0] sm:$0xff] }
 0x1e9   : > { %6078 = vmatpush1.bf16.msra.mxu0 %v6077_v60  ;;  %v1006_v60 = vld [vmem:[#allocation8 + $0x1c0] sm:$0xff] }
 0x1ea   : > { %6080 = vmatprep.subr.bf16.mxu0 %v6079_v61  ;;  %v1008_v61 = vld [vmem:[#allocation8 + $0x1d0] sm:$0xff] }
 0x1eb   : > { %v6121_v0 = vpack.c.bf16 %v1008_v61, %v1006_v60  ;;  %v1117_v61 = vld [vmem:[#allocation10 + $0x100] sm:$0xff] }
 0x1ed   : > { %6082 = vmatpush1.bf16.msra.mxu0 %v6081_v2  ;;  %v1010_v2 = vld [vmem:[#allocation8 + $0x1e0] sm:$0xff] }
 0x1ee   : > { %6084 = vmatprep.subr.bf16.mxu0 %v6083_v3  ;;  %v1012_v3 = vld [vmem:[#allocation8 + $0x1f0] sm:$0xff] }
 0x1ef   : > { %v6125_v4 = vpack.c.bf16 %v1012_v3, %v1010_v2  ;;  %v1121_v3 = vld [vmem:[#allocation10 + $0x120] sm:$0xff] }
 0x1f1   : > { %6086 = vmatpush1.bf16.msra.mxu0 %v6085_v8  ;;  %v1088_v8 = vld [vmem:[#allocation10 + $0x18] sm:$0xff] }
 0x1f2   : > { %6088 = vmatprep.subr.bf16.mxu0 %v6087_v9  ;;  %v6127_v11 = vpack.c.bf16 %v1088_v8, %v1086_v7  ;;  %v1126_v7 = vld [vmem:[#allocation10 + $0x148] sm:$0xff]  ;;  %v1128_v8 = vld [vmem:[#allocation10 + $0x158] sm:$0xff] }
 0x1f5   : > { %6090 = vmatpush1.bf16.msra.mxu0 %v6089_v14  ;;  %v1090_v14 = vld [vmem:[#allocation10 + $0x28] sm:$0xff] }
 0x1f6   : > { %6092 = vmatprep.subr.bf16.mxu0 %v6091_v15  ;;  %v1092_v15 = vld [vmem:[#allocation10 + $0x38] sm:$0xff] }
 0x1f7   : > { %v6131_v17 = vpack.c.bf16 %v1092_v15, %v1090_v14  ;;  %v1130_v14 = vld [vmem:[#allocation10 + $0x168] sm:$0xff]  ;;  %v1132_v15 = vld [vmem:[#allocation10 + $0x178] sm:$0xff] }
 0x1f9   : > { %6094 = vmatpush1.bf16.msra.mxu0 %v6093_v20  ;;  %v1096_v20 = vld [vmem:[#allocation10 + $0x58] sm:$0xff] }
 0x1fa   : > { %6096 = vmatprep.subr.bf16.mxu0 %v6095_v21  ;;  %v6133_v21 = vpack.c.bf16 %v1091_v18, %v1089_v16  ;;  %v6135_v22 = vpack.c.bf16 %v1096_v20, %v1094_v19  ;;  %v1129_v18 = vld [vmem:[#allocation10 + $0x160] sm:$0xff]  ;;  %v1131_v19 = vld [vmem:[#allocation10 + $0x170] sm:$0xff] }
 0x1fb   : > { %v6173_v20 = vpack.c.bf16 %v1131_v19, %v1129_v18 }
 0x1fd   : > { %6098 = vmatpush1.bf16.msra.mxu0 %v6097_v26  ;;  %v1100_v26 = vld [vmem:[#allocation10 + $0x78] sm:$0xff] }
 0x1fe   : > { %6100 = vmatprep.subr.bf16.mxu0 %v6099_v27  ;;  %v6137_v27 = vpack.c.bf16 %v1095_v24, %v1093_v23  ;;  %v6139_v28 = vpack.c.bf16 %v1100_v26, %v1098_v25  ;;  %v1133_v24 = vld [vmem:[#allocation10 + $0x180] sm:$0xff]  ;;  %v1135_v25 = vld [vmem:[#allocation10 + $0x190] sm:$0xff] }
 0x1ff   : > { %v6177_v26 = vpack.c.bf16 %v1135_v25, %v1133_v24 }
 0x201   : > { %6102 = vmatpush1.bf16.msra.mxu0 %v6101_v32  ;;  %v1104_v32 = vld [vmem:[#allocation10 + $0x98] sm:$0xff] }
 0x202   : > { %6104 = vmatprep.subr.bf16.mxu0 %v6103_v33  ;;  %v6141_v33 = vpack.c.bf16 %v1099_v30, %v1097_v29  ;;  %v6143_v34 = vpack.c.bf16 %v1104_v32, %v1102_v31  ;;  %v1137_v30 = vld [vmem:[#allocation10 + $0x1a0] sm:$0xff]  ;;  %v1139_v31 = vld [vmem:[#allocation10 + $0x1b0] sm:$0xff] }
 0x203   : > { %v6181_v32 = vpack.c.bf16 %v1139_v31, %v1137_v30 }
 0x205   : > { %6106 = vmatpush1.bf16.msra.mxu0 %v6105_v38  ;;  %v1108_v38 = vld [vmem:[#allocation10 + $0xb8] sm:$0xff] }
 0x206   : > { %6108 = vmatprep.subr.bf16.mxu0 %v6107_v39  ;;  %v6145_v39 = vpack.c.bf16 %v1103_v36, %v1101_v35  ;;  %v6147_v42 = vpack.c.bf16 %v1108_v38, %v1106_v37  ;;  %v1141_v36 = vld [vmem:[#allocation10 + $0x1c0] sm:$0xff]  ;;  %v1143_v37 = vld [vmem:[#allocation10 + $0x1d0] sm:$0xff] }
 0x207   : > { %v6185_v38 = vpack.c.bf16 %v1143_v37, %v1141_v36 }
 0x209   : > { %6110 = vmatpush1.bf16.msra.mxu0 %v6109_v46  ;;  %v1112_v46 = vld [vmem:[#allocation10 + $0xd8] sm:$0xff] }
 0x20a   : > { %6112 = vmatprep.subr.bf16.mxu0 %v6111_v47  ;;  %v6149_v47 = vpack.c.bf16 %v1107_v44, %v1105_v43  ;;  %v6151_v48 = vpack.c.bf16 %v1112_v46, %v1110_v45  ;;  %v1145_v44 = vld [vmem:[#allocation10 + $0x1e0] sm:$0xff]  ;;  %v1147_v45 = vld [vmem:[#allocation10 + $0x1f0] sm:$0xff] }
 0x20b   : > { %v6189_v46 = vpack.c.bf16 %v1147_v45, %v1145_v44 }
 0x20d   : > { %6114 = vmatpush1.bf16.msra.mxu0 %v6113_v52  ;;  %v1116_v52 = vld [vmem:[#allocation10 + $0xf8] sm:$0xff] }
 0x20e   : > { %6116 = vmatprep.subr.bf16.mxu0 %v6115_v53  ;;  %v6153_v53 = vpack.c.bf16 %v1111_v50, %v1109_v49  ;;  %v6155_v54 = vpack.c.bf16 %v1116_v52, %v1114_v51  ;;  %v7730_v51 = vmov 0.0   ;;  %v804_v52 = vlaneseq }
 0x211   : > { %6118 = vmatpush1.bf16.msra.mxu0 %v6117_v58  ;;  %v1120_v58 = vld [vmem:[#allocation10 + $0x118] sm:$0xff] }
 0x212   : > { %6120 = vmatprep.subr.bf16.mxu0 %v6119_v59  ;;  %v6157_v59 = vpack.c.bf16 %v1115_v56, %v1113_v55  ;;  %v6159_v60 = vpack.c.bf16 %v1120_v58, %v1118_v57  ;;  %v7733_v55 = vmov 1934713408   ;;  %v8290_v57 = vshrl.u32 %v804_v52, 7 }
 0x213   : > { %v1263_v56 = vunpack.c.l.s4 %v7733_v55 }
 0x215   : > { %6122 = vmatpush1.bf16.msra.mxu0 %v6121_v0  ;;  %v1124_v0 = vld [vmem:[#allocation10 + $0x138] sm:$0xff] }
 0x216   : > { %6124 = vmatprep.subr.bf16.mxu0 %v6123_v1  ;;  %v6161_v1 = vpack.c.bf16 %v1119_v62, %v1117_v61  ;;  %v6163_v2 = vpack.c.bf16 %v1124_v0, %v1122_v63 }
 0x219   : > { %6126 = vmatpush1.bf16.msra.mxu0 %v6125_v4  ;;  %v1123_v4 = vld [vmem:[#allocation10 + $0x130] sm:$0xff] }
 0x21a   : > { %6128 = vmatprep.subr.bf16.mxu0 %v6127_v11  ;;  %v6165_v11 = vpack.c.bf16 %v1123_v4, %v1121_v3 }
 0x21c   : > { %1079 = vmatmul.mubr.f32.vlgmr.msra.gmra.mrb[2].mxu0 %v8260_v40 }
 0x21d   : > { %1213 = vmatprep.mubr.f32.mxu0 %v8256_v41  ;;  %v6129_v41 = vpack.c.bf16 %v1087_v13, %v1085_v12  ;;  %v6167_v12 = vpack.c.bf16 %v1128_v8, %v1126_v7  ;;  %v1125_v13 = vld [vmem:[#allocation10 + $0x140] sm:$0xff] }
 0x21f   : > { %6130 = vmatpush1.bf16.msra.mxu0 %v6129_v41  ;;  %v1127_v41 = vld [vmem:[#allocation10 + $0x150] sm:$0xff] }
 0x220   : > { %6132 = vmatprep.subr.bf16.mxu0 %v6131_v17  ;;  %v6169_v16 = vpack.c.bf16 %v1127_v41, %v1125_v13  ;;  %v6171_v17 = vpack.c.bf16 %v1132_v15, %v1130_v14 }
 0x223   : > { %6134 = vmatpush1.bf16.msra.mxu0 %v6133_v21  ;;  %v1134_v21 = vld [vmem:[#allocation10 + $0x188] sm:$0xff] }
 0x224   : > { %6136 = vmatprep.subr.bf16.mxu0 %v6135_v22  ;;  %v1136_v22 = vld [vmem:[#allocation10 + $0x198] sm:$0xff] }
 0x225   : > { %v6175_v23 = vpack.c.bf16 %v1136_v22, %v1134_v21 }
 0x227   : > { %6138 = vmatpush1.bf16.msra.mxu0 %v6137_v27  ;;  %v1138_v27 = vld [vmem:[#allocation10 + $0x1a8] sm:$0xff] }
 0x228   : > { %6140 = vmatprep.subr.bf16.mxu0 %v6139_v28  ;;  %v1140_v28 = vld [vmem:[#allocation10 + $0x1b8] sm:$0xff] }
 0x229   : > { %v6179_v29 = vpack.c.bf16 %v1140_v28, %v1138_v27 }
 0x22b   : > { %6142 = vmatpush1.bf16.msra.mxu0 %v6141_v33  ;;  %v1142_v33 = vld [vmem:[#allocation10 + $0x1c8] sm:$0xff] }
 0x22c   : > { %6144 = vmatprep.subr.bf16.mxu0 %v6143_v34  ;;  %v1144_v34 = vld [vmem:[#allocation10 + $0x1d8] sm:$0xff] }
 0x22d   : > { %v6183_v35 = vpack.c.bf16 %v1144_v34, %v1142_v33 }
 0x22f   : > { %6146 = vmatpush1.bf16.msra.mxu0 %v6145_v39  ;;  %v1146_v39 = vld [vmem:[#allocation10 + $0x1e8] sm:$0xff] }
 0x230   : > { %6148 = vmatprep.subr.bf16.mxu0 %v6147_v42  ;;  %v1148_v42 = vld [vmem:[#allocation10 + $0x1f8] sm:$0xff] }
 0x231   : > { %v6187_v43 = vpack.c.bf16 %v1148_v42, %v1146_v39 }
 0x233   : > { %6150 = vmatpush1.bf16.msra.mxu0 %v6149_v47 }
 0x234   : > { %6152 = vmatprep.subr.bf16.mxu0 %v6151_v48 }
 0x237   : > { %6154 = vmatpush1.bf16.msra.mxu0 %v6153_v53  ;;  %v7732_v53 = vmov 1983009808  }
 0x238   : > { %6156 = vmatprep.subr.bf16.mxu0 %v6155_v54  ;;  %v1231_v54 = vunpack.c.l.s4 %v7732_v53 }
 0x23a   : > { %v1232_v58 = vunpack.c.0.s8 %v1231_v54 }
 0x23b   : > { %6158 = vmatpush1.bf16.msra.mxu0 %v6157_v59 }
 0x23c   : > { %6160 = vmatprep.subr.bf16.mxu0 %v6159_v60  ;;  %v8293_v60 = vsub.s32 %v1232_v58, %v8290_v57 }
 0x23f   : > { %6162 = vmatpush1.bf16.msra.mxu0 %v6161_v1 }
 0x240   : > { %6164 = vmatprep.subr.bf16.mxu0 %v6163_v2 }
 0x243   : > { %6166 = vmatpush1.bf16.msra.mxu0 %v6165_v11 }
 0x244   : > { %6168 = vmatprep.subr.bf16.mxu0 %v6167_v12 }
 0x247   : > { %6170 = vmatpush1.bf16.msra.mxu0 %v6169_v16 }
 0x248   : > { %6172 = vmatprep.subr.bf16.mxu0 %v6171_v17 }
 0x24b   : > { %6174 = vmatpush1.bf16.msra.mxu0 %v6173_v20 }
 0x24c   : > { %6176 = vmatprep.subr.bf16.mxu0 %v6175_v23 }
 0x24f   : > { %6178 = vmatpush1.bf16.msra.mxu0 %v6177_v26 }
 0x250   : > { %6180 = vmatprep.subr.bf16.mxu0 %v6179_v29 }
 0x253   : > { %6182 = vmatpush1.bf16.msra.mxu0 %v6181_v32 }
 0x254   : > { %6184 = vmatprep.subr.bf16.mxu0 %v6183_v35 }
 0x257   : > { %6186 = vmatpush1.bf16.msra.mxu0 %v6185_v38 }
 0x258   : > { %6188 = vmatprep.subr.bf16.mxu0 %v6187_v43 }
 0x25b   : > { %6190 = vmatpush1.bf16.msra.mxu0 %v6189_v46 }
 0x25c   : > { %5919 = vmatprep.subr.mxu0 %v7730_v51 }
 0x25e   : > { %1214 = vmatmul.mubr.f32.vlgmr.msra.gmra.mrb[4].mxu0 %v8260_v40  ;;  %v1264_v40 = vunpack.c.0.s8 %v1263_v56 }
 0x25f   : > { %5921 = vmatprep.mubr.msk.f32.mxu0 %vm7731_vm0, %v7730_v51 }
 0x260   : > { %v8296_v0 = vsub.s32 %v1264_v40, %v8290_v57 }
 0x2af   : > { %v8266_v5 = vpop.f32.mrb[0].mxu0 }
 0x2b0   : > { %1221 = vrot.lane.b32.xlu1 %v8266_v5, %s7729_s20  ;;  %v8270_v6 = vpop.f32.mrb[1].mxu0 }
 0x2b1   : > { %v1228_v9 = vcombine.low %v8266_v5, %v8270_v6  ;;  %v1229_v10 = vcombine.high %v8266_v5, %v8270_v6 }
 0x2b3   : > { %v1236_v1 = vrot.slane %v1228_v9, %v8293_v60  ;;  %v1243_v2 = vrot.slane %v1229_v10, %v8293_v60 }
 0x2b4   : > { %1225 = vrot.lane.b32.xlu1 %v8270_v6, %s7729_s20 }
 0x2ef   : > { %v8278_v47 = vpop.f32.mrb[2].mxu0 }
 0x2f0   : > { %1365 = vrot.lane.b32.xlu0 %v8278_v47, %s7729_s20  ;;  %v1082_v48 = vpop.f32.mrb[3].mxu0 }
 0x2f1   : > { %v1372_v49 = vcombine.low %v8278_v47, %v1082_v48  ;;  %v1373_v50 = vcombine.high %v8278_v47, %v1082_v48 }
 0x2f3   : > { %v1380_v36 = vrot.slane %v1372_v49, %v8293_v60  ;;  %v1387_v37 = vrot.slane %v1373_v50, %v8293_v60 }
 0x2f4   : > { %1369 = vrot.lane.b32.xlu0 %v1082_v48, %s7729_s20 }
 0x322   : > { %v1222_v59 = vpop.permute.xlu1 %1221 }
 0x326   : > { %v1226_v61 = vpop.permute.xlu1 %1225 }
 0x327   : > { %v1244_v62 = vcombine.low %v1222_v59, %v1226_v61  ;;  %v1245_v63 = vcombine.high %v1222_v59, %v1226_v61 }
 0x329   : > { %v1252_v3 = vrot.slane %v1244_v62, %v8293_v60  ;;  %v1259_v4 = vrot.slane %v1245_v63, %v8293_v60 }
 0x32b   : > { %v1260_v7 = vcombine.low %v1236_v1, %v1252_v3  ;;  %v1261_v8 = vcombine.high %v1236_v1, %v1252_v3  ;;  %v1276_v11 = vcombine.low %v1243_v2, %v1259_v4  ;;  %v1277_v12 = vcombine.high %v1243_v2, %v1259_v4 }
 0x32d   : > { %v1268_v13 = vrot.slane %v1260_v7, %v8296_v0  ;;  %v1275_v41 = vrot.slane %v1261_v8, %v8296_v0  ;;  %v1284_v14 = vrot.slane %v1276_v11, %v8296_v0  ;;  %v1291_v9 = vrot.slane %v1277_v12, %v8296_v0 }
 0x32f   : > { %v1296_v15 = vcombine.low %v1268_v13, %v1275_v41  ;;  %v5839_v16 = vcombine.high %v1268_v13, %v1275_v41  ;;  %v1312_v5 = vcombine.low %v1284_v14, %v1291_v9  ;;  %v5840_v6 = vcombine.high %v1284_v14, %v1291_v9 }
 0x331   : > { %v1303_v10 = vrot.slane %v1296_v15, %v8293_v60  ;;  %v1311_v17 = vrot.slane %v5839_v16, %v8293_v60  ;;  %v1319_v18 = vrot.slane %v1312_v5, %v8293_v60  ;;  %v1327_v19 = vrot.slane %v5840_v6, %v8293_v60  ;;  %v8356_v41 = vpop.f32.mrb[4].mxu0 }
 0x332   : > { %v8358_v14 = vpop.f32.mrb[5].mxu0  ;;  %v809_v16 = vand.u32 127, %v804_v52 }
 0x333   : > { %v1328_v20 = vcombine.low %v1303_v10, %v1311_v17  ;;  %v1329_v21 = vcombine.high %v1303_v10, %v1311_v17  ;;  %v1344_v22 = vcombine.low %v1319_v18, %v1327_v19  ;;  %v1345_v23 = vcombine.high %v1319_v18, %v1327_v19 }
 0x334   : > { %v1516_v9 = vcombine.low %v8356_v41, %v8358_v14  ;;  %v1517_v15 = vcombine.high %v8356_v41, %v8358_v14  ;;  %vm810_vm2 = vcmp.gt.s32.totalorder %v809_v16, %v8290_v57 }
 0x335   : > { %v1336_v24 = vrot.slane %v1328_v20, %v8296_v0  ;;  %v1352_v25 = vrot.slane %v1344_v22, %v8296_v0  ;;  %v1343_v26 = vrot.slane %v1329_v21, %v8296_v0  ;;  %v1359_v27 = vrot.slane %v1345_v23, %v8296_v0 }
 0x336   : > { %v811_v5 = vsel %vm810_vm2, -1e+09, %v7730_v51 }
 0x337   : > { %v1360_v28 = vcombine.low %v1336_v24, %v1352_v25  ;;  %v1361_v29 = vcombine.high %v1336_v24, %v1352_v25  ;;  %v1362_v30 = vcombine.low %v1343_v26, %v1359_v27  ;;  %v1363_v31 = vcombine.high %v1343_v26, %v1359_v27 }
 0x362   : > { %v1366_v32 = vpop.permute.xlu0 %1365 }
 0x366   : > { %v1370_v33 = vpop.permute.xlu0 %1369 }
 0x367   : > { %v1388_v34 = vcombine.low %v1366_v32, %v1370_v33  ;;  %v1389_v35 = vcombine.high %v1366_v32, %v1370_v33 }
 0x369   : > { %v1396_v38 = vrot.slane %v1388_v34, %v8293_v60  ;;  %v1403_v39 = vrot.slane %v1389_v35, %v8293_v60 }
 0x36b   : > { %v1404_v42 = vcombine.low %v1380_v36, %v1396_v38  ;;  %v1405_v43 = vcombine.high %v1380_v36, %v1396_v38  ;;  %v1420_v44 = vcombine.low %v1387_v37, %v1403_v39  ;;  %v1421_v45 = vcombine.high %v1387_v37, %v1403_v39 }
 0x36d   : > { %v1412_v46 = vrot.slane %v1404_v42, %v8296_v0  ;;  %v1419_v47 = vrot.slane %v1405_v43, %v8296_v0  ;;  %v1428_v48 = vrot.slane %v1420_v44, %v8296_v0  ;;  %v1435_v53 = vrot.slane %v1421_v45, %v8296_v0 }
 0x36f   : > { %v1440_v54 = vcombine.low %v1412_v46, %v1419_v47  ;;  %v5841_v49 = vcombine.high %v1412_v46, %v1419_v47  ;;  %v1456_v55 = vcombine.low %v1428_v48, %v1435_v53  ;;  %v5842_v50 = vcombine.high %v1428_v48, %v1435_v53 }
 0x371   : > { %v1447_v56 = vrot.slane %v1440_v54, %v8293_v60  ;;  %v1455_v58 = vrot.slane %v5841_v49, %v8293_v60  ;;  %v1463_v59 = vrot.slane %v1456_v55, %v8293_v60  ;;  %v1471_v40 = vrot.slane %v5842_v50, %v8293_v60 }
 0x373   : > { %v1472_v61 = vcombine.low %v1447_v56, %v1455_v58  ;;  %v1473_v62 = vcombine.high %v1447_v56, %v1455_v58  ;;  %v1488_v63 = vcombine.low %v1463_v59, %v1471_v40  ;;  %v1489_v1 = vcombine.high %v1463_v59, %v1471_v40 }
 0x375   : > { %v1480_v2 = vrot.slane %v1472_v61, %v8296_v0  ;;  %v1496_v3 = vrot.slane %v1488_v63, %v8296_v0  ;;  %v1487_v4 = vrot.slane %v1473_v62, %v8296_v0  ;;  %v1503_v7 = vrot.slane %v1489_v1, %v8296_v0 }
 0x376   : > { %v1524_v61 = vrot.slane %v1516_v9, %v8293_v60  ;;  %v1531_v62 = vrot.slane %v1517_v15, %v8293_v60 }
 0x377   : > { %v1504_v8 = vcombine.low %v1480_v2, %v1496_v3  ;;  %v1505_v11 = vcombine.high %v1480_v2, %v1496_v3  ;;  %v1506_v12 = vcombine.low %v1487_v4, %v1503_v7  ;;  %v1507_v13 = vcombine.high %v1487_v4, %v1503_v7 }
 0x379   : > { %5920 = vmatpush3.xpose.msk.msra.mxu0 %vm1652_vm1, %v1504_v8 }
 0x37a   : > { %5924 = vmatprep.subr.mxu0 %v7730_v51 }
 0x37c   : > { %5922 = vmatmul.mubr.msk.f32.vlgmr.msra.gmra.mrb[6].mxu0 %vm1652_vm1, %v1360_v28 }
 0x37d   : > { %5925 = vmatpush3.xpose.msk.msra.mxu0 %vm1652_vm1, %v1505_v11  ;;  %5926 = vmatprep.mubr.msk.f32.mxu0 %vm7731_vm0, %v7730_v51 }
 0x37e   : > { %5929 = vmatprep.subr.mxu0 %v7730_v51 }
 0x380   : > { %5927 = vmatmul.mubr.msk.f32.vlgmr.msra.gmra.mrb[8].mxu0 %vm1652_vm1, %v1361_v29 }
 0x381   : > { %5930 = vmatpush3.xpose.msk.msra.mxu0 %vm1652_vm1, %v1506_v12  ;;  %5931 = vmatprep.mubr.msk.f32.mxu0 %vm7731_vm0, %v7730_v51 }
 0x382   : > { %5934 = vmatprep.subr.mxu0 %v7730_v51 }
 0x384   : > { %5932 = vmatmul.mubr.msk.f32.vlgmr.msra.gmra.mrb[10].mxu0 %vm1652_vm1, %v1362_v30 }
 0x385   : > { %5935 = vmatpush3.xpose.msk.msra.mxu0 %vm1652_vm1, %v1507_v13  ;;  %5936 = vmatprep.mubr.msk.f32.mxu0 %vm7731_vm0, %v7730_v51 }
 0x386   : > { %5939 = vmatprep.subr.mxu0 %v7730_v51 }
 0x388   : > { %5937 = vmatmul.mubr.msk.f32.vlgmr.msra.gmra.mrb[12].mxu0 %vm1652_vm1, %v1363_v31 }
 0x389   : > { %5941 = vmatprep.mubr.msk.f32.mxu0 %vm7731_vm0, %v7730_v51 }
 0x44f   : > { %v1725_v6 = vpop.f32.mrb[6].mxu0 }
 0x450   : > { %v1726_v10 = vadd.f32 %v1725_v6, %v811_v5  ;;  %v5923_v17 = vpop.f32.mrb[7].mxu0 }
 0x452   : > { %v1958_v18 = vsel %vm1957_vm3, %v1726_v10, -inf }
 0x453   : > { %1959 = vmax.xlane.f32.xlu0 %v1958_v18  ;;  %v1801_v19 = vpop.f32.mrb[8].mxu0 }
 0x454   : > { %v1802_v20 = vadd.f32 %v1801_v19, %v811_v5  ;;  %v5928_v21 = vpop.f32.mrb[9].mxu0 }
 0x456   : > { %v1961_v22 = vsel %vm1957_vm3, %v1802_v20, -inf }
 0x457   : > { %1962 = vmax.xlane.f32.xlu1 %v1961_v22  ;;  %v1877_v23 = vpop.f32.mrb[10].mxu0 }
 0x458   : > { %v1878_v24 = vadd.f32 %v1877_v23, %v811_v5  ;;  %v5933_v52 = vpop.f32.mrb[11].mxu0 }
 0x45a   : > { %v1964_v25 = vsel %vm1957_vm3, %v1878_v24, -inf }
 0x45b   : > { %1965 = vmax.xlane.f32.xlu0 %v1964_v25  ;;  %v1953_v26 = vpop.f32.mrb[12].mxu0 }
 0x45c   : > { %v1954_v27 = vadd.f32 %v1953_v26, %v811_v5  ;;  %v5938_v28 = vpop.f32.mrb[13].mxu0 }
 0x45e   : > { %v1967_v29 = vsel %vm1957_vm3, %v1954_v27, -inf }
 0x45f   : > { %1968 = vmax.xlane.f32.xlu0 %v1967_v29 }
 0x4e0   : > { %v1960_v30 = vpop.xlane.xlu0 %1959 }
 0x4e1   : > { %v1970_v31 = vsub.f32 %v1726_v10, %v1960_v30 }
 0x4e3   : > { %v1974_v32 = vmul.f32 1.442695, %v1970_v31 }
 0x4e4   : > { %v1963_v33 = vpop.xlane.xlu1 %1962 }
 0x4e5   : > { %7221 = vpow2.f32 %v1974_v32  ;;  %v1971_v34 = vsub.f32 %v1802_v20, %v1963_v33 }
 0x4e7   : > { %v1976_v35 = vmul.f32 1.442695, %v1971_v34 }
 0x4e8   : > { %v1966_v42 = vpop.xlane.xlu0 %1965 }
 0x4e9   : > { %7223 = vpow2.f32 %v1976_v35  ;;  %v1972_v43 = vsub.f32 %v1878_v24, %v1966_v42  ;;  %v2440_v42 = vld [vmem:[#allocation11] sm:$0xff] }
 0x4eb   : > { %v1978_v45 = vmul.f32 1.442695, %v1972_v43 }
 0x4ec   : > { %v1969_v44 = vpop.xlane.xlu0 %1968 }
 0x4ed   : > { %v1973_v46 = vsub.f32 %v1954_v27, %v1969_v44  ;;  %7225 = vpow2.f32 %v1978_v45  ;;  %v2442_v44 = vld [vmem:[#allocation11 + $0x10] sm:$0xff]  ;;  %v2445_v45 = vld [vmem:[#allocation11 + $0x28] sm:$0xff] }
 0x4ef   : > { %v8371_v36 = vpop.eup %7221  ;;  %v1980_v47 = vmul.f32 1.442695, %v1973_v46  ;;  %v2447_v46 = vld [vmem:[#allocation11 + $0x38] sm:$0xff] }
 0x4f0   : > { %v1982_v37 = vsel %vm1957_vm3, %v8371_v36, 0.0 }
 0x4f1   : > { %1983 = vadd.xlane.f32.xlu1 %v1982_v37  ;;  %7227 = vpow2.f32 %v1980_v47  ;;  %v6193_v47 = vpack.c.bf16 %v2442_v44, %v2440_v42  ;;  %v2482_v44 = vld [vmem:[#allocation11 + $0x150] sm:$0xff] }
 0x4f3   : > { %v8375_v38 = vpop.eup %7223 }
 0x4f4   : > { %v1985_v39 = vsel %vm1957_vm3, %v8375_v38, 0.0 }
 0x4f5   : > { %1986 = vadd.xlane.f32.xlu0 %v1985_v39  ;;  %v2443_v39 = vld [vmem:[#allocation11 + $0x18] sm:$0xff] }
 0x4f7   : > { %v8383_v48 = vpop.eup %7225 }
 0x4f8   : > { %v1988_v53 = vsel %vm1957_vm3, %v8383_v48, 0.0 }
 0x4fb   : > { %v8387_v54 = vpop.eup %7227 }
 0x4fc   : > { %v1991_v49 = vsel %vm1957_vm3, %v8387_v54, 0.0 }
 0x502   : > { %1509 = vrot.lane.b32.xlu1 %v8356_v41, %s7729_s20 }
 0x50b   : > { %1513 = vrot.lane.b32.xlu0 %v8358_v14, %s7729_s20 }
 0x526   : > { %1989 = vadd.xlane.f32.xlu1 %v1988_v53  ;;  %v2444_v53 = vld [vmem:[#allocation11 + $0x20] sm:$0xff] }
 0x52a   : > { %1992 = vadd.xlane.f32.xlu0 %v1991_v49  ;;  %v2446_v49 = vld [vmem:[#allocation11 + $0x30] sm:$0xff] }
 0x57e   : > { %v1984_v55 = vpop.xlane.xlu1 %1983 }
 0x57f   : > { %7229 = vrcp.f32 %v1984_v55  ;;  %v2449_v55 = vld [vmem:[#allocation11 + $0x48] sm:$0xff] }
 0x582   : > { %v1987_v50 = vpop.xlane.xlu0 %1986  ;;  %v1510_v56 = vpop.permute.xlu1 %1509 }
 0x583   : > { %7231 = vrcp.f32 %v1987_v50  ;;  %v2451_v50 = vld [vmem:[#allocation11 + $0x58] sm:$0xff] }
 0x586   : > { %v1514_v58 = vpop.permute.xlu0 %1513 }
 0x587   : > { %v1532_v59 = vcombine.low %v1510_v56, %v1514_v58  ;;  %v1533_v40 = vcombine.high %v1510_v56, %v1514_v58  ;;  %v6197_v56 = vpack.c.bf16 %v2446_v49, %v2444_v53  ;;  %v2448_v58 = vld [vmem:[#allocation11 + $0x40] sm:$0xff]  ;;  %v2486_v49 = vld [vmem:[#allocation11 + $0x170] sm:$0xff] }
 0x588   : > { %v2484_v53 = vld [vmem:[#allocation11 + $0x160] sm:$0xff] }
 0x589   : > { %v1540_v63 = vrot.slane %v1532_v59, %v8293_v60  ;;  %v1547_v1 = vrot.slane %v1533_v40, %v8293_v60  ;;  %v7230_v21 = vpop.eup %7229  ;;  %v2450_v59 = vld [vmem:[#allocation11 + $0x50] sm:$0xff]  ;;  %v2453_v40 = vld [vmem:[#allocation11 + $0x68] sm:$0xff] }
 0x58a   : > { %v1998_v30 = vmul.f32 %v7230_v21, %v8371_v36  ;;  %v2471_v21 = vld [vmem:[#allocation11 + $0xf8] sm:$0xff] }
 0x58b   : > { %v1548_v2 = vcombine.low %v1524_v61, %v1540_v63  ;;  %v1549_v3 = vcombine.high %v1524_v61, %v1540_v63  ;;  %v1564_v4 = vcombine.low %v1531_v62, %v1547_v1  ;;  %v1565_v7 = vcombine.high %v1531_v62, %v1547_v1  ;;  %v2455_v61 = vld [vmem:[#allocation11 + $0x78] sm:$0xff]  ;;  %v2452_v1 = vld [vmem:[#allocation11 + $0x60] sm:$0xff] }
 0x58c   : > { %v6201_v62 = vpack.c.bf16 %v2450_v59, %v2448_v58  ;;  %v6203_v63 = vpack.c.bf16 %v2455_v61, %v2453_v40  ;;  %v2488_v58 = vld [vmem:[#allocation11 + $0x180] sm:$0xff]  ;;  %v2490_v59 = vld [vmem:[#allocation11 + $0x190] sm:$0xff]  ;;  %v2493_v40 = vld [vmem:[#allocation11 + $0x1a8] sm:$0xff] }
 0x58d   : > { %v1556_v8 = vrot.slane %v1548_v2, %v8296_v0  ;;  %v1563_v11 = vrot.slane %v1549_v3, %v8296_v0  ;;  %v1572_v12 = vrot.slane %v1564_v4, %v8296_v0  ;;  %v1579_v13 = vrot.slane %v1565_v7, %v8296_v0  ;;  %v7232_v29 = vpop.eup %7231  ;;  %v2454_v2 = vld [vmem:[#allocation11 + $0x70] sm:$0xff]  ;;  %v2457_v3 = vld [vmem:[#allocation11 + $0x88] sm:$0xff]  ;;  %v2459_v4 = vld [vmem:[#allocation11 + $0x98] sm:$0xff] }
 0x58e   : > { %v1999_v31 = vmul.f32 %v7232_v29, %v8375_v38  ;;  %v2441_v38 = vld [vmem:[#allocation11 + $0x8] sm:$0xff]  ;;  %v6205_v7 = vpack.c.bf16 %v2454_v2, %v2452_v1  ;;  %v2472_v29 = vld [vmem:[#allocation11 + $0x100] sm:$0xff]  ;;  %v2495_v61 = vld [vmem:[#allocation11 + $0x1b8] sm:$0xff] }
 0x58f   : > { %v1584_v41 = vcombine.low %v1556_v8, %v1563_v11  ;;  %v5843_v14 = vcombine.high %v1556_v8, %v1563_v11  ;;  %v1600_v9 = vcombine.low %v1572_v12, %v1579_v13  ;;  %v5844_v15 = vcombine.high %v1572_v12, %v1579_v13  ;;  %v2456_v11 = vld [vmem:[#allocation11 + $0x80] sm:$0xff]  ;;  %v2458_v12 = vld [vmem:[#allocation11 + $0x90] sm:$0xff]  ;;  %v2461_v13 = vld [vmem:[#allocation11 + $0xa8] sm:$0xff] }
 0x590   : > { %v6191_v43 = vpack.c.bf16 %v2443_v39, %v2441_v38  ;;  %v6207_v8 = vpack.c.bf16 %v2459_v4, %v2457_v3  ;;  %v2483_v38 = vld [vmem:[#allocation11 + $0x158] sm:$0xff]  ;;  %v2492_v1 = vld [vmem:[#allocation11 + $0x1a0] sm:$0xff]  ;;  %v2494_v2 = vld [vmem:[#allocation11 + $0x1b0] sm:$0xff] }
 0x591   : > { %v1591_v16 = vrot.slane %v1584_v41, %v8293_v60  ;;  %v1599_v5 = vrot.slane %v5843_v14, %v8293_v60  ;;  %v1607_v6 = vrot.slane %v1600_v9, %v8293_v60  ;;  %v1615_v10 = vrot.slane %v5844_v15, %v8293_v60  ;;  %v2463_v41 = vld [vmem:[#allocation11 + $0xb8] sm:$0xff]  ;;  %v2460_v15 = vld [vmem:[#allocation11 + $0xa0] sm:$0xff]  ;;  %v2497_v3 = vld [vmem:[#allocation11 + $0x1c8] sm:$0xff] }
 0x592   : > { %6192 = vmatprep.subr.bf16.mxu1 %v6191_v43  ;;  %v6209_v14 = vpack.c.bf16 %v2458_v12, %v2456_v11  ;;  %v6211_v9 = vpack.c.bf16 %v2463_v41, %v2461_v13  ;;  %v2480_v43 = vld [vmem:[#allocation11 + $0x140] sm:$0xff]  ;;  %v2499_v4 = vld [vmem:[#allocation11 + $0x1d8] sm:$0xff]  ;;  %v2498_v12 = vld [vmem:[#allocation11 + $0x1d0] sm:$0xff] }
 0x593   : > { %v1616_v17 = vcombine.low %v1591_v16, %v1599_v5  ;;  %v1632_v18 = vcombine.low %v1607_v6, %v1615_v10  ;;  %v1617_v19 = vcombine.high %v1591_v16, %v1599_v5  ;;  %v1633_v20 = vcombine.high %v1607_v6, %v1615_v10  ;;  %6194 = vmatpush1.bf16.msra.mxu1 %v6193_v47  ;;  %v2462_v16 = vld [vmem:[#allocation11 + $0xb0] sm:$0xff]  ;;  %v2465_v5 = vld [vmem:[#allocation11 + $0xc8] sm:$0xff]  ;;  %v2467_v6 = vld [vmem:[#allocation11 + $0xd8] sm:$0xff] }
 0x594   : > { %v6213_v10 = vpack.c.bf16 %v2462_v16, %v2460_v15  ;;  %v6233_v47 = vpack.c.bf16 %v2482_v44, %v2480_v43  ;;  %v2496_v11 = vld [vmem:[#allocation11 + $0x1c0] sm:$0xff] }
 0x595   : > { %v1624_v22 = vrot.slane %v1616_v17, %v8296_v0  ;;  %v1640_v23 = vrot.slane %v1632_v18, %v8296_v0  ;;  %v1631_v24 = vrot.slane %v1617_v19, %v8296_v0  ;;  %v1647_v52 = vrot.slane %v1633_v20, %v8296_v0  ;;  %v2464_v18 = vld [vmem:[#allocation11 + $0xc0] sm:$0xff]  ;;  %v2466_v19 = vld [vmem:[#allocation11 + $0xd0] sm:$0xff]  ;;  %v2469_v20 = vld [vmem:[#allocation11 + $0xe8] sm:$0xff] }
 0x596   : > { %v6215_v17 = vpack.c.bf16 %v2467_v6, %v2465_v5  ;;  %v6249_v13 = vpack.c.bf16 %v2498_v12, %v2496_v11  ;;  %v2758_v11 = vld [vmem:[#allocation14 + $0x18] sm:$0xff]  ;;  %v2755_v12 = vld [vmem:[#allocation14] sm:$0xff] }
 0x597   : > { %v1648_v25 = vcombine.low %v1624_v22, %v1640_v23  ;;  %v1649_v26 = vcombine.high %v1624_v22, %v1640_v23  ;;  %v1650_v27 = vcombine.low %v1631_v24, %v1647_v52  ;;  %v1651_v28 = vcombine.high %v1631_v24, %v1647_v52  ;;  %v2468_v24 = vld [vmem:[#allocation11 + $0xe0] sm:$0xff]  ;;  %v2470_v52 = vld [vmem:[#allocation11 + $0xf0] sm:$0xff] }
 0x598   : > { %v6217_v22 = vpack.c.bf16 %v2466_v19, %v2464_v18  ;;  %v6219_v23 = vpack.c.bf16 %v2471_v21, %v2469_v20 }
 0x599   : > { %5940 = vmatpush3.msra.mxu0 %v1648_v25  ;;  %v2473_v25 = vld [vmem:[#allocation11 + $0x108] sm:$0xff] }
 0x59a   : > { %5942 = vmatmul.mubr.msk.f32.vlgmr.msra.gmra.mrb[14].mxu0 %vm1957_vm3, %v1998_v30  ;;  %5944 = vmatprep.subr.mxu0 %v7730_v51  ;;  %v2474_v30 = vld [vmem:[#allocation11 + $0x110] sm:$0xff] }
 0x59b   : > { %5945 = vmatpush3.msra.mxu0 %v1649_v26  ;;  %5946 = vmatprep.mubr.msk.f32.mxu0 %vm7731_vm0, %v7730_v51  ;;  %v2475_v26 = vld [vmem:[#allocation11 + $0x118] sm:$0xff] }
 0x59c   : > { %5949 = vmatprep.subr.mxu0 %v7730_v51 }
 0x59e   : > { %5947 = vmatmul.mubr.msk.f32.vlgmr.msra.gmra.mrb[16].mxu0 %vm1957_vm3, %v1999_v31  ;;  %v2477_v31 = vld [vmem:[#allocation11 + $0x128] sm:$0xff] }
 0x59f   : > { %5950 = vmatpush3.msra.mxu0 %v1650_v27  ;;  %5951 = vmatprep.mubr.msk.f32.mxu0 %vm7731_vm0, %v7730_v51  ;;  %v6221_v27 = vpack.c.bf16 %v2470_v52, %v2468_v24 }
 0x5a0   : > { %5954 = vmatprep.subr.mxu0 %v7730_v51 }
 0x5b3   : > { %v1990_v32 = vpop.xlane.xlu1 %1989 }
 0x5b4   : > { %7233 = vrcp.f32 %v1990_v32  ;;  %v2479_v32 = vld [vmem:[#allocation11 + $0x138] sm:$0xff] }
 0x5b7   : > { %v1993_v33 = vpop.xlane.xlu0 %1992 }
 0x5b8   : > { %7235 = vrcp.f32 %v1993_v33  ;;  %v6225_v33 = vpack.c.bf16 %v2474_v30, %v2472_v29  ;;  %v2503_v29 = vld [vmem:[#allocation11 + $0x1f8] sm:$0xff] }
 0x5be   : > { %v7234_v34 = vpop.eup %7233 }
 0x5bf   : > { %v2000_v35 = vmul.f32 %v7234_v34, %v8383_v48  ;;  %v6195_v48 = vpack.c.bf16 %v2447_v46, %v2445_v45  ;;  %v6227_v34 = vpack.c.bf16 %v2479_v32, %v2477_v31  ;;  %v2485_v45 = vld [vmem:[#allocation11 + $0x168] sm:$0xff]  ;;  %v2487_v46 = vld [vmem:[#allocation11 + $0x178] sm:$0xff] }
 0x5c1   : > { %5952 = vmatmul.mubr.msk.f32.vlgmr.msra.gmra.mrb[18].mxu0 %vm1957_vm3, %v2000_v35  ;;  %6196 = vmatprep.subr.bf16.mxu1 %v6195_v48  ;;  %v2476_v35 = vld [vmem:[#allocation11 + $0x120] sm:$0xff]  ;;  %v6235_v48 = vpack.c.bf16 %v2487_v46, %v2485_v45 }
 0x5c2   : > { %v7236_v36 = vpop.eup %7235  ;;  %5955 = vmatpush3.msra.mxu0 %v1651_v28  ;;  %5956 = vmatprep.mubr.msk.f32.mxu0 %vm7731_vm0, %v7730_v51  ;;  %v6223_v28 = vpack.c.bf16 %v2475_v26, %v2473_v25 }
 0x5c3   : > { %v2001_v37 = vmul.f32 %v7236_v36, %v8387_v54  ;;  %v6199_v54 = vpack.c.bf16 %v2451_v50, %v2449_v55  ;;  %6198 = vmatpush1.bf16.msra.mxu1 %v6197_v56  ;;  %v2478_v36 = vld [vmem:[#allocation11 + $0x130] sm:$0xff]  ;;  %v2489_v55 = vld [vmem:[#allocation11 + $0x188] sm:$0xff]  ;;  %v2491_v50 = vld [vmem:[#allocation11 + $0x198] sm:$0xff]  ;;  %v6237_v56 = vpack.c.bf16 %v2486_v49, %v2484_v53 }
 0x5c4   : > { %v6229_v39 = vpack.c.bf16 %v2478_v36, %v2476_v35  ;;  %v2502_v35 = vld [vmem:[#allocation11 + $0x1f0] sm:$0xff] }
 0x5c5   : > { %5957 = vmatmul.mubr.msk.f32.vlgmr.msra.gmra.mrb[20].mxu0 %vm1957_vm3, %v2001_v37  ;;  %6200 = vmatprep.subr.bf16.mxu1 %v6199_v54  ;;  %v2481_v37 = vld [vmem:[#allocation11 + $0x148] sm:$0xff]  ;;  %v6239_v54 = vpack.c.bf16 %v2491_v50, %v2489_v55 }
 0x5c6   : > { %v6231_v42 = vpack.c.bf16 %v2483_v38, %v2481_v37 }
 0x5c7   : > { %6202 = vmatpush1.bf16.msra.mxu1 %v6201_v62  ;;  %v6241_v62 = vpack.c.bf16 %v2490_v59, %v2488_v58 }
 0x5c8   : > { %6204 = vmatprep.subr.bf16.mxu1 %v6203_v63  ;;  %v6243_v63 = vpack.c.bf16 %v2495_v61, %v2493_v40 }
 0x5cb   : > { %6206 = vmatpush1.bf16.msra.mxu1 %v6205_v7  ;;  %v6245_v7 = vpack.c.bf16 %v2494_v2, %v2492_v1 }
 0x5cc   : > { %6208 = vmatprep.subr.bf16.mxu1 %v6207_v8  ;;  %v6247_v8 = vpack.c.bf16 %v2499_v4, %v2497_v3 }
 0x5cf   : > { %6210 = vmatpush1.bf16.msra.mxu1 %v6209_v14 }
 0x5d0   : > { %6212 = vmatprep.subr.bf16.mxu1 %v6211_v9 }
 0x5d3   : > { %6214 = vmatpush1.bf16.msra.mxu1 %v6213_v10 }
 0x5d4   : > { %6216 = vmatprep.subr.bf16.mxu1 %v6215_v17 }
 0x5d7   : > { %6218 = vmatpush1.bf16.msra.mxu1 %v6217_v22 }
 0x5d8   : > { %6220 = vmatprep.subr.bf16.mxu1 %v6219_v23 }
 0x5db   : > { %6222 = vmatpush1.bf16.msra.mxu1 %v6221_v27 }
 0x5dc   : > { %6224 = vmatprep.subr.bf16.mxu1 %v6223_v28  ;;  %v2501_v28 = vld [vmem:[#allocation11 + $0x1e8] sm:$0xff] }
 0x5dd   : > { %v6251_v36 = vpack.c.bf16 %v2503_v29, %v2501_v28  ;;  %v2768_v29 = vld [vmem:[#allocation14 + $0x68] sm:$0xff] }
 0x5df   : > { %6226 = vmatpush1.bf16.msra.mxu1 %v6225_v33 }
 0x5e0   : > { %6228 = vmatprep.subr.bf16.mxu1 %v6227_v34  ;;  %v2500_v34 = vld [vmem:[#allocation11 + $0x1e0] sm:$0xff] }
 0x5e1   : > { %v6253_v37 = vpack.c.bf16 %v2502_v35, %v2500_v34  ;;  %v2772_v35 = vld [vmem:[#allocation14 + $0x88] sm:$0xff] }
 0x5e3   : > { %6230 = vmatpush1.bf16.msra.mxu1 %v6229_v39 }
 0x5e4   : > { %6232 = vmatprep.subr.bf16.mxu1 %v6231_v42 }
 0x5e7   : > { %6234 = vmatpush1.bf16.msra.mxu1 %v6233_v47 }
 0x5e8   : > { %6236 = vmatprep.subr.bf16.mxu1 %v6235_v48 }
 0x5eb   : > { %6238 = vmatpush1.bf16.msra.mxu1 %v6237_v56 }
 0x5ec   : > { %6240 = vmatprep.subr.bf16.mxu1 %v6239_v54 }
 0x5ef   : > { %6242 = vmatpush1.bf16.msra.mxu1 %v6241_v62 }
 0x5f0   : > { %6244 = vmatprep.subr.bf16.mxu1 %v6243_v63 }
 0x5f3   : > { %6246 = vmatpush1.bf16.msra.mxu1 %v6245_v7 }
 0x5f4   : > { %6248 = vmatprep.subr.bf16.mxu1 %v6247_v8  ;;  %v2756_v8 = vld [vmem:[#allocation14 + $0x8] sm:$0xff] }
 0x5f7   : > { %6250 = vmatpush1.bf16.msra.mxu1 %v6249_v13  ;;  %v6319_v13 = vpack.c.bf16 %v2758_v11, %v2756_v8  ;;  %v2792_v8 = vld [vmem:[#allocation14 + $0x128] sm:$0xff]  ;;  %v2794_v11 = vld [vmem:[#allocation14 + $0x138] sm:$0xff] }
 0x5f8   : > { %6252 = vmatprep.subr.bf16.mxu1 %v6251_v36  ;;  %v2774_v36 = vld [vmem:[#allocation14 + $0x98] sm:$0xff] }
 0x5fb   : > { %6254 = vmatpush1.bf16.msra.mxu1 %v6253_v37  ;;  %v6335_v37 = vpack.c.bf16 %v2774_v36, %v2772_v35  ;;  %v2799_v36 = vld [vmem:[#allocation14 + $0x160] sm:$0xff] }
 0x5fc   : > { %6320 = vmatprep.subr.bf16.mxu1 %v6319_v13  ;;  %v6355_v13 = vpack.c.bf16 %v2794_v11, %v2792_v8  ;;  %v2814_v8 = vld [vmem:[#allocation14 + $0x1d8] sm:$0xff] }
 0x66d   : > { %v2071_v41 = vpop.f32.mrb[14].mxu0 }
 0x66e   : > { %v5943_v14 = vpop.f32.mrb[15].mxu0 }
 0x66f   : > { %v2760_v14 = vld [vmem:[#allocation14 + $0x28] sm:$0xff] }
 0x671   : > { %v2144_v9 = vpop.f32.mrb[16].mxu0 }
 0x672   : > { %v5948_v15 = vpop.f32.mrb[17].mxu0 }
 0x694   : > { %v2217_v16 = vpop.f32.mrb[18].mxu0 }
 0x695   : > { %v2294_v5 = vcombine.low %v2071_v41, %v2217_v16  ;;  %v2295_v6 = vcombine.high %v2071_v41, %v2217_v16  ;;  %v5953_v10 = vpop.f32.mrb[19].mxu0  ;;  %v2757_v41 = vld [vmem:[#allocation14 + $0x10] sm:$0xff] }
 0x696   : > { %v6321_v15 = vpack.c.bf16 %v2757_v41, %v2755_v12  ;;  %v2764_v10 = vld [vmem:[#allocation14 + $0x48] sm:$0xff]  ;;  %v2791_v41 = vld [vmem:[#allocation14 + $0x120] sm:$0xff] }
 0x697   : > { %v2302_v21 = vrot.slane %v2294_v5, %v8293_v60  ;;  %v2309_v22 = vrot.slane %v2295_v6, %v8293_v60  ;;  %v2759_v5 = vld [vmem:[#allocation14 + $0x20] sm:$0xff]  ;;  %v2761_v6 = vld [vmem:[#allocation14 + $0x30] sm:$0xff] }
 0x698   : > { %v2290_v17 = vpop.f32.mrb[20].mxu0 }
 0x699   : > { %v2310_v18 = vcombine.low %v2144_v9, %v2290_v17  ;;  %v2311_v19 = vcombine.high %v2144_v9, %v2290_v17  ;;  %v5958_v20 = vpop.f32.mrb[21].mxu0  ;;  %v2762_v9 = vld [vmem:[#allocation14 + $0x38] sm:$0xff] }
 0x69a   : > { %v6323_v16 = vpack.c.bf16 %v2762_v9, %v2760_v14  ;;  %v2766_v17 = vld [vmem:[#allocation14 + $0x58] sm:$0xff]  ;;  %v2763_v20 = vld [vmem:[#allocation14 + $0x40] sm:$0xff]  ;;  %v2793_v14 = vld [vmem:[#allocation14 + $0x130] sm:$0xff] }
 0x69b   : > { %v2318_v23 = vrot.slane %v2310_v18, %v8293_v60  ;;  %v2325_v24 = vrot.slane %v2311_v19, %v8293_v60  ;;  %v6325_v18 = vpack.c.bf16 %v2761_v6, %v2759_v5  ;;  %v6327_v19 = vpack.c.bf16 %v2766_v17, %v2764_v10  ;;  %v2796_v9 = vld [vmem:[#allocation14 + $0x148] sm:$0xff]  ;;  %v2797_v5 = vld [vmem:[#allocation14 + $0x150] sm:$0xff]  ;;  %v2802_v17 = vld [vmem:[#allocation14 + $0x178] sm:$0xff] }
 0x69c   : > { %v6357_v6 = vpack.c.bf16 %v2793_v14, %v2791_v41  ;;  %v2800_v10 = vld [vmem:[#allocation14 + $0x168] sm:$0xff]  ;;  %v2643_v14 = vld [vmem:[#allocation13 + $0xb8] sm:$0xff] }
 0x69d   : > { %v2326_v52 = vcombine.low %v2302_v21, %v2318_v23  ;;  %v2327_v25 = vcombine.high %v2302_v21, %v2318_v23  ;;  %v2342_v26 = vcombine.low %v2309_v22, %v2325_v24  ;;  %v2343_v27 = vcombine.high %v2309_v22, %v2325_v24  ;;  %v2765_v21 = vld [vmem:[#allocation14 + $0x50] sm:$0xff]  ;;  %v2641_v41 = vld [vmem:[#allocation13 + $0xa8] sm:$0xff] }
 0x69e   : > { %v6329_v22 = vpack.c.bf16 %v2765_v21, %v2763_v20  ;;  %v7259_v24 = vld [vmem:[%s8219_s21] sm:$0xff]  ;;  %v2621_v20 = vld [vmem:[#allocation13 + $0x8] sm:$0xff]  ;;  %v2623_v21 = vld [vmem:[#allocation13 + $0x18] sm:$0xff]  ;;  %v6363_v35 = vpack.c.bf16 %v2802_v17, %v2800_v10 }
 0x69f   : > { %v2334_v30 = vrot.slane %v2326_v52, %v8296_v0  ;;  %v2341_v31 = vrot.slane %v2327_v25, %v8296_v0  ;;  %v2350_v32 = vrot.slane %v2342_v26, %v8296_v0  ;;  %v2357_v33 = vrot.slane %v2343_v27, %v8296_v0  ;;  %v7260_v26 = vld [vmem:[%s8219_s21 + $0x8] sm:$0xff] }
 0x6a0   : > { %v2818_v17 = vld [vmem:[#allocation14 + $0x1f8] sm:$0xff] }
 0x6a1   : > { %v2362_v38 = vcombine.low %v2334_v30, %v2341_v31  ;;  %v5857_v39 = vcombine.high %v2334_v30, %v2341_v31  ;;  %v2378_v42 = vcombine.low %v2350_v32, %v2357_v33  ;;  %v5858_v43 = vcombine.high %v2350_v32, %v2357_v33  ;;  %v2770_v30 = vld [vmem:[#allocation14 + $0x78] sm:$0xff]  ;;  %v2767_v32 = vld [vmem:[#allocation14 + $0x60] sm:$0xff]  ;;  %v2769_v33 = vld [vmem:[#allocation14 + $0x70] sm:$0xff] }
 0x6a2   : > { %v6331_v31 = vpack.c.bf16 %v2770_v30, %v2768_v29  ;;  %v6333_v34 = vpack.c.bf16 %v2769_v33, %v2767_v32  ;;  %v2624_v30 = vld [vmem:[#allocation13 + $0x20] sm:$0xff]  ;;  %v2629_v32 = vld [vmem:[#allocation13 + $0x48] sm:$0xff] }
 0x6a3   : > { %v2369_v44 = vrot.slane %v2362_v38, %v8293_v60  ;;  %v2377_v45 = vrot.slane %v5857_v39, %v8293_v60  ;;  %v2385_v46 = vrot.slane %v2378_v42, %v8293_v60  ;;  %v2393_v47 = vrot.slane %v5858_v43, %v8293_v60  ;;  %v2771_v38 = vld [vmem:[#allocation14 + $0x80] sm:$0xff]  ;;  %v2773_v39 = vld [vmem:[#allocation14 + $0x90] sm:$0xff]  ;;  %v2776_v42 = vld [vmem:[#allocation14 + $0xa8] sm:$0xff] }
 0x6a4   : > { %v6337_v43 = vpack.c.bf16 %v2773_v39, %v2771_v38  ;;  %v2804_v38 = vld [vmem:[#allocation14 + $0x188] sm:$0xff] }
 0x6a5   : > { %v2394_v48 = vcombine.low %v2369_v44, %v2377_v45  ;;  %v2395_v53 = vcombine.high %v2369_v44, %v2377_v45  ;;  %v2410_v49 = vcombine.low %v2385_v46, %v2393_v47  ;;  %v2411_v55 = vcombine.high %v2385_v46, %v2393_v47  ;;  %v2778_v44 = vld [vmem:[#allocation14 + $0xb8] sm:$0xff]  ;;  %v2775_v46 = vld [vmem:[#allocation14 + $0xa0] sm:$0xff]  ;;  %v2777_v47 = vld [vmem:[#allocation14 + $0xb0] sm:$0xff] }
 0x6a6   : > { %v6339_v45 = vpack.c.bf16 %v2778_v44, %v2776_v42  ;;  %v2806_v42 = vld [vmem:[#allocation14 + $0x198] sm:$0xff]  ;;  %v2628_v44 = vld [vmem:[#allocation13 + $0x40] sm:$0xff] }
 0x6a7   : > { %v2402_v50 = vrot.slane %v2394_v48, %v8296_v0  ;;  %v2409_v56 = vrot.slane %v2395_v53, %v8296_v0  ;;  %v2418_v54 = vrot.slane %v2410_v49, %v8296_v0  ;;  %v2425_v58 = vrot.slane %v2411_v55, %v8296_v0  ;;  %v2780_v53 = vld [vmem:[#allocation14 + $0xc8] sm:$0xff]  ;;  %v2782_v49 = vld [vmem:[#allocation14 + $0xd8] sm:$0xff]  ;;  %v2779_v55 = vld [vmem:[#allocation14 + $0xc0] sm:$0xff] }
 0x6a8   : > { %v6341_v48 = vpack.c.bf16 %v2777_v47, %v2775_v46  ;;  %v2633_v46 = vld [vmem:[#allocation13 + $0x68] sm:$0xff]  ;;  %v2635_v47 = vld [vmem:[#allocation13 + $0x78] sm:$0xff] }
 0x6a9   : > { %v2427_v59 = vcombine.high %v2402_v50, %v2418_v54  ;;  %v2429_v40 = vcombine.high %v2409_v56, %v2425_v58  ;;  %v2428_v61 = vcombine.low %v2409_v56, %v2425_v58  ;;  %v2426_v62 = vcombine.low %v2402_v50, %v2418_v54  ;;  %v2781_v56 = vld [vmem:[#allocation14 + $0xd0] sm:$0xff]  ;;  %v2784_v54 = vld [vmem:[#allocation14 + $0xe8] sm:$0xff]  ;;  %v2786_v58 = vld [vmem:[#allocation14 + $0xf8] sm:$0xff] }
 0x6aa   : > { %v6343_v50 = vpack.c.bf16 %v2782_v49, %v2780_v53  ;;  %v6367_v53 = vpack.c.bf16 %v2806_v42, %v2804_v38  ;;  %v2803_v49 = vld [vmem:[#allocation14 + $0x180] sm:$0xff]  ;;  %v2653_v42 = vld [vmem:[#allocation13 + $0x108] sm:$0xff] }
 0x6ab   : > { %v7209_v63 = vpack.i.bf16 %v2427_v59, %v2429_v40  ;;  %v6345_v59 = vpack.c.bf16 %v2781_v56, %v2779_v55  ;;  %v6347_v40 = vpack.c.bf16 %v2786_v58, %v2784_v54  ;;  %v2805_v55 = vld [vmem:[#allocation14 + $0x190] sm:$0xff]  ;;  %v2810_v54 = vld [vmem:[#allocation14 + $0x1b8] sm:$0xff]  ;;  %v6267_v58 = vpack.c.bf16 %v2635_v47, %v2633_v46  ;;  %v2648_v38 = vld [vmem:[#allocation13 + $0xe0] sm:$0xff] }
 0x6ac   : > { %v2652_v47 = vld [vmem:[#allocation13 + $0x100] sm:$0xff] }
 0x6ad   : > { %7210 = vrot.lane.b32.xlu1 %v7209_v63, %s7729_s20  ;;  %v2788_v63 = vld [vmem:[#allocation14 + $0x108] sm:$0xff] }
 0x71f   : > { %v7211_v1 = vpop.permute.xlu1 %7210 }
 0x720   : > { %v7213_v2 = vunpack.i.h.bf16 %v7211_v1  ;;  %v7212_v3 = vunpack.i.l.bf16 %v7211_v1  ;;  %v2790_v1 = vld [vmem:[#allocation14 + $0x118] sm:$0xff] }
 0x722   : > { %v2439_v4 = vsel %vm1652_vm1, %v2428_v61, %v7212_v3  ;;  %v2438_v7 = vsel %vm1652_vm1, %v2426_v62, %v7213_v2  ;;  %v2783_v61 = vld [vmem:[#allocation14 + $0xe0] sm:$0xff]  ;;  %v2785_v62 = vld [vmem:[#allocation14 + $0xf0] sm:$0xff]  ;;  %v6351_v3 = vpack.c.bf16 %v2790_v1, %v2788_v63  ;;  %v6369_v63 = vpack.c.bf16 %v2805_v55, %v2803_v49  ;;  %v2659_v49 = vld [vmem:[#allocation13 + $0x138] sm:$0xff] }
 0x723   : > { %2568 = vmatprep.mubr.f32.mxu1 %v2439_v4  ;;  %v6349_v2 = vpack.c.bf16 %v2785_v62, %v2783_v61  ;;  %v2787_v4 = vld [vmem:[#allocation14 + $0x100] sm:$0xff]  ;;  %v2637_v61 = vld [vmem:[#allocation13 + $0x88] sm:$0xff]  ;;  %v2639_v62 = vld [vmem:[#allocation13 + $0x98] sm:$0xff] }
 0x724   : > { %2569 = vmatmul.mubr.f32.vlgmr.msra.gmra.mrb[0].mxu1 %v2438_v7  ;;  %v2789_v7 = vld [vmem:[#allocation14 + $0x110] sm:$0xff]  ;;  %v6271_v11 = vpack.c.bf16 %v2639_v62, %v2637_v61  ;;  %v2660_v62 = vld [vmem:[#allocation13 + $0x140] sm:$0xff] }
 0x725   : > { %6322 = vmatpush1.bf16.msra.mxu1 %v6321_v15  ;;  %v6353_v12 = vpack.c.bf16 %v2789_v7, %v2787_v4  ;;  %v2798_v15 = vld [vmem:[#allocation14 + $0x158] sm:$0xff]  ;;  %v2812_v4 = vld [vmem:[#allocation14 + $0x1c8] sm:$0xff] }
 0x726   : > { %6324 = vmatprep.subr.bf16.mxu1 %v6323_v16  ;;  %v2795_v16 = vld [vmem:[#allocation14 + $0x140] sm:$0xff] }
 0x727   : > { %v6361_v33 = vpack.c.bf16 %v2797_v5, %v2795_v16  ;;  %v2811_v16 = vld [vmem:[#allocation14 + $0x1c0] sm:$0xff]  ;;  %v2813_v5 = vld [vmem:[#allocation14 + $0x1d0] sm:$0xff] }
 0x729   : > { %6326 = vmatpush1.bf16.msra.mxu1 %v6325_v18  ;;  %v8453_v18 = vld [vmem:[%s680_s18 + $0x8] sm:$0xff] }
 0x72a   : > { %6328 = vmatprep.subr.bf16.mxu1 %v6327_v19  ;;  %v6359_v19 = vpack.c.bf16 %v2798_v15, %v2796_v9  ;;  %2883 = vmatprep.mubr.f32.mxu1 %v8453_v18  ;;  %v6375_v15 = vpack.c.bf16 %v2814_v8, %v2812_v4 }
 0x72d   : > { %6330 = vmatpush1.bf16.msra.mxu1 %v6329_v22  ;;  %v2620_v22 = vld [vmem:[#allocation13] sm:$0xff] }
 0x72e   : > { %6332 = vmatprep.subr.bf16.mxu1 %v6331_v31  ;;  %v2626_v31 = vld [vmem:[#allocation13 + $0x30] sm:$0xff] }
 0x72f   : > { %v6261_v39 = vpack.c.bf16 %v2626_v31, %v2624_v30  ;;  %v2644_v31 = vld [vmem:[#allocation13 + $0xc0] sm:$0xff] }
 0x731   : > { %6334 = vmatpush1.bf16.msra.mxu1 %v6333_v34  ;;  %v2631_v34 = vld [vmem:[#allocation13 + $0x58] sm:$0xff] }
 0x732   : > { %6336 = vmatprep.subr.bf16.mxu1 %v6335_v37  ;;  %v2801_v37 = vld [vmem:[#allocation14 + $0x170] sm:$0xff] }
 0x735   : > { %6338 = vmatpush1.bf16.msra.mxu1 %v6337_v43  ;;  %v6263_v43 = vpack.c.bf16 %v2631_v34, %v2629_v32  ;;  %v2646_v32 = vld [vmem:[#allocation13 + $0xd0] sm:$0xff]  ;;  %v2651_v34 = vld [vmem:[#allocation13 + $0xf8] sm:$0xff] }
 0x736   : > { %6340 = vmatprep.subr.bf16.mxu1 %v6339_v45  ;;  %v2630_v45 = vld [vmem:[#allocation13 + $0x50] sm:$0xff] }
 0x737   : > { %v6265_v56 = vpack.c.bf16 %v2630_v45, %v2628_v44  ;;  %v8458_v44 = vld [vmem:[%s680_s18] sm:$0xff] }
 0x739   : > { %6342 = vmatpush1.bf16.msra.mxu1 %v6341_v48  ;;  %v6365_v48 = vpack.c.bf16 %v2801_v37, %v2799_v36  ;;  %v6281_v36 = vpack.c.bf16 %v2646_v32, %v2644_v31  ;;  %v2681_v31 = vld [vmem:[#allocation13 + $0x1e8] sm:$0xff]  ;;  %v2683_v32 = vld [vmem:[#allocation13 + $0x1f8] sm:$0xff] }
 0x73a   : > { %6344 = vmatprep.subr.bf16.mxu1 %v6343_v50  ;;  %v2808_v50 = vld [vmem:[#allocation14 + $0x1a8] sm:$0xff] }
 0x73b   : > { %v6371_v1 = vpack.c.bf16 %v2810_v54, %v2808_v50  ;;  %v2658_v54 = vld [vmem:[#allocation13 + $0x130] sm:$0xff] }
 0x73d   : > { %6346 = vmatpush1.bf16.msra.mxu1 %v6345_v59  ;;  %v2632_v59 = vld [vmem:[#allocation13 + $0x60] sm:$0xff] }
 0x73e   : > { %6348 = vmatprep.subr.bf16.mxu1 %v6347_v40  ;;  %v2634_v40 = vld [vmem:[#allocation13 + $0x70] sm:$0xff] }
 0x73f   : > { %v6269_v7 = vpack.c.bf16 %v2634_v40, %v2632_v59  ;;  %v2663_v59 = vld [vmem:[#allocation13 + $0x158] sm:$0xff] }
 0x741   : > { %6350 = vmatpush1.bf16.msra.mxu1 %v6349_v2  ;;  %v2807_v2 = vld [vmem:[#allocation14 + $0x1a0] sm:$0xff] }
 0x742   : > { %6352 = vmatprep.subr.bf16.mxu1 %v6351_v3  ;;  %v2809_v3 = vld [vmem:[#allocation14 + $0x1b0] sm:$0xff] }
 0x743   : > { %v6373_v9 = vpack.c.bf16 %v2809_v3, %v2807_v2 }
 0x745   : > { %6354 = vmatpush1.bf16.msra.mxu1 %v6353_v12  ;;  %v2636_v12 = vld [vmem:[#allocation13 + $0x80] sm:$0xff] }
 0x746   : > { %6356 = vmatprep.subr.bf16.mxu1 %v6355_v13  ;;  %v2638_v13 = vld [vmem:[#allocation13 + $0x90] sm:$0xff] }
 0x747   : > { %v6273_v10 = vpack.c.bf16 %v2638_v13, %v2636_v12  ;;  %v2665_v13 = vld [vmem:[#allocation13 + $0x168] sm:$0xff] }
 0x749   : > { %6358 = vmatpush1.bf16.msra.mxu1 %v6357_v6  ;;  %v2816_v6 = vld [vmem:[#allocation14 + $0x1e8] sm:$0xff] }
 0x74a   : > { %6360 = vmatprep.subr.bf16.mxu1 %v6359_v19  ;;  %v6275_v19 = vpack.c.bf16 %v2643_v14, %v2641_v41  ;;  %v2667_v41 = vld [vmem:[#allocation13 + $0x178] sm:$0xff] }
 0x74b   : > { %v6299_v14 = vpack.c.bf16 %v2667_v41, %v2665_v13 }
 0x74d   : > { %6362 = vmatpush1.bf16.msra.mxu1 %v6361_v33  ;;  %v2649_v33 = vld [vmem:[#allocation13 + $0xe8] sm:$0xff] }
 0x74e   : > { %6364 = vmatprep.subr.bf16.mxu1 %v6363_v35  ;;  %v6283_v37 = vpack.c.bf16 %v2651_v34, %v2649_v33  ;;  %v6315_v34 = vpack.c.bf16 %v2683_v32, %v2681_v31 }
 0x751   : > { %6366 = vmatpush1.bf16.msra.mxu1 %v6365_v48  ;;  %v2654_v48 = vld [vmem:[#allocation13 + $0x110] sm:$0xff] }
 0x752   : > { %6368 = vmatprep.subr.bf16.mxu1 %v6367_v53  ;;  %v2657_v53 = vld [vmem:[#allocation13 + $0x128] sm:$0xff]  ;;  %v6289_v55 = vpack.c.bf16 %v2654_v48, %v2652_v47  ;;  %v8473_v48 = vsub.s32 0, %v8290_v57 }
 0x753   : > { %v6291_v50 = vpack.c.bf16 %v2659_v49, %v2657_v53  ;;  %v8476_v53 = vsub.s32 1, %v8290_v57  ;;  %v802_v49 = vld [vmem:[%s8903_s8] sm:$0x3] }
 0x755   : > { %6370 = vmatpush1.bf16.msra.mxu1 %v6369_v63  ;;  %v2662_v63 = vld [vmem:[#allocation13 + $0x150] sm:$0xff] }
 0x756   : > { %6372 = vmatprep.subr.bf16.mxu1 %v6371_v1  ;;  %v6297_v1 = vpack.c.bf16 %v2662_v63, %v2660_v62 }
 0x759   : > { %6374 = vmatpush1.bf16.msra.mxu1 %v6373_v9  ;;  %v2664_v9 = vld [vmem:[#allocation13 + $0x160] sm:$0xff] }
 0x75a   : > { %6376 = vmatprep.subr.bf16.mxu1 %v6375_v15  ;;  %v2666_v15 = vld [vmem:[#allocation13 + $0x170] sm:$0xff] }
 0x7f7   : > { %v2570_v23 = vpop.f32.mrb[0].mxu1 }
 0x7f8   : > { %v8444_v52 = vadd.f32 %v7259_v24, %v2570_v23  ;;  %v2572_v25 = vpop.f32.mrb[1].mxu1  ;;  %v6255_v23 = vpack.c.bf16 %v2623_v21, %v2621_v20  ;;  %v2622_v24 = vld [vmem:[#allocation13 + $0x10] sm:$0xff]  ;;  %v2640_v20 = vld [vmem:[#allocation13 + $0xa0] sm:$0xff] }
 0x7f9   : > { %v8447_v27 = vadd.f32 %v7260_v26, %v2572_v25  ;;  %v2625_v25 = vld [vmem:[#allocation13 + $0x28] sm:$0xff]  ;;  %v2627_v26 = vld [vmem:[#allocation13 + $0x38] sm:$0xff]  ;;  %v2642_v21 = vld [vmem:[#allocation13 + $0xb0] sm:$0xff] }
 0x7fa   : > { %v6259_v29 = vpack.c.bf16 %v2627_v26, %v2625_v25  ;;  %6256 = vmatprep.subr.bf16.mxu0 %v6255_v23  ;;  %v2647_v23 = vld [vmem:[#allocation13 + $0xd8] sm:$0xff]  ;;  %v6379_v25 = vpack.c.bf16 %v2818_v17, %v2816_v6  ;;  %v2815_v26 = vld [vmem:[#allocation14 + $0x1e0] sm:$0xff]  ;;  %v2670_v17 = vld [vmem:[#allocation13 + $0x190] sm:$0xff] }
 0x7fb   : > { %v2577_v28 = vadd.f32 %v8447_v27, %v8444_v52  ;;  %v2671_v6 = vld [vmem:[#allocation13 + $0x198] sm:$0xff] }
 0x7fd   : > { %2578 = vadd.xlane.f32.xlu0 %v2577_v28  ;;  %v6257_v28 = vpack.c.bf16 %v2622_v24, %v2620_v22  ;;  %v2645_v22 = vld [vmem:[#allocation13 + $0xc8] sm:$0xff]  ;;  %v6377_v24 = vpack.c.bf16 %v2813_v5, %v2811_v16  ;;  %v6301_v16 = vpack.c.bf16 %v2666_v15, %v2664_v9 }
 0x7fe   : > { %v6279_v30 = vpack.c.bf16 %v2647_v23, %v2645_v22  ;;  %v2669_v5 = vld [vmem:[#allocation13 + $0x188] sm:$0xff]  ;;  %v2672_v22 = vld [vmem:[#allocation13 + $0x1a0] sm:$0xff]  ;;  %v2674_v23 = vld [vmem:[#allocation13 + $0x1b0] sm:$0xff] }
 0x7ff   : > { %6258 = vmatpush1.bf16.msra.mxu0 %v6257_v28  ;;  %v2817_v28 = vld [vmem:[#allocation14 + $0x1f0] sm:$0xff]  ;;  %6378 = vmatpush1.bf16.msra.mxu1 %v6377_v24  ;;  %v2677_v24 = vld [vmem:[#allocation13 + $0x1c8] sm:$0xff] }
 0x800   : > { %6260 = vmatprep.subr.bf16.mxu0 %v6259_v29  ;;  %v6277_v29 = vpack.c.bf16 %v2642_v21, %v2640_v20  ;;  %v6381_v35 = vpack.c.bf16 %v2817_v28, %v2815_v26  ;;  %6380 = vmatprep.subr.bf16.mxu1 %v6379_v25  ;;  %v2679_v25 = vld [vmem:[#allocation13 + $0x1d8] sm:$0xff]  ;;  %v6309_v26 = vpack.c.bf16 %v2674_v23, %v2672_v22 }
 0x801   : > { %v6311_v28 = vpack.c.bf16 %v2679_v25, %v2677_v24 }
 0x803   : > { %6262 = vmatpush1.bf16.msra.mxu0 %v6261_v39  ;;  %v2650_v39 = vld [vmem:[#allocation13 + $0xf0] sm:$0xff]  ;;  %6382 = vmatpush1.bf16.msra.mxu1 %v6381_v35  ;;  %v2680_v35 = vld [vmem:[#allocation13 + $0x1e0] sm:$0xff] }
 0x804   : > { %6264 = vmatprep.subr.bf16.mxu0 %v6263_v43  ;;  %v2655_v43 = vld [vmem:[#allocation13 + $0x118] sm:$0xff]  ;;  %v6285_v45 = vpack.c.bf16 %v2650_v39, %v2648_v38  ;;  %5959 = vmatprep.subr.mxu1 %v7730_v51 }
 0x805   : > { %v6287_v46 = vpack.c.bf16 %v2655_v43, %v2653_v42 }
 0x806   : > { %2884 = vmatmul.mubr.f32.vlgmr.msra.gmra.mrb[2].mxu1 %v8458_v44 }
 0x807   : > { %6266 = vmatpush1.bf16.msra.mxu0 %v6265_v56  ;;  %5961 = vmatprep.mubr.msk.f32.mxu1 %vm7731_vm0, %v7730_v51  ;;  %v2656_v56 = vld [vmem:[#allocation13 + $0x120] sm:$0xff] }
 0x808   : > { %6268 = vmatprep.subr.bf16.mxu0 %v6267_v58  ;;  %v2661_v58 = vld [vmem:[#allocation13 + $0x148] sm:$0xff]  ;;  %v6293_v40 = vpack.c.bf16 %v2658_v54, %v2656_v56  ;;  %v8488_v56 = vrot.slane %v802_v49, %v8476_v53 }
 0x809   : > { %v6295_v61 = vpack.c.bf16 %v2663_v59, %v2661_v58 }
 0x80b   : > { %6270 = vmatpush1.bf16.msra.mxu0 %v6269_v7 }
 0x80c   : > { %6272 = vmatprep.subr.bf16.mxu0 %v6271_v11 }
 0x80f   : > { %6274 = vmatpush1.bf16.msra.mxu0 %v6273_v10  ;;  %v6303_v10 = vpack.c.bf16 %v2671_v6, %v2669_v5 }
 0x810   : > { %6276 = vmatprep.subr.bf16.mxu0 %v6275_v19  ;;  %v2675_v19 = vld [vmem:[#allocation13 + $0x1b8] sm:$0xff] }
 0x813   : > { %6278 = vmatpush1.bf16.msra.mxu0 %v6277_v29  ;;  %v2676_v29 = vld [vmem:[#allocation13 + $0x1c0] sm:$0xff] }
 0x814   : > { %6280 = vmatprep.subr.bf16.mxu0 %v6279_v30  ;;  %v2678_v30 = vld [vmem:[#allocation13 + $0x1d0] sm:$0xff] }
 0x815   : > { %v6313_v33 = vpack.c.bf16 %v2678_v30, %v2676_v29 }
 0x817   : > { %6282 = vmatpush1.bf16.msra.mxu0 %v6281_v36  ;;  %v2682_v36 = vld [vmem:[#allocation13 + $0x1f0] sm:$0xff] }
 0x818   : > { %6284 = vmatprep.subr.bf16.mxu0 %v6283_v37  ;;  %v6317_v37 = vpack.c.bf16 %v2682_v36, %v2680_v35 }
 0x81b   : > { %6286 = vmatpush1.bf16.msra.mxu0 %v6285_v45 }
 0x81c   : > { %6288 = vmatprep.subr.bf16.mxu0 %v6287_v46 }
 0x81f   : > { %6290 = vmatpush1.bf16.msra.mxu0 %v6289_v55  ;;  %v803_v55 = vld [vmem:[%s8904_s30] sm:$0x3]  ;;  %s782_s30 = scalar_lea.vmem [#allocation22], %s8215_s12  ;;  %s5572_s12 = scalar_lea.sflag [#allocation4], %s8212_s7 }
 0x820   : > { %6292 = vmatprep.subr.bf16.mxu0 %v6291_v50  ;;  %v8485_v50 = vrot.slane %v802_v49, %v8473_v48  ;;  %v8491_v59 = vrot.slane %v803_v55, %v8473_v48  ;;  %s5588_s6 = sshll.u32 %s782_s30, 4  ;;  %s8771_s6 = int_to_ptr.vmem [resolvable:$true] %s5588_s6 }
 0x821   : > { %s7601_s1 = scalar_lea.vmem %s8771_s6, 256 }
 0x822   : > { %p7602_p2 = scmp.ne.s32.totalorder %s8771_s6, %s7601_s1 }
 0x823   : > { %6294 = vmatpush1.bf16.msra.mxu0 %v6293_v40  ;;  %v8494_v40 = vrot.slane %v803_v55, %v8476_v53  ;;  %v2892_v55 = vld [vmem:[#allocation16 + $0x10] sm:$0xff] }
 0x824   : > { %6296 = vmatprep.subr.bf16.mxu0 %v6295_v61  ;;  %p7603_p1 = pnand %p7602_p2, %p8910_p10 }
 0x826   : > { %p7604_p5 = pneg %p7603_p1 }
 0x827   : > { %6298 = vmatpush1.bf16.msra.mxu0 %v6297_v1 }
 0x828   : > { %6300 = vmatprep.subr.bf16.mxu0 %v6299_v14 }
 0x82b   : > { %6302 = vmatpush1.bf16.msra.mxu0 %v6301_v16 }
 0x82c   : > { %6304 = vmatprep.subr.bf16.mxu0 %v6303_v10 }
 0x88a   : > { %v2579_v2 = vpop.xlane.xlu0 %2578 }
 0x88b   : > { %v2581_v3 = vmul.f32 0.00390625, %v2579_v2 }
 0x88d   : > { %v8465_v4 = vsub.f32 %v8444_v52, %v2581_v3  ;;  %v2583_v7 = vsub.f32 %v8447_v27, %v2581_v3  ;;  %v2668_v52 = vld [vmem:[#allocation13 + $0x180] sm:$0xff]  ;;  %v2673_v27 = vld [vmem:[#allocation13 + $0x1a8] sm:$0xff] }
 0x88e   : > { %v6305_v20 = vpack.c.bf16 %v2670_v17, %v2668_v52  ;;  %v6307_v21 = vpack.c.bf16 %v2675_v19, %v2673_v27 }
 0x88f   : > { %v2584_v8 = vmul.f32 %v8465_v4, %v8465_v4  ;;  %v2585_v11 = vmul.f32 %v2583_v7, %v2583_v7 }
 0x890   : > { %6306 = vmatpush1.bf16.msra.mxu0 %v6305_v20 }
 0x891   : > { %v2586_v12 = vadd.f32 %v2585_v11, %v2584_v8  ;;  %6308 = vmatprep.subr.bf16.mxu0 %v6307_v21 }
 0x893   : > { %2587 = vadd.xlane.f32.xlu0 %v2586_v12 }
 0x894   : > { %6310 = vmatpush1.bf16.msra.mxu0 %v6309_v26 }
 0x895   : > { %6312 = vmatprep.subr.bf16.mxu0 %v6311_v28 }
 0x898   : > { %6314 = vmatpush1.bf16.msra.mxu0 %v6313_v33 }
 0x899   : > { %6316 = vmatprep.subr.bf16.mxu0 %v6315_v34 }
 0x89c   : > { %6318 = vmatpush1.bf16.msra.mxu0 %v6317_v37 }
 0x8d9   : > { %v2885_v38 = vpop.f32.mrb[2].mxu1 }
 0x8da   : > { %v2887_v39 = vpop.f32.mrb[3].mxu1  ;;  %3170 = vrot.lane.b32.xlu0 %v2885_v38, %s7729_s20 }
 0x8db   : > { %v3177_v42 = vcombine.low %v2885_v38, %v2887_v39  ;;  %v3178_v43 = vcombine.high %v2885_v38, %v2887_v39  ;;  %3174 = vrot.lane.b32.xlu1 %v2887_v39, %s7729_s20 }
 0x8dd   : > { %v3192_v8 = vrot.slane %v3178_v43, %v8293_v60  ;;  %v2891_v43 = vld [vmem:[#allocation16 + $0x8] sm:$0xff] }
 0x920   : > { %v2588_v45 = vpop.xlane.xlu0 %2587 }
 0x921   : > { %v2589_v46 = vmul.f32 0.00390625, %v2588_v45  ;;  %v2893_v45 = vld [vmem:[#allocation16 + $0x18] sm:$0xff] }
 0x922   : > { %v6383_v49 = vpack.c.bf16 %v2893_v45, %v2891_v43 }
 0x923   : > { %v2590_v47 = vadd.f32 1e-05, %v2589_v46  ;;  %v2890_v46 = vld [vmem:[#allocation16] sm:$0xff] }
 0x924   : > { %6384 = vmatprep.subr.bf16.mxu0 %v6383_v49  ;;  %v2919_v49 = vld [vmem:[#allocation16 + $0xe8] sm:$0xff] }
 0x925   : > { %7237 = vrsqrt.f32 %v2590_v47  ;;  %v7734_v47 = vmov 0  }
 0x926   : > { %7214 = vset.pattern.permute.xlu1 %v7734_v47  ;;  %7220 = vset.pattern.permute.xlu0 %v7734_v47  ;;  %v2916_v47 = vld [vmem:[#allocation16 + $0xd0] sm:$0xff] }
 0x92f   : > { %v7238_v54 = vpop.eup %7237 }
 0x930   : > { %v2593_v58 = vmul.f32 %v7238_v54, %v2583_v7  ;;  %v2592_v61 = vmul.f32 %v7238_v54, %v8465_v4  ;;  %v3185_v4 = vrot.slane %v3177_v42, %v8293_v60  ;;  %v2895_v54 = vld [vmem:[#allocation16 + $0x28] sm:$0xff] }
 0x932   : > { %v2606_v62 = vmul.f32 %v8488_v56, %v2593_v58  ;;  %v2605_v63 = vmul.f32 %v8485_v50, %v2592_v61  ;;  %v2897_v58 = vld [vmem:[#allocation16 + $0x38] sm:$0xff]  ;;  %v6385_v61 = vpack.c.bf16 %v2892_v55, %v2890_v46  ;;  %v2914_v46 = vld [vmem:[#allocation16 + $0xc0] sm:$0xff] }
 0x933   : > { %v2921_v55 = vld [vmem:[#allocation16 + $0xf8] sm:$0xff] }
 0x934   : > { %v8500_v1 = vadd.f32 %v8494_v40, %v2606_v62  ;;  %v8503_v2 = vadd.f32 %v8491_v59, %v2605_v63  ;;  %v6387_v62 = vpack.c.bf16 %v2897_v58, %v2895_v54  ;;  %v2894_v63 = vld [vmem:[#allocation16 + $0x20] sm:$0xff]  ;;  %v6409_v54 = vpack.c.bf16 %v2916_v47, %v2914_v46 }
 0x935   : > { %v6411_v58 = vpack.c.bf16 %v2921_v55, %v2919_v49  ;;  %v2942_v49 = vld [vmem:[#allocation16 + $0x1a0] sm:$0xff]  ;;  %v2944_v55 = vld [vmem:[#allocation16 + $0x1b0] sm:$0xff] }
 0x936   : > { %2748 = vmatprep.mubr.f32.mxu0 %v8500_v1 }
 0x937   : > { %2749 = vmatmul.mubr.f32.vlgmr.msra.gmra.mrb[22].mxu0 %v8503_v2 }
 0x938   : > { %3018 = vmatprep.mubr.f32.mxu0 %v8453_v18  ;;  %6386 = vmatpush1.bf16.msra.mxu0 %v6385_v61  ;;  %v2918_v61 = vld [vmem:[#allocation16 + $0xe0] sm:$0xff] }
 0x939   : > { %6388 = vmatprep.subr.bf16.mxu0 %v6387_v62  ;;  %v2920_v62 = vld [vmem:[#allocation16 + $0xf0] sm:$0xff] }
 0x94c   : > { %v3171_v3 = vpop.permute.xlu0 %3170 }
 0x94d   : > { %v3175_v7 = vpop.permute.xlu1 %3174 }
 0x94e   : > { %v3193_v11 = vcombine.low %v3171_v3, %v3175_v7  ;;  %v3194_v12 = vcombine.high %v3171_v3, %v3175_v7  ;;  %v2896_v3 = vld [vmem:[#allocation16 + $0x30] sm:$0xff]  ;;  %v2899_v7 = vld [vmem:[#allocation16 + $0x48] sm:$0xff] }
 0x950   : > { %v3201_v13 = vrot.slane %v3193_v11, %v8293_v60  ;;  %v3208_v41 = vrot.slane %v3194_v12, %v8293_v60  ;;  %v2898_v12 = vld [vmem:[#allocation16 + $0x40] sm:$0xff] }
 0x952   : > { %v3209_v14 = vcombine.low %v3185_v4, %v3201_v13  ;;  %v3210_v9 = vcombine.high %v3185_v4, %v3201_v13  ;;  %v3225_v15 = vcombine.low %v3192_v8, %v3208_v41  ;;  %v3226_v16 = vcombine.high %v3192_v8, %v3208_v41  ;;  %v2901_v4 = vld [vmem:[#allocation16 + $0x58] sm:$0xff]  ;;  %v2900_v13 = vld [vmem:[#allocation16 + $0x50] sm:$0xff]  ;;  %v812_v41 = vld [vmem:[%s789_s9] sm:$0xff]  ;;  %s7735_s9 = smov [#allocation22]  }
 0x953   : > { %v6389_v8 = vpack.c.bf16 %v2896_v3, %v2894_v63  ;;  %v6391_v11 = vpack.c.bf16 %v2901_v4, %v2899_v7  ;;  %vm813_vm4 = vcmp.ne.s32.totalorder %v812_v41, 0  ;;  %v2923_v63 = vld [vmem:[#allocation16 + $0x108] sm:$0xff]  ;;  %v2925_v3 = vld [vmem:[#allocation16 + $0x118] sm:$0xff]  ;;  %v6413_v7 = vpack.c.bf16 %v2920_v62, %v2918_v61  ;;  %s7605_s18 = sshll.u32 %s7735_s9, 4  ;;  %s7606_s18 = int_to_ptr.vmem [resolvable:$false] %s7605_s18 }
 0x954   : > { %v3217_v5 = vrot.slane %v3209_v14, %v8296_v0  ;;  %v3224_v18 = vrot.slane %v3210_v9, %v8296_v0  ;;  %v3233_v6 = vrot.slane %v3225_v15, %v8296_v0  ;;  %v3240_v52 = vrot.slane %v3226_v16, %v8296_v0  ;;  %v2903_v14 = vld [vmem:[#allocation16 + $0x68] sm:$0xff]  ;;  %v2905_v9 = vld [vmem:[#allocation16 + $0x78] sm:$0xff]  ;;  %p7608_p8 = scmp.lt.s32.totalorder %s8771_s6, %s7606_s18 }
 0x955   : > { %v814_v15 = vsel %vm813_vm4, -1e+09, %v7730_v51  ;;  %6390 = vmatpush1.bf16.msra.mxu0 %v6389_v8  ;;  %v6393_v16 = vpack.c.bf16 %v2900_v13, %v2898_v12  ;;  %v6415_v4 = vpack.c.bf16 %v2925_v3, %v2923_v63  ;;  %v2922_v8 = vld [vmem:[#allocation16 + $0x100] sm:$0xff]  ;;  %v2927_v12 = vld [vmem:[#allocation16 + $0x128] sm:$0xff]  ;;  %v2929_v13 = vld [vmem:[#allocation16 + $0x138] sm:$0xff]  ;;  %v6437_v61 = vpack.c.bf16 %v2944_v55, %v2942_v49 }
 0x956   : > { %v3245_v10 = vcombine.low %v3217_v5, %v3224_v18  ;;  %v5861_v17 = vcombine.high %v3217_v5, %v3224_v18  ;;  %v3261_v27 = vcombine.low %v3233_v6, %v3240_v52  ;;  %v5862_v19 = vcombine.high %v3233_v6, %v3240_v52  ;;  %6392 = vmatprep.subr.bf16.mxu0 %v6391_v11  ;;  %v2902_v18 = vld [vmem:[#allocation16 + $0x60] sm:$0xff]  ;;  %v2904_v6 = vld [vmem:[#allocation16 + $0x70] sm:$0xff]  ;;  %v2907_v52 = vld [vmem:[#allocation16 + $0x88] sm:$0xff] }
 0x957   : > { %v6395_v5 = vpack.c.bf16 %v2905_v9, %v2903_v14  ;;  %v2924_v11 = vld [vmem:[#allocation16 + $0x110] sm:$0xff]  ;;  %v6419_v14 = vpack.c.bf16 %v2929_v13, %v2927_v12  ;;  %v2926_v9 = vld [vmem:[#allocation16 + $0x120] sm:$0xff] }
 0x958   : > { %v3252_v20 = vrot.slane %v3245_v10, %v8293_v60  ;;  %v3260_v21 = vrot.slane %v5861_v17, %v8293_v60  ;;  %v3268_v22 = vrot.slane %v3261_v27, %v8293_v60  ;;  %v3276_v23 = vrot.slane %v5862_v19, %v8293_v60  ;;  %v2909_v10 = vld [vmem:[#allocation16 + $0x98] sm:$0xff]  ;;  %v2906_v19 = vld [vmem:[#allocation16 + $0x80] sm:$0xff]  ;;  %v2948_v3 = vld [vmem:[#allocation16 + $0x1d0] sm:$0xff] }
 0x959   : > { %6394 = vmatpush1.bf16.msra.mxu0 %v6393_v16  ;;  %v6397_v17 = vpack.c.bf16 %v2904_v6, %v2902_v18  ;;  %v6399_v27 = vpack.c.bf16 %v2909_v10, %v2907_v52  ;;  %v6417_v41 = vpack.c.bf16 %v2924_v11, %v2922_v8  ;;  %v2931_v16 = vld [vmem:[#allocation16 + $0x148] sm:$0xff]  ;;  %v2930_v52 = vld [vmem:[#allocation16 + $0x140] sm:$0xff]  ;;  %v2932_v10 = vld [vmem:[#allocation16 + $0x150] sm:$0xff] }
 0x95a   : > { %v3277_v24 = vcombine.low %v3252_v20, %v3260_v21  ;;  %v3278_v25 = vcombine.high %v3252_v20, %v3260_v21  ;;  %v3293_v26 = vcombine.low %v3268_v22, %v3276_v23  ;;  %v3294_v28 = vcombine.high %v3268_v22, %v3276_v23  ;;  %6396 = vmatprep.subr.bf16.mxu0 %v6395_v5  ;;  %v2908_v20 = vld [vmem:[#allocation16 + $0x90] sm:$0xff]  ;;  %v2911_v21 = vld [vmem:[#allocation16 + $0xa8] sm:$0xff]  ;;  %v2913_v22 = vld [vmem:[#allocation16 + $0xb8] sm:$0xff] }
 0x95b   : > { %v6401_v23 = vpack.c.bf16 %v2908_v20, %v2906_v19  ;;  %v2933_v5 = vld [vmem:[#allocation16 + $0x158] sm:$0xff]  ;;  %v6425_v19 = vpack.c.bf16 %v2932_v10, %v2930_v52  ;;  %v2946_v63 = vld [vmem:[#allocation16 + $0x1c0] sm:$0xff]  ;;  %v2952_v13 = vld [vmem:[#allocation16 + $0x1f0] sm:$0xff] }
 0x95c   : > { %v8521_v29 = vrot.slane %v3277_v24, %v8296_v0  ;;  %v8524_v30 = vrot.slane %v3293_v26, %v8296_v0  ;;  %v8527_v31 = vrot.slane %v3278_v25, %v8296_v0  ;;  %v8530_v32 = vrot.slane %v3294_v28, %v8296_v0  ;;  %v2910_v25 = vld [vmem:[#allocation16 + $0xa0] sm:$0xff]  ;;  %v2912_v26 = vld [vmem:[#allocation16 + $0xb0] sm:$0xff]  ;;  %v2915_v28 = vld [vmem:[#allocation16 + $0xc8] sm:$0xff] }
 0x95d   : > { %6398 = vmatpush1.bf16.msra.mxu0 %v6397_v17  ;;  %v6403_v24 = vpack.c.bf16 %v2913_v22, %v2911_v21  ;;  %v6405_v43 = vpack.c.bf16 %v2912_v26, %v2910_v25  ;;  %v6423_v6 = vpack.c.bf16 %v2933_v5, %v2931_v16  ;;  %v2935_v17 = vld [vmem:[#allocation16 + $0x168] sm:$0xff]  ;;  %v2934_v21 = vld [vmem:[#allocation16 + $0x160] sm:$0xff]  ;;  %v2936_v22 = vld [vmem:[#allocation16 + $0x170] sm:$0xff]  ;;  %v6441_v8 = vpack.c.bf16 %v2948_v3, %v2946_v63 }
 0x95e   : > { %v3309_v33 = vcombine.low %v8521_v29, %v8524_v30  ;;  %v3310_v34 = vcombine.high %v8521_v29, %v8524_v30  ;;  %v3311_v35 = vcombine.low %v8527_v31, %v8530_v32  ;;  %v3312_v36 = vcombine.high %v8527_v31, %v8530_v32  ;;  %6400 = vmatprep.subr.bf16.mxu0 %v6399_v27  ;;  %v2937_v27 = vld [vmem:[#allocation16 + $0x178] sm:$0xff]  ;;  %v2950_v12 = vld [vmem:[#allocation16 + $0x1e0] sm:$0xff] }
 0x95f   : > { %v6427_v20 = vpack.c.bf16 %v2937_v27, %v2935_v17  ;;  %v6429_v25 = vpack.c.bf16 %v2936_v22, %v2934_v21 }
 0x960   : > { %5960 = vmatpush3.xpose.msk.msra.mxu1 %vm1652_vm1, %v3309_v33  ;;  %v2917_v33 = vld [vmem:[#allocation16 + $0xd8] sm:$0xff] }
 0x961   : > { %5964 = vmatprep.subr.mxu1 %v7730_v51  ;;  %6402 = vmatpush1.bf16.msra.mxu0 %v6401_v23  ;;  %v6407_v45 = vpack.c.bf16 %v2917_v33, %v2915_v28  ;;  %v2939_v23 = vld [vmem:[#allocation16 + $0x188] sm:$0xff]  ;;  %v2938_v28 = vld [vmem:[#allocation16 + $0x180] sm:$0xff]  ;;  %v2940_v33 = vld [vmem:[#allocation16 + $0x190] sm:$0xff] }
 0x962   : > { %6404 = vmatprep.subr.bf16.mxu0 %v6403_v24  ;;  %v2941_v24 = vld [vmem:[#allocation16 + $0x198] sm:$0xff]  ;;  %v6433_v46 = vpack.c.bf16 %v2940_v33, %v2938_v28 }
 0x963   : > { %v6431_v26 = vpack.c.bf16 %v2941_v24, %v2939_v23 }
 0x965   : > { %6406 = vmatpush1.bf16.msra.mxu0 %v6405_v43  ;;  %v2943_v43 = vld [vmem:[#allocation16 + $0x1a8] sm:$0xff] }
 0x966   : > { %6408 = vmatprep.subr.bf16.mxu0 %v6407_v45  ;;  %v2945_v45 = vld [vmem:[#allocation16 + $0x1b8] sm:$0xff] }
 0x967   : > { %v6435_v47 = vpack.c.bf16 %v2945_v45, %v2943_v43 }
 0x969   : > { %6410 = vmatpush1.bf16.msra.mxu0 %v6409_v54  ;;  %v2947_v54 = vld [vmem:[#allocation16 + $0x1c8] sm:$0xff] }
 0x96a   : > { %6412 = vmatprep.subr.bf16.mxu0 %v6411_v58  ;;  %v2949_v58 = vld [vmem:[#allocation16 + $0x1d8] sm:$0xff] }
 0x96b   : > { %v6439_v62 = vpack.c.bf16 %v2949_v58, %v2947_v54 }
 0x96d   : > { %6414 = vmatpush1.bf16.msra.mxu0 %v6413_v7  ;;  %v2951_v7 = vld [vmem:[#allocation16 + $0x1e8] sm:$0xff] }
 0x96e   : > { %6416 = vmatprep.subr.bf16.mxu0 %v6415_v4  ;;  %v2953_v4 = vld [vmem:[#allocation16 + $0x1f8] sm:$0xff] }
 0x96f   : > { %v6443_v11 = vpack.c.bf16 %v2953_v4, %v2951_v7 }
 0x971   : > { %6418 = vmatpush1.bf16.msra.mxu0 %v6417_v41  ;;  %v6445_v41 = vpack.c.bf16 %v2952_v13, %v2950_v12 }
 0x972   : > { %6420 = vmatprep.subr.bf16.mxu0 %v6419_v14 }
 0xa0a   : > { %v8542_v37 = vpop.f32.mrb[22].mxu0 }
 0xa0b   : > { %3026 = vrot.lane.b32.xlu1 %v8542_v37, %s7729_s20  ;;  %v8546_v38 = vpop.f32.mrb[23].mxu0 }
 0xa0c   : > { %v3033_v39 = vcombine.low %v8542_v37, %v8546_v38  ;;  %v3034_v42 = vcombine.high %v8542_v37, %v8546_v38 }
 0xa0e   : > { %v3041_v5 = vrot.slane %v3033_v39, %v8293_v60 }
 0xa0f   : > { %3030 = vrot.lane.b32.xlu1 %v8546_v38, %s7729_s20 }
 0xa13   : > { %3459 = vperm.xlu1 %7214, %v814_v15   ;;  %v2928_v15 = vld [vmem:[#allocation16 + $0x130] sm:$0xff] }
 0xa14   : > { %v6421_v18 = vpack.c.bf16 %v2928_v15, %v2926_v9 }
 0xa16   : > { %6422 = vmatpush1.bf16.msra.mxu0 %v6421_v18  ;;  %v3048_v18 = vrot.slane %v3034_v42, %v8293_v60 }
 0xa17   : > { %6424 = vmatprep.subr.bf16.mxu0 %v6423_v6 }
 0xa1a   : > { %6426 = vmatpush1.bf16.msra.mxu0 %v6425_v19 }
 0xa1b   : > { %6428 = vmatprep.subr.bf16.mxu0 %v6427_v20 }
 0xa1e   : > { %6430 = vmatpush1.bf16.msra.mxu0 %v6429_v25 }
 0xa1f   : > { %6432 = vmatprep.subr.bf16.mxu0 %v6431_v26 }
 0xa22   : > { %6434 = vmatpush1.bf16.msra.mxu0 %v6433_v46 }
 0xa23   : > { %6436 = vmatprep.subr.bf16.mxu0 %v6435_v47 }
 0xa26   : > { %6438 = vmatpush1.bf16.msra.mxu0 %v6437_v61 }
 0xa27   : > { %6440 = vmatprep.subr.bf16.mxu0 %v6439_v62 }
 0xa2a   : > { %6442 = vmatpush1.bf16.msra.mxu0 %v6441_v8 }
 0xa2b   : > { %6444 = vmatprep.subr.bf16.mxu0 %v6443_v11 }
 0xa2e   : > { %6446 = vmatpush1.bf16.msra.mxu0 %v6445_v41 }
 0xa31   : > { %3019 = vmatmul.mubr.f32.vlgmr.msra.gmra.mrb[24].mxu0 %v8458_v44 }
 0xa7d   : > { %v3027_v14 = vpop.permute.xlu1 %3026 }
 0xa81   : > { %v3031_v9 = vpop.permute.xlu1 %3030 }
 0xa82   : > { %v3049_v15 = vcombine.low %v3027_v14, %v3031_v9  ;;  %v3050_v16 = vcombine.high %v3027_v14, %v3031_v9 }
 0xa84   : > { %v3057_v6 = vrot.slane %v3049_v15, %v8293_v60  ;;  %v3064_v52 = vrot.slane %v3050_v16, %v8293_v60 }
 0xa86   : > { %v3065_v10 = vcombine.low %v3041_v5, %v3057_v6  ;;  %v3066_v44 = vcombine.high %v3041_v5, %v3057_v6  ;;  %v3081_v17 = vcombine.low %v3048_v18, %v3064_v52  ;;  %v3082_v27 = vcombine.high %v3048_v18, %v3064_v52 }
 0xa88   : > { %v3073_v19 = vrot.slane %v3065_v10, %v8296_v0  ;;  %v3080_v20 = vrot.slane %v3066_v44, %v8296_v0  ;;  %v3089_v21 = vrot.slane %v3081_v17, %v8296_v0  ;;  %v3096_v39 = vrot.slane %v3082_v27, %v8296_v0 }
 0xa8a   : > { %v3101_v22 = vcombine.low %v3073_v19, %v3080_v20  ;;  %v5859_v23 = vcombine.high %v3073_v19, %v3080_v20  ;;  %v3117_v37 = vcombine.low %v3089_v21, %v3096_v39  ;;  %v5860_v38 = vcombine.high %v3089_v21, %v3096_v39 }
 0xa8c   : > { %v3108_v42 = vrot.slane %v3101_v22, %v8293_v60  ;;  %v3116_v24 = vrot.slane %v5859_v23, %v8293_v60  ;;  %v3124_v25 = vrot.slane %v3117_v37, %v8293_v60  ;;  %v3132_v26 = vrot.slane %v5860_v38, %v8293_v60 }
 0xa8e   : > { %v3133_v28 = vcombine.low %v3108_v42, %v3116_v24  ;;  %v3134_v33 = vcombine.high %v3108_v42, %v3116_v24  ;;  %v3149_v43 = vcombine.low %v3124_v25, %v3132_v26  ;;  %v3150_v45 = vcombine.high %v3124_v25, %v3132_v26 }
 0xa90   : > { %v3141_v46 = vrot.slane %v3133_v28, %v8296_v0  ;;  %v3157_v47 = vrot.slane %v3149_v43, %v8296_v0  ;;  %v3148_v49 = vrot.slane %v3134_v33, %v8296_v0  ;;  %v3164_v55 = vrot.slane %v3150_v45, %v8296_v0 }
 0xa92   : > { %v3165_v54 = vcombine.low %v3141_v46, %v3157_v47  ;;  %v3166_v58 = vcombine.high %v3141_v46, %v3157_v47  ;;  %v3167_v61 = vcombine.low %v3148_v49, %v3164_v55  ;;  %v3168_v62 = vcombine.high %v3148_v49, %v3164_v55  ;;  %v3460_v29 = vpop.permute.xlu1 %3459 }
 0xa94   : > { %5962 = vmatmul.mubr.msk.f32.vlgmr.msra.gmra.mrb[4].mxu1 %vm1652_vm1, %v3165_v54 }
 0xa95   : > { %5965 = vmatpush3.xpose.msk.msra.mxu1 %vm1652_vm1, %v3310_v34  ;;  %5966 = vmatprep.mubr.msk.f32.mxu1 %vm7731_vm0, %v7730_v51 }
 0xa96   : > { %5969 = vmatprep.subr.mxu1 %v7730_v51 }
 0xa98   : > { %5967 = vmatmul.mubr.msk.f32.vlgmr.msra.gmra.mrb[6].mxu1 %vm1652_vm1, %v3166_v58 }
 0xa99   : > { %5970 = vmatpush3.xpose.msk.msra.mxu1 %vm1652_vm1, %v3311_v35  ;;  %5971 = vmatprep.mubr.msk.f32.mxu1 %vm7731_vm0, %v7730_v51 }
 0xa9a   : > { %5974 = vmatprep.subr.mxu1 %v7730_v51 }
 0xa9c   : > { %5972 = vmatmul.mubr.msk.f32.vlgmr.msra.gmra.mrb[8].mxu1 %vm1652_vm1, %v3167_v61 }
 0xa9d   : > { %5975 = vmatpush3.xpose.msk.msra.mxu1 %vm1652_vm1, %v3312_v36  ;;  %5976 = vmatprep.mubr.msk.f32.mxu1 %vm7731_vm0, %v7730_v51 }
 0xa9e   : > { %5979 = vmatprep.subr.mxu1 %v7730_v51 }
 0xaa0   : > { %5977 = vmatmul.mubr.msk.f32.vlgmr.msra.gmra.mrb[10].mxu1 %vm1652_vm1, %v3168_v62 }
 0xaa1   : > { %5981 = vmatprep.mubr.msk.f32.mxu1 %vm7731_vm0, %v7730_v51 }
 0xb04   : > { %v3020_v9 = vpop.f32.mrb[24].mxu0 }
 0xb05   : > { %v3022_v15 = vpop.f32.mrb[25].mxu0 }
 0xb06   : > { %v3321_v16 = vcombine.low %v3020_v9, %v3022_v15  ;;  %v3322_v5 = vcombine.high %v3020_v9, %v3022_v15 }
 0xb08   : > { %v3329_v55 = vrot.slane %v3321_v16, %v8293_v60  ;;  %v3336_v54 = vrot.slane %v3322_v5, %v8293_v60 }
 0xb67   : > { %v3534_v30 = vpop.f32.mrb[4].mxu1 }
 0xb68   : > { %v3535_v34 = vadd.f32 %v3534_v30, %v3460_v29  ;;  %v5963_v35 = vpop.f32.mrb[5].mxu1 }
 0xb6a   : > { %v3766_v63 = vsel %vm1957_vm3, %v3535_v34, -inf }
 0xb6b   : > { %3767 = vmax.xlane.f32.xlu0 %v3766_v63  ;;  %v3610_v31 = vpop.f32.mrb[6].mxu1 }
 0xb6c   : > { %v3611_v32 = vadd.f32 %v3610_v31, %v3460_v29  ;;  %v5968_v36 = vpop.f32.mrb[7].mxu1 }
 0xb6e   : > { %v3769_v3 = vsel %vm1957_vm3, %v3611_v32, -inf }
 0xb6f   : > { %3770 = vmax.xlane.f32.xlu1 %v3769_v3  ;;  %v3686_v7 = vpop.f32.mrb[8].mxu1 }
 0xb70   : > { %v3687_v4 = vadd.f32 %v3686_v7, %v3460_v29  ;;  %v5973_v8 = vpop.f32.mrb[9].mxu1 }
 0xb72   : > { %v3772_v11 = vsel %vm1957_vm3, %v3687_v4, -inf }
 0xb73   : > { %3773 = vmax.xlane.f32.xlu0 %v3772_v11  ;;  %v3762_v12 = vpop.f32.mrb[10].mxu1 }
 0xb74   : > { %v3763_v13 = vadd.f32 %v3762_v12, %v3460_v29  ;;  %v5978_v41 = vpop.f32.mrb[11].mxu1 }
 0xb76   : > { %v3775_v14 = vsel %vm1957_vm3, %v3763_v13, -inf }
 0xb77   : > { %3776 = vmax.xlane.f32.xlu0 %v3775_v14 }
 0xbf8   : > { %v3768_v18 = vpop.xlane.xlu0 %3767 }
 0xbf9   : > { %v3778_v6 = vsub.f32 %v3535_v34, %v3768_v18 }
 0xbfb   : > { %v3782_v52 = vmul.f32 1.442695, %v3778_v6 }
 0xbfc   : > { %v3771_v10 = vpop.xlane.xlu1 %3770 }
 0xbfd   : > { %7239 = vpow2.f32 %v3782_v52  ;;  %v3779_v44 = vsub.f32 %v3611_v32, %v3771_v10 }
 0xbff   : > { %v3784_v17 = vmul.f32 1.442695, %v3779_v44 }
 0xc00   : > { %v3774_v39 = vpop.xlane.xlu0 %3773 }
 0xc01   : > { %7241 = vpow2.f32 %v3784_v17  ;;  %v3780_v22 = vsub.f32 %v3687_v4, %v3774_v39 }
 0xc03   : > { %v3786_v37 = vmul.f32 1.442695, %v3780_v22 }
 0xc04   : > { %v3777_v23 = vpop.xlane.xlu0 %3776 }
 0xc05   : > { %v3781_v38 = vsub.f32 %v3763_v13, %v3777_v23  ;;  %7243 = vpow2.f32 %v3786_v37 }
 0xc07   : > { %v8614_v27 = vpop.eup %7239  ;;  %v3788_v42 = vmul.f32 1.442695, %v3781_v38 }
 0xc08   : > { %v3790_v19 = vsel %vm1957_vm3, %v8614_v27, 0.0 }
 0xc09   : > { %3791 = vadd.xlane.f32.xlu1 %v3790_v19  ;;  %7245 = vpow2.f32 %v3788_v42 }
 0xc0b   : > { %v8618_v20 = vpop.eup %7241 }
 0xc0c   : > { %v3793_v21 = vsel %vm1957_vm3, %v8618_v20, 0.0 }
 0xc0d   : > { %3794 = vadd.xlane.f32.xlu0 %v3793_v21 }
 0xc0f   : > { %v8624_v24 = vpop.eup %7243 }
 0xc10   : > { %v3796_v25 = vsel %vm1957_vm3, %v8624_v24, 0.0 }
 0xc13   : > { %v8628_v26 = vpop.eup %7245 }
 0xc14   : > { %v3799_v28 = vsel %vm1957_vm3, %v8628_v26, 0.0 }
 0xc1a   : > { %3314 = vrot.lane.b32.xlu1 %v3020_v9, %s7729_s20 }
 0xc23   : > { %3318 = vrot.lane.b32.xlu0 %v3022_v15, %s7729_s20 }
 0xc3e   : > { %3797 = vadd.xlane.f32.xlu1 %v3796_v25  ;;  %v4249_v25 = vld [vmem:[#allocation17 + $0x8] sm:$0xff] }
 0xc42   : > { %3800 = vadd.xlane.f32.xlu0 %v3799_v28  ;;  %v4251_v28 = vld [vmem:[#allocation17 + $0x18] sm:$0xff] }
 0xc96   : > { %v3792_v33 = vpop.xlane.xlu1 %3791 }
 0xc97   : > { %7247 = vrcp.f32 %v3792_v33  ;;  %v4248_v33 = vld [vmem:[#allocation17] sm:$0xff] }
 0xc9a   : > { %v3795_v43 = vpop.xlane.xlu0 %3794  ;;  %v3315_v45 = vpop.permute.xlu1 %3314 }
 0xc9b   : > { %7249 = vrcp.f32 %v3795_v43  ;;  %v6447_v43 = vpack.c.bf16 %v4251_v28, %v4249_v25  ;;  %v4285_v25 = vld [vmem:[#allocation17 + $0x128] sm:$0xff]  ;;  %v4287_v28 = vld [vmem:[#allocation17 + $0x138] sm:$0xff] }
 0xc9d   : > { %6448 = vmatprep.subr.bf16.mxu0 %v6447_v43  ;;  %v6483_v43 = vpack.c.bf16 %v4287_v28, %v4285_v25 }
 0xc9e   : > { %v3319_v46 = vpop.permute.xlu0 %3318 }
 0xc9f   : > { %v3337_v47 = vcombine.low %v3315_v45, %v3319_v46  ;;  %v3338_v49 = vcombine.high %v3315_v45, %v3319_v46  ;;  %v4250_v45 = vld [vmem:[#allocation17 + $0x10] sm:$0xff]  ;;  %v4253_v46 = vld [vmem:[#allocation17 + $0x28] sm:$0xff] }
 0xca1   : > { %v3345_v58 = vrot.slane %v3337_v47, %v8293_v60  ;;  %v3352_v61 = vrot.slane %v3338_v49, %v8293_v60  ;;  %v7248_v16 = vpop.eup %7247  ;;  %v4255_v47 = vld [vmem:[#allocation17 + $0x38] sm:$0xff]  ;;  %v6449_v49 = vpack.c.bf16 %v4250_v45, %v4248_v33  ;;  %v4284_v45 = vld [vmem:[#allocation17 + $0x120] sm:$0xff] }
 0xca2   : > { %v3806_v39 = vmul.f32 %v7248_v16, %v8614_v27  ;;  %v4273_v16 = vld [vmem:[#allocation17 + $0xc8] sm:$0xff] }
 0xca3   : > { %v3353_v62 = vcombine.low %v3329_v55, %v3345_v58  ;;  %v3354_v29 = vcombine.high %v3329_v55, %v3345_v58  ;;  %v3369_v30 = vcombine.low %v3336_v54, %v3352_v61  ;;  %v3370_v34 = vcombine.high %v3336_v54, %v3352_v61  ;;  %v4252_v55 = vld [vmem:[#allocation17 + $0x20] sm:$0xff]  ;;  %v4254_v54 = vld [vmem:[#allocation17 + $0x30] sm:$0xff]  ;;  %v4257_v58 = vld [vmem:[#allocation17 + $0x48] sm:$0xff]  ;;  %6450 = vmatpush1.bf16.msra.mxu0 %v6449_v49 }
 0xca4   : > { %v4259_v61 = vld [vmem:[#allocation17 + $0x58] sm:$0xff] }
 0xca5   : > { %v3361_v35 = vrot.slane %v3353_v62, %v8296_v0  ;;  %v3368_v63 = vrot.slane %v3354_v29, %v8296_v0  ;;  %v3377_v31 = vrot.slane %v3369_v30, %v8296_v0  ;;  %v3384_v32 = vrot.slane %v3370_v34, %v8296_v0  ;;  %v7250_v21 = vpop.eup %7249  ;;  %v4256_v62 = vld [vmem:[#allocation17 + $0x40] sm:$0xff]  ;;  %v4258_v29 = vld [vmem:[#allocation17 + $0x50] sm:$0xff]  ;;  %v4261_v30 = vld [vmem:[#allocation17 + $0x68] sm:$0xff] }
 0xca6   : > { %v3807_v22 = vmul.f32 %v7250_v21, %v8618_v20  ;;  %v4263_v34 = vld [vmem:[#allocation17 + $0x78] sm:$0xff] }
 0xca7   : > { %v3389_v36 = vcombine.low %v3361_v35, %v3368_v63  ;;  %v5863_v3 = vcombine.high %v3361_v35, %v3368_v63  ;;  %v3405_v7 = vcombine.low %v3377_v31, %v3384_v32  ;;  %v5864_v4 = vcombine.high %v3377_v31, %v3384_v32  ;;  %v4260_v31 = vld [vmem:[#allocation17 + $0x60] sm:$0xff]  ;;  %v4262_v32 = vld [vmem:[#allocation17 + $0x70] sm:$0xff]  ;;  %v4291_v49 = vld [vmem:[#allocation17 + $0x158] sm:$0xff] }
 0xca8   : > { %v6457_v35 = vpack.c.bf16 %v4258_v29, %v4256_v62  ;;  %v6459_v63 = vpack.c.bf16 %v4263_v34, %v4261_v30  ;;  %v4292_v29 = vld [vmem:[#allocation17 + $0x160] sm:$0xff]  ;;  %v4294_v30 = vld [vmem:[#allocation17 + $0x170] sm:$0xff]  ;;  %v4297_v34 = vld [vmem:[#allocation17 + $0x188] sm:$0xff] }
 0xca9   : > { %v3396_v8 = vrot.slane %v3389_v36, %v8293_v60  ;;  %v3404_v11 = vrot.slane %v5863_v3, %v8293_v60  ;;  %v3412_v12 = vrot.slane %v3405_v7, %v8293_v60  ;;  %v3420_v13 = vrot.slane %v5864_v4, %v8293_v60  ;;  %v4265_v36 = vld [vmem:[#allocation17 + $0x88] sm:$0xff]  ;;  %v4267_v3 = vld [vmem:[#allocation17 + $0x98] sm:$0xff] }
 0xcaa   : > { %v6461_v7 = vpack.c.bf16 %v4262_v32, %v4260_v31  ;;  %v6463_v4 = vpack.c.bf16 %v4267_v3, %v4265_v36  ;;  %v4296_v32 = vld [vmem:[#allocation17 + $0x180] sm:$0xff]  ;;  %v4298_v36 = vld [vmem:[#allocation17 + $0x190] sm:$0xff]  ;;  %v4301_v3 = vld [vmem:[#allocation17 + $0x1a8] sm:$0xff] }
 0xcab   : > { %v3421_v41 = vcombine.low %v3396_v8, %v3404_v11  ;;  %v3437_v14 = vcombine.low %v3412_v12, %v3420_v13  ;;  %v3422_v9 = vcombine.high %v3396_v8, %v3404_v11  ;;  %v3438_v15 = vcombine.high %v3412_v12, %v3420_v13  ;;  %v4264_v8 = vld [vmem:[#allocation17 + $0x80] sm:$0xff]  ;;  %v4266_v11 = vld [vmem:[#allocation17 + $0x90] sm:$0xff]  ;;  %v4269_v12 = vld [vmem:[#allocation17 + $0xa8] sm:$0xff] }
 0xcac   : > { %v4271_v13 = vld [vmem:[#allocation17 + $0xb8] sm:$0xff] }
 0xcad   : > { %v3429_v5 = vrot.slane %v3421_v41, %v8296_v0  ;;  %v3445_v18 = vrot.slane %v3437_v14, %v8296_v0  ;;  %v3436_v6 = vrot.slane %v3422_v9, %v8296_v0  ;;  %v3452_v52 = vrot.slane %v3438_v15, %v8296_v0  ;;  %v4268_v9 = vld [vmem:[#allocation17 + $0xa0] sm:$0xff]  ;;  %v4270_v15 = vld [vmem:[#allocation17 + $0xb0] sm:$0xff] }
 0xcae   : > { %v6465_v41 = vpack.c.bf16 %v4266_v11, %v4264_v8  ;;  %v6467_v14 = vpack.c.bf16 %v4271_v13, %v4269_v12  ;;  %v4300_v11 = vld [vmem:[#allocation17 + $0x1a0] sm:$0xff]  ;;  %v4302_v12 = vld [vmem:[#allocation17 + $0x1b0] sm:$0xff]  ;;  %v4305_v13 = vld [vmem:[#allocation17 + $0x1c8] sm:$0xff] }
 0xcaf   : > { %v3453_v10 = vcombine.low %v3429_v5, %v3445_v18  ;;  %v3454_v44 = vcombine.high %v3429_v5, %v3445_v18  ;;  %v3455_v17 = vcombine.low %v3436_v6, %v3452_v52  ;;  %v3456_v19 = vcombine.high %v3436_v6, %v3452_v52  ;;  %v4275_v5 = vld [vmem:[#allocation17 + $0xd8] sm:$0xff]  ;;  %v4272_v52 = vld [vmem:[#allocation17 + $0xc0] sm:$0xff] }
 0xcb0   : > { %v6469_v18 = vpack.c.bf16 %v4270_v15, %v4268_v9  ;;  %v6471_v6 = vpack.c.bf16 %v4275_v5, %v4273_v16  ;;  %v4304_v15 = vld [vmem:[#allocation17 + $0x1c0] sm:$0xff]  ;;  %v4306_v16 = vld [vmem:[#allocation17 + $0x1d0] sm:$0xff] }
 0xcb1   : > { %5980 = vmatpush3.msra.mxu1 %v3453_v10  ;;  %v4274_v10 = vld [vmem:[#allocation17 + $0xd0] sm:$0xff]  ;;  %v6505_v5 = vpack.c.bf16 %v4306_v16, %v4304_v15 }
 0xcb2   : > { %5982 = vmatmul.mubr.msk.f32.vlgmr.msra.gmra.mrb[12].mxu1 %vm1957_vm3, %v3806_v39  ;;  %5984 = vmatprep.subr.mxu1 %v7730_v51  ;;  %v4276_v39 = vld [vmem:[#allocation17 + $0xe0] sm:$0xff] }
 0xcb3   : > { %5985 = vmatpush3.msra.mxu1 %v3454_v44  ;;  %5986 = vmatprep.mubr.msk.f32.mxu1 %vm7731_vm0, %v7730_v51  ;;  %v4277_v44 = vld [vmem:[#allocation17 + $0xe8] sm:$0xff] }
 0xcb4   : > { %5989 = vmatprep.subr.mxu1 %v7730_v51 }
 0xcb6   : > { %5987 = vmatmul.mubr.msk.f32.vlgmr.msra.gmra.mrb[14].mxu1 %vm1957_vm3, %v3807_v22  ;;  %v4278_v22 = vld [vmem:[#allocation17 + $0xf0] sm:$0xff] }
 0xcb7   : > { %5990 = vmatpush3.msra.mxu1 %v3455_v17  ;;  %5991 = vmatprep.mubr.msk.f32.mxu1 %vm7731_vm0, %v7730_v51  ;;  %v4279_v17 = vld [vmem:[#allocation17 + $0xf8] sm:$0xff] }
 0xcb8   : > { %5994 = vmatprep.subr.mxu1 %v7730_v51  ;;  %v6475_v21 = vpack.c.bf16 %v4279_v17, %v4277_v44 }
 0xccb   : > { %v3798_v27 = vpop.xlane.xlu1 %3797 }
 0xccc   : > { %7251 = vrcp.f32 %v3798_v27  ;;  %v4281_v27 = vld [vmem:[#allocation17 + $0x108] sm:$0xff] }
 0xccf   : > { %v3801_v23 = vpop.xlane.xlu0 %3800 }
 0xcd0   : > { %7253 = vrcp.f32 %v3801_v23  ;;  %v4283_v23 = vld [vmem:[#allocation17 + $0x118] sm:$0xff] }
 0xcd6   : > { %v7252_v37 = vpop.eup %7251 }
 0xcd7   : > { %v3808_v38 = vmul.f32 %v7252_v37, %v8624_v24  ;;  %v6451_v24 = vpack.c.bf16 %v4255_v47, %v4253_v46  ;;  %v6477_v37 = vpack.c.bf16 %v4278_v22, %v4276_v39  ;;  %v4286_v46 = vld [vmem:[#allocation17 + $0x130] sm:$0xff]  ;;  %v4289_v47 = vld [vmem:[#allocation17 + $0x148] sm:$0xff] }
 0xcd9   : > { %5992 = vmatmul.mubr.msk.f32.vlgmr.msra.gmra.mrb[16].mxu1 %vm1957_vm3, %v3808_v38  ;;  %6452 = vmatprep.subr.bf16.mxu0 %v6451_v24  ;;  %v6479_v38 = vpack.c.bf16 %v4283_v23, %v4281_v27  ;;  %v6485_v24 = vpack.c.bf16 %v4286_v46, %v4284_v45  ;;  %v4309_v45 = vld [vmem:[#allocation17 + $0x1e8] sm:$0xff]  ;;  %v4311_v46 = vld [vmem:[#allocation17 + $0x1f8] sm:$0xff] }
 0xcda   : > { %v7254_v20 = vpop.eup %7253  ;;  %5995 = vmatpush3.msra.mxu1 %v3456_v19  ;;  %5996 = vmatprep.mubr.msk.f32.mxu1 %vm7731_vm0, %v7730_v51  ;;  %v6453_v51 = vpack.c.bf16 %v4254_v54, %v4252_v55  ;;  %v6473_v19 = vpack.c.bf16 %v4274_v10, %v4272_v52  ;;  %v6487_v55 = vpack.c.bf16 %v4291_v49, %v4289_v47  ;;  %v4288_v54 = vld [vmem:[#allocation17 + $0x140] sm:$0xff] }
 0xcdb   : > { %v3809_v42 = vmul.f32 %v7254_v20, %v8628_v26  ;;  %v6455_v26 = vpack.c.bf16 %v4259_v61, %v4257_v58  ;;  %v4280_v20 = vld [vmem:[#allocation17 + $0x100] sm:$0xff]  ;;  %v4290_v58 = vld [vmem:[#allocation17 + $0x150] sm:$0xff]  ;;  %v4293_v61 = vld [vmem:[#allocation17 + $0x168] sm:$0xff] }
 0xcdc   : > { %6454 = vmatpush1.bf16.msra.mxu0 %v6453_v51  ;;  %v4295_v51 = vld [vmem:[#allocation17 + $0x178] sm:$0xff] }
 0xcdd   : > { %5997 = vmatmul.mubr.msk.f32.vlgmr.msra.gmra.mrb[18].mxu1 %vm1957_vm3, %v3809_v42  ;;  %6456 = vmatprep.subr.bf16.mxu0 %v6455_v26  ;;  %v4282_v42 = vld [vmem:[#allocation17 + $0x110] sm:$0xff]  ;;  %v6489_v26 = vpack.c.bf16 %v4290_v58, %v4288_v54  ;;  %v6491_v62 = vpack.c.bf16 %v4295_v51, %v4293_v61  ;;  %v4308_v54 = vld [vmem:[#allocation17 + $0x1e0] sm:$0xff]  ;;  %v6507_v61 = vpack.c.bf16 %v4311_v46, %v4309_v45 }
 0xcde   : > { %v6481_v33 = vpack.c.bf16 %v4282_v42, %v4280_v20  ;;  %v4310_v58 = vld [vmem:[#allocation17 + $0x1f0] sm:$0xff] }
 0xcdf   : > { %v6509_v51 = vpack.c.bf16 %v4310_v58, %v4308_v54  ;;  %v4431_v54 = vld [vmem:[#allocation19 + $0xd0] sm:$0xff]  ;;  %v4438_v58 = vld [vmem:[#allocation19 + $0x108] sm:$0xff] }
 0xce0   : > { %6458 = vmatpush1.bf16.msra.mxu0 %v6457_v35  ;;  %v4299_v35 = vld [vmem:[#allocation17 + $0x198] sm:$0xff] }
 0xce1   : > { %6460 = vmatprep.subr.bf16.mxu0 %v6459_v63  ;;  %v6493_v63 = vpack.c.bf16 %v4294_v30, %v4292_v29  ;;  %v6495_v31 = vpack.c.bf16 %v4299_v35, %v4297_v34 }
 0xce4   : > { %6462 = vmatpush1.bf16.msra.mxu0 %v6461_v7  ;;  %v4303_v7 = vld [vmem:[#allocation17 + $0x1b8] sm:$0xff] }
 0xce5   : > { %6464 = vmatprep.subr.bf16.mxu0 %v6463_v4  ;;  %v6497_v4 = vpack.c.bf16 %v4298_v36, %v4296_v32  ;;  %v6499_v8 = vpack.c.bf16 %v4303_v7, %v4301_v3 }
 0xce8   : > { %6466 = vmatpush1.bf16.msra.mxu0 %v6465_v41  ;;  %v4307_v41 = vld [vmem:[#allocation17 + $0x1d8] sm:$0xff] }
 0xce9   : > { %6468 = vmatprep.subr.bf16.mxu0 %v6467_v14  ;;  %v6501_v14 = vpack.c.bf16 %v4302_v12, %v4300_v11  ;;  %v6503_v9 = vpack.c.bf16 %v4307_v41, %v4305_v13 }
 0xcec   : > { %6470 = vmatpush1.bf16.msra.mxu0 %v6469_v18 }
 0xced   : > { %6472 = vmatprep.subr.bf16.mxu0 %v6471_v6 }
 0xcf0   : > { %6474 = vmatpush1.bf16.msra.mxu0 %v6473_v19 }
 0xcf1   : > { %6476 = vmatprep.subr.bf16.mxu0 %v6475_v21 }
 0xcf4   : > { %6478 = vmatpush1.bf16.msra.mxu0 %v6477_v37 }
 0xcf5   : > { %6480 = vmatprep.subr.bf16.mxu0 %v6479_v38 }
 0xcf8   : > { %6482 = vmatpush1.bf16.msra.mxu0 %v6481_v33 }
 0xcf9   : > { %6484 = vmatprep.subr.bf16.mxu0 %v6483_v43 }
 0xcfc   : > { %6486 = vmatpush1.bf16.msra.mxu0 %v6485_v24 }
 0xcfd   : > { %6488 = vmatprep.subr.bf16.mxu0 %v6487_v55 }
 0xd00   : > { %6490 = vmatpush1.bf16.msra.mxu0 %v6489_v26 }
 0xd01   : > { %6492 = vmatprep.subr.bf16.mxu0 %v6491_v62 }
 0xd04   : > { %6494 = vmatpush1.bf16.msra.mxu0 %v6493_v63 }
 0xd05   : > { %6496 = vmatprep.subr.bf16.mxu0 %v6495_v31 }
 0xd08   : > { %6498 = vmatpush1.bf16.msra.mxu0 %v6497_v4 }
 0xd09   : > { %6500 = vmatprep.subr.bf16.mxu0 %v6499_v8 }
 0xd0c   : > { %6502 = vmatpush1.bf16.msra.mxu0 %v6501_v14 }
 0xd0d   : > { %6504 = vmatprep.subr.bf16.mxu0 %v6503_v9 }
 0xd10   : > { %6506 = vmatpush1.bf16.msra.mxu0 %v6505_v5 }
 0xd11   : > { %6508 = vmatprep.subr.bf16.mxu0 %v6507_v61  ;;  %v4446_v61 = vld [vmem:[#allocation19 + $0x148] sm:$0xff] }
 0xd14   : > { %6510 = vmatpush1.bf16.msra.mxu0 %v6509_v51 }
 0xd85   : > { %v3879_v18 = vpop.f32.mrb[12].mxu1 }
 0xd86   : > { %v5983_v6 = vpop.f32.mrb[13].mxu1 }
 0xd89   : > { %v3952_v52 = vpop.f32.mrb[14].mxu1 }
 0xd8a   : > { %v5988_v10 = vpop.f32.mrb[15].mxu1 }
 0xdac   : > { %v4025_v44 = vpop.f32.mrb[16].mxu1 }
 0xdad   : > { %v4102_v17 = vcombine.low %v3879_v18, %v4025_v44  ;;  %v4103_v19 = vcombine.high %v3879_v18, %v4025_v44  ;;  %v5993_v21 = vpop.f32.mrb[17].mxu1 }
 0xdae   : > { %v4414_v21 = vld [vmem:[#allocation19 + $0x48] sm:$0xff] }
 0xdaf   : > { %v4110_v37 = vrot.slane %v4102_v17, %v8293_v60  ;;  %v4117_v38 = vrot.slane %v4103_v19, %v8293_v60  ;;  %v4406_v19 = vld [vmem:[#allocation19 + $0x8] sm:$0xff] }
 0xdb0   : > { %v4098_v39 = vpop.f32.mrb[18].mxu1 }
 0xdb1   : > { %v4118_v22 = vcombine.low %v3952_v52, %v4098_v39  ;;  %v4119_v27 = vcombine.high %v3952_v52, %v4098_v39  ;;  %v5998_v23 = vpop.f32.mrb[19].mxu1  ;;  %v4408_v39 = vld [vmem:[#allocation19 + $0x18] sm:$0xff] }
 0xdb2   : > { %v4405_v23 = vld [vmem:[#allocation19] sm:$0xff] }
 0xdb3   : > { %v4126_v20 = vrot.slane %v4118_v22, %v8293_v60  ;;  %v4133_v42 = vrot.slane %v4119_v27, %v8293_v60  ;;  %v6511_v22 = vpack.c.bf16 %v4414_v21, %v4406_v19  ;;  %v4416_v27 = vld [vmem:[#allocation19 + $0x58] sm:$0xff]  ;;  %v4471_v19 = vld [vmem:[#allocation19 + $0x210] sm:$0xff] }
 0xdb5   : > { %v4134_v25 = vcombine.low %v4110_v37, %v4126_v20  ;;  %v4135_v28 = vcombine.high %v4110_v37, %v4126_v20  ;;  %v4150_v33 = vcombine.low %v4117_v38, %v4133_v42  ;;  %v4151_v43 = vcombine.high %v4117_v38, %v4133_v42  ;;  %v4413_v37 = vld [vmem:[#allocation19 + $0x40] sm:$0xff]  ;;  %v4407_v42 = vld [vmem:[#allocation19 + $0x10] sm:$0xff]  ;;  %6512 = vmatprep.subr.bf16.mxu1 %v6511_v22  ;;  %v4486_v22 = vld [vmem:[#allocation19 + $0x288] sm:$0xff] }
 0xdb6   : > { %v6575_v38 = vpack.c.bf16 %v4416_v27, %v4408_v39  ;;  %v6513_v20 = vpack.c.bf16 %v4413_v37, %v4405_v23  ;;  %v4479_v39 = vld [vmem:[#allocation19 + $0x250] sm:$0xff]  ;;  %v4494_v27 = vld [vmem:[#allocation19 + $0x2c8] sm:$0xff]  ;;  %v4488_v23 = vld [vmem:[#allocation19 + $0x298] sm:$0xff] }
 0xdb7   : > { %v4142_v47 = vrot.slane %v4134_v25, %v8296_v0  ;;  %v4149_v49 = vrot.slane %v4135_v28, %v8296_v0  ;;  %v4158_v24 = vrot.slane %v4150_v33, %v8296_v0  ;;  %v4165_v55 = vrot.slane %v4151_v43, %v8296_v0  ;;  %v4422_v25 = vld [vmem:[#allocation19 + $0x88] sm:$0xff]  ;;  %v4424_v33 = vld [vmem:[#allocation19 + $0x98] sm:$0xff] }
 0xdb8   : > { %v4432_v43 = vld [vmem:[#allocation19 + $0xd8] sm:$0xff]  ;;  %6576 = vmatprep.subr.bf16.mxu0 %v6575_v38  ;;  %6514 = vmatpush1.bf16.msra.mxu1 %v6513_v20  ;;  %v6593_v20 = vpack.c.bf16 %v4479_v39, %v4471_v19 }
 0xdb9   : > { %v4170_v26 = vcombine.low %v4142_v47, %v4149_v49  ;;  %v5877_v62 = vcombine.high %v4142_v47, %v4149_v49  ;;  %v4186_v29 = vcombine.low %v4158_v24, %v4165_v55  ;;  %v5878_v30 = vcombine.high %v4158_v24, %v4165_v55  ;;  %v4421_v47 = vld [vmem:[#allocation19 + $0x80] sm:$0xff]  ;;  %v4423_v24 = vld [vmem:[#allocation19 + $0x90] sm:$0xff]  ;;  %v4496_v37 = vld [vmem:[#allocation19 + $0x2d8] sm:$0xff] }
 0xdba   : > { %v6579_v46 = vpack.c.bf16 %v4432_v43, %v4424_v33  ;;  %v4429_v49 = vld [vmem:[#allocation19 + $0xc0] sm:$0xff]  ;;  %v6581_v51 = vpack.c.bf16 %v4431_v54, %v4423_v24  ;;  %v4495_v33 = vld [vmem:[#allocation19 + $0x2d0] sm:$0xff]  ;;  %v4502_v43 = vld [vmem:[#allocation19 + $0x308] sm:$0xff] }
 0xdbb   : > { %v4177_v34 = vrot.slane %v4170_v26, %v8293_v60  ;;  %v4185_v35 = vrot.slane %v5877_v62, %v8293_v60  ;;  %v4193_v63 = vrot.slane %v4186_v29, %v8293_v60  ;;  %v4201_v31 = vrot.slane %v5878_v30, %v8293_v60  ;;  %v4440_v62 = vld [vmem:[#allocation19 + $0x118] sm:$0xff]  ;;  %v4437_v30 = vld [vmem:[#allocation19 + $0x100] sm:$0xff] }
 0xdbc   : > { %v6517_v55 = vpack.c.bf16 %v4429_v49, %v4421_v47  ;;  %v6519_v26 = vpack.c.bf16 %v4446_v61, %v4438_v58  ;;  %v4448_v29 = vld [vmem:[#allocation19 + $0x158] sm:$0xff]  ;;  %v4501_v54 = vld [vmem:[#allocation19 + $0x300] sm:$0xff]  ;;  %v4503_v61 = vld [vmem:[#allocation19 + $0x310] sm:$0xff] }
 0xdbd   : > { %v4202_v32 = vcombine.low %v4177_v34, %v4185_v35  ;;  %v4203_v36 = vcombine.high %v4177_v34, %v4185_v35  ;;  %v4218_v3 = vcombine.low %v4193_v63, %v4201_v31  ;;  %v4219_v7 = vcombine.high %v4193_v63, %v4201_v31  ;;  %v4445_v35 = vld [vmem:[#allocation19 + $0x140] sm:$0xff]  ;;  %v4439_v63 = vld [vmem:[#allocation19 + $0x110] sm:$0xff]  ;;  %v4512_v47 = vld [vmem:[#allocation19 + $0x358] sm:$0xff] }
 0xdbe   : > { %v6583_v34 = vpack.c.bf16 %v4448_v29, %v4440_v62  ;;  %v4447_v31 = vld [vmem:[#allocation19 + $0x150] sm:$0xff]  ;;  %v4509_v58 = vld [vmem:[#allocation19 + $0x340] sm:$0xff]  ;;  %v4518_v62 = vld [vmem:[#allocation19 + $0x388] sm:$0xff] }
 0xdbf   : > { %v4210_v4 = vrot.slane %v4202_v32, %v8296_v0  ;;  %v4217_v8 = vrot.slane %v4203_v36, %v8296_v0  ;;  %v4226_v11 = vrot.slane %v4218_v3, %v8296_v0  ;;  %v4233_v12 = vrot.slane %v4219_v7, %v8296_v0  ;;  %v4454_v36 = vld [vmem:[#allocation19 + $0x188] sm:$0xff]  ;;  %v4456_v7 = vld [vmem:[#allocation19 + $0x198] sm:$0xff] }
 0xdc0   : > { %v6521_v32 = vpack.c.bf16 %v4445_v35, %v4437_v30  ;;  %v4462_v3 = vld [vmem:[#allocation19 + $0x1c8] sm:$0xff]  ;;  %v4520_v30 = vld [vmem:[#allocation19 + $0x398] sm:$0xff]  ;;  %v6537_v35 = vpack.c.bf16 %v4509_v58, %v4501_v54 }
 0xdc1   : > { %v4235_v13 = vcombine.high %v4210_v4, %v4226_v11  ;;  %v4237_v41 = vcombine.high %v4217_v8, %v4233_v12  ;;  %v4236_v14 = vcombine.low %v4217_v8, %v4233_v12  ;;  %v4234_v9 = vcombine.low %v4210_v4, %v4226_v11  ;;  %v4464_v11 = vld [vmem:[#allocation19 + $0x1d8] sm:$0xff]  ;;  %v4453_v12 = vld [vmem:[#allocation19 + $0x180] sm:$0xff]  ;;  %v4526_v29 = vld [vmem:[#allocation19 + $0x3c8] sm:$0xff] }
 0xdc2   : > { %v6585_v4 = vpack.c.bf16 %v4447_v31, %v4439_v63  ;;  %v6523_v8 = vpack.c.bf16 %v4462_v3, %v4454_v36  ;;  %v6539_v31 = vpack.c.bf16 %v4526_v29, %v4518_v62  ;;  %v4525_v36 = vld [vmem:[#allocation19 + $0x3c0] sm:$0xff]  ;;  %v4519_v3 = vld [vmem:[#allocation19 + $0x390] sm:$0xff] }
 0xdc3   : > { %v7215_v15 = vpack.i.bf16 %v4235_v13, %v4237_v41  ;;  %v4461_v13 = vld [vmem:[#allocation19 + $0x1c0] sm:$0xff]  ;;  %v6587_v41 = vpack.c.bf16 %v4464_v11, %v4456_v7  ;;  %v4542_v11 = vld [vmem:[#allocation19 + $0x448] sm:$0xff] }
 0xdc5   : > { %7216 = vrot.lane.b32.xlu1 %v7215_v15, %s7729_s20  ;;  %v4470_v15 = vld [vmem:[#allocation19 + $0x208] sm:$0xff]  ;;  %s7607_s20 = scalar_lea.vmem %s7606_s18, 512 }
 0xdc6   : > { %p7609_p3 = scmp.lt.s32.totalorder %s7607_s20, %s7601_s1 }
 0xdc8   : > { %p7610_p12 = por %p7609_p3, %p7608_p8 }
 0xdca   : > { %p7611_p6 = pnand %p7610_p12, %p7604_p5 }
 0xe37   : > { %v7217_v60 = vpop.permute.xlu1 %7216 }
 0xe38   : > { %v7219_v16 = vunpack.i.h.bf16 %v7217_v60  ;;  %v7218_v5 = vunpack.i.l.bf16 %v7217_v60  ;;  %v4478_v60 = vld [vmem:[#allocation19 + $0x248] sm:$0xff] }
 0xe3a   : > { %v4247_v18 = vsel %vm1652_vm1, %v4236_v14, %v7218_v5  ;;  %v4246_v6 = vsel %vm1652_vm1, %v4234_v9, %v7219_v16  ;;  %v4455_v14 = vld [vmem:[#allocation19 + $0x190] sm:$0xff]  ;;  %v4472_v16 = vld [vmem:[#allocation19 + $0x218] sm:$0xff] }
 0xe3b   : > { %4376 = vmatprep.mubr.f32.mxu0 %v4247_v18  ;;  %v4463_v9 = vld [vmem:[#allocation19 + $0x1d0] sm:$0xff]  ;;  %v4480_v5 = vld [vmem:[#allocation19 + $0x258] sm:$0xff]  ;;  %v6525_v18 = vpack.c.bf16 %v4461_v13, %v4453_v12 }
 0xe3c   : > { %4377 = vmatmul.mubr.f32.vlgmr.msra.gmra.mrb[26].mxu0 %v4246_v6  ;;  %v6589_v6 = vpack.c.bf16 %v4463_v9, %v4455_v14  ;;  %v6591_v21 = vpack.c.bf16 %v4480_v5, %v4472_v16  ;;  %v4536_v12 = vld [vmem:[#allocation19 + $0x418] sm:$0xff]  ;;  %v4535_v16 = vld [vmem:[#allocation19 + $0x410] sm:$0xff] }
 0xe3d   : > { %v4544_v13 = vld [vmem:[#allocation19 + $0x458] sm:$0xff] }
 0xe3e   : > { %v6607_v5 = vpack.c.bf16 %v4544_v13, %v4536_v12  ;;  %v4600_v12 = vld [vmem:[#allocation19 + $0x618] sm:$0xff] }
 0xf0f   : > { %v4378_v52 = vpop.f32.mrb[26].mxu0 }
 0xf10   : > { %v8685_v10 = vadd.f32 %v4378_v52, %v8503_v2  ;;  %v4380_v0 = vpop.f32.mrb[27].mxu0  ;;  %v4415_v2 = vld [vmem:[#allocation19 + $0x50] sm:$0xff]  ;;  %v6527_v52 = vpack.c.bf16 %v4478_v60, %v4470_v15  ;;  %v4533_v15 = vld [vmem:[#allocation19 + $0x400] sm:$0xff] }
 0xf11   : > { %v8688_v44 = vadd.f32 %v4380_v0, %v8500_v1  ;;  %v6577_v28 = vpack.c.bf16 %v4415_v2, %v4407_v42  ;;  %v4430_v1 = vld [vmem:[#allocation19 + $0xc8] sm:$0xff]  ;;  %v4469_v0 = vld [vmem:[#allocation19 + $0x200] sm:$0xff]  ;;  %v6531_v42 = vpack.c.bf16 %v4494_v27, %v4486_v22 }
 0xf12   : > { %v6515_v45 = vpack.c.bf16 %v4430_v1, %v4422_v25  ;;  %v4485_v2 = vld [vmem:[#allocation19 + $0x280] sm:$0xff]  ;;  %v6595_v1 = vpack.c.bf16 %v4496_v37, %v4488_v23  ;;  %v4551_v23 = vld [vmem:[#allocation19 + $0x490] sm:$0xff] }
 0xf13   : > { %v4385_v17 = vadd.f32 %v8688_v44, %v8685_v10  ;;  %6578 = vmatpush1.bf16.msra.mxu0 %v6577_v28  ;;  %v4493_v25 = vld [vmem:[#allocation19 + $0x2c0] sm:$0xff]  ;;  %v4487_v28 = vld [vmem:[#allocation19 + $0x290] sm:$0xff] }
 0xf14   : > { %6516 = vmatprep.subr.bf16.mxu1 %v6515_v45  ;;  %6580 = vmatprep.subr.bf16.mxu0 %v6579_v46  ;;  %v4510_v45 = vld [vmem:[#allocation19 + $0x348] sm:$0xff]  ;;  %v4504_v46 = vld [vmem:[#allocation19 + $0x318] sm:$0xff]  ;;  %v6533_v49 = vpack.c.bf16 %v4493_v25, %v4485_v2  ;;  %v6597_v24 = vpack.c.bf16 %v4495_v33, %v4487_v28  ;;  %v4541_v60 = vld [vmem:[#allocation19 + $0x440] sm:$0xff] }
 0xf15   : > { %4386 = vadd.xlane.f32.xlu0 %v4385_v17  ;;  %6518 = vmatpush1.bf16.msra.mxu1 %v6517_v55  ;;  %v4477_v17 = vld [vmem:[#allocation19 + $0x240] sm:$0xff]  ;;  %v6535_v55 = vpack.c.bf16 %v4510_v45, %v4502_v43  ;;  %v6545_v19 = vpack.c.bf16 %v4541_v60, %v4533_v15  ;;  %v4568_v2 = vld [vmem:[#allocation19 + $0x518] sm:$0xff] }
 0xf16   : > { %6520 = vmatprep.subr.bf16.mxu1 %v6519_v26  ;;  %v6529_v38 = vpack.c.bf16 %v4477_v17, %v4469_v0  ;;  %v4511_v26 = vld [vmem:[#allocation19 + $0x350] sm:$0xff]  ;;  %v4552_v0 = vld [vmem:[#allocation19 + $0x498] sm:$0xff]  ;;  %v4549_v22 = vld [vmem:[#allocation19 + $0x480] sm:$0xff] }
 0xf17   : > { %6582 = vmatpush1.bf16.msra.mxu0 %v6581_v51  ;;  %v6599_v51 = vpack.c.bf16 %v4512_v47, %v4504_v46  ;;  %v6601_v63 = vpack.c.bf16 %v4511_v26, %v4503_v61  ;;  %v4560_v17 = vld [vmem:[#allocation19 + $0x4d8] sm:$0xff]  ;;  %v4557_v27 = vld [vmem:[#allocation19 + $0x4c0] sm:$0xff]  ;;  %v4567_v47 = vld [vmem:[#allocation19 + $0x510] sm:$0xff] }
 0xf18   : > { %6584 = vmatprep.subr.bf16.mxu0 %v6583_v34  ;;  %v4528_v34 = vld [vmem:[#allocation19 + $0x3d8] sm:$0xff]  ;;  %v6611_v37 = vpack.c.bf16 %v4560_v17, %v4552_v0  ;;  %v6549_v28 = vpack.c.bf16 %v4557_v27, %v4549_v22  ;;  %v4565_v43 = vld [vmem:[#allocation19 + $0x500] sm:$0xff] }
 0xf19   : > { %6522 = vmatpush1.bf16.msra.mxu1 %v6521_v32  ;;  %v4517_v32 = vld [vmem:[#allocation19 + $0x380] sm:$0xff]  ;;  %v6603_v7 = vpack.c.bf16 %v4528_v34, %v4520_v30  ;;  %v4576_v25 = vld [vmem:[#allocation19 + $0x558] sm:$0xff]  ;;  %v4582_v30 = vld [vmem:[#allocation19 + $0x588] sm:$0xff] }
 0xf1a   : > { %6524 = vmatprep.subr.bf16.mxu1 %v6523_v8  ;;  %v4534_v8 = vld [vmem:[#allocation19 + $0x408] sm:$0xff]  ;;  %v4573_v45 = vld [vmem:[#allocation19 + $0x540] sm:$0xff]  ;;  %v6615_v46 = vpack.c.bf16 %v4576_v25, %v4568_v2  ;;  %v4616_v0 = vld [vmem:[#allocation19 + $0x698] sm:$0xff] }
 0xf1b   : > { %6586 = vmatpush1.bf16.msra.mxu0 %v6585_v4  ;;  %v4527_v4 = vld [vmem:[#allocation19 + $0x3d0] sm:$0xff]  ;;  %v6543_v9 = vpack.c.bf16 %v4542_v11, %v4534_v8  ;;  %v4590_v34 = vld [vmem:[#allocation19 + $0x5c8] sm:$0xff]  ;;  %v4632_v2 = vld [vmem:[#allocation19 + $0x718] sm:$0xff] }
 0xf1c   : > { %6588 = vmatprep.subr.bf16.mxu0 %v6587_v41  ;;  %v6541_v41 = vpack.c.bf16 %v4525_v36, %v4517_v32  ;;  %v6605_v14 = vpack.c.bf16 %v4527_v4, %v4519_v3  ;;  %v4581_v32 = vld [vmem:[#allocation19 + $0x580] sm:$0xff]  ;;  %v4598_v8 = vld [vmem:[#allocation19 + $0x608] sm:$0xff] }
 0xf1d   : > { %6526 = vmatpush1.bf16.msra.mxu1 %v6525_v18  ;;  %v4543_v18 = vld [vmem:[#allocation19 + $0x450] sm:$0xff]  ;;  %v4589_v36 = vld [vmem:[#allocation19 + $0x5c0] sm:$0xff]  ;;  %v4606_v11 = vld [vmem:[#allocation19 + $0x648] sm:$0xff] }
 0xf1e   : > { %6528 = vmatprep.subr.bf16.mxu1 %v6527_v52  ;;  %v4558_v52 = vld [vmem:[#allocation19 + $0x4c8] sm:$0xff]  ;;  %v6557_v3 = vpack.c.bf16 %v4589_v36, %v4581_v32  ;;  %v6559_v13 = vpack.c.bf16 %v4606_v11, %v4598_v8 }
 0xf1f   : > { %6590 = vmatpush1.bf16.msra.mxu0 %v6589_v6  ;;  %v4550_v6 = vld [vmem:[#allocation19 + $0x488] sm:$0xff] }
 0xf20   : > { %6592 = vmatprep.subr.bf16.mxu0 %v6591_v21  ;;  %v6609_v21 = vpack.c.bf16 %v4543_v18, %v4535_v16  ;;  %v6547_v39 = vpack.c.bf16 %v4558_v52, %v4550_v6  ;;  %v4599_v16 = vld [vmem:[#allocation19 + $0x610] sm:$0xff]  ;;  %v4614_v6 = vld [vmem:[#allocation19 + $0x688] sm:$0xff] }
 0xf21   : > { %6530 = vmatpush1.bf16.msra.mxu1 %v6529_v38  ;;  %v4559_v38 = vld [vmem:[#allocation19 + $0x4d0] sm:$0xff]  ;;  %v4622_v52 = vld [vmem:[#allocation19 + $0x6c8] sm:$0xff] }
 0xf22   : > { %6532 = vmatprep.subr.bf16.mxu1 %v6531_v42  ;;  %v4574_v42 = vld [vmem:[#allocation19 + $0x548] sm:$0xff]  ;;  %v6563_v17 = vpack.c.bf16 %v4622_v52, %v4614_v6  ;;  %v4428_v52 = vld [vmem:[#allocation19 + $0xb8] sm:$0xff] }
 0xf23   : > { %6594 = vmatpush1.bf16.msra.mxu0 %v6593_v20  ;;  %v4566_v20 = vld [vmem:[#allocation19 + $0x508] sm:$0xff] }
 0xf24   : > { %6596 = vmatprep.subr.bf16.mxu0 %v6595_v1  ;;  %v6613_v1 = vpack.c.bf16 %v4559_v38, %v4551_v23  ;;  %v6551_v33 = vpack.c.bf16 %v4574_v42, %v4566_v20  ;;  %v4615_v23 = vld [vmem:[#allocation19 + $0x690] sm:$0xff]  ;;  %v4630_v20 = vld [vmem:[#allocation19 + $0x708] sm:$0xff] }
 0xf25   : > { %6534 = vmatpush1.bf16.msra.mxu1 %v6533_v49  ;;  %v4575_v49 = vld [vmem:[#allocation19 + $0x550] sm:$0xff]  ;;  %v4638_v42 = vld [vmem:[#allocation19 + $0x748] sm:$0xff] }
 0xf26   : > { %6536 = vmatprep.subr.bf16.mxu1 %v6535_v55  ;;  %v6617_v55 = vpack.c.bf16 %v4575_v49, %v4567_v47  ;;  %v6567_v25 = vpack.c.bf16 %v4638_v42, %v4630_v20  ;;  %v4639_v47 = vld [vmem:[#allocation19 + $0x750] sm:$0xff]  ;;  %v4410_v32 = vld [vmem:[#allocation19 + $0x28] sm:$0xff]  ;;  %v4444_v42 = vld [vmem:[#allocation19 + $0x138] sm:$0xff] }
 0xf27   : > { %6598 = vmatpush1.bf16.msra.mxu0 %v6597_v24  ;;  %v6553_v24 = vpack.c.bf16 %v4573_v45, %v4565_v43  ;;  %v4418_v36 = vld [vmem:[#allocation19 + $0x68] sm:$0xff] }
 0xf28   : > { %6600 = vmatprep.subr.bf16.mxu0 %v6599_v51  ;;  %v4434_v6 = vld [vmem:[#allocation19 + $0xe8] sm:$0xff] }
 0xf29   : > { %6538 = vmatpush1.bf16.msra.mxu1 %v6537_v35  ;;  %v4584_v35 = vld [vmem:[#allocation19 + $0x598] sm:$0xff]  ;;  %v4450_v20 = vld [vmem:[#allocation19 + $0x168] sm:$0xff] }
 0xf2a   : > { %6540 = vmatprep.subr.bf16.mxu1 %v6539_v31  ;;  %v4592_v31 = vld [vmem:[#allocation19 + $0x5d8] sm:$0xff] }
 0xf2b   : > { %6602 = vmatpush1.bf16.msra.mxu0 %v6601_v63  ;;  %v6555_v63 = vpack.c.bf16 %v4590_v34, %v4582_v30 }
 0xf2c   : > { %6604 = vmatprep.subr.bf16.mxu0 %v6603_v7  ;;  %v4583_v7 = vld [vmem:[#allocation19 + $0x590] sm:$0xff] }
 0xf2d   : > { %6542 = vmatpush1.bf16.msra.mxu1 %v6541_v41  ;;  %v4608_v41 = vld [vmem:[#allocation19 + $0x658] sm:$0xff] }
 0xf2e   : > { %6544 = vmatprep.subr.bf16.mxu1 %v6543_v9  ;;  %v4605_v9 = vld [vmem:[#allocation19 + $0x640] sm:$0xff]  ;;  %v6623_v15 = vpack.c.bf16 %v4608_v41, %v4600_v12 }
 0xf2f   : > { %6606 = vmatpush1.bf16.msra.mxu0 %v6605_v14  ;;  %v4597_v14 = vld [vmem:[#allocation19 + $0x600] sm:$0xff] }
 0xf30   : > { %6608 = vmatprep.subr.bf16.mxu0 %v6607_v5  ;;  %v6561_v60 = vpack.c.bf16 %v4605_v9, %v4597_v14  ;;  %v4607_v5 = vld [vmem:[#allocation19 + $0x650] sm:$0xff]  ;;  %v4409_v14 = vld [vmem:[#allocation19 + $0x20] sm:$0xff] }
 0xf31   : > { %6546 = vmatpush1.bf16.msra.mxu1 %v6545_v19  ;;  %v6625_v18 = vpack.c.bf16 %v4607_v5, %v4599_v16  ;;  %v4624_v19 = vld [vmem:[#allocation19 + $0x6d8] sm:$0xff]  ;;  %v4417_v9 = vld [vmem:[#allocation19 + $0x60] sm:$0xff] }
 0xf32   : > { %6548 = vmatprep.subr.bf16.mxu1 %v6547_v39  ;;  %v4621_v39 = vld [vmem:[#allocation19 + $0x6c0] sm:$0xff]  ;;  %v6627_v22 = vpack.c.bf16 %v4624_v19, %v4616_v0  ;;  %v4436_v0 = vld [vmem:[#allocation19 + $0xf8] sm:$0xff] }
 0xf33   : > { %6610 = vmatpush1.bf16.msra.mxu0 %v6609_v21  ;;  %v4613_v21 = vld [vmem:[#allocation19 + $0x680] sm:$0xff] }
 0xf34   : > { %6612 = vmatprep.subr.bf16.mxu0 %v6611_v37  ;;  %v6565_v27 = vpack.c.bf16 %v4621_v39, %v4613_v21  ;;  %v4623_v37 = vld [vmem:[#allocation19 + $0x6d0] sm:$0xff]  ;;  %v4425_v21 = vld [vmem:[#allocation19 + $0xa0] sm:$0xff] }
 0xf35   : > { %6550 = vmatpush1.bf16.msra.mxu1 %v6549_v28  ;;  %v6629_v38 = vpack.c.bf16 %v4623_v37, %v4615_v23  ;;  %v4640_v28 = vld [vmem:[#allocation19 + $0x758] sm:$0xff]  ;;  %v4433_v39 = vld [vmem:[#allocation19 + $0xe0] sm:$0xff]  ;;  %v4442_v23 = vld [vmem:[#allocation19 + $0x128] sm:$0xff] }
 0xf36   : > { %6552 = vmatprep.subr.bf16.mxu1 %v6551_v33  ;;  %v4637_v33 = vld [vmem:[#allocation19 + $0x740] sm:$0xff]  ;;  %v6631_v43 = vpack.c.bf16 %v4640_v28, %v4632_v2  ;;  %v4452_v2 = vld [vmem:[#allocation19 + $0x178] sm:$0xff] }
 0xf37   : > { %6614 = vmatpush1.bf16.msra.mxu0 %v6613_v1  ;;  %v4629_v1 = vld [vmem:[#allocation19 + $0x700] sm:$0xff] }
 0xf38   : > { %6616 = vmatprep.subr.bf16.mxu0 %v6615_v46  ;;  %v6569_v45 = vpack.c.bf16 %v4637_v33, %v4629_v1  ;;  %v4631_v46 = vld [vmem:[#allocation19 + $0x710] sm:$0xff]  ;;  %v4441_v1 = vld [vmem:[#allocation19 + $0x120] sm:$0xff] }
 0xf39   : > { %6554 = vmatpush1.bf16.msra.mxu1 %v6553_v24  ;;  %v6633_v49 = vpack.c.bf16 %v4639_v47, %v4631_v46  ;;  %v4646_v24 = vld [vmem:[#allocation19 + $0x788] sm:$0xff]  ;;  %v4449_v33 = vld [vmem:[#allocation19 + $0x160] sm:$0xff]  ;;  %v4443_v46 = vld [vmem:[#allocation19 + $0x130] sm:$0xff] }
 0xf3a   : > { %6556 = vmatprep.subr.bf16.mxu1 %v6555_v63  ;;  %v4655_v63 = vld [vmem:[#allocation19 + $0x7d0] sm:$0xff] }
 0xf3b   : > { %6618 = vmatpush1.bf16.msra.mxu0 %v6617_v55  ;;  %v4654_v55 = vld [vmem:[#allocation19 + $0x7c8] sm:$0xff]  ;;  %v4451_v47 = vld [vmem:[#allocation19 + $0x170] sm:$0xff] }
 0xf3d   : > { %6558 = vmatpush1.bf16.msra.mxu1 %v6557_v3  ;;  %v6639_v3 = vpack.c.bf16 %v4418_v36, %v4410_v32  ;;  %v4482_v32 = vld [vmem:[#allocation19 + $0x268] sm:$0xff]  ;;  %v4476_v36 = vld [vmem:[#allocation19 + $0x238] sm:$0xff] }
 0xf3e   : > { %6560 = vmatprep.subr.bf16.mxu1 %v6559_v13 }
 0xf41   : > { %6562 = vmatpush1.bf16.msra.mxu1 %v6561_v60  ;;  %v4419_v60 = vld [vmem:[#allocation19 + $0x70] sm:$0xff] }
 0xf42   : > { %6564 = vmatprep.subr.bf16.mxu1 %v6563_v17 }
 0xf45   : > { %6566 = vmatpush1.bf16.msra.mxu1 %v6565_v27  ;;  %v4435_v27 = vld [vmem:[#allocation19 + $0xf0] sm:$0xff] }
 0xf46   : > { %6568 = vmatprep.subr.bf16.mxu1 %v6567_v25  ;;  %v6645_v25 = vpack.c.bf16 %v4433_v39, %v4425_v21  ;;  %v4514_v21 = vld [vmem:[#allocation19 + $0x368] sm:$0xff]  ;;  %v4508_v39 = vld [vmem:[#allocation19 + $0x338] sm:$0xff] }
 0xf49   : > { %6570 = vmatpush1.bf16.msra.mxu1 %v6569_v45  ;;  %v6711_v45 = vpack.c.bf16 %v4452_v2, %v4444_v42  ;;  %v4507_v2 = vld [vmem:[#allocation19 + $0x330] sm:$0xff] }
 0xfa2   : > { %v4387_v54 = vpop.xlane.xlu0 %4386 }
 0xfa3   : > { %v4388_v58 = vmul.f32 0.00390625, %v4387_v54  ;;  %v4648_v54 = vld [vmem:[#allocation19 + $0x798] sm:$0xff] }
 0xfa5   : > { %v8693_v61 = vsub.f32 %v8685_v10, %v4388_v58  ;;  %v8696_v51 = vsub.f32 %v8688_v44, %v4388_v58  ;;  %v6619_v10 = vpack.c.bf16 %v4592_v31, %v4584_v35  ;;  %v4591_v44 = vld [vmem:[#allocation19 + $0x5d0] sm:$0xff]  ;;  %v6571_v58 = vpack.c.bf16 %v4654_v55, %v4646_v24  ;;  %v4466_v24 = vld [vmem:[#allocation19 + $0x1e8] sm:$0xff]  ;;  %v4460_v55 = vld [vmem:[#allocation19 + $0x1b8] sm:$0xff] }
 0xfa6   : > { %v6621_v4 = vpack.c.bf16 %v4591_v44, %v4583_v7  ;;  %v4647_v35 = vld [vmem:[#allocation19 + $0x790] sm:$0xff]  ;;  %v4420_v7 = vld [vmem:[#allocation19 + $0x78] sm:$0xff] }
 0xfa7   : > { %v4391_v26 = vmul.f32 %v8693_v61, %v8693_v61  ;;  %v4392_v62 = vmul.f32 %v8696_v51, %v8696_v51  ;;  %6620 = vmatprep.subr.bf16.mxu0 %v6619_v10  ;;  %6572 = vmatprep.subr.bf16.mxu1 %v6571_v58  ;;  %v6637_v31 = vpack.c.bf16 %v4655_v63, %v4647_v35  ;;  %v4412_v10 = vld [vmem:[#allocation19 + $0x38] sm:$0xff]  ;;  %v4459_v35 = vld [vmem:[#allocation19 + $0x1b0] sm:$0xff] }
 0xfa8   : > { %6622 = vmatpush1.bf16.msra.mxu0 %v6621_v4  ;;  %v6703_v44 = vpack.c.bf16 %v4420_v7, %v4412_v10  ;;  %v6649_v58 = vpack.c.bf16 %v4449_v33, %v4441_v1  ;;  %v4467_v63 = vld [vmem:[#allocation19 + $0x1f0] sm:$0xff]  ;;  %v4484_v10 = vld [vmem:[#allocation19 + $0x278] sm:$0xff]  ;;  %v4530_v1 = vld [vmem:[#allocation19 + $0x3e8] sm:$0xff] }
 0xfa9   : > { %v4393_v29 = vadd.f32 %v4392_v62, %v4391_v26  ;;  %6624 = vmatprep.subr.bf16.mxu0 %v6623_v15  ;;  %v4656_v26 = vld [vmem:[#allocation19 + $0x7d8] sm:$0xff]  ;;  %v4645_v62 = vld [vmem:[#allocation19 + $0x780] sm:$0xff]  ;;  %v4411_v15 = vld [vmem:[#allocation19 + $0x30] sm:$0xff]  ;;  %v6717_v7 = vpack.c.bf16 %v4467_v63, %v4459_v35 }
 0xfaa   : > { %v6635_v30 = vpack.c.bf16 %v4656_v26, %v4648_v54  ;;  %v4468_v54 = vld [vmem:[#allocation19 + $0x1f8] sm:$0xff]  ;;  %v6713_v26 = vpack.c.bf16 %v4451_v47, %v4443_v46  ;;  %v4521_v47 = vld [vmem:[#allocation19 + $0x3a0] sm:$0xff] }
 0xfab   : > { %4394 = vadd.xlane.f32.xlu0 %v4393_v29  ;;  %v4653_v29 = vld [vmem:[#allocation19 + $0x7c0] sm:$0xff]  ;;  %v4524_v33 = vld [vmem:[#allocation19 + $0x3b8] sm:$0xff] }
 0xfac   : > { %6626 = vmatpush1.bf16.msra.mxu0 %v6625_v18  ;;  %v6573_v34 = vpack.c.bf16 %v4653_v29, %v4645_v62  ;;  %v4426_v18 = vld [vmem:[#allocation19 + $0xa8] sm:$0xff]  ;;  %v4457_v62 = vld [vmem:[#allocation19 + $0x1a0] sm:$0xff] }
 0xfad   : > { %6628 = vmatprep.subr.bf16.mxu0 %v6627_v22  ;;  %v4427_v22 = vld [vmem:[#allocation19 + $0xb0] sm:$0xff]  ;;  %v6643_v37 = vpack.c.bf16 %v4434_v6, %v4426_v18  ;;  %v4465_v29 = vld [vmem:[#allocation19 + $0x1e0] sm:$0xff] }
 0xfae   : > { %6574 = vmatpush1.bf16.msra.mxu1 %v6573_v34  ;;  %v6709_v28 = vpack.c.bf16 %v4435_v27, %v4427_v22  ;;  %v6715_v34 = vpack.c.bf16 %v4468_v54, %v4460_v55  ;;  %v4497_v18 = vld [vmem:[#allocation19 + $0x2e0] sm:$0xff]  ;;  %v4516_v22 = vld [vmem:[#allocation19 + $0x378] sm:$0xff]  ;;  %v4523_v54 = vld [vmem:[#allocation19 + $0x3b0] sm:$0xff] }
 0xfaf   : > { %6640 = vmatprep.subr.bf16.mxu1 %v6639_v3  ;;  %v6653_v3 = vpack.c.bf16 %v4465_v29, %v4457_v62  ;;  %v6727_v42 = vpack.c.bf16 %v4516_v22, %v4508_v39  ;;  %v4546_v62 = vld [vmem:[#allocation19 + $0x468] sm:$0xff]  ;;  %v4540_v29 = vld [vmem:[#allocation19 + $0x438] sm:$0xff]  ;;  %v4537_v63 = vld [vmem:[#allocation19 + $0x420] sm:$0xff] }
 0xfb0   : > { %6630 = vmatpush1.bf16.msra.mxu0 %v6629_v38  ;;  %v6707_v38 = vpack.c.bf16 %v4436_v0, %v4428_v52  ;;  %v4491_v0 = vld [vmem:[#allocation19 + $0x2b0] sm:$0xff] }
 0xfb1   : > { %6632 = vmatprep.subr.bf16.mxu0 %v6631_v43  ;;  %v6647_v43 = vpack.c.bf16 %v4450_v20, %v4442_v23  ;;  %v4571_v22 = vld [vmem:[#allocation19 + $0x530] sm:$0xff] }
 0xfb4   : > { %6634 = vmatpush1.bf16.msra.mxu0 %v6633_v49  ;;  %v4458_v49 = vld [vmem:[#allocation19 + $0x1a8] sm:$0xff] }
 0xfb5   : > { %6636 = vmatprep.subr.bf16.mxu0 %v6635_v30  ;;  %v6651_v30 = vpack.c.bf16 %v4466_v24, %v4458_v49  ;;  %v4529_v49 = vld [vmem:[#allocation19 + $0x3e0] sm:$0xff] }
 0xfb8   : > { %6638 = vmatpush1.bf16.msra.mxu0 %v6637_v31  ;;  %v4474_v31 = vld [vmem:[#allocation19 + $0x228] sm:$0xff] }
 0xfb9   : > { %6704 = vmatprep.subr.bf16.mxu0 %v6703_v44  ;;  %v4473_v44 = vld [vmem:[#allocation19 + $0x220] sm:$0xff] }
0x1038   : > { %v4395_v4 = vpop.xlane.xlu0 %4394 }
0x1039   : > { %v4396_v8 = vmul.f32 0.00390625, %v4395_v4  ;;  %v4481_v4 = vld [vmem:[#allocation19 + $0x260] sm:$0xff] }
0x103b   : > { %v4397_v11 = vadd.f32 1e-05, %v4396_v8  ;;  %v6655_v8 = vpack.c.bf16 %v4482_v32, %v4474_v31  ;;  %v4545_v31 = vld [vmem:[#allocation19 + $0x460] sm:$0xff] }
0x103d   : > { %7255 = vrsqrt.f32 %v4397_v11  ;;  %v6719_v11 = vpack.c.bf16 %v4484_v10, %v4476_v36  ;;  %v4539_v10 = vld [vmem:[#allocation19 + $0x430] sm:$0xff] }
0x1047   : > { %v7256_v12 = vpop.eup %7255 }
0x1048   : > { %v4399_v13 = vmul.f32 %v7256_v12, %v8693_v61  ;;  %v4400_v41 = vmul.f32 %v7256_v12, %v8696_v51  ;;  %v6641_v61 = vpack.c.bf16 %v4417_v9, %v4409_v14  ;;  %v6705_v51 = vpack.c.bf16 %v4419_v60, %v4411_v15  ;;  %v4475_v12 = vld [vmem:[#allocation19 + $0x230] sm:$0xff]  ;;  %v4498_v14 = vld [vmem:[#allocation19 + $0x2e8] sm:$0xff]  ;;  %v4492_v9 = vld [vmem:[#allocation19 + $0x2b8] sm:$0xff] }
0x1049   : > { %v4500_v15 = vld [vmem:[#allocation19 + $0x2f8] sm:$0xff]  ;;  %v6657_v60 = vpack.c.bf16 %v4481_v4, %v4473_v44  ;;  %v4562_v44 = vld [vmem:[#allocation19 + $0x4e8] sm:$0xff] }
0x104a   : > { %v4402_v16 = vmul.f32 %v4400_v41, %v8488_v56  ;;  %v4401_v5 = vmul.f32 %v4399_v13, %v8485_v50  ;;  %v4483_v13 = vld [vmem:[#allocation19 + $0x270] sm:$0xff]  ;;  %v4490_v41 = vld [vmem:[#allocation19 + $0x2a8] sm:$0xff]  ;;  %v6723_v52 = vpack.c.bf16 %v4500_v15, %v4492_v9  ;;  %v4556_v4 = vld [vmem:[#allocation19 + $0x4b8] sm:$0xff] }
0x104b   : > { %v6659_v6 = vpack.c.bf16 %v4498_v14, %v4490_v41  ;;  %v4561_v41 = vld [vmem:[#allocation19 + $0x4e0] sm:$0xff]  ;;  %v4555_v15 = vld [vmem:[#allocation19 + $0x4b0] sm:$0xff] }
0x104c   : > { %v8707_v17 = vadd.f32 %v4402_v16, %v8494_v40  ;;  %v8710_v19 = vadd.f32 %v4401_v5, %v8491_v59  ;;  %v6721_v16 = vpack.c.bf16 %v4483_v13, %v4475_v12  ;;  %v4489_v5 = vld [vmem:[#allocation19 + $0x2a0] sm:$0xff] }
0x104d   : > { %v6661_v27 = vpack.c.bf16 %v4497_v18, %v4489_v5  ;;  %v4553_v13 = vld [vmem:[#allocation19 + $0x4a0] sm:$0xff]  ;;  %v4578_v5 = vld [vmem:[#allocation19 + $0x568] sm:$0xff]  ;;  %v4572_v18 = vld [vmem:[#allocation19 + $0x538] sm:$0xff] }
0x104e   : > { %4767 = vmatprep.mubr.f32.mxu1 %v8707_v17  ;;  %4838 = vmatprep.mubr.f32.mxu0 %v8707_v17 }
0x104f   : > { %4768 = vmatmul.mubr.f32.vlgmr.msra.gmra.mrb[20].mxu1 %v8710_v19  ;;  %4839 = vmatmul.mubr.f32.vlgmr.msra.gmra.mrb[28].mxu0 %v8710_v19 }
0x1050   : > { %6642 = vmatpush1.bf16.msra.mxu1 %v6641_v61  ;;  %6706 = vmatpush1.bf16.msra.mxu0 %v6705_v51  ;;  %v4499_v61 = vld [vmem:[#allocation19 + $0x2f0] sm:$0xff]  ;;  %v4506_v51 = vld [vmem:[#allocation19 + $0x328] sm:$0xff] }
0x1051   : > { %4909 = vmatprep.mubr.f32.mxu1 %v8707_v17  ;;  %4980 = vmatprep.mubr.f32.mxu0 %v8707_v17  ;;  %v6725_v23 = vpack.c.bf16 %v4499_v61, %v4491_v0  ;;  %v6663_v20 = vpack.c.bf16 %v4514_v21, %v4506_v51  ;;  %v4569_v61 = vld [vmem:[#allocation19 + $0x520] sm:$0xff] }
0x1052   : > { %6644 = vmatprep.subr.bf16.mxu1 %v6643_v37  ;;  %6708 = vmatprep.subr.bf16.mxu0 %v6707_v38  ;;  %v4505_v37 = vld [vmem:[#allocation19 + $0x320] sm:$0xff] }
0x1053   : > { %v4513_v38 = vld [vmem:[#allocation19 + $0x360] sm:$0xff] }
0x1054   : > { %6646 = vmatpush1.bf16.msra.mxu1 %v6645_v25  ;;  %6710 = vmatpush1.bf16.msra.mxu0 %v6709_v28  ;;  %v4515_v25 = vld [vmem:[#allocation19 + $0x370] sm:$0xff]  ;;  %v4522_v28 = vld [vmem:[#allocation19 + $0x3a8] sm:$0xff]  ;;  %v4577_v51 = vld [vmem:[#allocation19 + $0x560] sm:$0xff] }
0x1055   : > { %6648 = vmatprep.subr.bf16.mxu1 %v6647_v43  ;;  %6712 = vmatprep.subr.bf16.mxu0 %v6711_v45  ;;  %v4532_v43 = vld [vmem:[#allocation19 + $0x3f8] sm:$0xff]  ;;  %v6665_v45 = vpack.c.bf16 %v4513_v38, %v4505_v37  ;;  %v6729_v46 = vpack.c.bf16 %v4515_v25, %v4507_v2  ;;  %v6667_v24 = vpack.c.bf16 %v4530_v1, %v4522_v28  ;;  %v4594_v37 = vld [vmem:[#allocation19 + $0x5e8] sm:$0xff]  ;;  %v4585_v25 = vld [vmem:[#allocation19 + $0x5a0] sm:$0xff] }
0x1056   : > { %v6731_v55 = vpack.c.bf16 %v4532_v43, %v4524_v33  ;;  %v4588_v38 = vld [vmem:[#allocation19 + $0x5b8] sm:$0xff]  ;;  %v4593_v28 = vld [vmem:[#allocation19 + $0x5e0] sm:$0xff]  ;;  %v4587_v43 = vld [vmem:[#allocation19 + $0x5b0] sm:$0xff] }
0x1058   : > { %6650 = vmatpush1.bf16.msra.mxu1 %v6649_v58  ;;  %6714 = vmatpush1.bf16.msra.mxu0 %v6713_v26  ;;  %v4531_v58 = vld [vmem:[#allocation19 + $0x3f0] sm:$0xff]  ;;  %v4538_v26 = vld [vmem:[#allocation19 + $0x428] sm:$0xff] }
0x1059   : > { %6652 = vmatprep.subr.bf16.mxu1 %v6651_v30  ;;  %6716 = vmatprep.subr.bf16.mxu0 %v6715_v34  ;;  %v4548_v30 = vld [vmem:[#allocation19 + $0x478] sm:$0xff]  ;;  %v6669_v34 = vpack.c.bf16 %v4529_v49, %v4521_v47  ;;  %v6733_v35 = vpack.c.bf16 %v4531_v58, %v4523_v54  ;;  %v6671_v32 = vpack.c.bf16 %v4546_v62, %v4538_v26  ;;  %v4610_v47 = vld [vmem:[#allocation19 + $0x668] sm:$0xff]  ;;  %v4601_v58 = vld [vmem:[#allocation19 + $0x620] sm:$0xff] }
0x105a   : > { %v6735_v36 = vpack.c.bf16 %v4548_v30, %v4540_v29  ;;  %v4604_v49 = vld [vmem:[#allocation19 + $0x638] sm:$0xff]  ;;  %v4609_v26 = vld [vmem:[#allocation19 + $0x660] sm:$0xff]  ;;  %v4603_v30 = vld [vmem:[#allocation19 + $0x630] sm:$0xff] }
0x105c   : > { %6654 = vmatpush1.bf16.msra.mxu1 %v6653_v3  ;;  %6718 = vmatpush1.bf16.msra.mxu0 %v6717_v7  ;;  %v4547_v3 = vld [vmem:[#allocation19 + $0x470] sm:$0xff]  ;;  %v4554_v7 = vld [vmem:[#allocation19 + $0x4a8] sm:$0xff] }
0x105d   : > { %6656 = vmatprep.subr.bf16.mxu1 %v6655_v8  ;;  %6720 = vmatprep.subr.bf16.mxu0 %v6719_v11  ;;  %v4564_v8 = vld [vmem:[#allocation19 + $0x4f8] sm:$0xff]  ;;  %v6673_v11 = vpack.c.bf16 %v4545_v31, %v4537_v63  ;;  %v6737_v12 = vpack.c.bf16 %v4547_v3, %v4539_v10  ;;  %v6675_v14 = vpack.c.bf16 %v4562_v44, %v4554_v7  ;;  %v4626_v63 = vld [vmem:[#allocation19 + $0x6e8] sm:$0xff]  ;;  %v4617_v3 = vld [vmem:[#allocation19 + $0x6a0] sm:$0xff] }
0x105e   : > { %v6739_v9 = vpack.c.bf16 %v4564_v8, %v4556_v4  ;;  %v4620_v31 = vld [vmem:[#allocation19 + $0x6b8] sm:$0xff]  ;;  %v4625_v7 = vld [vmem:[#allocation19 + $0x6e0] sm:$0xff]  ;;  %v4619_v8 = vld [vmem:[#allocation19 + $0x6b0] sm:$0xff] }
0x1060   : > { %6658 = vmatpush1.bf16.msra.mxu1 %v6657_v60  ;;  %6722 = vmatpush1.bf16.msra.mxu0 %v6721_v16  ;;  %v4563_v60 = vld [vmem:[#allocation19 + $0x4f0] sm:$0xff]  ;;  %v4570_v16 = vld [vmem:[#allocation19 + $0x528] sm:$0xff] }
0x1061   : > { %6660 = vmatprep.subr.bf16.mxu1 %v6659_v6  ;;  %6724 = vmatprep.subr.bf16.mxu0 %v6723_v52  ;;  %v4580_v6 = vld [vmem:[#allocation19 + $0x578] sm:$0xff]  ;;  %v6677_v52 = vpack.c.bf16 %v4561_v41, %v4553_v13  ;;  %v6741_v0 = vpack.c.bf16 %v4563_v60, %v4555_v15  ;;  %v6679_v21 = vpack.c.bf16 %v4578_v5, %v4570_v16  ;;  %v4642_v13 = vld [vmem:[#allocation19 + $0x768] sm:$0xff]  ;;  %v4633_v60 = vld [vmem:[#allocation19 + $0x720] sm:$0xff] }
0x1062   : > { %v6743_v39 = vpack.c.bf16 %v4580_v6, %v4572_v18  ;;  %v4636_v41 = vld [vmem:[#allocation19 + $0x738] sm:$0xff]  ;;  %v4641_v16 = vld [vmem:[#allocation19 + $0x760] sm:$0xff]  ;;  %v4635_v6 = vld [vmem:[#allocation19 + $0x730] sm:$0xff] }
0x1064   : > { %6662 = vmatpush1.bf16.msra.mxu1 %v6661_v27  ;;  %6726 = vmatpush1.bf16.msra.mxu0 %v6725_v23  ;;  %v4579_v27 = vld [vmem:[#allocation19 + $0x570] sm:$0xff]  ;;  %v4586_v23 = vld [vmem:[#allocation19 + $0x5a8] sm:$0xff] }
0x1065   : > { %6664 = vmatprep.subr.bf16.mxu1 %v6663_v20  ;;  %6728 = vmatprep.subr.bf16.mxu0 %v6727_v42  ;;  %v4596_v20 = vld [vmem:[#allocation19 + $0x5f8] sm:$0xff]  ;;  %v6681_v42 = vpack.c.bf16 %v4577_v51, %v4569_v61  ;;  %v6745_v2 = vpack.c.bf16 %v4579_v27, %v4571_v22  ;;  %v6683_v1 = vpack.c.bf16 %v4594_v37, %v4586_v23  ;;  %v4658_v61 = vld [vmem:[#allocation19 + $0x7e8] sm:$0xff]  ;;  %v4649_v27 = vld [vmem:[#allocation19 + $0x7a0] sm:$0xff] }
0x1066   : > { %v6747_v33 = vpack.c.bf16 %v4596_v20, %v4588_v38  ;;  %v4652_v51 = vld [vmem:[#allocation19 + $0x7b8] sm:$0xff]  ;;  %v4657_v38 = vld [vmem:[#allocation19 + $0x7e0] sm:$0xff]  ;;  %v4651_v20 = vld [vmem:[#allocation19 + $0x7b0] sm:$0xff] }
0x1068   : > { %6666 = vmatpush1.bf16.msra.mxu1 %v6665_v45  ;;  %6730 = vmatpush1.bf16.msra.mxu0 %v6729_v46  ;;  %v4595_v45 = vld [vmem:[#allocation19 + $0x5f0] sm:$0xff]  ;;  %v4602_v46 = vld [vmem:[#allocation19 + $0x628] sm:$0xff] }
0x1069   : > { %6668 = vmatprep.subr.bf16.mxu1 %v6667_v24  ;;  %6732 = vmatprep.subr.bf16.mxu0 %v6731_v55  ;;  %v4612_v24 = vld [vmem:[#allocation19 + $0x678] sm:$0xff]  ;;  %v6685_v55 = vpack.c.bf16 %v4593_v28, %v4585_v25  ;;  %v6749_v54 = vpack.c.bf16 %v4595_v45, %v4587_v43  ;;  %v6687_v62 = vpack.c.bf16 %v4610_v47, %v4602_v46  ;;  %v4995_v43 = vld [vmem:[#allocation20] sm:$0xff]  ;;  %v4997_v45 = vld [vmem:[#allocation20 + $0x10] sm:$0xff] }
0x106a   : > { %v6751_v29 = vpack.c.bf16 %v4612_v24, %v4604_v49  ;;  %v4998_v25 = vld [vmem:[#allocation20 + $0x18] sm:$0xff]  ;;  %v6701_v28 = vpack.c.bf16 %v4657_v38, %v4649_v27  ;;  %v5000_v46 = vld [vmem:[#allocation20 + $0x28] sm:$0xff]  ;;  %v6769_v49 = vpack.c.bf16 %v4997_v45, %v4995_v43  ;;  %v5033_v43 = vld [vmem:[#allocation20 + $0x130] sm:$0xff] }
0x106b   : > { %v5002_v47 = vld [vmem:[#allocation20 + $0x38] sm:$0xff]  ;;  %v5028_v27 = vld [vmem:[#allocation20 + $0x108] sm:$0xff] }
0x106c   : > { %6670 = vmatpush1.bf16.msra.mxu1 %v6669_v34  ;;  %6734 = vmatpush1.bf16.msra.mxu0 %v6733_v35  ;;  %v4611_v34 = vld [vmem:[#allocation19 + $0x670] sm:$0xff]  ;;  %v4618_v35 = vld [vmem:[#allocation19 + $0x6a8] sm:$0xff]  ;;  %v6771_v24 = vpack.c.bf16 %v5002_v47, %v5000_v46  ;;  %v5038_v46 = vld [vmem:[#allocation20 + $0x158] sm:$0xff] }
0x106d   : > { %6672 = vmatprep.subr.bf16.mxu1 %v6671_v32  ;;  %6736 = vmatprep.subr.bf16.mxu0 %v6735_v36  ;;  %v4628_v32 = vld [vmem:[#allocation19 + $0x6f8] sm:$0xff]  ;;  %v6689_v36 = vpack.c.bf16 %v4609_v26, %v4601_v58  ;;  %v6753_v10 = vpack.c.bf16 %v4611_v34, %v4603_v30  ;;  %v6691_v44 = vpack.c.bf16 %v4626_v63, %v4618_v35  ;;  %v5004_v58 = vld [vmem:[#allocation20 + $0x48] sm:$0xff]  ;;  %v5003_v30 = vld [vmem:[#allocation20 + $0x40] sm:$0xff] }
0x106e   : > { %v6755_v4 = vpack.c.bf16 %v4628_v32, %v4620_v31  ;;  %v5006_v26 = vld [vmem:[#allocation20 + $0x58] sm:$0xff]  ;;  %v5005_v34 = vld [vmem:[#allocation20 + $0x50] sm:$0xff]  ;;  %v5008_v35 = vld [vmem:[#allocation20 + $0x68] sm:$0xff] }
0x106f   : > { %v5010_v63 = vld [vmem:[#allocation20 + $0x78] sm:$0xff]  ;;  %v6777_v31 = vpack.c.bf16 %v5005_v34, %v5003_v30  ;;  %v5036_v45 = vld [vmem:[#allocation20 + $0x148] sm:$0xff]  ;;  %v5041_v30 = vld [vmem:[#allocation20 + $0x170] sm:$0xff] }
0x1070   : > { %6674 = vmatpush1.bf16.msra.mxu1 %v6673_v11  ;;  %6738 = vmatpush1.bf16.msra.mxu0 %v6737_v12  ;;  %v4627_v11 = vld [vmem:[#allocation19 + $0x6f0] sm:$0xff]  ;;  %v4634_v12 = vld [vmem:[#allocation19 + $0x728] sm:$0xff]  ;;  %v6779_v32 = vpack.c.bf16 %v5010_v63, %v5008_v35  ;;  %v5046_v35 = vld [vmem:[#allocation20 + $0x198] sm:$0xff] }
0x1071   : > { %6676 = vmatprep.subr.bf16.mxu1 %v6675_v14  ;;  %6740 = vmatprep.subr.bf16.mxu0 %v6739_v9  ;;  %v4644_v14 = vld [vmem:[#allocation19 + $0x778] sm:$0xff]  ;;  %v6693_v9 = vpack.c.bf16 %v4625_v7, %v4617_v3  ;;  %v6757_v15 = vpack.c.bf16 %v4627_v11, %v4619_v8  ;;  %v6695_v5 = vpack.c.bf16 %v4642_v13, %v4634_v12  ;;  %v5012_v3 = vld [vmem:[#allocation20 + $0x88] sm:$0xff]  ;;  %v5011_v8 = vld [vmem:[#allocation20 + $0x80] sm:$0xff] }
0x1072   : > { %v6759_v18 = vpack.c.bf16 %v4644_v14, %v4636_v41  ;;  %v5014_v7 = vld [vmem:[#allocation20 + $0x98] sm:$0xff]  ;;  %v5013_v11 = vld [vmem:[#allocation20 + $0x90] sm:$0xff]  ;;  %v5016_v12 = vld [vmem:[#allocation20 + $0xa8] sm:$0xff] }
0x1073   : > { %v5018_v13 = vld [vmem:[#allocation20 + $0xb8] sm:$0xff]  ;;  %v6785_v41 = vpack.c.bf16 %v5013_v11, %v5011_v8  ;;  %v5044_v34 = vld [vmem:[#allocation20 + $0x188] sm:$0xff]  ;;  %v5049_v8 = vld [vmem:[#allocation20 + $0x1b0] sm:$0xff] }
0x1074   : > { %6678 = vmatpush1.bf16.msra.mxu1 %v6677_v52  ;;  %6742 = vmatpush1.bf16.msra.mxu0 %v6741_v0  ;;  %v4643_v52 = vld [vmem:[#allocation19 + $0x770] sm:$0xff]  ;;  %v4650_v0 = vld [vmem:[#allocation19 + $0x7a8] sm:$0xff]  ;;  %v6787_v14 = vpack.c.bf16 %v5018_v13, %v5016_v12  ;;  %v5054_v12 = vld [vmem:[#allocation20 + $0x1d8] sm:$0xff] }
0x1075   : > { %6680 = vmatprep.subr.bf16.mxu1 %v6679_v21  ;;  %6744 = vmatprep.subr.bf16.mxu0 %v6743_v39  ;;  %v4660_v21 = vld [vmem:[#allocation19 + $0x7f8] sm:$0xff]  ;;  %v6697_v39 = vpack.c.bf16 %v4641_v16, %v4633_v60  ;;  %v6761_v22 = vpack.c.bf16 %v4643_v52, %v4635_v6  ;;  %v6699_v23 = vpack.c.bf16 %v4658_v61, %v4650_v0  ;;  %v5020_v60 = vld [vmem:[#allocation20 + $0xc8] sm:$0xff]  ;;  %v5019_v6 = vld [vmem:[#allocation20 + $0xc0] sm:$0xff] }
0x1076   : > { %v6763_v37 = vpack.c.bf16 %v4660_v21, %v4652_v51  ;;  %v5022_v16 = vld [vmem:[#allocation20 + $0xd8] sm:$0xff]  ;;  %v5021_v52 = vld [vmem:[#allocation20 + $0xd0] sm:$0xff]  ;;  %v5024_v0 = vld [vmem:[#allocation20 + $0xe8] sm:$0xff] }
0x1077   : > { %v5026_v61 = vld [vmem:[#allocation20 + $0xf8] sm:$0xff]  ;;  %v6793_v51 = vpack.c.bf16 %v5021_v52, %v5019_v6  ;;  %v5052_v11 = vld [vmem:[#allocation20 + $0x1c8] sm:$0xff]  ;;  %v5057_v6 = vld [vmem:[#allocation20 + $0x1f0] sm:$0xff] }
0x1078   : > { %6682 = vmatpush1.bf16.msra.mxu1 %v6681_v42  ;;  %6746 = vmatpush1.bf16.msra.mxu0 %v6745_v2  ;;  %v4659_v42 = vld [vmem:[#allocation19 + $0x7f0] sm:$0xff]  ;;  %v4996_v2 = vld [vmem:[#allocation20 + $0x8] sm:$0xff]  ;;  %v6795_v21 = vpack.c.bf16 %v5026_v61, %v5024_v0  ;;  %v5062_v0 = vld [vmem:[#allocation20 + $0x218] sm:$0xff] }
0x1079   : > { %6684 = vmatprep.subr.bf16.mxu1 %v6683_v1  ;;  %6748 = vmatprep.subr.bf16.mxu0 %v6747_v33  ;;  %v6765_v1 = vpack.c.bf16 %v4659_v42, %v4651_v20  ;;  %v6767_v33 = vpack.c.bf16 %v4998_v25, %v4996_v2  ;;  %v5027_v20 = vld [vmem:[#allocation20 + $0x100] sm:$0xff]  ;;  %v5029_v42 = vld [vmem:[#allocation20 + $0x110] sm:$0xff]  ;;  %v5032_v2 = vld [vmem:[#allocation20 + $0x128] sm:$0xff] }
0x107a   : > { %v5034_v25 = vld [vmem:[#allocation20 + $0x138] sm:$0xff]  ;;  %v5060_v52 = vld [vmem:[#allocation20 + $0x208] sm:$0xff] }
0x107c   : > { %6686 = vmatpush1.bf16.msra.mxu1 %v6685_v55  ;;  %6750 = vmatpush1.bf16.msra.mxu0 %v6749_v54  ;;  %v4999_v55 = vld [vmem:[#allocation20 + $0x20] sm:$0xff]  ;;  %v5001_v54 = vld [vmem:[#allocation20 + $0x30] sm:$0xff] }
0x107d   : > { %6688 = vmatprep.subr.bf16.mxu1 %v6687_v62  ;;  %6752 = vmatprep.subr.bf16.mxu0 %v6751_v29  ;;  %v6773_v62 = vpack.c.bf16 %v5001_v54, %v4999_v55  ;;  %v6775_v29 = vpack.c.bf16 %v5006_v26, %v5004_v58  ;;  %v5037_v55 = vld [vmem:[#allocation20 + $0x150] sm:$0xff]  ;;  %v5040_v54 = vld [vmem:[#allocation20 + $0x168] sm:$0xff]  ;;  %v5042_v58 = vld [vmem:[#allocation20 + $0x178] sm:$0xff] }
0x1080   : > { %6690 = vmatpush1.bf16.msra.mxu1 %v6689_v36  ;;  %6754 = vmatpush1.bf16.msra.mxu0 %v6753_v10  ;;  %v5007_v36 = vld [vmem:[#allocation20 + $0x60] sm:$0xff]  ;;  %v5009_v10 = vld [vmem:[#allocation20 + $0x70] sm:$0xff] }
0x1081   : > { %6692 = vmatprep.subr.bf16.mxu1 %v6691_v44  ;;  %6756 = vmatprep.subr.bf16.mxu0 %v6755_v4  ;;  %v6781_v44 = vpack.c.bf16 %v5009_v10, %v5007_v36  ;;  %v6783_v4 = vpack.c.bf16 %v5014_v7, %v5012_v3  ;;  %v5045_v36 = vld [vmem:[#allocation20 + $0x190] sm:$0xff]  ;;  %v5048_v10 = vld [vmem:[#allocation20 + $0x1a8] sm:$0xff]  ;;  %v5050_v3 = vld [vmem:[#allocation20 + $0x1b8] sm:$0xff] }
0x1084   : > { %6694 = vmatpush1.bf16.msra.mxu1 %v6693_v9  ;;  %6758 = vmatpush1.bf16.msra.mxu0 %v6757_v15  ;;  %v5015_v9 = vld [vmem:[#allocation20 + $0xa0] sm:$0xff]  ;;  %v5017_v15 = vld [vmem:[#allocation20 + $0xb0] sm:$0xff] }
0x1085   : > { %6696 = vmatprep.subr.bf16.mxu1 %v6695_v5  ;;  %6760 = vmatprep.subr.bf16.mxu0 %v6759_v18  ;;  %v6789_v5 = vpack.c.bf16 %v5017_v15, %v5015_v9  ;;  %v6791_v18 = vpack.c.bf16 %v5022_v16, %v5020_v60  ;;  %v5053_v9 = vld [vmem:[#allocation20 + $0x1d0] sm:$0xff]  ;;  %v5056_v15 = vld [vmem:[#allocation20 + $0x1e8] sm:$0xff]  ;;  %v5058_v60 = vld [vmem:[#allocation20 + $0x1f8] sm:$0xff] }
0x1088   : > { %6698 = vmatpush1.bf16.msra.mxu1 %v6697_v39  ;;  %6762 = vmatpush1.bf16.msra.mxu0 %v6761_v22  ;;  %v5023_v39 = vld [vmem:[#allocation20 + $0xe0] sm:$0xff]  ;;  %v5025_v22 = vld [vmem:[#allocation20 + $0xf0] sm:$0xff] }
0x1089   : > { %6700 = vmatprep.subr.bf16.mxu1 %v6699_v23  ;;  %6764 = vmatprep.subr.bf16.mxu0 %v6763_v37  ;;  %v5030_v23 = vld [vmem:[#allocation20 + $0x118] sm:$0xff]  ;;  %v6797_v37 = vpack.c.bf16 %v5025_v22, %v5023_v39  ;;  %v4677_v39 = vsub.s32 3, %v8290_v57 }
0x108a   : > { %v6799_v38 = vpack.c.bf16 %v5030_v23, %v5028_v27 }
0x108c   : > { %6702 = vmatpush1.bf16.msra.mxu1 %v6701_v28  ;;  %6766 = vmatpush1.bf16.msra.mxu0 %v6765_v1  ;;  %v6801_v28 = vpack.c.bf16 %v5029_v42, %v5027_v20  ;;  %v6803_v1 = vpack.c.bf16 %v5034_v25, %v5032_v2  ;;  %v5059_v25 = vld [vmem:[#allocation20 + $0x200] sm:$0xff] }
0x108d   : > { %6768 = vmatprep.subr.bf16.mxu1 %v6767_v33  ;;  %v5031_v33 = vld [vmem:[#allocation20 + $0x120] sm:$0xff] }
0x108e   : > { %v6805_v47 = vpack.c.bf16 %v5033_v43, %v5031_v33  ;;  %v5064_v43 = vld [vmem:[#allocation20 + $0x228] sm:$0xff] }
0x108f   : > { %4910 = vmatmul.mubr.f32.vlgmr.msra.gmra.mrb[22].mxu1 %v8710_v19  ;;  %4981 = vmatmul.mubr.f32.vlgmr.msra.gmra.mrb[30].mxu0 %v8710_v19 }
0x1090   : > { %6770 = vmatpush1.bf16.msra.mxu1 %v6769_v49  ;;  %v6807_v49 = vpack.c.bf16 %v5038_v46, %v5036_v45  ;;  %v5066_v45 = vld [vmem:[#allocation20 + $0x238] sm:$0xff] }
0x1091   : > { %6772 = vmatprep.subr.bf16.mxu1 %v6771_v24  ;;  %v5035_v24 = vld [vmem:[#allocation20 + $0x140] sm:$0xff] }
0x1092   : > { %v6809_v26 = vpack.c.bf16 %v5037_v55, %v5035_v24  ;;  %v6835_v24 = vpack.c.bf16 %v5066_v45, %v5064_v43  ;;  %v5063_v55 = vld [vmem:[#allocation20 + $0x220] sm:$0xff] }
0x1094   : > { %6774 = vmatpush1.bf16.msra.mxu1 %v6773_v62  ;;  %v6811_v62 = vpack.c.bf16 %v5042_v58, %v5040_v54  ;;  %v5065_v54 = vld [vmem:[#allocation20 + $0x230] sm:$0xff] }
0x1095   : > { %6776 = vmatprep.subr.bf16.mxu1 %v6775_v29  ;;  %v5039_v29 = vld [vmem:[#allocation20 + $0x160] sm:$0xff] }
0x1096   : > { %v6813_v63 = vpack.c.bf16 %v5041_v30, %v5039_v29  ;;  %v6837_v29 = vpack.c.bf16 %v5065_v54, %v5063_v55 }
0x1098   : > { %6778 = vmatpush1.bf16.msra.mxu1 %v6777_v31  ;;  %v6815_v31 = vpack.c.bf16 %v5046_v35, %v5044_v34  ;;  %v5067_v34 = vld [vmem:[#allocation20 + $0x240] sm:$0xff]  ;;  %v5069_v35 = vld [vmem:[#allocation20 + $0x250] sm:$0xff] }
0x1099   : > { %6780 = vmatprep.subr.bf16.mxu1 %v6779_v32  ;;  %v5043_v32 = vld [vmem:[#allocation20 + $0x180] sm:$0xff] }
0x109a   : > { %v6817_v7 = vpack.c.bf16 %v5045_v36, %v5043_v32  ;;  %v6841_v32 = vpack.c.bf16 %v5069_v35, %v5067_v34  ;;  %v5103_v35 = vld [vmem:[#allocation20 + $0x360] sm:$0xff] }
0x109c   : > { %6782 = vmatpush1.bf16.msra.mxu1 %v6781_v44  ;;  %v6819_v44 = vpack.c.bf16 %v5050_v3, %v5048_v10  ;;  %v5071_v10 = vld [vmem:[#allocation20 + $0x260] sm:$0xff]  ;;  %v5073_v3 = vld [vmem:[#allocation20 + $0x270] sm:$0xff] }
0x109d   : > { %6784 = vmatprep.subr.bf16.mxu1 %v6783_v4  ;;  %v5047_v4 = vld [vmem:[#allocation20 + $0x1a0] sm:$0xff] }
0x109e   : > { %v6821_v13 = vpack.c.bf16 %v5049_v8, %v5047_v4  ;;  %v6845_v4 = vpack.c.bf16 %v5073_v3, %v5071_v10  ;;  %v5107_v3 = vld [vmem:[#allocation20 + $0x380] sm:$0xff] }
0x10a0   : > { %6786 = vmatpush1.bf16.msra.mxu1 %v6785_v41  ;;  %v6823_v41 = vpack.c.bf16 %v5054_v12, %v5052_v11  ;;  %v5075_v11 = vld [vmem:[#allocation20 + $0x280] sm:$0xff]  ;;  %v5077_v12 = vld [vmem:[#allocation20 + $0x290] sm:$0xff] }
0x10a1   : > { %6788 = vmatprep.subr.bf16.mxu1 %v6787_v14  ;;  %v5051_v14 = vld [vmem:[#allocation20 + $0x1c0] sm:$0xff] }
0x10a2   : > { %v6825_v16 = vpack.c.bf16 %v5053_v9, %v5051_v14  ;;  %v6849_v14 = vpack.c.bf16 %v5077_v12, %v5075_v11  ;;  %v5111_v12 = vld [vmem:[#allocation20 + $0x3a0] sm:$0xff] }
0x10a4   : > { %6790 = vmatpush1.bf16.msra.mxu1 %v6789_v5  ;;  %v6827_v5 = vpack.c.bf16 %v5058_v60, %v5056_v15  ;;  %v5079_v15 = vld [vmem:[#allocation20 + $0x2a0] sm:$0xff]  ;;  %v5081_v60 = vld [vmem:[#allocation20 + $0x2b0] sm:$0xff] }
0x10a5   : > { %6792 = vmatprep.subr.bf16.mxu1 %v6791_v18  ;;  %v5055_v18 = vld [vmem:[#allocation20 + $0x1e0] sm:$0xff] }
0x10a6   : > { %v6829_v61 = vpack.c.bf16 %v5057_v6, %v5055_v18  ;;  %v6853_v18 = vpack.c.bf16 %v5081_v60, %v5079_v15  ;;  %v4673_v15 = vsub.s32 2, %v8290_v57 }
0x10a8   : > { %6794 = vmatpush1.bf16.msra.mxu1 %v6793_v51  ;;  %v6831_v51 = vpack.c.bf16 %v5062_v0, %v5060_v52  ;;  %v5083_v52 = vld [vmem:[#allocation20 + $0x2c0] sm:$0xff]  ;;  %v5085_v0 = vld [vmem:[#allocation20 + $0x2d0] sm:$0xff] }
0x10a9   : > { %6796 = vmatprep.subr.bf16.mxu1 %v6795_v21  ;;  %v8723_v21 = vld [vmem:[%s8907_s0] sm:$0xff] }
0x10aa   : > { %v4666_v22 = vrot.slane %v8723_v21, %v8473_v48  ;;  %v4670_v27 = vrot.slane %v8723_v21, %v8476_v53  ;;  %v4678_v23 = vrot.slane %v8723_v21, %v4677_v39  ;;  %v6857_v39 = vpack.c.bf16 %v5085_v0, %v5083_v52  ;;  %v5122_v52 = vld [vmem:[#allocation20 + $0x3f8] sm:$0xff] }
0x10ac   : > { %6798 = vmatpush1.bf16.msra.mxu1 %v6797_v37 }
0x10ad   : > { %6800 = vmatprep.subr.bf16.mxu1 %v6799_v38 }
0x10b0   : > { %6802 = vmatpush1.bf16.msra.mxu1 %v6801_v28  ;;  %v5061_v28 = vld [vmem:[#allocation20 + $0x210] sm:$0xff] }
0x10b1   : > { %6804 = vmatprep.subr.bf16.mxu1 %v6803_v1 }
0x10b4   : > { %6806 = vmatpush1.bf16.msra.mxu1 %v6805_v47  ;;  %v6833_v47 = vpack.c.bf16 %v5061_v28, %v5059_v25  ;;  %v5091_v25 = vld [vmem:[#allocation20 + $0x300] sm:$0xff]  ;;  %v5093_v28 = vld [vmem:[#allocation20 + $0x310] sm:$0xff] }
0x10b5   : > { %6808 = vmatprep.subr.bf16.mxu1 %v6807_v49  ;;  %v6865_v43 = vpack.c.bf16 %v5093_v28, %v5091_v25 }
0x10b8   : > { %6810 = vmatpush1.bf16.msra.mxu1 %v6809_v26  ;;  %v5068_v26 = vld [vmem:[#allocation20 + $0x248] sm:$0xff] }
0x10b9   : > { %6812 = vmatprep.subr.bf16.mxu1 %v6811_v62  ;;  %v5070_v62 = vld [vmem:[#allocation20 + $0x258] sm:$0xff] }
0x10ba   : > { %v6839_v30 = vpack.c.bf16 %v5070_v62, %v5068_v26  ;;  %v5101_v26 = vld [vmem:[#allocation20 + $0x350] sm:$0xff]  ;;  %v5104_v62 = vld [vmem:[#allocation20 + $0x368] sm:$0xff] }
0x10bc   : > { %6814 = vmatpush1.bf16.msra.mxu1 %v6813_v63  ;;  %v5072_v63 = vld [vmem:[#allocation20 + $0x268] sm:$0xff] }
0x10bd   : > { %6816 = vmatprep.subr.bf16.mxu1 %v6815_v31  ;;  %v5074_v31 = vld [vmem:[#allocation20 + $0x278] sm:$0xff] }
0x10be   : > { %v6843_v36 = vpack.c.bf16 %v5074_v31, %v5072_v63  ;;  %v5105_v63 = vld [vmem:[#allocation20 + $0x370] sm:$0xff]  ;;  %v5108_v31 = vld [vmem:[#allocation20 + $0x388] sm:$0xff] }
0x10c0   : > { %6818 = vmatpush1.bf16.msra.mxu1 %v6817_v7  ;;  %v5076_v7 = vld [vmem:[#allocation20 + $0x288] sm:$0xff] }
0x10c1   : > { %6820 = vmatprep.subr.bf16.mxu1 %v6819_v44  ;;  %v5078_v44 = vld [vmem:[#allocation20 + $0x298] sm:$0xff] }
0x10c2   : > { %v6847_v8 = vpack.c.bf16 %v5078_v44, %v5076_v7  ;;  %v5109_v7 = vld [vmem:[#allocation20 + $0x390] sm:$0xff]  ;;  %v5112_v44 = vld [vmem:[#allocation20 + $0x3a8] sm:$0xff] }
0x10c4   : > { %6822 = vmatpush1.bf16.msra.mxu1 %v6821_v13  ;;  %v5080_v13 = vld [vmem:[#allocation20 + $0x2a8] sm:$0xff] }
0x10c5   : > { %6824 = vmatprep.subr.bf16.mxu1 %v6823_v41  ;;  %v5082_v41 = vld [vmem:[#allocation20 + $0x2b8] sm:$0xff] }
0x10c6   : > { %v6851_v9 = vpack.c.bf16 %v5082_v41, %v5080_v13  ;;  %v5113_v13 = vld [vmem:[#allocation20 + $0x3b0] sm:$0xff]  ;;  %v5116_v41 = vld [vmem:[#allocation20 + $0x3c8] sm:$0xff] }
0x10c8   : > { %6826 = vmatpush1.bf16.msra.mxu1 %v6825_v16  ;;  %v5084_v16 = vld [vmem:[#allocation20 + $0x2c8] sm:$0xff] }
0x10c9   : > { %6828 = vmatprep.subr.bf16.mxu1 %v6827_v5  ;;  %v5086_v5 = vld [vmem:[#allocation20 + $0x2d8] sm:$0xff] }
0x10ca   : > { %v6855_v6 = vpack.c.bf16 %v5086_v5, %v5084_v16  ;;  %v5115_v16 = vld [vmem:[#allocation20 + $0x3c0] sm:$0xff]  ;;  %v5117_v5 = vld [vmem:[#allocation20 + $0x3d0] sm:$0xff] }
0x10cb   : > { %v6889_v0 = vpack.c.bf16 %v5117_v5, %v5115_v16  ;;  %v5145_v16 = vld [vmem:[#allocation20 + $0x4b0] sm:$0xff]  ;;  %v5148_v5 = vld [vmem:[#allocation20 + $0x4c8] sm:$0xff] }
0x10cc   : > { %6830 = vmatpush1.bf16.msra.mxu1 %v6829_v61  ;;  %v5088_v61 = vld [vmem:[#allocation20 + $0x2e8] sm:$0xff] }
0x10cd   : > { %6832 = vmatprep.subr.bf16.mxu1 %v6831_v51  ;;  %v5090_v51 = vld [vmem:[#allocation20 + $0x2f8] sm:$0xff] }
0x1122   : > { %v4769_v37 = vpop.f32.mrb[20].mxu1  ;;  %v8731_v38 = vpop.f32.mrb[28].mxu0 }
0x1123   : > { %v4770_v20 = vadd.f32 %v4769_v37, %v4666_v22  ;;  %v4771_v42 = vpop.f32.mrb[21].mxu1  ;;  %v4842_v2 = vpop.f32.mrb[29].mxu0  ;;  %v6859_v22 = vpack.c.bf16 %v5090_v51, %v5088_v61  ;;  %v5092_v37 = vld [vmem:[#allocation20 + $0x308] sm:$0xff]  ;;  %v4674_v61 = vrot.slane %v8723_v21, %v4673_v15 }
0x1124   : > { %v4772_v1 = vadd.f32 %v4771_v42, %v4670_v27  ;;  %v4843_v33 = vadd.f32 %v4842_v2, %v4678_v23  ;;  %v5087_v27 = vld [vmem:[#allocation20 + $0x2e0] sm:$0xff]  ;;  %v5089_v23 = vld [vmem:[#allocation20 + $0x2f0] sm:$0xff] }
0x1125   : > { %v4987_v49 = vmax.f32 %v4770_v20, 0.0  ;;  %v5094_v20 = vld [vmem:[#allocation20 + $0x318] sm:$0xff]  ;;  %v6861_v42 = vpack.c.bf16 %v5089_v23, %v5087_v27  ;;  %v5124_v23 = vld [vmem:[#allocation20 + $0x408] sm:$0xff]  ;;  %v4841_v25 = vadd.f32 %v8731_v38, %v4674_v61  ;;  %v5149_v61 = vld [vmem:[#allocation20 + $0x4d0] sm:$0xff] }
0x1126   : > { %v4988_v46 = vmax.f32 %v4772_v1, 0.0  ;;  %v4990_v58 = vmax.f32 %v4843_v33, 0.0  ;;  %v6863_v2 = vpack.c.bf16 %v5094_v20, %v5092_v37  ;;  %v5096_v1 = vld [vmem:[#allocation20 + $0x328] sm:$0xff]  ;;  %v5098_v33 = vld [vmem:[#allocation20 + $0x338] sm:$0xff] }
0x1127   : > { %v6867_v45 = vpack.c.bf16 %v5098_v33, %v5096_v1  ;;  %v5126_v37 = vld [vmem:[#allocation20 + $0x418] sm:$0xff] }
0x1128   : > { %5327 = vmatprep.mubr.f32.mxu1 %v4988_v46  ;;  %v5095_v46 = vld [vmem:[#allocation20 + $0x320] sm:$0xff]  ;;  %v6895_v33 = vpack.c.bf16 %v5126_v37, %v5124_v23  ;;  %v5134_v38 = vld [vmem:[#allocation20 + $0x458] sm:$0xff]  ;;  %v5153_v37 = vld [vmem:[#allocation20 + $0x4f0] sm:$0xff] }
0x1129   : > { %5328 = vmatmul.mubr.f32.vlgmr.msra.gmra.mrb[24].mxu1 %v4987_v49  ;;  %v5100_v49 = vld [vmem:[#allocation20 + $0x348] sm:$0xff]  ;;  %v5151_v23 = vld [vmem:[#allocation20 + $0x4e0] sm:$0xff] }
0x112a   : > { %6834 = vmatpush1.bf16.msra.mxu1 %v6833_v47  ;;  %5398 = vmatprep.mubr.f32.mxu1 %v4990_v58  ;;  %v5097_v47 = vld [vmem:[#allocation20 + $0x330] sm:$0xff]  ;;  %v5099_v58 = vld [vmem:[#allocation20 + $0x340] sm:$0xff] }
0x112b   : > { %6836 = vmatprep.subr.bf16.mxu1 %v6835_v24  ;;  %v5102_v24 = vld [vmem:[#allocation20 + $0x358] sm:$0xff]  ;;  %v6869_v55 = vpack.c.bf16 %v5097_v47, %v5095_v46  ;;  %v5128_v47 = vld [vmem:[#allocation20 + $0x428] sm:$0xff] }
0x112c   : > { %v6871_v54 = vpack.c.bf16 %v5102_v24, %v5100_v49  ;;  %v5130_v49 = vld [vmem:[#allocation20 + $0x438] sm:$0xff] }
0x112e   : > { %6838 = vmatpush1.bf16.msra.mxu1 %v6837_v29  ;;  %v5106_v29 = vld [vmem:[#allocation20 + $0x378] sm:$0xff] }
0x112f   : > { %6840 = vmatprep.subr.bf16.mxu1 %v6839_v30  ;;  %v6873_v30 = vpack.c.bf16 %v5101_v26, %v5099_v58  ;;  %v6875_v34 = vpack.c.bf16 %v5106_v29, %v5104_v62  ;;  %v5127_v58 = vld [vmem:[#allocation20 + $0x420] sm:$0xff]  ;;  %v5129_v26 = vld [vmem:[#allocation20 + $0x430] sm:$0xff]  ;;  %v5132_v29 = vld [vmem:[#allocation20 + $0x448] sm:$0xff] }
0x1132   : > { %6842 = vmatpush1.bf16.msra.mxu1 %v6841_v32  ;;  %v5110_v32 = vld [vmem:[#allocation20 + $0x398] sm:$0xff] }
0x1133   : > { %6844 = vmatprep.subr.bf16.mxu1 %v6843_v36  ;;  %v6877_v36 = vpack.c.bf16 %v5105_v63, %v5103_v35  ;;  %v6879_v10 = vpack.c.bf16 %v5110_v32, %v5108_v31  ;;  %v5131_v35 = vld [vmem:[#allocation20 + $0x440] sm:$0xff]  ;;  %v5133_v63 = vld [vmem:[#allocation20 + $0x450] sm:$0xff]  ;;  %v5136_v31 = vld [vmem:[#allocation20 + $0x468] sm:$0xff] }
0x1134   : > { %v5138_v32 = vld [vmem:[#allocation20 + $0x478] sm:$0xff] }
0x1136   : > { %6846 = vmatpush1.bf16.msra.mxu1 %v6845_v4  ;;  %v5114_v4 = vld [vmem:[#allocation20 + $0x3b8] sm:$0xff] }
0x1137   : > { %6848 = vmatprep.subr.bf16.mxu1 %v6847_v8  ;;  %v6881_v8 = vpack.c.bf16 %v5109_v7, %v5107_v3  ;;  %v6883_v11 = vpack.c.bf16 %v5114_v4, %v5112_v44  ;;  %v5135_v3 = vld [vmem:[#allocation20 + $0x460] sm:$0xff]  ;;  %v5137_v7 = vld [vmem:[#allocation20 + $0x470] sm:$0xff]  ;;  %v5140_v44 = vld [vmem:[#allocation20 + $0x488] sm:$0xff] }
0x1138   : > { %v5142_v4 = vld [vmem:[#allocation20 + $0x498] sm:$0xff] }
0x113a   : > { %6850 = vmatpush1.bf16.msra.mxu1 %v6849_v14  ;;  %v5118_v14 = vld [vmem:[#allocation20 + $0x3d8] sm:$0xff] }
0x113b   : > { %6852 = vmatprep.subr.bf16.mxu1 %v6851_v9  ;;  %v6885_v9 = vpack.c.bf16 %v5113_v13, %v5111_v12  ;;  %v6887_v60 = vpack.c.bf16 %v5118_v14, %v5116_v41  ;;  %v5139_v12 = vld [vmem:[#allocation20 + $0x480] sm:$0xff]  ;;  %v5141_v13 = vld [vmem:[#allocation20 + $0x490] sm:$0xff]  ;;  %v5144_v41 = vld [vmem:[#allocation20 + $0x4a8] sm:$0xff] }
0x113c   : > { %v5146_v14 = vld [vmem:[#allocation20 + $0x4b8] sm:$0xff] }
0x113d   : > { %v6915_v15 = vpack.c.bf16 %v5146_v14, %v5144_v41  ;;  %v5175_v14 = vld [vmem:[#allocation20 + $0x5a0] sm:$0xff] }
0x113e   : > { %6854 = vmatpush1.bf16.msra.mxu1 %v6853_v18  ;;  %v4685_v18 = vsub.s32 5, %v8290_v57 }
0x113f   : > { %6856 = vmatprep.subr.bf16.mxu1 %v6855_v6  ;;  %v5120_v6 = vld [vmem:[#allocation20 + $0x3e8] sm:$0xff] }
0x1140   : > { %v6891_v51 = vpack.c.bf16 %v5122_v52, %v5120_v6  ;;  %v4686_v27 = vrot.slane %v8723_v21, %v4685_v18  ;;  %v5150_v18 = vld [vmem:[#allocation20 + $0x4d8] sm:$0xff] }
0x1141   : > { %v6919_v52 = vpack.c.bf16 %v5150_v18, %v5148_v5  ;;  %v4681_v5 = vsub.s32 4, %v8290_v57 }
0x1142   : > { %6858 = vmatpush1.bf16.msra.mxu1 %v6857_v39  ;;  %v5119_v39 = vld [vmem:[#allocation20 + $0x3e0] sm:$0xff] }
0x1143   : > { %6860 = vmatprep.subr.bf16.mxu1 %v6859_v22  ;;  %v5121_v22 = vld [vmem:[#allocation20 + $0x3f0] sm:$0xff] }
0x1146   : > { %6862 = vmatpush1.bf16.msra.mxu1 %v6861_v42 }
0x1147   : > { %6864 = vmatprep.subr.bf16.mxu1 %v6863_v2  ;;  %v6893_v2 = vpack.c.bf16 %v5121_v22, %v5119_v39  ;;  %v5154_v39 = vld [vmem:[#allocation20 + $0x4f8] sm:$0xff] }
0x114a   : > { %6866 = vmatpush1.bf16.msra.mxu1 %v6865_v43  ;;  %v5123_v43 = vld [vmem:[#allocation20 + $0x400] sm:$0xff] }
0x114b   : > { %6868 = vmatprep.subr.bf16.mxu1 %v6867_v45  ;;  %v5125_v45 = vld [vmem:[#allocation20 + $0x410] sm:$0xff] }
0x114c   : > { %v6897_v24 = vpack.c.bf16 %v5125_v45, %v5123_v43  ;;  %v5155_v43 = vld [vmem:[#allocation20 + $0x500] sm:$0xff]  ;;  %v5157_v45 = vld [vmem:[#allocation20 + $0x510] sm:$0xff] }
0x114e   : > { %6870 = vmatpush1.bf16.msra.mxu1 %v6869_v55  ;;  %v4989_v55 = vmax.f32 %v4841_v25, 0.0  ;;  %v5158_v25 = vld [vmem:[#allocation20 + $0x518] sm:$0xff] }
0x114f   : > { %6872 = vmatprep.subr.bf16.mxu1 %v6871_v54  ;;  %v6899_v54 = vpack.c.bf16 %v5130_v49, %v5128_v47  ;;  %v5162_v47 = vld [vmem:[#allocation20 + $0x538] sm:$0xff]  ;;  %v6929_v49 = vpack.c.bf16 %v5157_v45, %v5155_v43 }
0x1152   : > { %6874 = vmatpush1.bf16.msra.mxu1 %v6873_v30  ;;  %v6901_v30 = vpack.c.bf16 %v5129_v26, %v5127_v58  ;;  %v5164_v58 = vld [vmem:[#allocation20 + $0x548] sm:$0xff]  ;;  %v5166_v26 = vld [vmem:[#allocation20 + $0x558] sm:$0xff] }
0x1153   : > { %6876 = vmatprep.subr.bf16.mxu1 %v6875_v34  ;;  %v6903_v34 = vpack.c.bf16 %v5134_v38, %v5132_v29  ;;  %v6935_v29 = vpack.c.bf16 %v5166_v26, %v5164_v58  ;;  %v5163_v38 = vld [vmem:[#allocation20 + $0x540] sm:$0xff] }
0x1156   : > { %6878 = vmatpush1.bf16.msra.mxu1 %v6877_v36  ;;  %v6905_v36 = vpack.c.bf16 %v5133_v63, %v5131_v35  ;;  %v5170_v35 = vld [vmem:[#allocation20 + $0x578] sm:$0xff] }
0x1157   : > { %6880 = vmatprep.subr.bf16.mxu1 %v6879_v10  ;;  %v6907_v10 = vpack.c.bf16 %v5138_v32, %v5136_v31  ;;  %v5167_v32 = vld [vmem:[#allocation20 + $0x560] sm:$0xff] }
0x115a   : > { %6882 = vmatpush1.bf16.msra.mxu1 %v6881_v8  ;;  %v6909_v8 = vpack.c.bf16 %v5137_v7, %v5135_v3  ;;  %v5174_v3 = vld [vmem:[#allocation20 + $0x598] sm:$0xff] }
0x115b   : > { %6884 = vmatprep.subr.bf16.mxu1 %v6883_v11  ;;  %v6911_v11 = vpack.c.bf16 %v5142_v4, %v5140_v44  ;;  %v5171_v4 = vld [vmem:[#allocation20 + $0x580] sm:$0xff] }
0x115e   : > { %6886 = vmatpush1.bf16.msra.mxu1 %v6885_v9  ;;  %v6913_v9 = vpack.c.bf16 %v5141_v13, %v5139_v12  ;;  %v5178_v12 = vld [vmem:[#allocation20 + $0x5b8] sm:$0xff] }
0x115f   : > { %6888 = vmatprep.subr.bf16.mxu1 %v6887_v60  ;;  %v5143_v60 = vld [vmem:[#allocation20 + $0x4a0] sm:$0xff] }
0x1160   : > { %v6917_v6 = vpack.c.bf16 %v5145_v16, %v5143_v60  ;;  %v5182_v60 = vld [vmem:[#allocation20 + $0x5d8] sm:$0xff] }
0x1162   : > { %v8737_v20 = vpop.f32.mrb[22].mxu1  ;;  %v8739_v42 = vpop.f32.mrb[30].mxu0  ;;  %6890 = vmatpush1.bf16.msra.mxu1 %v6889_v0  ;;  %v5147_v0 = vld [vmem:[#allocation20 + $0x4c0] sm:$0xff] }
0x1163   : > { %v4913_v28 = vpop.f32.mrb[23].mxu1  ;;  %v8742_v1 = vpop.f32.mrb[31].mxu0  ;;  %6892 = vmatprep.subr.bf16.mxu1 %v6891_v51  ;;  %v5152_v51 = vld [vmem:[#allocation20 + $0x4e8] sm:$0xff]  ;;  %v6921_v22 = vpack.c.bf16 %v5149_v61, %v5147_v0  ;;  %v4693_v0 = vsub.s32 7, %v8290_v57 }
0x1164   : > { %v4914_v46 = vadd.f32 %v4913_v28, %v4686_v27  ;;  %v6923_v27 = vpack.c.bf16 %v5154_v39, %v5152_v51  ;;  %v6925_v28 = vpack.c.bf16 %v5153_v37, %v5151_v23  ;;  %v5184_v61 = vld [vmem:[#allocation20 + $0x5e8] sm:$0xff]  ;;  %v5186_v51 = vld [vmem:[#allocation20 + $0x5f8] sm:$0xff]  ;;  %v5183_v23 = vld [vmem:[#allocation20 + $0x5e0] sm:$0xff] }
0x1165   : > { %v5185_v37 = vld [vmem:[#allocation20 + $0x5f0] sm:$0xff] }
0x1166   : > { %6894 = vmatpush1.bf16.msra.mxu1 %v6893_v2  ;;  %v4992_v62 = vmax.f32 %v4914_v46, 0.0  ;;  %v5156_v2 = vld [vmem:[#allocation20 + $0x508] sm:$0xff] }
0x1167   : > { %6896 = vmatprep.subr.bf16.mxu1 %v6895_v33  ;;  %v6927_v33 = vpack.c.bf16 %v5158_v25, %v5156_v2  ;;  %v5160_v46 = vld [vmem:[#allocation20 + $0x528] sm:$0xff]  ;;  %v4694_v2 = vrot.slane %v8723_v21, %v4693_v0  ;;  %v5211_v0 = vld [vmem:[#allocation20 + $0x6c0] sm:$0xff] }
0x1168   : > { %v5188_v25 = vld [vmem:[#allocation20 + $0x608] sm:$0xff] }
0x1169   : > { %5399 = vmatmul.mubr.f32.vlgmr.msra.gmra.mrb[24].mxu1 %v4989_v55  ;;  %v5159_v55 = vld [vmem:[#allocation20 + $0x520] sm:$0xff] }
0x116a   : > { %6898 = vmatpush1.bf16.msra.mxu1 %v6897_v24  ;;  %5469 = vmatprep.mubr.f32.mxu1 %v4992_v62  ;;  %v6931_v24 = vpack.c.bf16 %v5162_v47, %v5160_v46  ;;  %v5187_v46 = vld [vmem:[#allocation20 + $0x600] sm:$0xff]  ;;  %v5189_v47 = vld [vmem:[#allocation20 + $0x610] sm:$0xff] }
0x116b   : > { %6900 = vmatprep.subr.bf16.mxu1 %v6899_v54  ;;  %v5161_v54 = vld [vmem:[#allocation20 + $0x530] sm:$0xff] }
0x116c   : > { %v6933_v62 = vpack.c.bf16 %v5161_v54, %v5159_v55  ;;  %v5194_v55 = vld [vmem:[#allocation20 + $0x638] sm:$0xff]  ;;  %v6961_v54 = vpack.c.bf16 %v5189_v47, %v5187_v46  ;;  %v5224_v46 = vld [vmem:[#allocation20 + $0x728] sm:$0xff] }
0x116d   : > { %v5226_v47 = vld [vmem:[#allocation20 + $0x738] sm:$0xff] }
0x116e   : > { %6902 = vmatpush1.bf16.msra.mxu1 %v6901_v30  ;;  %v5165_v30 = vld [vmem:[#allocation20 + $0x550] sm:$0xff] }
0x116f   : > { %6904 = vmatprep.subr.bf16.mxu1 %v6903_v34  ;;  %v5168_v34 = vld [vmem:[#allocation20 + $0x568] sm:$0xff]  ;;  %v6937_v63 = vpack.c.bf16 %v5165_v30, %v5163_v38 }
0x1170   : > { %v6939_v31 = vpack.c.bf16 %v5170_v35, %v5168_v34  ;;  %v5196_v30 = vld [vmem:[#allocation20 + $0x648] sm:$0xff]  ;;  %v5198_v34 = vld [vmem:[#allocation20 + $0x658] sm:$0xff] }
0x1171   : > { %v6967_v35 = vpack.c.bf16 %v5198_v34, %v5196_v30  ;;  %v5229_v30 = vld [vmem:[#allocation20 + $0x750] sm:$0xff]  ;;  %v5232_v34 = vld [vmem:[#allocation20 + $0x768] sm:$0xff] }
0x1172   : > { %6906 = vmatpush1.bf16.msra.mxu1 %v6905_v36  ;;  %v5169_v36 = vld [vmem:[#allocation20 + $0x570] sm:$0xff] }
0x1173   : > { %6908 = vmatprep.subr.bf16.mxu1 %v6907_v10  ;;  %v5172_v10 = vld [vmem:[#allocation20 + $0x588] sm:$0xff]  ;;  %v6941_v7 = vpack.c.bf16 %v5169_v36, %v5167_v32  ;;  %v5202_v32 = vld [vmem:[#allocation20 + $0x678] sm:$0xff] }
0x1174   : > { %v6943_v44 = vpack.c.bf16 %v5174_v3, %v5172_v10  ;;  %v5199_v3 = vld [vmem:[#allocation20 + $0x660] sm:$0xff] }
0x1176   : > { %6910 = vmatpush1.bf16.msra.mxu1 %v6909_v8  ;;  %v5173_v8 = vld [vmem:[#allocation20 + $0x590] sm:$0xff] }
0x1177   : > { %6912 = vmatprep.subr.bf16.mxu1 %v6911_v11  ;;  %v5176_v11 = vld [vmem:[#allocation20 + $0x5a8] sm:$0xff]  ;;  %v6945_v13 = vpack.c.bf16 %v5173_v8, %v5171_v4  ;;  %v5206_v4 = vld [vmem:[#allocation20 + $0x698] sm:$0xff] }
0x1178   : > { %v6947_v41 = vpack.c.bf16 %v5178_v12, %v5176_v11  ;;  %v5203_v12 = vld [vmem:[#allocation20 + $0x680] sm:$0xff] }
0x117a   : > { %6914 = vmatpush1.bf16.msra.mxu1 %v6913_v9  ;;  %v5177_v9 = vld [vmem:[#allocation20 + $0x5b0] sm:$0xff] }
0x117b   : > { %6916 = vmatprep.subr.bf16.mxu1 %v6915_v15  ;;  %v5180_v15 = vld [vmem:[#allocation20 + $0x5c8] sm:$0xff]  ;;  %v6949_v16 = vpack.c.bf16 %v5177_v9, %v5175_v14  ;;  %v5210_v14 = vld [vmem:[#allocation20 + $0x6b8] sm:$0xff] }
0x117c   : > { %v6951_v18 = vpack.c.bf16 %v5182_v60, %v5180_v15  ;;  %v5207_v60 = vld [vmem:[#allocation20 + $0x6a0] sm:$0xff] }
0x117e   : > { %6918 = vmatpush1.bf16.msra.mxu1 %v6917_v6  ;;  %v5179_v6 = vld [vmem:[#allocation20 + $0x5c0] sm:$0xff] }
0x117f   : > { %6920 = vmatprep.subr.bf16.mxu1 %v6919_v52  ;;  %v5181_v52 = vld [vmem:[#allocation20 + $0x5d0] sm:$0xff] }
0x1180   : > { %v6953_v39 = vpack.c.bf16 %v5181_v52, %v5179_v6 }
0x1182   : > { %6922 = vmatpush1.bf16.msra.mxu1 %v6921_v22  ;;  %v4682_v22 = vrot.slane %v8723_v21, %v4681_v5  ;;  %v5212_v5 = vld [vmem:[#allocation20 + $0x6c8] sm:$0xff] }
0x1183   : > { %6924 = vmatprep.subr.bf16.mxu1 %v6923_v27  ;;  %v6955_v27 = vpack.c.bf16 %v5186_v51, %v5184_v61  ;;  %v5213_v61 = vld [vmem:[#allocation20 + $0x6d0] sm:$0xff]  ;;  %v5216_v51 = vld [vmem:[#allocation20 + $0x6e8] sm:$0xff] }
0x1184   : > { %v4912_v43 = vadd.f32 %v8737_v20, %v4682_v22  ;;  %v6985_v22 = vpack.c.bf16 %v5213_v61, %v5211_v0 }
0x1186   : > { %6926 = vmatpush1.bf16.msra.mxu1 %v6925_v28  ;;  %v5190_v28 = vld [vmem:[#allocation20 + $0x618] sm:$0xff]  ;;  %v4991_v58 = vmax.f32 %v4912_v43, 0.0  ;;  %v5219_v43 = vld [vmem:[#allocation20 + $0x700] sm:$0xff] }
0x1187   : > { %6928 = vmatprep.subr.bf16.mxu1 %v6927_v33  ;;  %v6957_v33 = vpack.c.bf16 %v5185_v37, %v5183_v23  ;;  %v6959_v45 = vpack.c.bf16 %v5190_v28, %v5188_v25  ;;  %v5215_v23 = vld [vmem:[#allocation20 + $0x6e0] sm:$0xff]  ;;  %v5217_v37 = vld [vmem:[#allocation20 + $0x6f0] sm:$0xff]  ;;  %v5222_v25 = vld [vmem:[#allocation20 + $0x718] sm:$0xff] }
0x1188   : > { %v6989_v28 = vpack.c.bf16 %v5217_v37, %v5215_v23  ;;  %v5251_v37 = vld [vmem:[%s8908_s5] sm:$0x3] }
0x118a   : > { %6930 = vmatpush1.bf16.msra.mxu1 %v6929_v49  ;;  %v4985_v49 = vadd.f32 %v8742_v1, %v4694_v2  ;;  %v5197_v1 = vld [vmem:[#allocation20 + $0x650] sm:$0xff]  ;;  %v5220_v2 = vld [vmem:[#allocation20 + $0x708] sm:$0xff] }
0x118b   : > { %6932 = vmatprep.subr.bf16.mxu1 %v6931_v24  ;;  %v5192_v24 = vld [vmem:[#allocation20 + $0x628] sm:$0xff] }
0x118c   : > { %v6963_v26 = vpack.c.bf16 %v5194_v55, %v5192_v24  ;;  %v4994_v38 = vmax.f32 %v4985_v49, 0.0  ;;  %v6995_v24 = vpack.c.bf16 %v5226_v47, %v5224_v46  ;;  %v5223_v55 = vld [vmem:[#allocation20 + $0x720] sm:$0xff] }
0x118e   : > { %6934 = vmatpush1.bf16.msra.mxu1 %v6933_v62  ;;  %v5191_v62 = vld [vmem:[#allocation20 + $0x620] sm:$0xff] }
0x118f   : > { %6936 = vmatprep.subr.bf16.mxu1 %v6935_v29  ;;  %v5193_v29 = vld [vmem:[#allocation20 + $0x630] sm:$0xff] }
0x1190   : > { %v6965_v20 = vpack.c.bf16 %v5193_v29, %v5191_v62 }
0x1192   : > { %6938 = vmatpush1.bf16.msra.mxu1 %v6937_v63  ;;  %v5195_v63 = vld [vmem:[#allocation20 + $0x640] sm:$0xff] }
0x1193   : > { %6940 = vmatprep.subr.bf16.mxu1 %v6939_v31  ;;  %v5200_v31 = vld [vmem:[#allocation20 + $0x668] sm:$0xff]  ;;  %v6969_v36 = vpack.c.bf16 %v5197_v1, %v5195_v63  ;;  %v5231_v1 = vld [vmem:[#allocation20 + $0x760] sm:$0xff] }
0x1194   : > { %v6971_v10 = vpack.c.bf16 %v5202_v32, %v5200_v31  ;;  %v5233_v31 = vld [vmem:[#allocation20 + $0x770] sm:$0xff]  ;;  %v5236_v32 = vld [vmem:[#allocation20 + $0x788] sm:$0xff] }
0x1196   : > { %6942 = vmatpush1.bf16.msra.mxu1 %v6941_v7  ;;  %v5201_v7 = vld [vmem:[#allocation20 + $0x670] sm:$0xff] }
0x1197   : > { %6944 = vmatprep.subr.bf16.mxu1 %v6943_v44  ;;  %v5204_v44 = vld [vmem:[#allocation20 + $0x688] sm:$0xff]  ;;  %v6973_v8 = vpack.c.bf16 %v5201_v7, %v5199_v3  ;;  %v5235_v7 = vld [vmem:[#allocation20 + $0x780] sm:$0xff] }
0x1198   : > { %v6975_v11 = vpack.c.bf16 %v5206_v4, %v5204_v44  ;;  %v5237_v44 = vld [vmem:[#allocation20 + $0x790] sm:$0xff]  ;;  %v5240_v4 = vld [vmem:[#allocation20 + $0x7a8] sm:$0xff] }
0x119a   : > { %6946 = vmatpush1.bf16.msra.mxu1 %v6945_v13  ;;  %v5205_v13 = vld [vmem:[#allocation20 + $0x690] sm:$0xff] }
0x119b   : > { %6948 = vmatprep.subr.bf16.mxu1 %v6947_v41  ;;  %v5208_v41 = vld [vmem:[#allocation20 + $0x6a8] sm:$0xff]  ;;  %v6977_v9 = vpack.c.bf16 %v5205_v13, %v5203_v12  ;;  %v5239_v13 = vld [vmem:[#allocation20 + $0x7a0] sm:$0xff] }
0x119c   : > { %v6979_v15 = vpack.c.bf16 %v5210_v14, %v5208_v41  ;;  %v5241_v41 = vld [vmem:[#allocation20 + $0x7b0] sm:$0xff]  ;;  %v5244_v14 = vld [vmem:[#allocation20 + $0x7c8] sm:$0xff] }
0x119e   : > { %6950 = vmatpush1.bf16.msra.mxu1 %v6949_v16  ;;  %v5209_v16 = vld [vmem:[#allocation20 + $0x6b0] sm:$0xff] }
0x119f   : > { %6952 = vmatprep.subr.bf16.mxu1 %v6951_v18  ;;  %v5214_v18 = vld [vmem:[#allocation20 + $0x6d8] sm:$0xff]  ;;  %v6981_v6 = vpack.c.bf16 %v5209_v16, %v5207_v60  ;;  %v4689_v60 = vsub.s32 6, %v8290_v57 }
0x11a0   : > { %v6983_v52 = vpack.c.bf16 %v5214_v18, %v5212_v5  ;;  %v5243_v5 = vld [vmem:[#allocation20 + $0x7c0] sm:$0xff]  ;;  %v5245_v18 = vld [vmem:[#allocation20 + $0x7d0] sm:$0xff] }
0x11a1   : > { %v7017_v0 = vpack.c.bf16 %v5245_v18, %v5243_v5  ;;  %v4690_v61 = vrot.slane %v8723_v21, %v4689_v60  ;;  %v5260_v21 = vrot.slane %v5251_v37, %v8476_v53 }
0x11a2   : > { %6954 = vmatpush1.bf16.msra.mxu1 %v6953_v39  ;;  %v5218_v39 = vld [vmem:[#allocation20 + $0x6f8] sm:$0xff] }
0x11a3   : > { %6956 = vmatprep.subr.bf16.mxu1 %v6955_v27  ;;  %v6987_v27 = vpack.c.bf16 %v5218_v39, %v5216_v51  ;;  %v5247_v39 = vld [vmem:[#allocation20 + $0x7e0] sm:$0xff]  ;;  %v4983_v23 = vadd.f32 %v8739_v42, %v4690_v61 }
0x11a5   : > { %v4993_v57 = vmax.f32 %v4983_v23, 0.0 }
0x11a6   : > { %6958 = vmatpush1.bf16.msra.mxu1 %v6957_v33  ;;  %v6991_v33 = vpack.c.bf16 %v5222_v25, %v5220_v2  ;;  %v5256_v2 = vrot.slane %v5251_v37, %v8473_v48 }
0x11a7   : > { %6960 = vmatprep.subr.bf16.mxu1 %v6959_v45  ;;  %v5221_v45 = vld [vmem:[#allocation20 + $0x710] sm:$0xff] }
0x11a8   : > { %v6993_v49 = vpack.c.bf16 %v5221_v45, %v5219_v43 }
0x11a9   : > { %5470 = vmatmul.mubr.f32.vlgmr.msra.gmra.mrb[24].mxu1 %v4991_v58  ;;  %v5228_v58 = vld [vmem:[#allocation20 + $0x748] sm:$0xff] }
0x11aa   : > { %6962 = vmatpush1.bf16.msra.mxu1 %v6961_v54  ;;  %5540 = vmatprep.mubr.f32.mxu1 %v4994_v38  ;;  %v5225_v54 = vld [vmem:[#allocation20 + $0x730] sm:$0xff]  ;;  %v5227_v38 = vld [vmem:[#allocation20 + $0x740] sm:$0xff] }
0x11ab   : > { %6964 = vmatprep.subr.bf16.mxu1 %v6963_v26  ;;  %v5230_v26 = vld [vmem:[#allocation20 + $0x758] sm:$0xff]  ;;  %v6997_v62 = vpack.c.bf16 %v5225_v54, %v5223_v55 }
0x11ac   : > { %v6999_v29 = vpack.c.bf16 %v5230_v26, %v5228_v58 }
0x11ae   : > { %6966 = vmatpush1.bf16.msra.mxu1 %v6965_v20  ;;  %v5234_v20 = vld [vmem:[#allocation20 + $0x778] sm:$0xff] }
0x11af   : > { %6968 = vmatprep.subr.bf16.mxu1 %v6967_v35  ;;  %v7001_v35 = vpack.c.bf16 %v5229_v30, %v5227_v38  ;;  %v7003_v63 = vpack.c.bf16 %v5234_v20, %v5232_v34 }
0x11b2   : > { %6970 = vmatpush1.bf16.msra.mxu1 %v6969_v36  ;;  %v5238_v36 = vld [vmem:[#allocation20 + $0x798] sm:$0xff] }
0x11b3   : > { %6972 = vmatprep.subr.bf16.mxu1 %v6971_v10  ;;  %v7005_v10 = vpack.c.bf16 %v5233_v31, %v5231_v1  ;;  %v7007_v3 = vpack.c.bf16 %v5238_v36, %v5236_v32 }
0x11b6   : > { %6974 = vmatpush1.bf16.msra.mxu1 %v6973_v8  ;;  %v5242_v8 = vld [vmem:[#allocation20 + $0x7b8] sm:$0xff] }
0x11b7   : > { %6976 = vmatprep.subr.bf16.mxu1 %v6975_v11  ;;  %v7009_v11 = vpack.c.bf16 %v5237_v44, %v5235_v7  ;;  %v7011_v12 = vpack.c.bf16 %v5242_v8, %v5240_v4 }
0x11ba   : > { %6978 = vmatpush1.bf16.msra.mxu1 %v6977_v9  ;;  %v5246_v9 = vld [vmem:[#allocation20 + $0x7d8] sm:$0xff] }
0x11bb   : > { %6980 = vmatprep.subr.bf16.mxu1 %v6979_v15  ;;  %v7013_v15 = vpack.c.bf16 %v5241_v41, %v5239_v13  ;;  %v7015_v16 = vpack.c.bf16 %v5246_v9, %v5244_v14 }
0x11be   : > { %6982 = vmatpush1.bf16.msra.mxu1 %v6981_v6  ;;  %v5248_v6 = vld [vmem:[#allocation20 + $0x7e8] sm:$0xff] }
0x11bf   : > { %6984 = vmatprep.subr.bf16.mxu1 %v6983_v52  ;;  %v5250_v52 = vld [vmem:[#allocation20 + $0x7f8] sm:$0xff] }
0x11c0   : > { %v7019_v51 = vpack.c.bf16 %v5250_v52, %v5248_v6 }
0x11c2   : > { %6986 = vmatpush1.bf16.msra.mxu1 %v6985_v22  ;;  %v5249_v22 = vld [vmem:[#allocation20 + $0x7f0] sm:$0xff] }
0x11c3   : > { %6988 = vmatprep.subr.bf16.mxu1 %v6987_v27  ;;  %v7021_v27 = vpack.c.bf16 %v5249_v22, %v5247_v39 }
0x11c6   : > { %6990 = vmatpush1.bf16.msra.mxu1 %v6989_v28 }
0x11c7   : > { %6992 = vmatprep.subr.bf16.mxu1 %v6991_v33 }
0x11ca   : > { %6994 = vmatpush1.bf16.msra.mxu1 %v6993_v49 }
0x11cb   : > { %6996 = vmatprep.subr.bf16.mxu1 %v6995_v24 }
0x11ce   : > { %6998 = vmatpush1.bf16.msra.mxu1 %v6997_v62 }
0x11cf   : > { %7000 = vmatprep.subr.bf16.mxu1 %v6999_v29 }
0x11d2   : > { %7002 = vmatpush1.bf16.msra.mxu1 %v7001_v35 }
0x11d3   : > { %7004 = vmatprep.subr.bf16.mxu1 %v7003_v63 }
0x11d6   : > { %7006 = vmatpush1.bf16.msra.mxu1 %v7005_v10 }
0x11d7   : > { %7008 = vmatprep.subr.bf16.mxu1 %v7007_v3 }
0x11da   : > { %7010 = vmatpush1.bf16.msra.mxu1 %v7009_v11 }
0x11db   : > { %7012 = vmatprep.subr.bf16.mxu1 %v7011_v12 }
0x11de   : > { %7014 = vmatpush1.bf16.msra.mxu1 %v7013_v15 }
0x11df   : > { %7016 = vmatprep.subr.bf16.mxu1 %v7015_v16 }
0x11e2   : > { %7018 = vmatpush1.bf16.msra.mxu1 %v7017_v0 }
0x11e3   : > { %7020 = vmatprep.subr.bf16.mxu1 %v7019_v51 }
0x11e6   : > { %7022 = vmatpush1.bf16.msra.mxu1 %v7021_v27 }
0x11e9   : > { %5541 = vmatmul.mubr.f32.vlgmr.msra.gmra.mrb[24].mxu1 %v4993_v57 }
0x12bc   : > { %v5542_v25 = vpop.f32.mrb[24].mxu1 }
0x12bd   : > { %v7023_v28 = vadd.f32 %v5542_v25, %v5256_v2  ;;  %v5544_v33 = vpop.f32.mrb[25].mxu1 }
0x12be   : > { %v7024_v43 = vadd.f32 %v5544_v33, %v5260_v21 }
0x12bf   : > { %v5547_v45 = vadd.f32 %v7023_v28, %v8710_v19 }
0x12c0   : > { %v5548_v42 = vadd.f32 %v7024_v43, %v8707_v17 }
0x12c2   : > { %v5549_v46 = vadd.f32 %v5548_v42, %v5547_v45 }
0x12c4   : > { %5550 = vadd.xlane.f32.xlu0 %v5549_v46 }
0x1351   : > { %v5551_v47 = vpop.xlane.xlu0 %5550 }
0x1352   : > { %v5552_v49 = vmul.f32 0.00390625, %v5551_v47 }
0x1354   : > { %v5553_v24 = vsub.f32 %v5547_v45, %v5552_v49  ;;  %v5554_v55 = vsub.f32 %v5548_v42, %v5552_v49 }
0x1356   : > { %v5555_v54 = vmul.f32 %v5553_v24, %v5553_v24  ;;  %v5556_v48 = vmul.f32 %v5554_v55, %v5554_v55 }
0x1358   : > { %v5557_v58 = vadd.f32 %v5556_v48, %v5555_v54 }
0x135a   : > { %5558 = vadd.xlane.f32.xlu0 %v5557_v58 }
0x13e7   : > { %v5559_v53 = vpop.xlane.xlu0 %5558 }
0x13e8   : > { %v5560_v26 = vmul.f32 0.00390625, %v5559_v53 }
0x13ea   : > { %v5561_v62 = vadd.f32 1e-05, %v5560_v26 }
0x13ec   : > { %7257 = vrsqrt.f32 %v5561_v62 }
0x13f6   : > { %v7258_v19 = vpop.eup %7257 }
0x13f7   : > { %v5563_v29 = vmul.f32 %v7258_v19, %v5553_v24  ;;  %v5564_v17 = vmul.f32 %v7258_v19, %v5554_v55 }
0x13f9   : > { %v5565_v38 = vmul.f32 %v5563_v29, %v8485_v50  ;;  %v5566_v30 = vmul.f32 %v5564_v17, %v8488_v56 }
0x13fb   : > { %v5567_v34 = vadd.f32 %v5565_v38, %v8491_v59  ;;  %v5568_v20 = vadd.f32 %v5566_v30, %v8494_v40 }
0x13fd   : > { %5569 = vst [vmem:[%s782_s30] sm:$0xff] %v5567_v34  ;;  %5570 = vst [vmem:[%s782_s30 + $0x8] sm:$0xff] %v5568_v20 }
0x13fe   : > { %7614 = shalt.err (!%p7611_p6)
}
0x13ff   : > { %s7615_s7 = scalar_lea.hbm %s8769_s23, 256  ;;  %s7619_s8 = scalar_lea.hbm %s8909_s4, 512 }
0x1400   : > { %p7616_p13 = scmp.ne.s32.totalorder %s8769_s23, %s7615_s7  ;;  %p7620_p0 = scmp.lt.u32.totalorder %s8769_s23, %s8909_s4 }
0x1401   : > { %p7621_p7 = scmp.lt.u32.totalorder %s7619_s8, %s7615_s7  ;;  %p7623_p2 = scmp.lt.u32.totalorder %s7615_s7, %s8769_s23 }
0x1402   : > { %p7617_p4 = pnand %p7616_p13, %p8910_p10 }
0x1403   : > { %p7622_p11 = por %p7621_p7, %p7620_p0 }
0x1404   : > { %p7618_p9 = pneg %p7617_p4 }
0x1405   : > { %p7624_p1 = por %p7623_p2, %p7622_p11 }
0x1407   : > { %p7625_p5 = pnand %p7624_p1, %p7618_p9 }
0x1409   : > { %7628 = shalt.err (!%p7625_p5)
}
0x140a   : > { %7075 = dma.vmem_to_hbm [thread:$0]  (%p8910_p10), %s8771_s6, 256, %s8769_s23, %s5572_s12  }
0x140b PF: > { %s5600_s30 = sand.u32 1, %s7691_s24   ;;  %p8911_p8 = scmp.ne.s32.totalorder %s8883_s19, 0 }
0x140c   : > { %p8912_p3 = scmp.ge.s32.totalorder %s7711_s29, 2  ;;  %s5601_s27 = scalar_lea.sflag [#allocation4], %s5600_s30 }
0x140e   : > { %p7116_p12 = pnand %p8912_p3, %p8911_p8 }
0x1410   : > { %7686 = dma.done.wait (!%p7116_p12), %s5601_s27, 256  }
0x1411   : > { %7688 = vsyncadd (!%p7116_p12), %s5601_s27, 4294967040  ;;  %s41_s29 = sadd.s32 1, %s7711_s29   ;;  %s8913_s24 = smov %s7695_s25 }
0x1412   : > { %p38_p6 = scmp.ge.s32.totalorder %s41_s29, 4   ;;  %s8914_s25 = smov %s7699_s26 }
0x1413   : > { %s8915_s26 = smov %s8133_s2  ;;  %s8916_s27 = smov %s7707_s28 }
0x1414   : > { %s8917_s28 = smov %s8919_s17  ;;  %40 = sbr.rel (!%p38_p6) target bundleno = 29 (0x1d), region = 190 }
0x141b   :  { %5606 = vsyncpa [#allocation3], 1 }
0x141c   :  { %5608 = vsyncpa [#allocation3 + $0x1], 1 }
0x141d   :  { %5609 = vsyncpa [#allocation6], 1 }
0x141e   :  { %5611 = vsyncpa [#allocation6 + $0x1], 1 }
0x141f   :  { %5612 = vsyncpa [#allocation9], 1 }
0x1420   :  { %5613 = vsyncpa [#allocation12], 1 }
0x1421   :  { %5614 = vsyncpa [#allocation15], 1 }
0x1422   :  { %5615 = vsyncpa [#allocation18], 1 }
0x1423   :  { %5616 = vsyncpa [#allocation21], 1 }
0x1424   :  { %5617 = vsyncpa [#allocation4], 1 }
0x1425   :  { %5619 = vsyncpa [#allocation4 + $0x1], 1 }

</bundles_post_ra>
